<compile_context>
chip_gen: v6e
topology: v6e:2x2x1
jax: 0.10.0
libtpu: 0.0.40
codegen_flags: <defaults>
</compile_context>

<pallas_src>
import math

import jax
import jax.numpy as jnp
from jax import lax
from jax.experimental import pallas as pl
from jax.experimental.pallas import tpu as pltpu


# --------------------------------------------------------------------------
# kernel
# --------------------------------------------------------------------------
def _make_block_kernel(Nb, Ho, Wo, Cin, Cmid, Cout, add_shortcut, compute_dtype):
    HoWo = Ho * Wo
    Hp2, Wp2 = Ho + 2, Wo + 2

    def kernel(p1_ref, w1_ref, s1_ref, b1_ref, w2_ref, s2_ref, b2_ref,
               o_ref, zpad_ref):
        # ----- conv1: single im2col matmul (Nb*Ho*Wo, 9*Cin)@(9*Cin, Cmid) --
        p1 = p1_ref[...].reshape(Nb * HoWo, 9 * Cin)            # bf16
        acc1 = jnp.dot(p1, w1_ref[...], preferred_element_type=jnp.float32)
        z1 = jnp.maximum(acc1 * s1_ref[...] + b1_ref[...], 0.0)  # bn1 + relu

        # ----- stage z1 into zero-padded VMEM scratch for conv2 -------------
        # Only the 1-pixel border needs zeroing; the interior is overwritten
        # every grid step (cheap, and safe under "parallel" megacore sharding
        # since it does not rely on a program_id==0 init step).
        zpad_ref[:, 0:1, :, :] = jnp.zeros((Nb, 1, Wp2, Cmid), jnp.float32)
        zpad_ref[:, Ho + 1:Ho + 2, :, :] = jnp.zeros((Nb, 1, Wp2, Cmid),
                                                     jnp.float32)
        zpad_ref[:, :, 0:1, :] = jnp.zeros((Nb, Hp2, 1, Cmid), jnp.float32)
        zpad_ref[:, :, Wo + 1:Wo + 2, :] = jnp.zeros((Nb, Hp2, 1, Cmid),
                                                     jnp.float32)
        zpad_ref[:, 1:Ho + 1, 1:Wo + 1, :] = z1.reshape(Nb, Ho, Wo, Cmid)

        # ----- conv2: in-kernel im2col (contiguous slices) + single matmul --
        # NOTE: at full ResNet56 sizes, tile the Ho*Wo (M) dimension with a
        # fori_loop if the concatenated patch exceeds the vreg budget.
        taps = [zpad_ref[:, kh:kh + Ho, kw:kw + Wo, :]
                for kh in range(3) for kw in range(3)]
        p2 = jnp.concatenate(taps, axis=-1)                     # (Nb,Ho,Wo,9*Cmid)
        p2 = p2.reshape(Nb * HoWo, 9 * Cmid).astype(compute_dtype)
        acc2 = jnp.dot(p2, w2_ref[...], preferred_element_type=jnp.float32)
        z2 = acc2 * s2_ref[...] + b2_ref[...]                    # bn2

        # ----- identity shortcut -------------------------------------------
        # For stride 1, the center tap (kh=kw=1) of the conv1 im2col patch is
        # exactly the original x, so no extra input / interior slice needed.
        if add_shortcut:
            z2 = z2 + p1[:, 4 * Cin:5 * Cin].astype(jnp.float32)

        z2 = jnp.maximum(z2, 0.0)
        o_ref[...] = z2.reshape(Nb, HoWo, Cout).astype(o_ref.dtype)

    return kernel


def _pick_batch_block(N, per_image_bytes, budget_bytes):
    """Largest divisor of N whose per-step VMEM footprint fits the budget."""
    nb = 1
    for cand in range(1, N + 1):
        if N % cand == 0 and cand * per_image_bytes <= budget_bytes:
            nb = cand
    return nb


# --------------------------------------------------------------------------
# params
# --------------------------------------------------------------------------
def init_params(key, inp, mip, oup):
    """Deterministic init matching BaseBlock_ResNet56.weights_init()."""
    k1, k2 = jax.random.split(key)
    std1 = math.sqrt(2.0 / (3 * 3 * mip))
    std2 = math.sqrt(2.0 / (3 * 3 * oup))
    w1 = jax.random.normal(k1, (mip, inp, 3, 3), jnp.float32) * std1   # OIHW
    w2 = jax.random.normal(k2, (oup, mip, 3, 3), jnp.float32) * std2   # OIHW
    bn1 = dict(gamma=jnp.ones((mip,), jnp.float32),
               beta=jnp.zeros((mip,), jnp.float32),
               mean=jnp.zeros((mip,), jnp.float32),
               var=jnp.ones((mip,), jnp.float32))
    bn2 = dict(gamma=jnp.ones((oup,), jnp.float32),
               beta=jnp.zeros((oup,), jnp.float32),
               mean=jnp.zeros((oup,), jnp.float32),
               var=jnp.ones((oup,), jnp.float32))
    return dict(w1=w1, w2=w2, bn1=bn1, bn2=bn2)


# --------------------------------------------------------------------------
# forward (NHWC core + NCHW wrapper)
# --------------------------------------------------------------------------
def base_block_resnet56_forward_nhwc(x_nhwc, params, subsample=False,
                                     shortcuts=False, eps=1e-5,
                                     compute_dtype=jnp.bfloat16):
    N, H, W, Cin = x_nhwc.shape
    stride = 2 if subsample else 1
    Cmid = params['w1'].shape[0]
    Cout = params['w2'].shape[0]
    Ho = (H + 2 - 3) // stride + 1
    Wo = (W + 2 - 3) // stride + 1
    HoWo = Ho * Wo

    # conv1 im2col built with cheap XLA strided slices in the wrapper. This
    # handles stride 1 and 2 uniformly and keeps the kernel free of strided
    # ref indexing.
    xq = x_nhwc.astype(compute_dtype)
    x_pad = jnp.pad(xq, ((0, 0), (1, 1), (1, 1), (0, 0)))
    taps = []
    for kh in range(3):
        for kw in range(3):
            taps.append(x_pad[:, kh:kh + stride * (Ho - 1) + 1:stride,
                              kw:kw + stride * (Wo - 1) + 1:stride, :])
    patches = jnp.concatenate(taps, axis=-1).reshape(N, HoWo, 9 * Cin)

    # OIHW -> (kh*kw*I, O), compute dtype for the MXU.
    w1 = jnp.transpose(params['w1'], (2, 3, 1, 0)).reshape(9 * Cin, Cmid)
    w2 = jnp.transpose(params['w2'], (2, 3, 1, 0)).reshape(9 * Cmid, Cout)
    w1 = w1.astype(compute_dtype)
    w2 = w2.astype(compute_dtype)

    def fold_bn(bn, C):
        scale = (bn['gamma'] / jnp.sqrt(bn['var'] + eps)).astype(jnp.float32)
        bias = (bn['beta'] - bn['mean'] * scale).astype(jnp.float32)
        return scale.reshape(1, C), bias.reshape(1, C)

    s1, b1 = fold_bn(params['bn1'], Cmid)
    s2, b2 = fold_bn(params['bn2'], Cout)

    # PyTorch shortcut(): only add x when z.shape == x.shape.
    add_shortcut = bool(shortcuts) and (stride == 1) and (Cin == Cout)

    # Pick how many images to process per grid step against a VMEM budget
    # (double-buffered in/out blocks + scratch + im2col temporaries).
    esz = jnp.dtype(compute_dtype).itemsize
    per_img = (2 * HoWo * 9 * Cin * esz
               + 2 * HoWo * Cout * 4
               + (Ho + 2) * (Wo + 2) * Cmid * 4
               + 2 * HoWo * 9 * Cmid * 4)
    Nb = _pick_batch_block(N, per_img, budget_bytes=12 * 1024 * 1024)

    kernel = _make_block_kernel(Nb, Ho, Wo, Cin, Cmid, Cout, add_shortcut,
                                compute_dtype)

    out = pl.pallas_call(
        kernel,
        out_shape=jax.ShapeDtypeStruct((N, HoWo, Cout), jnp.float32),
        grid=(N // Nb,),
        in_specs=[
            pl.BlockSpec((Nb, HoWo, 9 * Cin), lambda n: (n, 0, 0)),
            pl.BlockSpec((9 * Cin, Cmid), lambda n: (0, 0)),
            pl.BlockSpec((1, Cmid), lambda n: (0, 0)),
            pl.BlockSpec((1, Cmid), lambda n: (0, 0)),
            pl.BlockSpec((9 * Cmid, Cout), lambda n: (0, 0)),
            pl.BlockSpec((1, Cout), lambda n: (0, 0)),
            pl.BlockSpec((1, Cout), lambda n: (0, 0)),
        ],
        out_specs=pl.BlockSpec((Nb, HoWo, Cout), lambda n: (n, 0, 0)),
        scratch_shapes=[pltpu.VMEM((Nb, Ho + 2, Wo + 2, Cmid), jnp.float32)],
        compiler_params=pltpu.CompilerParams(
            dimension_semantics=("parallel",),       # batch axis, no carry
            vmem_limit_bytes=64 * 1024 * 1024),
    )(patches, w1, s1, b1, w2, s2, b2)

    return out.reshape(N, Ho, Wo, Cout)


def base_block_resnet56_forward(x_nchw, params, subsample=False,
                                shortcuts=False, eps=1e-5,
                                compute_dtype=jnp.bfloat16):
    """NCHW (PyTorch-layout) wrapper. Prefer the NHWC entry point when
    chaining blocks to avoid per-block layout transposes."""
    x_nhwc = jnp.transpose(x_nchw, (0, 2, 3, 1)).astype(jnp.float32)
    y_nhwc = base_block_resnet56_forward_nhwc(
        x_nhwc, params, subsample=subsample, shortcuts=shortcuts,
        eps=eps, compute_dtype=compute_dtype)
    return jnp.transpose(y_nhwc, (0, 3, 1, 2))


# --------------------------------------------------------------------------
# reference (pure JAX, lax.conv) with matching bf16 quantization points
# --------------------------------------------------------------------------
def ref_forward(x_nchw, params, subsample=False, shortcuts=False, eps=1e-5,
                compute_dtype=jnp.bfloat16):
    stride = 2 if subsample else 1
    f32 = jnp.float32
    x = jnp.transpose(x_nchw, (0, 2, 3, 1)).astype(f32)
    xq = x.astype(compute_dtype).astype(f32)
    w1 = jnp.transpose(params['w1'], (2, 3, 1, 0)).astype(compute_dtype).astype(f32)
    w2 = jnp.transpose(params['w2'], (2, 3, 1, 0)).astype(compute_dtype).astype(f32)
    dn = ('NHWC', 'HWIO', 'NHWC')
    z = lax.conv_general_dilated(xq, w1, (stride, stride), ((1, 1), (1, 1)),
                                 dimension_numbers=dn,
                                 precision=lax.Precision.HIGHEST)
    bn1 = params['bn1']
    z = (z - bn1['mean']) / jnp.sqrt(bn1['var'] + eps) * bn1['gamma'] + bn1['beta']
    z = jnp.maximum(z, 0.0)
    zq = z.astype(compute_dtype).astype(f32)
    z = lax.conv_general_dilated(zq, w2, (1, 1), ((1, 1), (1, 1)),
                                 dimension_numbers=dn,
                                 precision=lax.Precision.HIGHEST)
    bn2 = params['bn2']
    z = (z - bn2['mean']) / jnp.sqrt(bn2['var'] + eps) * bn2['gamma'] + bn2['beta']
    if shortcuts and z.shape == x.shape:
        z = z + xq
    z = jnp.maximum(z, 0.0)
    return jnp.transpose(z, (0, 3, 1, 2))


# --------------------------------------------------------------------------
# self-test
# --------------------------------------------------------------------------
if __name__ == "__main__":
    key = jax.random.PRNGKey(0)
    kx, kp = jax.random.split(key)

    N, Cin, H, W = 2, 4, 16, 16
    Cmid, Cout = 8, 4

    x = jax.random.normal(kx, (N, Cin, H, W), jnp.float32)
    params = init_params(kp, Cin, Cmid, Cout)

    # case 1: no subsample, shortcut active (Cin == Cout, stride 1)
    y1 = base_block_resnet56_forward(x, params, subsample=False, shortcuts=True)
    jax.block_until_ready(y1)
    r1 = ref_forward(x, params, subsample=False, shortcuts=True)
    assert y1.shape == (N, Cout, H, W)
    assert jnp.allclose(y1, r1, atol=2e-3, rtol=2e-3), "mismatch (stride 1)"

    # case 2: subsample (stride-2 conv1); shortcut skipped (shape mismatch)
    y2 = base_block_resnet56_forward(x, params, subsample=True, shortcuts=True)
    jax.block_until_ready(y2)
    r2 = ref_forward(x, params, subsample=True, shortcuts=True)
    assert y2.shape == (N, Cout, H // 2, W // 2)
    assert jnp.allclose(y2, r2, atol=2e-3, rtol=2e-3), "mismatch (stride 2)"

    print("KERNEL_OK")
</pallas_src>

<mosaic_0001>
module attributes {stable_mosaic.version = 11 : i64} {
  func.func @kernel(%arg0: i32, %arg1: memref<2x256x36xbf16, #tpu.memory_space<vmem>>, %arg2: memref<36x8xbf16, #tpu.memory_space<vmem>>, %arg3: memref<1x8xf32, #tpu.memory_space<vmem>>, %arg4: memref<1x8xf32, #tpu.memory_space<vmem>>, %arg5: memref<72x4xbf16, #tpu.memory_space<vmem>>, %arg6: memref<1x4xf32, #tpu.memory_space<vmem>>, %arg7: memref<1x4xf32, #tpu.memory_space<vmem>>, %arg8: memref<2x256x4xf32, #tpu.memory_space<vmem>>, %arg9: memref<2x18x18x8xf32, #tpu.memory_space<vmem>>) attributes {dimension_semantics = [#tpu.dimension_semantics<parallel>], iteration_bounds = array<i64: 1>, scalar_prefetch = 0 : i64, scratch_operands = 1 : i64, tpu.core_type = #tpu.core_type<tc>, window_params = [{transform_indices = @transform_0, window_bounds = array<i64: 2, 256, 36>}, {pipeline_mode = #tpu.pipeline_mode<synchronous>, transform_indices = @transform_1, window_bounds = array<i64: 36, 8>}, {pipeline_mode = #tpu.pipeline_mode<synchronous>, transform_indices = @transform_2, window_bounds = array<i64: 1, 8>}, {pipeline_mode = #tpu.pipeline_mode<synchronous>, transform_indices = @transform_3, window_bounds = array<i64: 1, 8>}, {pipeline_mode = #tpu.pipeline_mode<synchronous>, transform_indices = @transform_4, window_bounds = array<i64: 72, 4>}, {pipeline_mode = #tpu.pipeline_mode<synchronous>, transform_indices = @transform_5, window_bounds = array<i64: 1, 4>}, {pipeline_mode = #tpu.pipeline_mode<synchronous>, transform_indices = @transform_6, window_bounds = array<i64: 1, 4>}, {transform_indices = @transform_7, window_bounds = array<i64: 2, 256, 4>}]} {
    %c0 = arith.constant 0 : index
    %c0_0 = arith.constant 0 : index
    %c0_1 = arith.constant 0 : index
    %0 = vector.load %arg1[%c0, %c0_0, %c0_1] : memref<2x256x36xbf16, #tpu.memory_space<vmem>>, vector<2x256x36xbf16>
    %1 = vector.shape_cast %0 : vector<2x256x36xbf16> to vector<512x36xbf16>
    %c0_2 = arith.constant 0 : index
    %c0_3 = arith.constant 0 : index
    %2 = vector.load %arg2[%c0_2, %c0_3] : memref<36x8xbf16, #tpu.memory_space<vmem>>, vector<36x8xbf16>
    %cst = arith.constant dense<0.000000e+00> : vector<512x8xf32>
    %3 = tpu.matmul %1, %2, %cst {dimension_numbers = #tpu.dot_dimension_numbers<[1], [0], [0], [1], [0, 0, 1, 1], [], []>} : vector<512x36xbf16>, vector<36x8xbf16>, vector<512x8xf32> -> vector<512x8xf32>
    %c0_4 = arith.constant 0 : index
    %c0_5 = arith.constant 0 : index
    %4 = vector.load %arg3[%c0_4, %c0_5] : memref<1x8xf32, #tpu.memory_space<vmem>>, vector<1x8xf32>
    %5 = vector.broadcast %4 : vector<1x8xf32> to vector<512x8xf32>
    %6 = arith.mulf %3, %5 : vector<512x8xf32>
    %c0_6 = arith.constant 0 : index
    %c0_7 = arith.constant 0 : index
    %7 = vector.load %arg4[%c0_6, %c0_7] : memref<1x8xf32, #tpu.memory_space<vmem>>, vector<1x8xf32>
    %8 = vector.broadcast %7 : vector<1x8xf32> to vector<512x8xf32>
    %9 = arith.addf %6, %8 : vector<512x8xf32>
    %cst_8 = arith.constant 0.000000e+00 : f32
    %10 = vector.broadcast %cst_8 : f32 to vector<512x8xf32>
    %11 = arith.maximumf %9, %10 : vector<512x8xf32>
    %cst_9 = arith.constant 0.000000e+00 : f32
    %12 = vector.broadcast %cst_9 : f32 to vector<2x1x18x8xf32>
    %c0_10 = arith.constant 0 : index
    %c0_11 = arith.constant 0 : index
    %c0_12 = arith.constant 0 : index
    %c0_13 = arith.constant 0 : index
    %13 = vector.load %arg9[%c0_10, %c0_11, %c0_12, %c0_13] : memref<2x18x18x8xf32, #tpu.memory_space<vmem>>, vector<2x1x18x8xf32>
    tpu.vector_store %arg9[%c0_10, %c0_11, %c0_12, %c0_13], %12 {strides = array<i32>} : memref<2x18x18x8xf32, #tpu.memory_space<vmem>>, vector<2x1x18x8xf32>,
    %cst_14 = arith.constant 0.000000e+00 : f32
    %14 = vector.broadcast %cst_14 : f32 to vector<2x1x18x8xf32>
    %c0_15 = arith.constant 0 : index
    %c17 = arith.constant 17 : index
    %c0_16 = arith.constant 0 : index
    %c0_17 = arith.constant 0 : index
    %15 = vector.load %arg9[%c0_15, %c17, %c0_16, %c0_17] : memref<2x18x18x8xf32, #tpu.memory_space<vmem>>, vector<2x1x18x8xf32>
    tpu.vector_store %arg9[%c0_15, %c17, %c0_16, %c0_17], %14 {strides = array<i32>} : memref<2x18x18x8xf32, #tpu.memory_space<vmem>>, vector<2x1x18x8xf32>,
    %cst_18 = arith.constant 0.000000e+00 : f32
    %16 = vector.broadcast %cst_18 : f32 to vector<2x18x1x8xf32>
    %c0_19 = arith.constant 0 : index
    %c0_20 = arith.constant 0 : index
    %c0_21 = arith.constant 0 : index
    %c0_22 = arith.constant 0 : index
    %17 = vector.load %arg9[%c0_19, %c0_20, %c0_21, %c0_22] : memref<2x18x18x8xf32, #tpu.memory_space<vmem>>, vector<2x18x1x8xf32>
    tpu.vector_store %arg9[%c0_19, %c0_20, %c0_21, %c0_22], %16 {strides = array<i32>} : memref<2x18x18x8xf32, #tpu.memory_space<vmem>>, vector<2x18x1x8xf32>,
    %cst_23 = arith.constant 0.000000e+00 : f32
    %18 = vector.broadcast %cst_23 : f32 to vector<2x18x1x8xf32>
    %c0_24 = arith.constant 0 : index
    %c0_25 = arith.constant 0 : index
    %c17_26 = arith.constant 17 : index
    %c0_27 = arith.constant 0 : index
    %19 = vector.load %arg9[%c0_24, %c0_25, %c17_26, %c0_27] : memref<2x18x18x8xf32, #tpu.memory_space<vmem>>, vector<2x18x1x8xf32>
    tpu.vector_store %arg9[%c0_24, %c0_25, %c17_26, %c0_27], %18 {strides = array<i32>} : memref<2x18x18x8xf32, #tpu.memory_space<vmem>>, vector<2x18x1x8xf32>,
    %20 = vector.shape_cast %11 : vector<512x8xf32> to vector<2x16x16x8xf32>
    %c0_28 = arith.constant 0 : index
    %c1 = arith.constant 1 : index
    %c1_29 = arith.constant 1 : index
    %c0_30 = arith.constant 0 : index
    %21 = vector.load %arg9[%c0_28, %c1, %c1_29, %c0_30] : memref<2x18x18x8xf32, #tpu.memory_space<vmem>>, vector<2x16x16x8xf32>
    tpu.vector_store %arg9[%c0_28, %c1, %c1_29, %c0_30], %20 {strides = array<i32>} : memref<2x18x18x8xf32, #tpu.memory_space<vmem>>, vector<2x16x16x8xf32>,
    %c0_31 = arith.constant 0 : index
    %c0_32 = arith.constant 0 : index
    %c0_33 = arith.constant 0 : index
    %c0_34 = arith.constant 0 : index
    %22 = vector.load %arg9[%c0_31, %c0_32, %c0_33, %c0_34] : memref<2x18x18x8xf32, #tpu.memory_space<vmem>>, vector<2x16x16x8xf32>
    %c0_35 = arith.constant 0 : index
    %c0_36 = arith.constant 0 : index
    %c1_37 = arith.constant 1 : index
    %c0_38 = arith.constant 0 : index
    %23 = vector.load %arg9[%c0_35, %c0_36, %c1_37, %c0_38] : memref<2x18x18x8xf32, #tpu.memory_space<vmem>>, vector<2x16x16x8xf32>
    %c0_39 = arith.constant 0 : index
    %c0_40 = arith.constant 0 : index
    %c2 = arith.constant 2 : index
    %c0_41 = arith.constant 0 : index
    %24 = vector.load %arg9[%c0_39, %c0_40, %c2, %c0_41] : memref<2x18x18x8xf32, #tpu.memory_space<vmem>>, vector<2x16x16x8xf32>
    %c0_42 = arith.constant 0 : index
    %c1_43 = arith.constant 1 : index
    %c0_44 = arith.constant 0 : index
    %c0_45 = arith.constant 0 : index
    %25 = vector.load %arg9[%c0_42, %c1_43, %c0_44, %c0_45] : memref<2x18x18x8xf32, #tpu.memory_space<vmem>>, vector<2x16x16x8xf32>
    %c0_46 = arith.constant 0 : index
    %c1_47 = arith.constant 1 : index
    %c1_48 = arith.constant 1 : index
    %c0_49 = arith.constant 0 : index
    %26 = vector.load %arg9[%c0_46, %c1_47, %c1_48, %c0_49] : memref<2x18x18x8xf32, #tpu.memory_space<vmem>>, vector<2x16x16x8xf32>
    %c0_50 = arith.constant 0 : index
    %c1_51 = arith.constant 1 : index
    %c2_52 = arith.constant 2 : index
    %c0_53 = arith.constant 0 : index
    %27 = vector.load %arg9[%c0_50, %c1_51, %c2_52, %c0_53] : memref<2x18x18x8xf32, #tpu.memory_space<vmem>>, vector<2x16x16x8xf32>
    %c0_54 = arith.constant 0 : index
    %c2_55 = arith.constant 2 : index
    %c0_56 = arith.constant 0 : index
    %c0_57 = arith.constant 0 : index
    %28 = vector.load %arg9[%c0_54, %c2_55, %c0_56, %c0_57] : memref<2x18x18x8xf32, #tpu.memory_space<vmem>>, vector<2x16x16x8xf32>
    %c0_58 = arith.constant 0 : index
    %c2_59 = arith.constant 2 : index
    %c1_60 = arith.constant 1 : index
    %c0_61 = arith.constant 0 : index
    %29 = vector.load %arg9[%c0_58, %c2_59, %c1_60, %c0_61] : memref<2x18x18x8xf32, #tpu.memory_space<vmem>>, vector<2x16x16x8xf32>
    %c0_62 = arith.constant 0 : index
    %c2_63 = arith.constant 2 : index
    %c2_64 = arith.constant 2 : index
    %c0_65 = arith.constant 0 : index
    %30 = vector.load %arg9[%c0_62, %c2_63, %c2_64, %c0_65] : memref<2x18x18x8xf32, #tpu.memory_space<vmem>>, vector<2x16x16x8xf32>
    %31 = tpu.concatenate %22, %23, %24, %25, %26, %27, %28, %29, %30 in 3 : vector<2x16x16x8xf32>, vector<2x16x16x8xf32>, vector<2x16x16x8xf32>, vector<2x16x16x8xf32>, vector<2x16x16x8xf32>, vector<2x16x16x8xf32>, vector<2x16x16x8xf32>, vector<2x16x16x8xf32>, vector<2x16x16x8xf32> -> vector<2x16x16x72xf32>
    %32 = vector.shape_cast %31 : vector<2x16x16x72xf32> to vector<512x72xf32>
    %33 = arith.truncf %32 : vector<512x72xf32> to vector<512x72xbf16>
    %c0_66 = arith.constant 0 : index
    %c0_67 = arith.constant 0 : index
    %34 = vector.load %arg5[%c0_66, %c0_67] : memref<72x4xbf16, #tpu.memory_space<vmem>>, vector<72x4xbf16>
    %cst_68 = arith.constant dense<0.000000e+00> : vector<512x4xf32>
    %35 = tpu.matmul %33, %34, %cst_68 {dimension_numbers = #tpu.dot_dimension_numbers<[1], [0], [0], [1], [0, 0, 1, 1], [], []>} : vector<512x72xbf16>, vector<72x4xbf16>, vector<512x4xf32> -> vector<512x4xf32>
    %c0_69 = arith.constant 0 : index
    %c0_70 = arith.constant 0 : index
    %36 = vector.load %arg6[%c0_69, %c0_70] : memref<1x4xf32, #tpu.memory_space<vmem>>, vector<1x4xf32>
    %37 = vector.broadcast %36 : vector<1x4xf32> to vector<512x4xf32>
    %38 = arith.mulf %35, %37 : vector<512x4xf32>
    %c0_71 = arith.constant 0 : index
    %c0_72 = arith.constant 0 : index
    %39 = vector.load %arg7[%c0_71, %c0_72] : memref<1x4xf32, #tpu.memory_space<vmem>>, vector<1x4xf32>
    %40 = vector.broadcast %39 : vector<1x4xf32> to vector<512x4xf32>
    %41 = arith.addf %38, %40 : vector<512x4xf32>
    %42 = vector.extract_strided_slice %1 {offsets = [0, 16], sizes = [512, 4], strides = [1, 1]} : vector<512x36xbf16> to vector<512x4xbf16>
    %43 = arith.extf %42 : vector<512x4xbf16> to vector<512x4xf32>
    %44 = arith.addf %41, %43 : vector<512x4xf32>
    %cst_73 = arith.constant 0.000000e+00 : f32
    %45 = vector.broadcast %cst_73 : f32 to vector<512x4xf32>
    %46 = arith.maximumf %44, %45 : vector<512x4xf32>
    %47 = vector.shape_cast %46 : vector<512x4xf32> to vector<2x256x4xf32>
    %c0_74 = arith.constant 0 : index
    %c0_75 = arith.constant 0 : index
    %c0_76 = arith.constant 0 : index
    %48 = vector.load %arg8[%c0_74, %c0_75, %c0_76] : memref<2x256x4xf32, #tpu.memory_space<vmem>>, vector<2x256x4xf32>
    tpu.vector_store %arg8[%c0_74, %c0_75, %c0_76], %47 {strides = array<i32>} : memref<2x256x4xf32, #tpu.memory_space<vmem>>, vector<2x256x4xf32>,
    return
  }
  func.func @transform_0(%arg0: i32) -> (i32, i32, i32) {
    %c0_i32 = arith.constant 0 : i32
    %c0_i32_0 = arith.constant 0 : i32
    %c0_i32_1 = arith.constant 0 : i32
    return %arg0, %c0_i32, %c0_i32_0 : i32, i32, i32
  }
  func.func @transform_1(%arg0: i32) -> (i32, i32) {
    %c0_i32 = arith.constant 0 : i32
    %c0_i32_0 = arith.constant 0 : i32
    %c0_i32_1 = arith.constant 0 : i32
    return %c0_i32, %c0_i32_0 : i32, i32
  }
  func.func @transform_2(%arg0: i32) -> (i32, i32) {
    %c0_i32 = arith.constant 0 : i32
    %c0_i32_0 = arith.constant 0 : i32
    %c0_i32_1 = arith.constant 0 : i32
    return %c0_i32, %c0_i32_0 : i32, i32
  }
  func.func @transform_3(%arg0: i32) -> (i32, i32) {
    %c0_i32 = arith.constant 0 : i32
    %c0_i32_0 = arith.constant 0 : i32
    %c0_i32_1 = arith.constant 0 : i32
    return %c0_i32, %c0_i32_0 : i32, i32
  }
  func.func @transform_4(%arg0: i32) -> (i32, i32) {
    %c0_i32 = arith.constant 0 : i32
    %c0_i32_0 = arith.constant 0 : i32
    %c0_i32_1 = arith.constant 0 : i32
    return %c0_i32, %c0_i32_0 : i32, i32
  }
  func.func @transform_5(%arg0: i32) -> (i32, i32) {
    %c0_i32 = arith.constant 0 : i32
    %c0_i32_0 = arith.constant 0 : i32
    %c0_i32_1 = arith.constant 0 : i32
    return %c0_i32, %c0_i32_0 : i32, i32
  }
  func.func @transform_6(%arg0: i32) -> (i32, i32) {
    %c0_i32 = arith.constant 0 : i32
    %c0_i32_0 = arith.constant 0 : i32
    %c0_i32_1 = arith.constant 0 : i32
    return %c0_i32, %c0_i32_0 : i32, i32
  }
  func.func @transform_7(%arg0: i32) -> (i32, i32, i32) {
    %c0_i32 = arith.constant 0 : i32
    %c0_i32_0 = arith.constant 0 : i32
    %c0_i32_1 = arith.constant 0 : i32
    return %arg0, %c0_i32, %c0_i32_0 : i32, i32, i32
  }
}

</mosaic_0001>

<bundles_post_ra>
// kernel: tpu_custom_call.1
= control target key start
LH: loop header
LB: loop body
LE: loop exit
PB: predicated region body
PF: predicated region fallthrough
CT: control target
= control target key end

     0   :  { %vm368_vm0 = vcmask 1041408   ;;  %vm271_vm1 = vcmask 293888   ;;  %vm867_vm2 = vcmask 64512   ;;  %vm870_vm3 = vcmask 58368   ;;  %s7252_s18 = smov 8   ;;  %s7253_s23 = smov 16   ;;  %s11046_s1 = inlined_call_operand.vmem [shape: bf16[36,8], index: 1, kind: input, shape index: {}]   ;;  %s11047_s0 = inlined_call_operand.vmem [shape: bf16[2,256,36], index: 0, kind: input, shape index: {}]   ;;  %s11048_s2 = inlined_call_operand.vmem [shape: f32[1,8], index: 2, kind: input, shape index: {}]   ;;  %s11049_s3 = inlined_call_operand.vmem [shape: f32[1,8], index: 3, kind: input, shape index: {}]   ;;  %s11050_s4 = inlined_call_operand.vmem [shape: bf16[72,4], index: 4, kind: input, shape index: {}]   ;;  %s11051_s5 = inlined_call_operand.vmem [shape: f32[1,4], index: 5, kind: input, shape index: {}]   ;;  %s11052_s6 = inlined_call_operand.vmem [shape: f32[1,4], index: 6, kind: input, shape index: {}]   ;;  %s11053_s7 = inlined_call_operand.vmem [shape: f32[2,256,4], index: 7, kind: output, shape index: {}]  }
   0x1   :  { %v7057_v0 = vld [vmem:[%s11046_s1 + $0x10] ss:$0 sps:$4 sm:$0x33]   ;;  %v7058_v1 = vld [vmem:[%s11046_s1 + $0x8] sm:$0xff]   ;;  %v27_v3 = vld [vmem:[%s11047_s0] sm:$0xff]   ;;  %v7251_v22 = vmov 0.0  }
   0x2   :  { %5605 = vmatprep.subr.msk.bf16.mxu0 %vm368_vm0, %v7057_v0  ;;  %v370_v2 = vsel %vm368_vm0, %v7057_v0, 0  ;;  %v7059_v4 = vld [vmem:[%s11046_s1] sm:$0xff]   ;;  %5467 = vmatprep.mubr.msk.bf16.mxu0 %vm271_vm1, %v27_v3  ;;  %v29_v5 = vld [vmem:[%s11047_s0 + $0x8] sm:$0xff]   ;;  %v31_v6 = vld [vmem:[%s11047_s0 + $0x10] sm:$0xff]   ;;  %868 = vst.msk [vmem:[#allocation2] sm:$0xff] %vm867_vm2, %v7251_v22  ;;  %vm882_vm4 = vcmask 57344  }
   0x3   :  { %5462 = vmatpush3.bf16.msra.mxu0 %v370_v2  ;;  %v33_v7 = vld [vmem:[%s11047_s0 + $0x18] sm:$0xff]   ;;  %v35_v8 = vld [vmem:[%s11047_s0 + $0x20] sm:$0xff]   ;;  %v37_v9 = vld [vmem:[%s11047_s0 + $0x28] sm:$0xff]   ;;  %869 = vst.msk [vmem:[#allocation2 + $0x8] sm:$0xff] %vm867_vm2, %v7251_v22  ;;  %s7254_s24 = smov 48   ;;  %s7255_s9 = smov 24  }
   0x4   :  { %5463 = vmatprep.subr.bf16.mxu0 %v7058_v1  ;;  %v39_v10 = vld [vmem:[%s11047_s0 + $0x30] sm:$0xff]   ;;  %v41_v11 = vld [vmem:[%s11047_s0 + $0x38] sm:$0xff]   ;;  %v43_v12 = vld [vmem:[%s11047_s0 + $0x40] sm:$0xff]   ;;  %871 = vst.msk [vmem:[#allocation2 + $0x10] sm:$0x3] %vm870_vm3, %v7251_v22  ;;  %s7256_s10 = smov 32  }
   0x5   :  { %v45_v13 = vld [vmem:[%s11047_s0 + $0x48] sm:$0xff]   ;;  %v47_v14 = vld [vmem:[%s11047_s0 + $0x50] sm:$0xff]   ;;  %v49_v15 = vld [vmem:[%s11047_s0 + $0x58] sm:$0xff]   ;;  %872 = vst.msk [vmem:[#allocation2 + $0x1b0] sm:$0xff] %vm867_vm2, %v7251_v22  ;;  %s7257_s11 = smov 40   ;;  %vm3709_vm5 = vcmask 130048  }
   0x6   :  { %v51_v16 = vld [vmem:[%s11047_s0 + $0x60] sm:$0xff]   ;;  %v53_v17 = vld [vmem:[%s11047_s0 + $0x68] sm:$0xff]   ;;  %v55_v18 = vld [vmem:[%s11047_s0 + $0x70] sm:$0xff]   ;;  %873 = vst.msk [vmem:[#allocation2 + $0x1b8] sm:$0xff] %vm867_vm2, %v7251_v22  ;;  %vm3774_vm6 = vcmask 195584   ;;  %vm3839_vm7 = vcmask 261120  }
   0x7   :  { %5464 = vmatpush3.bf16.msra.mxu0 %v7058_v1  ;;  %v57_v19 = vld [vmem:[%s11047_s0 + $0x78] sm:$0xff]   ;;  %v59_v20 = vld [vmem:[%s11047_s0 + $0x80] sm:$0xff]   ;;  %v61_v21 = vld [vmem:[%s11047_s0 + $0x88] sm:$0xff]   ;;  %874 = vst.msk [vmem:[#allocation2 + $0x1c0] sm:$0x3] %vm870_vm3, %v7251_v22  ;;  %vm3904_vm8 = vcmask 326656  }
   0x8   :  { %5465 = vmatprep.subr.bf16.mxu0 %v7059_v4  ;;  %876 = vst.msk [vmem:[#allocation2 + $0x198] sm:$0xff] %vm867_vm2, %v7251_v22  ;;  %877 = vst.msk [vmem:[#allocation2 + $0x1a0] sm:$0xff] %vm867_vm2, %v7251_v22  ;;  %v63_v28 = vld [vmem:[%s11047_s0 + $0x90] sm:$0xff]   ;;  %v65_v30 = vld [vmem:[%s11047_s0 + $0x98] sm:$0xff]   ;;  %vm3969_vm9 = vcmask 392192   ;;  %vm4329_vm10 = vcmask 1043456  }
   0x9   :  { %878 = vst.msk [vmem:[#allocation2 + $0x1a8] sm:$0x3] %vm870_vm3, %v7251_v22  ;;  %881 = vst.msk [vmem:[#allocation2 + $0x358] sm:$0x3] %vm870_vm3, %v7251_v22  ;;  %v67_v40 = vld [vmem:[%s11047_s0 + $0xa0] sm:$0xff]   ;;  %v69_v41 = vld [vmem:[%s11047_s0 + $0xa8] sm:$0xff]  }
   0xa   :  { %879 = vst.msk [vmem:[#allocation2 + $0x348] sm:$0xff] %vm867_vm2, %v7251_v22  ;;  %880 = vst.msk [vmem:[#allocation2 + $0x350] sm:$0xff] %vm867_vm2, %v7251_v22  ;;  %v7402_v23 = vld [vmem:[#allocation2 + $0x1] sm:$0xff]  ;;  %v71_v42 = vld [vmem:[%s11047_s0 + $0xb0] sm:$0xff]   ;;  %s7258_s22 = smov 56   ;;  %vm4034_vm11 = vcmask 457728  }
   0xb   :  { %5466 = vmatpush3.bf16.msra.mxu0 %v7059_v4  ;;  %v7404_v24 = vld [vmem:[#allocation2 + $0x9] sm:$0xff]  ;;  %919 = vst.msk [vmem:[#allocation2 + $0x11] sm:$0x1] %vm882_vm4, %v7251_v22  ;;  %883 = vst.msk [vmem:[#allocation2] sm:$0x1] %vm882_vm4, %v7251_v22  ;;  %v73_v43 = vld [vmem:[%s11047_s0 + $0xb8] sm:$0xff]  }
   0xc   :  { %v5617_v25 = vpack.i.bf16 %v7404_v24, %v7402_v23  ;;  %884 = vst.msk [vmem:[#allocation2 + $0x18] sm:$0x1] %vm882_vm4, %v7251_v22  ;;  %885 = vst.msk [vmem:[#allocation2 + $0x30] sm:$0x1] %vm882_vm4, %v7251_v22  ;;  %v1148_v31 = vld [vmem:[#allocation2 + $0x2] sm:$0xff]  ;;  %v79_v46 = vld [vmem:[%s11047_s0 + $0xd0] sm:$0xff]  }
   0xd   :  { %886 = vst.msk [vmem:[#allocation2 + $0x48] sm:$0x1] %vm882_vm4, %v7251_v22  ;;  %887 = vst.msk [vmem:[#allocation2 + $0x60] sm:$0x1] %vm882_vm4, %v7251_v22  ;;  %v1116_v26 = vld [vmem:[#allocation2 + $0x1b1] sm:$0xff]  ;;  %v75_v44 = vld [vmem:[%s11047_s0 + $0xc0] sm:$0xff]  }
   0xe   :  { %5468 = vmatmul.mubr.msk.bf16.vlgmr.msra.gmra.mxu0 %vm271_vm1, %v29_v5  ;;  %888 = vst.msk [vmem:[#allocation2 + $0x78] sm:$0x1] %vm882_vm4, %v7251_v22  ;;  %889 = vst.msk [vmem:[#allocation2 + $0x90] sm:$0x1] %vm882_vm4, %v7251_v22  ;;  %5618 = vrot.lane.b32.xlu0 %v5617_v25, %s7252_s18  ;;  %v1117_v27 = vld [vmem:[#allocation2 + $0x1b9] sm:$0xff]  ;;  %v77_v45 = vld [vmem:[%s11047_s0 + $0xc8] sm:$0xff]  }
   0xf   :  { %5471 = vmatprep.mubr.msk.bf16.mxu0 %vm271_vm1, %v31_v6  ;;  %890 = vst.msk [vmem:[#allocation2 + $0xa8] sm:$0x1] %vm882_vm4, %v7251_v22  ;;  %891 = vst.msk [vmem:[#allocation2 + $0xc0] sm:$0x1] %vm882_vm4, %v7251_v22  ;;  %v5622_v29 = vpack.i.bf16 %v1117_v27, %v1116_v26  ;;  %v1436_v35 = vld [vmem:[#allocation2 + $0x1a0] sm:$0xff]  ;;  %v1180_v36 = vld [vmem:[#allocation2 + $0x1b2] sm:$0xff] }
  0x10   :  { %892 = vst.msk [vmem:[#allocation2 + $0xd8] sm:$0x1] %vm882_vm4, %v7251_v22  ;;  %893 = vst.msk [vmem:[#allocation2 + $0xf0] sm:$0x1] %vm882_vm4, %v7251_v22  ;;  %v81_v47 = vld [vmem:[%s11047_s0 + $0xd8] sm:$0xff]   ;;  %v83_v48 = vld [vmem:[%s11047_s0 + $0xe0] sm:$0xff]  }
  0x11   :  { %894 = vst.msk [vmem:[#allocation2 + $0x108] sm:$0x1] %vm882_vm4, %v7251_v22  ;;  %895 = vst.msk [vmem:[#allocation2 + $0x120] sm:$0x1] %vm882_vm4, %v7251_v22  ;;  %v85_v49 = vld [vmem:[%s11047_s0 + $0xe8] sm:$0xff]   ;;  %v87_v50 = vld [vmem:[%s11047_s0 + $0xf0] sm:$0xff]  }
  0x12   :  { %896 = vst.msk [vmem:[#allocation2 + $0x138] sm:$0x1] %vm882_vm4, %v7251_v22  ;;  %897 = vst.msk [vmem:[#allocation2 + $0x150] sm:$0x1] %vm882_vm4, %v7251_v22  ;;  %5623 = vrot.lane.b32.xlu0 %v5622_v29, %s7252_s18  ;;  %v1149_v32 = vld [vmem:[#allocation2 + $0xa] sm:$0xff]  ;;  %v89_v54 = vld [vmem:[%s11047_s0 + $0xf8] sm:$0xff]  }
  0x13   :  { %898 = vst.msk [vmem:[#allocation2 + $0x168] sm:$0x1] %vm882_vm4, %v7251_v22  ;;  %899 = vst.msk [vmem:[#allocation2 + $0x180] sm:$0x1] %vm882_vm4, %v7251_v22  ;;  %v5627_v33 = vpack.i.bf16 %v1149_v32, %v1148_v31  ;;  %v7614_v51 = vld [vmem:[%s11048_s2] ss:$0 sm:$0xff] }
  0x14   :  { %902 = vst.msk [vmem:[#allocation2 + $0x1c8] sm:$0x1] %vm882_vm4, %v7251_v22  ;;  %903 = vst.msk [vmem:[#allocation2 + $0x1e0] sm:$0x1] %vm882_vm4, %v7251_v22  ;;  %v7619_v53 = vld [vmem:[%s11049_s3] ss:$0 sm:$0xff] }
  0x15   :  { %904 = vst.msk [vmem:[#allocation2 + $0x1f8] sm:$0x1] %vm882_vm4, %v7251_v22  ;;  %905 = vst.msk [vmem:[#allocation2 + $0x210] sm:$0x1] %vm882_vm4, %v7251_v22  ;;  %vm4099_vm12 = vcmask 523264   ;;  %vm4232_vm13 = vcmask 588800  }
  0x16   :  { %5472 = vmatmul.mubr.msk.bf16.gmra.mxu0 %vm271_vm1, %v33_v7  ;;  %906 = vst.msk [vmem:[#allocation2 + $0x228] sm:$0x1] %vm882_vm4, %v7251_v22  ;;  %907 = vst.msk [vmem:[#allocation2 + $0x240] sm:$0x1] %vm882_vm4, %v7251_v22  ;;  %5628 = vrot.lane.b32.xlu0 %v5627_v33, %s7253_s23  ;;  %s7260_s29 = smov 112   ;;  %vm5212_vm14 = vcmask 31744  }
  0x17   :  { %5475 = vmatprep.mubr.msk.bf16.mxu0 %vm271_vm1, %v35_v8  ;;  %908 = vst.msk [vmem:[#allocation2 + $0x258] sm:$0x1] %vm882_vm4, %v7251_v22  ;;  %909 = vst.msk [vmem:[#allocation2 + $0x270] sm:$0x1] %vm882_vm4, %v7251_v22 }
  0x18   :  { %910 = vst.msk [vmem:[#allocation2 + $0x288] sm:$0x1] %vm882_vm4, %v7251_v22  ;;  %911 = vst.msk [vmem:[#allocation2 + $0x2a0] sm:$0x1] %vm882_vm4, %v7251_v22 }
  0x19   :  { %912 = vst.msk [vmem:[#allocation2 + $0x2b8] sm:$0x1] %vm882_vm4, %v7251_v22  ;;  %913 = vst.msk [vmem:[#allocation2 + $0x2d0] sm:$0x1] %vm882_vm4, %v7251_v22 }
  0x1a   :  { %914 = vst.msk [vmem:[#allocation2 + $0x2e8] sm:$0x1] %vm882_vm4, %v7251_v22  ;;  %915 = vst.msk [vmem:[#allocation2 + $0x300] sm:$0x1] %vm882_vm4, %v7251_v22 }
  0x1b   :  { %916 = vst.msk [vmem:[#allocation2 + $0x318] sm:$0x1] %vm882_vm4, %v7251_v22  ;;  %917 = vst.msk [vmem:[#allocation2 + $0x330] sm:$0x1] %vm882_vm4, %v7251_v22 }
  0x1c   :  { %920 = vst.msk [vmem:[#allocation2 + $0x29] sm:$0x1] %vm882_vm4, %v7251_v22  ;;  %921 = vst.msk [vmem:[#allocation2 + $0x41] sm:$0x1] %vm882_vm4, %v7251_v22 }
  0x1d   :  { %922 = vst.msk [vmem:[#allocation2 + $0x59] sm:$0x1] %vm882_vm4, %v7251_v22  ;;  %923 = vst.msk [vmem:[#allocation2 + $0x71] sm:$0x1] %vm882_vm4, %v7251_v22 }
  0x1e   :  { %5476 = vmatmul.mubr.msk.bf16.gmra.mxu0 %vm271_vm1, %v37_v9  ;;  %924 = vst.msk [vmem:[#allocation2 + $0x89] sm:$0x1] %vm882_vm4, %v7251_v22  ;;  %925 = vst.msk [vmem:[#allocation2 + $0xa1] sm:$0x1] %vm882_vm4, %v7251_v22 }
  0x1f   :  { %5479 = vmatprep.mubr.msk.bf16.mxu0 %vm271_vm1, %v39_v10  ;;  %926 = vst.msk [vmem:[#allocation2 + $0xb9] sm:$0x1] %vm882_vm4, %v7251_v22  ;;  %927 = vst.msk [vmem:[#allocation2 + $0xd1] sm:$0x1] %vm882_vm4, %v7251_v22 }
  0x20   :  { %928 = vst.msk [vmem:[#allocation2 + $0xe9] sm:$0x1] %vm882_vm4, %v7251_v22  ;;  %929 = vst.msk [vmem:[#allocation2 + $0x101] sm:$0x1] %vm882_vm4, %v7251_v22 }
  0x21   :  { %930 = vst.msk [vmem:[#allocation2 + $0x119] sm:$0x1] %vm882_vm4, %v7251_v22  ;;  %931 = vst.msk [vmem:[#allocation2 + $0x131] sm:$0x1] %vm882_vm4, %v7251_v22 }
  0x22   :  { %932 = vst.msk [vmem:[#allocation2 + $0x149] sm:$0x1] %vm882_vm4, %v7251_v22  ;;  %933 = vst.msk [vmem:[#allocation2 + $0x161] sm:$0x1] %vm882_vm4, %v7251_v22 }
  0x23   :  { %934 = vst.msk [vmem:[#allocation2 + $0x179] sm:$0x1] %vm882_vm4, %v7251_v22  ;;  %935 = vst.msk [vmem:[#allocation2 + $0x191] sm:$0x1] %vm882_vm4, %v7251_v22 }
  0x24   :  { %938 = vst.msk [vmem:[#allocation2 + $0x1d9] sm:$0x1] %vm882_vm4, %v7251_v22  ;;  %939 = vst.msk [vmem:[#allocation2 + $0x1f1] sm:$0x1] %vm882_vm4, %v7251_v22 }
  0x25   :  { %940 = vst.msk [vmem:[#allocation2 + $0x209] sm:$0x1] %vm882_vm4, %v7251_v22  ;;  %941 = vst.msk [vmem:[#allocation2 + $0x221] sm:$0x1] %vm882_vm4, %v7251_v22 }
  0x26   :  { %5480 = vmatmul.mubr.msk.bf16.gmra.mxu0 %vm271_vm1, %v41_v11  ;;  %942 = vst.msk [vmem:[#allocation2 + $0x239] sm:$0x1] %vm882_vm4, %v7251_v22  ;;  %943 = vst.msk [vmem:[#allocation2 + $0x251] sm:$0x1] %vm882_vm4, %v7251_v22 }
  0x27   :  { %5483 = vmatprep.mubr.msk.bf16.mxu0 %vm271_vm1, %v43_v12  ;;  %944 = vst.msk [vmem:[#allocation2 + $0x269] sm:$0x1] %vm882_vm4, %v7251_v22  ;;  %945 = vst.msk [vmem:[#allocation2 + $0x281] sm:$0x1] %vm882_vm4, %v7251_v22 }
  0x28   :  { %946 = vst.msk [vmem:[#allocation2 + $0x299] sm:$0x1] %vm882_vm4, %v7251_v22  ;;  %947 = vst.msk [vmem:[#allocation2 + $0x2b1] sm:$0x1] %vm882_vm4, %v7251_v22 }
  0x29   :  { %948 = vst.msk [vmem:[#allocation2 + $0x2c9] sm:$0x1] %vm882_vm4, %v7251_v22  ;;  %949 = vst.msk [vmem:[#allocation2 + $0x2e1] sm:$0x1] %vm882_vm4, %v7251_v22 }
  0x2a   :  { %950 = vst.msk [vmem:[#allocation2 + $0x2f9] sm:$0x1] %vm882_vm4, %v7251_v22  ;;  %951 = vst.msk [vmem:[#allocation2 + $0x311] sm:$0x1] %vm882_vm4, %v7251_v22 }
  0x2b   :  { %952 = vst.msk [vmem:[#allocation2 + $0x329] sm:$0x1] %vm882_vm4, %v7251_v22  ;;  %953 = vst.msk [vmem:[#allocation2 + $0x341] sm:$0x1] %vm882_vm4, %v7251_v22 }
  0x2c   :  { %900 = vst.msk [vmem:[#allocation2 + $0x198] sm:$0x1] %vm882_vm4, %v7251_v22  ;;  %901 = vst.msk [vmem:[#allocation2 + $0x1b0] sm:$0x1] %vm882_vm4, %v7251_v22 }
  0x2d   :  { %918 = vst.msk [vmem:[#allocation2 + $0x348] sm:$0x1] %vm882_vm4, %v7251_v22  ;;  %936 = vst.msk [vmem:[#allocation2 + $0x1a9] sm:$0x1] %vm882_vm4, %v7251_v22 }
  0x2e   :  { %5484 = vmatmul.mubr.msk.bf16.gmra.mxu0 %vm271_vm1, %v45_v13  ;;  %937 = vst.msk [vmem:[#allocation2 + $0x1c1] sm:$0x1] %vm882_vm4, %v7251_v22  ;;  %954 = vst.msk [vmem:[#allocation2 + $0x359] sm:$0x1] %vm882_vm4, %v7251_v22 }
  0x2f   :  { %5487 = vmatprep.mubr.msk.bf16.mxu0 %vm271_vm1, %v47_v14 }
  0x33   :  { %v1435_v34 = vld [vmem:[#allocation2 + $0x198] sm:$0xff] }
  0x34   :  { %v5637_v37 = vpack.i.bf16 %v1436_v35, %v1435_v34 }
  0x35   :  { %v1181_v38 = vld [vmem:[#allocation2 + $0x1ba] sm:$0xff] }
  0x36   :  { %5488 = vmatmul.mubr.msk.bf16.gmra.mxu0 %vm271_vm1, %v49_v15  ;;  %v5632_v39 = vpack.i.bf16 %v1181_v38, %v1180_v36  ;;  %5638 = vrot.lane.b32.xlu1 %v5637_v37, %s7254_s24 }
  0x37   :  { %5491 = vmatprep.mubr.msk.bf16.mxu0 %vm271_vm1, %v51_v16 }
  0x38   :  { %5633 = vrot.lane.b32.xlu0 %v5632_v39, %s7253_s23 }
  0x3e   :  { %5492 = vmatmul.mubr.msk.bf16.gmra.mxu0 %vm271_vm1, %v53_v17 }
  0x3f   :  { %5495 = vmatprep.mubr.msk.bf16.mxu0 %vm271_vm1, %v55_v18 }
  0x46   :  { %5496 = vmatmul.mubr.msk.bf16.gmra.mxu0 %vm271_vm1, %v57_v19 }
  0x47   :  { %5499 = vmatprep.mubr.msk.bf16.mxu0 %vm271_vm1, %v59_v20 }
  0x4e   :  { %5500 = vmatmul.mubr.msk.bf16.gmra.mxu0 %vm271_vm1, %v61_v21 }
  0x4f   :  { %5503 = vmatprep.mubr.msk.bf16.mxu0 %vm271_vm1, %v63_v28 }
  0x56   :  { %5504 = vmatmul.mubr.msk.bf16.gmra.mxu0 %vm271_vm1, %v65_v30 }
  0x57   :  { %5507 = vmatprep.mubr.msk.bf16.mxu0 %vm271_vm1, %v67_v40 }
  0x5e   :  { %5508 = vmatmul.mubr.msk.bf16.gmra.mxu0 %vm271_vm1, %v69_v41 }
  0x5f   :  { %5511 = vmatprep.mubr.msk.bf16.mxu0 %vm271_vm1, %v71_v42 }
  0x66   :  { %5512 = vmatmul.mubr.msk.bf16.gmra.mxu0 %vm271_vm1, %v73_v43 }
  0x67   :  { %5515 = vmatprep.mubr.msk.bf16.mxu0 %vm271_vm1, %v75_v44 }
  0x6e   :  { %5516 = vmatmul.mubr.msk.bf16.gmra.mxu0 %vm271_vm1, %v77_v45 }
  0x6f   :  { %5519 = vmatprep.mubr.msk.bf16.mxu0 %vm271_vm1, %v79_v46 }
  0x76   :  { %5520 = vmatmul.mubr.msk.bf16.gmra.mxu0 %vm271_vm1, %v81_v47 }
  0x77   :  { %5523 = vmatprep.mubr.msk.bf16.mxu0 %vm271_vm1, %v83_v48 }
  0x7e   :  { %5524 = vmatmul.mubr.msk.bf16.gmra.mxu0 %vm271_vm1, %v85_v49 }
  0x7f   :  { %5527 = vmatprep.mubr.msk.bf16.mxu0 %vm271_vm1, %v87_v50 }
  0x86   :  { %5528 = vmatmul.mubr.msk.bf16.gmra.mxu0 %vm271_vm1, %v89_v54 }
  0xce   :  { %v5469_v52 = vpop.f32.mrf.mxu0 }
  0xcf   :  { %v670_v55 = vmul.f32 %v5469_v52, %v7614_v51 }
  0xd0   :  { %v406_v56 = vpop.f32.mrf.mxu0 }
  0xd1   :  { %v741_v57 = vadd.f32 %v7619_v53, %v670_v55  ;;  %v668_v58 = vmul.f32 %v7614_v51, %v406_v56 }
  0xd2   :  { %v5470_v59 = vpop.f32.mrf.mxu0 }
  0xd3   :  { %v805_v60 = vmax.f32 %v741_v57, 0.0  ;;  %v739_v61 = vadd.f32 %v7619_v53, %v668_v58  ;;  %v671_v62 = vmul.f32 %v5470_v59, %v7614_v51 }
  0xd4   :  { %v409_v63 = vpop.f32.mrf.mxu0 }
  0xd5   :  { %958 = vst.msk [vmem:[#allocation2 + $0x31] sm:$0xff] %vm867_vm2, %v805_v60  ;;  %v803_v0 = vmax.f32 %v739_v61, 0.0  ;;  %v742_v1 = vadd.f32 %v7619_v53, %v671_v62  ;;  %v669_v2 = vmul.f32 %v7614_v51, %v409_v63 }
  0xd6   :  { %v5473_v3 = vpop.f32.mrf.mxu0 }
  0xd7   :  { %956 = vst.msk [vmem:[#allocation2 + $0x19] sm:$0xff] %vm867_vm2, %v803_v0  ;;  %v806_v4 = vmax.f32 %v742_v1, 0.0  ;;  %v740_v5 = vadd.f32 %v7619_v53, %v669_v2  ;;  %v674_v6 = vmul.f32 %v5473_v3, %v7614_v51 }
  0xd8   :  { %v422_v7 = vpop.f32.mrf.mxu0 }
  0xd9   :  { %959 = vst.msk [vmem:[#allocation2 + $0x39] sm:$0xff] %vm867_vm2, %v806_v4  ;;  %v804_v8 = vmax.f32 %v740_v5, 0.0  ;;  %v745_v9 = vadd.f32 %v7619_v53, %v674_v6  ;;  %v672_v10 = vmul.f32 %v7614_v51, %v422_v7 }
  0xda   :  { %v5474_v11 = vpop.f32.mrf.mxu0 }
  0xdb   :  { %957 = vst.msk [vmem:[#allocation2 + $0x21] sm:$0xff] %vm867_vm2, %v804_v8  ;;  %v809_v12 = vmax.f32 %v745_v9, 0.0  ;;  %v743_v13 = vadd.f32 %v7619_v53, %v672_v10  ;;  %v675_v14 = vmul.f32 %v5474_v11, %v7614_v51 }
  0xdc   :  { %v425_v15 = vpop.f32.mrf.mxu0  ;;  %v1088_v22 = vld [vmem:[#allocation2 + $0x31] sm:$0xff] }
  0xdd   :  { %962 = vst.msk [vmem:[#allocation2 + $0x61] sm:$0xff] %vm867_vm2, %v809_v12  ;;  %v807_v16 = vmax.f32 %v743_v13, 0.0  ;;  %v746_v17 = vadd.f32 %v7619_v53, %v675_v14  ;;  %v673_v18 = vmul.f32 %v7614_v51, %v425_v15  ;;  %v1405_v37 = vld [vmem:[#allocation2 + $0x30] sm:$0xff] }
  0xde   :  { %v5477_v19 = vpop.f32.mrf.mxu0  ;;  %v1086_v49 = vld [vmem:[#allocation2 + $0x19] sm:$0xff] }
  0xdf   :  { %960 = vst.msk [vmem:[#allocation2 + $0x49] sm:$0xff] %vm867_vm2, %v807_v16  ;;  %v810_v20 = vmax.f32 %v746_v17, 0.0  ;;  %v744_v21 = vadd.f32 %v7619_v53, %v673_v18  ;;  %v678_v23 = vmul.f32 %v5477_v19, %v7614_v51  ;;  %v1212_v61 = vld [vmem:[#allocation2 + $0x18] sm:$0xff] }
  0xe0   :  { %v1152_v24 = vld [vmem:[#allocation2 + $0x32] sm:$0xff]  ;;  %v1153_v25 = vld [vmem:[#allocation2 + $0x3a] sm:$0xff]  ;;  %v438_v27 = vpop.f32.mrf.mxu0 }
  0xe1   :  { %v1089_v26 = vld [vmem:[#allocation2 + $0x39] sm:$0xff]  ;;  %963 = vst.msk [vmem:[#allocation2 + $0x69] sm:$0xff] %vm867_vm2, %v810_v20  ;;  %v808_v28 = vmax.f32 %v744_v21, 0.0  ;;  %v5647_v29 = vpack.i.bf16 %v1153_v25, %v1152_v24  ;;  %v749_v31 = vadd.f32 %v7619_v53, %v678_v23  ;;  %v676_v33 = vmul.f32 %v7614_v51, %v438_v27 }
  0xe2   :  { %v5642_v30 = vpack.i.bf16 %v1089_v26, %v1088_v22  ;;  %v1406_v32 = vld [vmem:[#allocation2 + $0x38] sm:$0xff]  ;;  %v5478_v34 = vpop.f32.mrf.mxu0  ;;  %v1087_v43 = vld [vmem:[#allocation2 + $0x21] sm:$0xff] }
  0xe3   :  { %961 = vst.msk [vmem:[#allocation2 + $0x51] sm:$0xff] %vm867_vm2, %v808_v28  ;;  %5648 = vrot.lane.b32.xlu0 %v5647_v29, %s7253_s23  ;;  %v813_v35 = vmax.f32 %v749_v31, 0.0  ;;  %v679_v36 = vmul.f32 %v5478_v34, %v7614_v51  ;;  %v747_v38 = vadd.f32 %v7619_v53, %v676_v33  ;;  %v5667_v40 = vpack.i.bf16 %v1406_v32, %v1405_v37  ;;  %v1213_v56 = vld [vmem:[#allocation2 + $0x20] sm:$0xff] }
  0xe4   :  { %5643 = vrot.lane.b32.xlu1 %v5642_v30, %s7252_s18  ;;  %v441_v39 = vpop.f32.mrf.mxu0  ;;  %v5672_v52 = vpack.i.bf16 %v1087_v43, %v1086_v49  ;;  %v5682_v0 = vpack.i.bf16 %v1213_v56, %v1212_v61  ;;  %v1150_v3 = vld [vmem:[#allocation2 + $0x1a] sm:$0xff]  ;;  %v1151_v4 = vld [vmem:[#allocation2 + $0x22] sm:$0xff] }
  0xe5   :  { %966 = vst.msk [vmem:[#allocation2 + $0x91] sm:$0xff] %vm867_vm2, %v813_v35  ;;  %v750_v41 = vadd.f32 %v7619_v53, %v679_v36  ;;  %v677_v42 = vmul.f32 %v7614_v51, %v441_v39  ;;  %v811_v44 = vmax.f32 %v747_v38, 0.0  ;;  %v5677_v11 = vpack.i.bf16 %v1151_v4, %v1150_v3  ;;  %v1218_v14 = vld [vmem:[#allocation2 + $0x60] sm:$0xff] }
  0xe6   :  { %v5481_v45 = vpop.f32.mrf.mxu0  ;;  %v1282_v25 = vld [vmem:[#allocation2 + $0x61] sm:$0xff] }
  0xe7   :  { %5668 = vrot.lane.b32.xlu0 %v5667_v40, %s7254_s24  ;;  %v814_v46 = vmax.f32 %v750_v41, 0.0  ;;  %v748_v47 = vadd.f32 %v7619_v53, %v677_v42  ;;  %v682_v48 = vmul.f32 %v5481_v45, %v7614_v51  ;;  %964 = vst.msk [vmem:[#allocation2 + $0x79] sm:$0xff] %vm867_vm2, %v811_v44 }
  0xe8   :  { %5653 = vrot.lane.b32.xlu1 %v5667_v40, %s7255_s9  ;;  %v454_v50 = vpop.f32.mrf.mxu0  ;;  %v1219_v15 = vld [vmem:[#allocation2 + $0x68] sm:$0xff] }
  0xe9   :  { %967 = vst.msk [vmem:[#allocation2 + $0x99] sm:$0xff] %vm867_vm2, %v814_v46  ;;  %v812_v54 = vmax.f32 %v748_v47, 0.0  ;;  %v753_v55 = vadd.f32 %v7619_v53, %v682_v48  ;;  %v680_v57 = vmul.f32 %v7614_v51, %v454_v50  ;;  %v5707_v22 = vpack.i.bf16 %v1219_v15, %v1218_v14  ;;  %v1283_v26 = vld [vmem:[#allocation2 + $0x69] sm:$0xff] }
  0xea   :  { %v5482_v58 = vpop.f32.mrf.mxu0  ;;  %v5712_v33 = vpack.i.bf16 %v1283_v26, %v1282_v25  ;;  %v1346_v36 = vld [vmem:[#allocation2 + $0x62] sm:$0xff]  ;;  %v1347_v37 = vld [vmem:[#allocation2 + $0x6a] sm:$0xff] }
  0xeb   :  { %5673 = vrot.lane.b32.xlu0 %v5672_v52, %s7252_s18  ;;  %965 = vst.msk [vmem:[#allocation2 + $0x81] sm:$0xff] %vm867_vm2, %v812_v54  ;;  %v817_v59 = vmax.f32 %v753_v55, 0.0  ;;  %v683_v60 = vmul.f32 %v5482_v58, %v7614_v51  ;;  %v751_v62 = vadd.f32 %v7619_v53, %v680_v57  ;;  %v5717_v44 = vpack.i.bf16 %v1347_v37, %v1346_v36  ;;  %v1090_v47 = vld [vmem:[#allocation2 + $0x49] sm:$0xff]  ;;  %v1091_v48 = vld [vmem:[#allocation2 + $0x51] sm:$0xff] }
  0xec   :  { %5658 = vrot.lane.b32.xlu1 %v5642_v30, %s7256_s10  ;;  %v457_v63 = vpop.f32.mrf.mxu0  ;;  %v5727_v57 = vpack.i.bf16 %v1091_v48, %v1090_v47  ;;  %v1216_v58 = vld [vmem:[#allocation2 + $0x48] sm:$0xff]  ;;  %v1217_v61 = vld [vmem:[#allocation2 + $0x50] sm:$0xff] }
  0xed   :  { %970 = vst.msk [vmem:[#allocation2 + $0xc1] sm:$0xff] %vm867_vm2, %v817_v59  ;;  %v754_v1 = vadd.f32 %v7619_v53, %v683_v60  ;;  %v681_v2 = vmul.f32 %v7614_v51, %v457_v63  ;;  %v815_v5 = vmax.f32 %v751_v62, 0.0  ;;  %v1154_v62 = vld [vmem:[#allocation2 + $0x4a] sm:$0xff]  ;;  %v1155_v63 = vld [vmem:[#allocation2 + $0x52] sm:$0xff] }
  0xee   :  { %v5485_v6 = vpop.f32.mrf.mxu0 }
  0xef   :  { %5683 = vrot.lane.b32.xlu0 %v5682_v0, %s7255_s9  ;;  %v818_v7 = vmax.f32 %v754_v1, 0.0  ;;  %v752_v8 = vadd.f32 %v7619_v53, %v681_v2  ;;  %v686_v9 = vmul.f32 %v5485_v6, %v7614_v51  ;;  %968 = vst.msk [vmem:[#allocation2 + $0xa9] sm:$0xff] %vm867_vm2, %v815_v5  ;;  %v5737_v6 = vpack.i.bf16 %v1217_v61, %v1216_v58 }
  0xf0   :  { %5663 = vrot.lane.b32.xlu1 %v5647_v29, %s7257_s11  ;;  %v470_v10 = vpop.f32.mrf.mxu0 }
  0xf1   :  { %971 = vst.msk [vmem:[#allocation2 + $0xc9] sm:$0xff] %vm867_vm2, %v818_v7  ;;  %v816_v12 = vmax.f32 %v752_v8, 0.0  ;;  %v757_v13 = vadd.f32 %v7619_v53, %v686_v9  ;;  %v684_v16 = vmul.f32 %v7614_v51, %v470_v10  ;;  %v5732_v7 = vpack.i.bf16 %v1155_v63, %v1154_v62 }
  0xf2   :  { %v5486_v17 = vpop.f32.mrf.mxu0  ;;  %v1221_v63 = vld [vmem:[#allocation2 + $0x80] sm:$0xff] }
  0xf3   :  { %5688 = vrot.lane.b32.xlu0 %v5672_v52, %s7256_s10  ;;  %969 = vst.msk [vmem:[#allocation2 + $0xb1] sm:$0xff] %vm867_vm2, %v816_v12  ;;  %v821_v18 = vmax.f32 %v757_v13, 0.0  ;;  %v687_v19 = vmul.f32 %v5486_v17, %v7614_v51  ;;  %v755_v20 = vadd.f32 %v7619_v53, %v684_v16 }
  0xf4   :  { %5678 = vrot.lane.b32.xlu1 %v5677_v11, %s7253_s23  ;;  %v473_v21 = vpop.f32.mrf.mxu0 }
  0xf5   :  { %974 = vst.msk [vmem:[#allocation2 + $0xf1] sm:$0xff] %vm867_vm2, %v821_v18  ;;  %v758_v23 = vadd.f32 %v7619_v53, %v687_v19  ;;  %v685_v24 = vmul.f32 %v7614_v51, %v473_v21  ;;  %v819_v27 = vmax.f32 %v755_v20, 0.0  ;;  %v1222_v18 = vld [vmem:[#allocation2 + $0x90] sm:$0xff]  ;;  %v1223_v19 = vld [vmem:[#allocation2 + $0x98] sm:$0xff] }
  0xf6   :  { %v5489_v28 = vpop.f32.mrf.mxu0  ;;  %v5767_v26 = vpack.i.bf16 %v1223_v19, %v1222_v18 }
  0xf7   :  { %5693 = vrot.lane.b32.xlu0 %v5677_v11, %s7257_s11  ;;  %v822_v29 = vmax.f32 %v758_v23, 0.0  ;;  %v756_v30 = vadd.f32 %v7619_v53, %v685_v24  ;;  %v690_v31 = vmul.f32 %v5489_v28, %v7614_v51  ;;  %972 = vst.msk [vmem:[#allocation2 + $0xd9] sm:$0xff] %vm867_vm2, %v819_v27 }
  0xf8   :  { %5708 = vrot.lane.b32.xlu1 %v5707_v22, %s7255_s9  ;;  %v486_v32 = vpop.f32.mrf.mxu0 }
  0xf9   :  { %975 = vst.msk [vmem:[#allocation2 + $0xf9] sm:$0xff] %vm867_vm2, %v822_v29  ;;  %v820_v34 = vmax.f32 %v756_v30, 0.0  ;;  %v761_v35 = vadd.f32 %v7619_v53, %v690_v31  ;;  %v688_v38 = vmul.f32 %v7614_v51, %v486_v32  ;;  %v1286_v29 = vld [vmem:[#allocation2 + $0x91] sm:$0xff]  ;;  %v1287_v30 = vld [vmem:[#allocation2 + $0x99] sm:$0xff] }
  0xfa   :  { %v5490_v39 = vpop.f32.mrf.mxu0  ;;  %v5772_v37 = vpack.i.bf16 %v1287_v30, %v1286_v29  ;;  %v1099_v29 = vld [vmem:[#allocation2 + $0xb1] sm:$0xff] }
  0xfb   :  { %5698 = vrot.lane.b32.xlu0 %v5712_v33, %s7252_s18  ;;  %973 = vst.msk [vmem:[#allocation2 + $0xe1] sm:$0xff] %vm867_vm2, %v820_v34  ;;  %v825_v40 = vmax.f32 %v761_v35, 0.0  ;;  %v691_v41 = vmul.f32 %v5490_v39, %v7614_v51  ;;  %v759_v42 = vadd.f32 %v7619_v53, %v688_v38 }
  0xfc   :  { %5713 = vrot.lane.b32.xlu1 %v5712_v33, %s7256_s10  ;;  %v489_v43 = vpop.f32.mrf.mxu0 }
  0xfd   :  { %978 = vst.msk [vmem:[#allocation2 + $0x121] sm:$0xff] %vm867_vm2, %v825_v40  ;;  %v762_v45 = vadd.f32 %v7619_v53, %v691_v41  ;;  %v689_v46 = vmul.f32 %v7614_v51, %v489_v43  ;;  %v823_v49 = vmax.f32 %v759_v42, 0.0  ;;  %v1350_v40 = vld [vmem:[#allocation2 + $0x92] sm:$0xff]  ;;  %v1351_v41 = vld [vmem:[#allocation2 + $0x9a] sm:$0xff] }
  0xfe   :  { %v5493_v50 = vpop.f32.mrf.mxu0  ;;  %v5777_v48 = vpack.i.bf16 %v1351_v41, %v1350_v40 }
  0xff   :  { %5703 = vrot.lane.b32.xlu0 %v5717_v44, %s7253_s23  ;;  %v826_v52 = vmax.f32 %v762_v45, 0.0  ;;  %v760_v54 = vadd.f32 %v7619_v53, %v689_v46  ;;  %v694_v55 = vmul.f32 %v5493_v50, %v7614_v51  ;;  %976 = vst.msk [vmem:[#allocation2 + $0x109] sm:$0xff] %vm867_vm2, %v823_v49 }
 0x100   :  { %5718 = vrot.lane.b32.xlu1 %v5717_v44, %s7257_s11  ;;  %v502_v56 = vpop.f32.mrf.mxu0 }
 0x101   :  { %979 = vst.msk [vmem:[#allocation2 + $0x129] sm:$0xff] %vm867_vm2, %v826_v52  ;;  %v824_v59 = vmax.f32 %v760_v54, 0.0  ;;  %v765_v60 = vadd.f32 %v7619_v53, %v694_v55  ;;  %v692_v0 = vmul.f32 %v7614_v51, %v502_v56  ;;  %v1094_v52 = vld [vmem:[#allocation2 + $0x79] sm:$0xff]  ;;  %v1095_v54 = vld [vmem:[#allocation2 + $0x81] sm:$0xff] }
 0x102   :  { %v5494_v1 = vpop.f32.mrf.mxu0 }
 0x103   :  { %5723 = vrot.lane.b32.xlu0 %v5707_v22, %s7254_s24  ;;  %977 = vst.msk [vmem:[#allocation2 + $0x111] sm:$0xff] %vm867_vm2, %v824_v59  ;;  %v829_v2 = vmax.f32 %v765_v60, 0.0  ;;  %v695_v3 = vmul.f32 %v5494_v1, %v7614_v51  ;;  %v763_v4 = vadd.f32 %v7619_v53, %v692_v0  ;;  %v5787_v59 = vpack.i.bf16 %v1095_v54, %v1094_v52  ;;  %v1220_v60 = vld [vmem:[#allocation2 + $0x78] sm:$0xff]  ;;  %v1159_v1 = vld [vmem:[#allocation2 + $0x82] sm:$0xff]  ;;  %v1230_v54 = vld [vmem:[#allocation2 + $0xf0] sm:$0xff] }
 0x104   :  { %5728 = vrot.lane.b32.xlu1 %v5727_v57, %s7252_s18  ;;  %v505_v5 = vpop.f32.mrf.mxu0  ;;  %v1158_v0 = vld [vmem:[#allocation2 + $0x7a] sm:$0xff] }
 0x105   :  { %982 = vst.msk [vmem:[#allocation2 + $0x151] sm:$0xff] %vm867_vm2, %v829_v2  ;;  %v766_v8 = vadd.f32 %v7619_v53, %v695_v3  ;;  %v693_v9 = vmul.f32 %v7614_v51, %v505_v5  ;;  %v827_v10 = vmax.f32 %v763_v4, 0.0  ;;  %v5797_v4 = vpack.i.bf16 %v1221_v63, %v1220_v60  ;;  %v1359_v63 = vld [vmem:[#allocation2 + $0xfa] sm:$0xff] }
 0x106   :  { %v5497_v11 = vpop.f32.mrf.mxu0  ;;  %v5792_v5 = vpack.i.bf16 %v1159_v1, %v1158_v0 }
 0x107   :  { %5738 = vrot.lane.b32.xlu0 %v5737_v6, %s7255_s9  ;;  %v830_v12 = vmax.f32 %v766_v8, 0.0  ;;  %v764_v13 = vadd.f32 %v7619_v53, %v693_v9  ;;  %v698_v14 = vmul.f32 %v5497_v11, %v7614_v51  ;;  %980 = vst.msk [vmem:[#allocation2 + $0x139] sm:$0xff] %vm867_vm2, %v827_v10 }
 0x108   :  { %5733 = vrot.lane.b32.xlu1 %v5732_v7, %s7253_s23  ;;  %v518_v15 = vpop.f32.mrf.mxu0 }
 0x109   :  { %983 = vst.msk [vmem:[#allocation2 + $0x159] sm:$0xff] %vm867_vm2, %v830_v12  ;;  %v828_v16 = vmax.f32 %v764_v13, 0.0  ;;  %v769_v17 = vadd.f32 %v7619_v53, %v698_v14  ;;  %v696_v20 = vmul.f32 %v7614_v51, %v518_v15  ;;  %v1226_v15 = vld [vmem:[#allocation2 + $0xc0] sm:$0xff] }
 0x10a   :  { %v5498_v21 = vpop.f32.mrf.mxu0 }
 0x10b   :  { %5743 = vrot.lane.b32.xlu0 %v5727_v57, %s7256_s10  ;;  %981 = vst.msk [vmem:[#allocation2 + $0x141] sm:$0xff] %vm867_vm2, %v828_v16  ;;  %v833_v22 = vmax.f32 %v769_v17, 0.0  ;;  %v699_v23 = vmul.f32 %v5498_v21, %v7614_v51  ;;  %v767_v24 = vadd.f32 %v7619_v53, %v696_v20  ;;  %v1227_v16 = vld [vmem:[#allocation2 + $0xc8] sm:$0xff] }
 0x10c   :  { %5753 = vrot.lane.b32.xlu1 %v5737_v6, %s7254_s24  ;;  %v521_v25 = vpop.f32.mrf.mxu0  ;;  %v5827_v19 = vpack.i.bf16 %v1227_v16, %v1226_v15  ;;  %v1290_v21 = vld [vmem:[#allocation2 + $0xc1] sm:$0xff]  ;;  %v1228_v15 = vld [vmem:[#allocation2 + $0xd8] sm:$0xff] }
 0x10d   :  { %986 = vst.msk [vmem:[#allocation2 + $0x181] sm:$0xff] %vm867_vm2, %v833_v22  ;;  %v770_v27 = vadd.f32 %v7619_v53, %v699_v23  ;;  %v697_v28 = vmul.f32 %v7614_v51, %v521_v25  ;;  %v831_v31 = vmax.f32 %v767_v24, 0.0  ;;  %v1291_v22 = vld [vmem:[#allocation2 + $0xc9] sm:$0xff] }
 0x10e   :  { %v5501_v32 = vpop.f32.mrf.mxu0  ;;  %v5832_v23 = vpack.i.bf16 %v1291_v22, %v1290_v21  ;;  %v1354_v24 = vld [vmem:[#allocation2 + $0xc2] sm:$0xff]  ;;  %v1355_v25 = vld [vmem:[#allocation2 + $0xca] sm:$0xff] }
 0x10f   :  { %5748 = vrot.lane.b32.xlu0 %v5732_v7, %s7257_s11  ;;  %v834_v33 = vmax.f32 %v770_v27, 0.0  ;;  %v768_v34 = vadd.f32 %v7619_v53, %v697_v28  ;;  %v702_v35 = vmul.f32 %v5501_v32, %v7614_v51  ;;  %984 = vst.msk [vmem:[#allocation2 + $0x169] sm:$0xff] %vm867_vm2, %v831_v31  ;;  %v1098_v28 = vld [vmem:[#allocation2 + $0xa9] sm:$0xff] }
 0x110   :  { %5768 = vrot.lane.b32.xlu1 %v5767_v26, %s7255_s9  ;;  %v534_v36 = vpop.f32.mrf.mxu0  ;;  %v1167_v21 = vld [vmem:[#allocation2 + $0xe2] sm:$0xff] }
 0x111   :  { %987 = vst.msk [vmem:[#allocation2 + $0x189] sm:$0xff] %vm867_vm2, %v834_v33  ;;  %v832_v38 = vmax.f32 %v768_v34, 0.0  ;;  %v773_v39 = vadd.f32 %v7619_v53, %v702_v35  ;;  %v700_v42 = vmul.f32 %v7614_v51, %v534_v36  ;;  %v5847_v33 = vpack.i.bf16 %v1099_v29, %v1098_v28  ;;  %v1224_v34 = vld [vmem:[#allocation2 + $0xa8] sm:$0xff]  ;;  %v1225_v35 = vld [vmem:[#allocation2 + $0xb0] sm:$0xff]  ;;  %v1234_v29 = vld [vmem:[#allocation2 + $0x120] sm:$0xff] }
 0x112   :  { %v5502_v43 = vpop.f32.mrf.mxu0 }
 0x113   :  { %5758 = vrot.lane.b32.xlu0 %v5772_v37, %s7252_s18  ;;  %985 = vst.msk [vmem:[#allocation2 + $0x171] sm:$0xff] %vm867_vm2, %v832_v38  ;;  %v837_v44 = vmax.f32 %v773_v39, 0.0  ;;  %v703_v45 = vmul.f32 %v5502_v43, %v7614_v51  ;;  %v771_v46 = vadd.f32 %v7619_v53, %v700_v42  ;;  %v1163_v38 = vld [vmem:[#allocation2 + $0xb2] sm:$0xff]  ;;  %v5857_v43 = vpack.i.bf16 %v1225_v35, %v1224_v34  ;;  %v1298_v34 = vld [vmem:[#allocation2 + $0x121] sm:$0xff]  ;;  %v1299_v35 = vld [vmem:[#allocation2 + $0x129] sm:$0xff] }
 0x114   :  { %5773 = vrot.lane.b32.xlu1 %v5772_v37, %s7256_s10  ;;  %v537_v47 = vpop.f32.mrf.mxu0  ;;  %v1162_v37 = vld [vmem:[#allocation2 + $0xaa] sm:$0xff] }
 0x115   :  { %990 = vst.msk [vmem:[#allocation2 + $0x1e1] sm:$0xff] %vm867_vm2, %v837_v44  ;;  %v774_v49 = vadd.f32 %v7619_v53, %v703_v45  ;;  %v701_v50 = vmul.f32 %v7614_v51, %v537_v47  ;;  %v835_v55 = vmax.f32 %v771_v46, 0.0  ;;  %v5852_v45 = vpack.i.bf16 %v1163_v38, %v1162_v37 }
 0x116   :  { %v5505_v58 = vpop.f32.mrf.mxu0 }
 0x117   :  { %5763 = vrot.lane.b32.xlu0 %v5777_v48, %s7253_s23  ;;  %v838_v56 = vmax.f32 %v774_v49, 0.0  ;;  %v772_v57 = vadd.f32 %v7619_v53, %v701_v50  ;;  %988 = vst.msk [vmem:[#allocation2 + $0x1c9] sm:$0xff] %vm867_vm2, %v835_v55  ;;  %v706_v62 = vmul.f32 %v5505_v58, %v7614_v51  ;;  %v1231_v55 = vld [vmem:[#allocation2 + $0xf8] sm:$0xff] }
 0x118   :  { %5778 = vrot.lane.b32.xlu1 %v5777_v48, %s7257_s11  ;;  %v550_v3 = vpop.f32.mrf.mxu0  ;;  %v1294_v58 = vld [vmem:[#allocation2 + $0xf1] sm:$0xff] }
 0x119   :  { %991 = vst.msk [vmem:[#allocation2 + $0x1e9] sm:$0xff] %vm867_vm2, %v838_v56  ;;  %v836_v61 = vmax.f32 %v772_v57, 0.0  ;;  %v777_v2 = vadd.f32 %v7619_v53, %v706_v62  ;;  %v704_v7 = vmul.f32 %v7614_v51, %v550_v3  ;;  %v5887_v56 = vpack.i.bf16 %v1231_v55, %v1230_v54  ;;  %v7804_v57 = vpop.permute.xlu0 %5618  ;;  %v1358_v62 = vld [vmem:[#allocation2 + $0xf2] sm:$0xff] }
 0x11a   :  { %v5506_v8 = vpop.f32.mrf.mxu0 }
 0x11b   :  { %5783 = vrot.lane.b32.xlu0 %v5767_v26, %s7254_s24  ;;  %989 = vst.msk [vmem:[#allocation2 + $0x1d1] sm:$0xff] %vm867_vm2, %v836_v61  ;;  %v841_v6 = vmax.f32 %v777_v2, 0.0  ;;  %v775_v9 = vadd.f32 %v7619_v53, %v704_v7  ;;  %v707_v10 = vmul.f32 %v5506_v8, %v7614_v51  ;;  %v5837_v26 = vpack.i.bf16 %v1355_v25, %v1354_v24  ;;  %v1103_v7 = vld [vmem:[#allocation2 + $0xe1] sm:$0xff] }
 0x11c   :  { %5788 = vrot.lane.b32.xlu1 %v5787_v59, %s7252_s18  ;;  %v553_v11 = vpop.f32.mrf.mxu0 }
 0x11d   :  { %994 = vst.msk [vmem:[#allocation2 + $0x211] sm:$0xff] %vm867_vm2, %v841_v6  ;;  %v839_v12 = vmax.f32 %v775_v9, 0.0  ;;  %v778_v13 = vadd.f32 %v7619_v53, %v707_v10  ;;  %v705_v14 = vmul.f32 %v7614_v51, %v553_v11  ;;  %v7811_v1 = vpop.permute.xlu0 %5623  ;;  %v1102_v6 = vld [vmem:[#allocation2 + $0xd9] sm:$0xff] }
 0x11e   :  { %v5509_v27 = vpop.f32.mrf.mxu0 }
 0x11f   :  { %5798 = vrot.lane.b32.xlu0 %v5797_v4, %s7255_s9  ;;  %992 = vst.msk [vmem:[#allocation2 + $0x1f9] sm:$0xff] %vm867_vm2, %v839_v12  ;;  %v842_v17 = vmax.f32 %v778_v13, 0.0  ;;  %v776_v18 = vadd.f32 %v7619_v53, %v705_v14  ;;  %v710_v30 = vmul.f32 %v5509_v27, %v7614_v51  ;;  %v5907_v13 = vpack.i.bf16 %v1103_v7, %v1102_v6  ;;  %v7831_v27 = vpop.permute.xlu1 %5638  ;;  %v1233_v6 = vld [vmem:[#allocation2 + $0x110] sm:$0xff] }
 0x120   :  { %5793 = vrot.lane.b32.xlu1 %v5792_v5, %s7253_s23  ;;  %v566_v32 = vpop.f32.mrf.mxu0  ;;  %11298 = vst [vmem:[#allocation3_spill] sm:$0xff] %v7831_v27  ;;  %v1170_v7 = vld [vmem:[#allocation2 + $0x10a] sm:$0xff] }
 0x121   :  { %995 = vst.msk [vmem:[#allocation2 + $0x219] sm:$0xff] %vm867_vm2, %v842_v17  ;;  %v840_v20 = vmax.f32 %v776_v18, 0.0  ;;  %v781_v31 = vadd.f32 %v7619_v53, %v710_v30  ;;  %v708_v36 = vmul.f32 %v7614_v51, %v566_v32  ;;  %v7820_v14 = vpop.permute.xlu0 %5628  ;;  %v1235_v30 = vld [vmem:[#allocation2 + $0x128] sm:$0xff] }
 0x122   :  { %v5510_v40 = vpop.f32.mrf.mxu0 }
 0x123   :  { %5803 = vrot.lane.b32.xlu0 %v5787_v59, %s7256_s10  ;;  %993 = vst.msk [vmem:[#allocation2 + $0x201] sm:$0xff] %vm867_vm2, %v840_v20  ;;  %v845_v39 = vmax.f32 %v781_v31, 0.0  ;;  %v779_v41 = vadd.f32 %v7619_v53, %v708_v36  ;;  %v711_v42 = vmul.f32 %v5510_v40, %v7614_v51  ;;  %v1295_v59 = vld [vmem:[#allocation2 + $0xf9] sm:$0xff] }
 0x124   :  { %5813 = vrot.lane.b32.xlu1 %v5797_v4, %s7254_s24  ;;  %v569_v44 = vpop.f32.mrf.mxu0  ;;  %v5892_v60 = vpack.i.bf16 %v1295_v59, %v1294_v58  ;;  %v5897_v4 = vpack.i.bf16 %v1359_v63, %v1358_v62  ;;  %v1166_v20 = vld [vmem:[#allocation2 + $0xda] sm:$0xff] }
 0x125   :  { %998 = vst.msk [vmem:[#allocation2 + $0x241] sm:$0xff] %vm867_vm2, %v845_v39  ;;  %v843_v46 = vmax.f32 %v779_v41, 0.0  ;;  %v782_v47 = vadd.f32 %v7619_v53, %v711_v42  ;;  %v709_v48 = vmul.f32 %v7614_v51, %v569_v44  ;;  %v5912_v25 = vpack.i.bf16 %v1167_v21, %v1166_v20  ;;  %v7833_v28 = vpop.permute.xlu0 %5633  ;;  %v1362_v44 = vld [vmem:[#allocation2 + $0x122] sm:$0xff] }
 0x126   :  { %v5513_v61 = vpop.f32.mrf.mxu0  ;;  %v5952_v41 = vpack.i.bf16 %v1299_v35, %v1298_v34 }
 0x127   :  { %5808 = vrot.lane.b32.xlu0 %v5792_v5, %s7257_s11  ;;  %996 = vst.msk [vmem:[#allocation2 + $0x229] sm:$0xff] %vm867_vm2, %v843_v46  ;;  %v846_v49 = vmax.f32 %v782_v47, 0.0  ;;  %v780_v50 = vadd.f32 %v7619_v53, %v709_v48  ;;  %v714_v0 = vmul.f32 %v5513_v61, %v7614_v51  ;;  %v1107_v61 = vld [vmem:[#allocation2 + $0x111] sm:$0xff] }
 0x128   :  { %5828 = vrot.lane.b32.xlu1 %v5827_v19, %s7255_s9  ;;  %v582_v3 = vpop.f32.mrf.mxu0 }
 0x129   :  { %999 = vst.msk [vmem:[#allocation2 + $0x249] sm:$0xff] %vm867_vm2, %v846_v49  ;;  %v844_v52 = vmax.f32 %v780_v50, 0.0  ;;  %v785_v2 = vadd.f32 %v7619_v53, %v714_v0  ;;  %v712_v5 = vmul.f32 %v7614_v51, %v582_v3 }
 0x12a   :  { %v5514_v9 = vpop.f32.mrf.mxu0 }
 0x12b   :  { %5818 = vrot.lane.b32.xlu0 %v5832_v23, %s7252_s18  ;;  %997 = vst.msk [vmem:[#allocation2 + $0x231] sm:$0xff] %vm867_vm2, %v844_v52  ;;  %v849_v8 = vmax.f32 %v785_v2, 0.0  ;;  %v783_v10 = vadd.f32 %v7619_v53, %v712_v5  ;;  %v715_v11 = vmul.f32 %v5514_v9, %v7614_v51 }
 0x12c   :  { %5833 = vrot.lane.b32.xlu1 %v5832_v23, %s7256_s10  ;;  %v585_v12 = vpop.f32.mrf.mxu0 }
 0x12d   :  { %1002 = vst.msk [vmem:[#allocation2 + $0x271] sm:$0xff] %vm867_vm2, %v849_v8  ;;  %v847_v16 = vmax.f32 %v783_v10, 0.0  ;;  %v786_v17 = vadd.f32 %v7619_v53, %v715_v11  ;;  %v713_v18 = vmul.f32 %v7614_v51, %v585_v12  ;;  %v1171_v8 = vld [vmem:[#allocation2 + $0x112] sm:$0xff] }
 0x12e   :  { %v5517_v36 = vpop.f32.mrf.mxu0  ;;  %v5972_v12 = vpack.i.bf16 %v1171_v8, %v1170_v7 }
 0x12f   :  { %5823 = vrot.lane.b32.xlu0 %v5837_v26, %s7253_s23  ;;  %1000 = vst.msk [vmem:[#allocation2 + $0x259] sm:$0xff] %vm867_vm2, %v847_v16  ;;  %v850_v22 = vmax.f32 %v786_v17, 0.0  ;;  %v784_v23 = vadd.f32 %v7619_v53, %v713_v18  ;;  %v718_v37 = vmul.f32 %v5517_v36, %v7614_v51  ;;  %v1238_v16 = vld [vmem:[#allocation2 + $0x150] sm:$0xff]  ;;  %v1239_v17 = vld [vmem:[#allocation2 + $0x158] sm:$0xff] }
 0x130   :  { %5838 = vrot.lane.b32.xlu1 %v5837_v26, %s7257_s11  ;;  %v598_v38 = vpop.f32.mrf.mxu0 }
 0x131   :  { %1003 = vst.msk [vmem:[#allocation2 + $0x279] sm:$0xff] %vm867_vm2, %v850_v22  ;;  %v848_v26 = vmax.f32 %v784_v23, 0.0  ;;  %v789_v42 = vadd.f32 %v7619_v53, %v718_v37  ;;  %v6007_v23 = vpack.i.bf16 %v1239_v17, %v1238_v16 }
 0x132   :  { %v5518_v46 = vpop.f32.mrf.mxu0 }
 0x133   :  { %5843 = vrot.lane.b32.xlu0 %v5827_v19, %s7254_s24  ;;  %v1229_v19 = vld [vmem:[#allocation2 + $0xe0] sm:$0xff]  ;;  %1001 = vst.msk [vmem:[#allocation2 + $0x261] sm:$0xff] %vm867_vm2, %v848_v26  ;;  %v853_v47 = vmax.f32 %v789_v42, 0.0  ;;  %v719_v49 = vmul.f32 %v5518_v46, %v7614_v51  ;;  %v1302_v26 = vld [vmem:[#allocation2 + $0x151] sm:$0xff] }
 0x134   :  { %5848 = vrot.lane.b32.xlu1 %v5847_v33, %s7252_s18  ;;  %v5917_v24 = vpack.i.bf16 %v1229_v19, %v1228_v15  ;;  %v601_v50 = vpop.f32.mrf.mxu0  ;;  %v1367_v46 = vld [vmem:[#allocation2 + $0x15a] sm:$0xff] }
 0x135   :  { %1006 = vst.msk [vmem:[#allocation2 + $0x2a1] sm:$0xff] %vm867_vm2, %v853_v47  ;;  %v790_v58 = vadd.f32 %v7619_v53, %v719_v49  ;;  %v717_v59 = vmul.f32 %v7614_v51, %v601_v50 }
 0x136   :  { %v5521_v18 = vpop.f32.mrf.mxu0 }
 0x137   :  { %5858 = vrot.lane.b32.xlu0 %v5857_v43, %s7255_s9  ;;  %v854_v62 = vmax.f32 %v790_v58, 0.0  ;;  %v788_v63 = vadd.f32 %v7619_v53, %v717_v59  ;;  %v722_v19 = vmul.f32 %v5521_v18, %v7614_v51  ;;  %v1111_v58 = vld [vmem:[#allocation2 + $0x141] sm:$0xff] }
 0x138   :  { %5853 = vrot.lane.b32.xlu1 %v5852_v45, %s7253_s23  ;;  %v614_v20 = vpop.f32.mrf.mxu0 }
 0x139   :  { %1007 = vst.msk [vmem:[#allocation2 + $0x2a9] sm:$0xff] %vm867_vm2, %v854_v62  ;;  %v852_v5 = vmax.f32 %v788_v63, 0.0  ;;  %v1237_v62 = vld [vmem:[#allocation2 + $0x140] sm:$0xff] }
 0x13a   :  { %v1174_v63 = vld [vmem:[#allocation2 + $0x13a] sm:$0xff] }
 0x13b   :  { %5863 = vrot.lane.b32.xlu0 %v5847_v33, %s7256_s10  ;;  %v5947_v33 = vpack.i.bf16 %v1235_v30, %v1234_v29  ;;  %1005 = vst.msk [vmem:[#allocation2 + $0x291] sm:$0xff] %vm867_vm2, %v852_v5  ;;  %v1303_v29 = vld [vmem:[#allocation2 + $0x159] sm:$0xff]  ;;  %v5522_v30 = vpop.f32.mrf.mxu0 }
 0x13c   :  { %5873 = vrot.lane.b32.xlu1 %v5857_v43, %s7254_s24  ;;  %v716_v43 = vmul.f32 %v7614_v51, %v598_v38  ;;  %v723_v35 = vmul.f32 %v5522_v30, %v7614_v51 }
 0x13d   :  { %v617_v36 = vpop.f32.mrf.mxu0 }
 0x13e   :  { %v787_v48 = vadd.f32 %v7619_v53, %v716_v43  ;;  %v794_v43 = vadd.f32 %v7619_v53, %v723_v35 }
 0x13f   :  { %5868 = vrot.lane.b32.xlu0 %v5852_v45, %s7257_s11  ;;  %v1363_v45 = vld [vmem:[#allocation2 + $0x12a] sm:$0xff]  ;;  %v5525_v8 = vpop.f32.mrf.mxu0 }
 0x140   :  { %5888 = vrot.lane.b32.xlu1 %v5887_v56, %s7255_s9  ;;  %v5957_v55 = vpack.i.bf16 %v1363_v45, %v1362_v44  ;;  %v721_v44 = vmul.f32 %v7614_v51, %v617_v36  ;;  %v1366_v45 = vld [vmem:[#allocation2 + $0x152] sm:$0xff]  ;;  %v858_v47 = vmax.f32 %v794_v43, 0.0 }
 0x141   :  { %v630_v16 = vpop.f32.mrf.mxu0 }
 0x142   :  { %1011 = vst.msk [vmem:[#allocation2 + $0x2d9] sm:$0xff] %vm867_vm2, %v858_v47 }
 0x143   :  { %5878 = vrot.lane.b32.xlu0 %v5892_v60, %s7252_s18 }
 0x144   :  { %5893 = vrot.lane.b32.xlu1 %v5892_v60, %s7256_s10  ;;  %v1106_v60 = vld [vmem:[#allocation2 + $0x109] sm:$0xff] }
 0x145   :  { %v5967_v3 = vpack.i.bf16 %v1107_v61, %v1106_v60  ;;  %v1236_v61 = vld [vmem:[#allocation2 + $0x138] sm:$0xff] }
 0x147   :  { %5883 = vrot.lane.b32.xlu0 %v5897_v4, %s7253_s23 }
 0x148   :  { %5898 = vrot.lane.b32.xlu1 %v5897_v4, %s7257_s11  ;;  %v1232_v4 = vld [vmem:[#allocation2 + $0x108] sm:$0xff] }
 0x149   :  { %v5977_v11 = vpack.i.bf16 %v1233_v6, %v1232_v4  ;;  %v6037_v6 = vpack.i.bf16 %v1237_v62, %v1236_v61  ;;  %v1370_v61 = vld [vmem:[#allocation2 + $0x182] sm:$0xff]  ;;  %v1371_v62 = vld [vmem:[#allocation2 + $0x18a] sm:$0xff] }
 0x14b   :  { %5903 = vrot.lane.b32.xlu0 %v5887_v56, %s7254_s24  ;;  %v851_v56 = vmax.f32 %v787_v48, 0.0  ;;  %v792_v48 = vadd.f32 %v7619_v53, %v721_v44 }
 0x14c   :  { %5908 = vrot.lane.b32.xlu1 %v5907_v13, %s7252_s18 }
 0x14d   :  { %1004 = vst.msk [vmem:[#allocation2 + $0x289] sm:$0xff] %vm867_vm2, %v851_v56  ;;  %v856_v56 = vmax.f32 %v792_v48, 0.0 }
 0x14f   :  { %5918 = vrot.lane.b32.xlu0 %v5917_v24, %s7255_s9  ;;  %1009 = vst.msk [vmem:[#allocation2 + $0x2c1] sm:$0xff] %vm867_vm2, %v856_v56 }
 0x150   :  { %5913 = vrot.lane.b32.xlu1 %v5912_v25, %s7253_s23 }
 0x153   :  { %5923 = vrot.lane.b32.xlu0 %v5907_v13, %s7256_s10 }
 0x154   :  { %5933 = vrot.lane.b32.xlu1 %v5917_v24, %s7254_s24  ;;  %v793_v24 = vadd.f32 %v7619_v53, %v722_v19  ;;  %v7941_v19 = vld [vmem:[%s11049_s3] ss:$0 sm:$0xff] }
 0x155   :  { %v7838_v31 = vpop.permute.xlu0 %5648 }
 0x156   :  { %v7840_v32 = vpop.permute.xlu1 %5643 }
 0x157   :  { %5928 = vrot.lane.b32.xlu0 %v5912_v25, %s7257_s11  ;;  %v720_v25 = vmul.f32 %v7614_v51, %v614_v20  ;;  %v1110_v51 = vld [vmem:[#allocation2 + $0x139] sm:$0xff]  ;;  %v5645_v27 = vunpack.i.l.bf16 %v7840_v32 }
 0x158   :  { %5948 = vrot.lane.b32.xlu1 %v5947_v33, %s7255_s9 }
 0x159   :  { %v7845_v39 = vpop.permute.xlu0 %5668  ;;  %v791_v34 = vadd.f32 %v7619_v53, %v720_v25  ;;  %v6027_v53 = vpack.i.bf16 %v1111_v58, %v1110_v51  ;;  %v1243_v25 = vld [vmem:[#allocation2 + $0x188] sm:$0xff] }
 0x15a   :  { %v7847_v40 = vpop.permute.xlu1 %5653  ;;  %v1240_v58 = vld [vmem:[#allocation2 + $0x168] sm:$0xff] }
 0x15b   :  { %5938 = vrot.lane.b32.xlu0 %v5952_v41, %s7252_s18  ;;  %v855_v42 = vmax.f32 %v791_v34, 0.0 }
 0x15c   :  { %5953 = vrot.lane.b32.xlu1 %v5952_v41, %s7256_s10  ;;  %v6012_v41 = vpack.i.bf16 %v1303_v29, %v1302_v26  ;;  %v5526_v26 = vpop.f32.mrf.mxu0 }
 0x15d   :  { %v7857_v54 = vpop.permute.xlu0 %5673  ;;  %1008 = vst.msk [vmem:[#allocation2 + $0x2b9] sm:$0xff] %vm867_vm2, %v855_v42 }
 0x15e   :  { %v7855_v52 = vpop.permute.xlu1 %5658  ;;  %v633_v34 = vpop.f32.mrf.mxu0 }
 0x15f   :  { %5943 = vrot.lane.b32.xlu0 %v5957_v55, %s7253_s23 }
 0x160   :  { %5958 = vrot.lane.b32.xlu1 %v5957_v55, %s7257_s11  ;;  %v6017_v55 = vpack.i.bf16 %v1367_v46, %v1366_v45  ;;  %v1306_v45 = vld [vmem:[#allocation2 + $0x181] sm:$0xff]  ;;  %v1307_v46 = vld [vmem:[#allocation2 + $0x189] sm:$0xff] }
 0x161   :  { %v7868_v2 = vpop.permute.xlu0 %5683  ;;  %v6062_v51 = vpack.i.bf16 %v1307_v46, %v1306_v45 }
 0x162   :  { %v7866_v0 = vpop.permute.xlu1 %5663 }
 0x163   :  { %5963 = vrot.lane.b32.xlu0 %v5947_v33, %s7254_s24  ;;  %v857_v33 = vmax.f32 %v793_v24, 0.0  ;;  %v1242_v24 = vld [vmem:[#allocation2 + $0x180] sm:$0xff] }
 0x164   :  { %5968 = vrot.lane.b32.xlu1 %v5967_v3, %s7252_s18 }
 0x165   :  { %v7876_v10 = vpop.permute.xlu0 %5688  ;;  %1010 = vst.msk [vmem:[#allocation2 + $0x2d1] sm:$0xff] %vm867_vm2, %v857_v33 }
 0x166   :  { %v7874_v9 = vpop.permute.xlu1 %5678 }
 0x167   :  { %5978 = vrot.lane.b32.xlu0 %v5977_v11, %s7255_s9 }
 0x168   :  { %5973 = vrot.lane.b32.xlu1 %v5972_v12, %s7253_s23 }
 0x169   :  { %v7880_v13 = vpop.permute.xlu0 %5693 }
 0x16a   :  { %v7882_v15 = vpop.permute.xlu1 %5708 }
 0x16b   :  { %11299 = vst [vmem:[#allocation4_spill] sm:$0xff] %v7882_v15  ;;  %5983 = vrot.lane.b32.xlu0 %v5967_v3, %s7256_s10  ;;  %v1175_v3 = vld [vmem:[#allocation2 + $0x142] sm:$0xff] }
 0x16c   :  { %5993 = vrot.lane.b32.xlu1 %v5977_v11, %s7254_s24  ;;  %v6032_v7 = vpack.i.bf16 %v1175_v3, %v1174_v63  ;;  %v7931_v11 = vld [vmem:[%s11048_s2] ss:$0 sm:$0xff]  ;;  %v1241_v63 = vld [vmem:[#allocation2 + $0x170] sm:$0xff]  ;;  %v8338_v15 = vld [vmem:[#allocation2 + $0x121] sm:$0xff] }
 0x16d   :  { %v7889_v22 = vpop.permute.xlu0 %5698  ;;  %v727_v33 = vmul.f32 %v7931_v11, %v5526_v26  ;;  %v725_v44 = vmul.f32 %v7931_v11, %v633_v34  ;;  %v1369_v26 = vld [vmem:[#allocation2 + $0x172] sm:$0xff]  ;;  %v1121_v34 = vld [vmem:[#allocation2 + $0x1e9] sm:$0xff]  ;;  %11430 = vst [vmem:[#allocation135_spill] sm:$0xff] %v8338_v15 }
 0x16e   :  { %v7887_v21 = vpop.permute.xlu1 %5713  ;;  %v8465_v15 = vld [vmem:[#allocation2 + $0x219] sm:$0xff] }
 0x16f   :  { %11300 = vst [vmem:[#allocation5_spill] sm:$0xff] %v7887_v21  ;;  %5988 = vrot.lane.b32.xlu0 %v5972_v12, %s7257_s11  ;;  %v726_v12 = vmul.f32 %v7931_v11, %v5525_v8  ;;  %v798_v43 = vadd.f32 %v7941_v19, %v727_v33  ;;  %v796_v48 = vadd.f32 %v7941_v19, %v725_v44  ;;  %v1120_v33 = vld [vmem:[#allocation2 + $0x1e1] sm:$0xff]  ;;  %v8334_v21 = vld [vmem:[#allocation2 + $0x10a] sm:$0xff]  ;;  %11459 = vst [vmem:[#allocation164_spill] sm:$0xff] %v8465_v15 }
 0x170   :  { %6008 = vrot.lane.b32.xlu1 %v6007_v23, %s7255_s9  ;;  %v6087_v8 = vpack.i.bf16 %v1241_v63, %v1240_v58  ;;  %v1246_v63 = vld [vmem:[#allocation2 + $0x1e0] sm:$0xff]  ;;  %11429 = vst [vmem:[#allocation134_spill] sm:$0xff] %v8334_v21 }
 0x171   :  { %v7899_v38 = vpop.permute.xlu0 %5703  ;;  %v797_v20 = vadd.f32 %v7941_v19, %v726_v12  ;;  %v862_v47 = vmax.f32 %v798_v43, 0.0  ;;  %v1304_v12 = vld [vmem:[#allocation2 + $0x169] sm:$0xff] }
 0x172   :  { %v7897_v37 = vpop.permute.xlu1 %5718  ;;  %11302 = vst [vmem:[#allocation7_spill] sm:$0xff] %v7899_v38  ;;  %v8332_v38 = vld [vmem:[#allocation2 + $0x111] sm:$0xff]  ;;  %v8461_v21 = vld [vmem:[#allocation2 + $0x202] sm:$0xff] }
 0x173   :  { %11301 = vst [vmem:[#allocation6_spill] sm:$0xff] %v7897_v37  ;;  %5998 = vrot.lane.b32.xlu0 %v6012_v41, %s7252_s18  ;;  %v861_v29 = vmax.f32 %v797_v20, 0.0  ;;  %1015 = vst.msk [vmem:[#allocation2 + $0x309] sm:$0xff] %vm867_vm2, %v862_v47  ;;  %v8310_v37 = vld [vmem:[#allocation2 + $0xda] sm:$0xff] }
 0x174   :  { %6013 = vrot.lane.b32.xlu1 %v6012_v41, %s7256_s10  ;;  %v6057_v41 = vpack.i.bf16 %v1243_v25, %v1242_v24  ;;  %v1368_v25 = vld [vmem:[#allocation2 + $0x16a] sm:$0xff]  ;;  %11423 = vst [vmem:[#allocation128_spill] sm:$0xff] %v8310_v37  ;;  %11457 = vst [vmem:[#allocation162_spill] sm:$0xff] %v8461_v21 }
 0x175   :  { %v7908_v49 = vpop.permute.xlu0 %5723  ;;  %1014 = vst.msk [vmem:[#allocation2 + $0x301] sm:$0xff] %vm867_vm2, %v861_v29  ;;  %v5529_v29 = vpop.f32.mrf.mxu0  ;;  %v6097_v44 = vpack.i.bf16 %v1369_v26, %v1368_v25  ;;  %v1185_v25 = vld [vmem:[#allocation2 + $0x1ea] sm:$0xff] }
 0x176   :  { %11303 = vst [vmem:[#allocation8_spill] sm:$0xff] %v7908_v49  ;;  %v7910_v50 = vpop.permute.xlu1 %5728  ;;  %v8285_v49 = vld [vmem:[#allocation2 + $0xc1] sm:$0xff] }
 0x177   :  { %11304 = vst [vmem:[#allocation9_spill] sm:$0xff] %v7910_v50  ;;  %6003 = vrot.lane.b32.xlu0 %v6017_v55, %s7253_s23  ;;  %11415 = vst [vmem:[#allocation120_spill] sm:$0xff] %v8285_v49  ;;  %v8401_v50 = vld [vmem:[#allocation2 + $0x16a] sm:$0xff]  ;;  %v8417_v49 = vld [vmem:[#allocation2 + $0x182] sm:$0xff] }
 0x178   :  { %6018 = vrot.lane.b32.xlu1 %v6017_v55, %s7257_s11  ;;  %11444 = vst [vmem:[#allocation149_spill] sm:$0xff] %v8401_v50  ;;  %11446 = vst [vmem:[#allocation151_spill] sm:$0xff] %v8417_v49  ;;  %v5676_v49 = vunpack.i.h.bf16 %v7857_v54 }
 0x179   :  { %v7916_v59 = vpop.permute.xlu0 %5738 }
 0x17a   :  { %11305 = vst [vmem:[#allocation10_spill] sm:$0xff] %v7916_v59  ;;  %v7918_v60 = vpop.permute.xlu1 %5733  ;;  %v8291_v59 = vld [vmem:[#allocation2 + $0xca] sm:$0xff] }
 0x17b   :  { %11306 = vst [vmem:[#allocation11_spill] sm:$0xff] %v7918_v60  ;;  %6023 = vrot.lane.b32.xlu0 %v6007_v23, %s7254_s24  ;;  %v724_v23 = vmul.f32 %v7931_v11, %v630_v16  ;;  %v1305_v16 = vld [vmem:[#allocation2 + $0x171] sm:$0xff]  ;;  %11418 = vst [vmem:[#allocation123_spill] sm:$0xff] %v8291_v59 }
 0x17c   :  { %6028 = vrot.lane.b32.xlu1 %v6027_v53, %s7252_s18  ;;  %v6092_v24 = vpack.i.bf16 %v1305_v16, %v1304_v12  ;;  %v1247_v16 = vld [vmem:[#allocation2 + $0x1e8] sm:$0xff]  ;;  %v8336_v60 = vld [vmem:[#allocation2 + $0x112] sm:$0xff] }
 0x17d   :  { %v7922_v4 = vpop.permute.xlu0 %5743  ;;  %v795_v30 = vadd.f32 %v7941_v19, %v724_v23 }
 0x17e   :  { %11307 = vst [vmem:[#allocation12_spill] sm:$0xff] %v7922_v4  ;;  %v7924_v5 = vpop.permute.xlu1 %5753  ;;  %v8289_v4 = vld [vmem:[#allocation2 + $0xc2] sm:$0xff] }
 0x17f   :  { %11308 = vst [vmem:[#allocation13_spill] sm:$0xff] %v7924_v5  ;;  %6038 = vrot.lane.b32.xlu0 %v6037_v6, %s7255_s9  ;;  %v859_v42 = vmax.f32 %v795_v30, 0.0  ;;  %v730_v30 = vmul.f32 %v7931_v11, %v5529_v29  ;;  %v8287_v5 = vld [vmem:[#allocation2 + $0xc9] sm:$0xff]  ;;  %11417 = vst [vmem:[#allocation122_spill] sm:$0xff] %v8289_v4 }
 0x180   :  { %6033 = vrot.lane.b32.xlu1 %v6032_v7, %s7253_s23  ;;  %11416 = vst [vmem:[#allocation121_spill] sm:$0xff] %v8287_v5  ;;  %v8419_v5 = vld [vmem:[#allocation2 + $0x18a] sm:$0xff] }
 0x181   :  { %v7934_v17 = vpop.permute.xlu0 %5748  ;;  %1012 = vst.msk [vmem:[#allocation2 + $0x2e9] sm:$0xff] %vm867_vm2, %v859_v42  ;;  %v801_v45 = vadd.f32 %v7941_v19, %v730_v30  ;;  %11447 = vst [vmem:[#allocation152_spill] sm:$0xff] %v8419_v5  ;;  %v5681_v5 = vunpack.i.h.bf16 %v7874_v9 }
 0x182   :  { %11309 = vst [vmem:[#allocation14_spill] sm:$0xff] %v7934_v17  ;;  %v7936_v18 = vpop.permute.xlu1 %5768  ;;  %v8283_v17 = vld [vmem:[#allocation2 + $0xb2] sm:$0xff] }
 0x183   :  { %11310 = vst [vmem:[#allocation15_spill] sm:$0xff] %v7936_v18  ;;  %6043 = vrot.lane.b32.xlu0 %v6027_v53, %s7256_s10  ;;  %v860_v53 = vmax.f32 %v796_v48, 0.0  ;;  %v6107_v48 = vpack.i.bf16 %v1121_v34, %v1120_v33  ;;  %v6117_v34 = vpack.i.bf16 %v1247_v16, %v1246_v63  ;;  %v1309_v63 = vld [vmem:[#allocation2 + $0x1d1] sm:$0xff]  ;;  %11414 = vst [vmem:[#allocation119_spill] sm:$0xff] %v8283_v17  ;;  %v8423_v17 = vld [vmem:[#allocation2 + $0x1e9] sm:$0xff] }
 0x184   :  { %6053 = vrot.lane.b32.xlu1 %v6037_v6, %s7254_s24  ;;  %v1372_v16 = vld [vmem:[#allocation2 + $0x1ca] sm:$0xff]  ;;  %11449 = vst [vmem:[#allocation154_spill] sm:$0xff] %v8423_v17  ;;  %v7133_v17 = vld [vmem:[#allocation2 + $0x38] sm:$0xff] }
 0x185   :  { %v7951_v36 = vpop.permute.xlu0 %5758  ;;  %1013 = vst.msk [vmem:[#allocation2 + $0x2f1] sm:$0xff] %vm867_vm2, %v860_v53  ;;  %v8268_v18 = vld [vmem:[#allocation2 + $0x91] sm:$0xff] }
 0x186   :  { %v7949_v35 = vpop.permute.xlu1 %5773  ;;  %11312 = vst [vmem:[#allocation17_spill] sm:$0xff] %v7951_v36  ;;  %11408 = vst [vmem:[#allocation113_spill] sm:$0xff] %v8268_v18  ;;  %v8407_v18 = vld [vmem:[#allocation2 + $0x1e8] sm:$0xff] }
 0x187   :  { %11311 = vst [vmem:[#allocation16_spill] sm:$0xff] %v7949_v35  ;;  %6048 = vrot.lane.b32.xlu0 %v6032_v7, %s7257_s11  ;;  %v6067_v7 = vpack.i.bf16 %v1371_v62, %v1370_v61 }
 0x188   :  { %6058 = vrot.lane.b32.xlu1 %v6057_v41, %s7255_s9 }
 0x189   :  { %v7962_v56 = vpop.permute.xlu0 %5763 }
 0x18a   :  { %v7960_v55 = vpop.permute.xlu1 %5778  ;;  %11314 = vst [vmem:[#allocation19_spill] sm:$0xff] %v7962_v56  ;;  %v8250_v56 = vld [vmem:[#allocation2 + $0x6a] sm:$0xff] }
 0x18b   :  { %11313 = vst [vmem:[#allocation18_spill] sm:$0xff] %v7960_v55  ;;  %6073 = vrot.lane.b32.xlu0 %v6057_v41, %s7254_s24  ;;  %v646_v41 = vpop.f32.mrf.mxu0  ;;  %v8246_v55 = vld [vmem:[#allocation2 + $0x81] sm:$0xff]  ;;  %11402 = vst [vmem:[#allocation107_spill] sm:$0xff] %v8250_v56 }
 0x18c   :  { %6063 = vrot.lane.b32.xlu1 %v6062_v51, %s7256_s10  ;;  %v728_v46 = vmul.f32 %v7931_v11, %v646_v41  ;;  %v865_v51 = vmax.f32 %v801_v45, 0.0  ;;  %11400 = vst [vmem:[#allocation105_spill] sm:$0xff] %v8246_v55  ;;  %v1333_v36 = vld [vmem:[#allocation2 + $0x2f1] sm:$0xff] }
 0x18d   :  { %v7968_v3 = vpop.permute.xlu0 %5783  ;;  %v5530_v47 = vpop.f32.mrf.mxu0  ;;  %v8378_v55 = vld [vmem:[#allocation2 + $0x152] sm:$0xff] }
 0x18e   :  { %11315 = vst [vmem:[#allocation20_spill] sm:$0xff] %v7968_v3  ;;  %v7970_v6 = vpop.permute.xlu1 %5788  ;;  %v799_v58 = vadd.f32 %v7941_v19, %v728_v46  ;;  %1018 = vst.msk [vmem:[#allocation2 + $0x331] sm:$0xff] %vm867_vm2, %v865_v51  ;;  %v731_v12 = vmul.f32 %v7931_v11, %v5530_v47  ;;  %v1244_v46 = vld [vmem:[#allocation2 + $0x1c8] sm:$0xff]  ;;  %v1245_v47 = vld [vmem:[#allocation2 + $0x1d0] sm:$0xff] }
 0x18f   :  { %11316 = vst [vmem:[#allocation21_spill] sm:$0xff] %v7970_v6  ;;  %6088 = vrot.lane.b32.xlu0 %v6087_v8, %s7255_s9  ;;  %v649_v53 = vpop.f32.mrf.mxu0  ;;  %v8281_v6 = vld [vmem:[#allocation2 + $0xaa] sm:$0xff]  ;;  %11438 = vst [vmem:[#allocation143_spill] sm:$0xff] %v8378_v55  ;;  %v8542_v55 = vld [vmem:[#allocation2 + $0x242] sm:$0xff] }
 0x190   :  { %6068 = vrot.lane.b32.xlu1 %v6067_v7, %s7257_s11  ;;  %v863_v7 = vmax.f32 %v799_v58, 0.0  ;;  %v802_v26 = vadd.f32 %v7941_v19, %v731_v12  ;;  %v729_v29 = vmul.f32 %v7931_v11, %v649_v53  ;;  %v6142_v58 = vpack.i.bf16 %v1245_v47, %v1244_v46  ;;  %v1308_v53 = vld [vmem:[#allocation2 + $0x1c9] sm:$0xff]  ;;  %11413 = vst [vmem:[#allocation118_spill] sm:$0xff] %v8281_v6  ;;  %v8421_v6 = vld [vmem:[#allocation2 + $0x1e1] sm:$0xff] }
 0x191   :  { %v7974_v20 = vpop.permute.xlu0 %5798  ;;  %v6147_v12 = vpack.i.bf16 %v1309_v63, %v1308_v53  ;;  %v1250_v47 = vld [vmem:[#allocation2 + $0x210] sm:$0xff]  ;;  %11448 = vst [vmem:[#allocation153_spill] sm:$0xff] %v8421_v6  ;;  %11470 = vst [vmem:[#allocation175_spill] sm:$0xff] %v8542_v55 }
 0x192   :  { %11317 = vst [vmem:[#allocation22_spill] sm:$0xff] %v7974_v20  ;;  %v7976_v23 = vpop.permute.xlu1 %5793  ;;  %1016 = vst.msk [vmem:[#allocation2 + $0x319] sm:$0xff] %vm867_vm2, %v863_v7  ;;  %v800_v45 = vadd.f32 %v7941_v19, %v729_v29  ;;  %v8248_v20 = vld [vmem:[#allocation2 + $0x62] sm:$0xff] }
 0x193   :  { %11318 = vst [vmem:[#allocation23_spill] sm:$0xff] %v7976_v23  ;;  %6093 = vrot.lane.b32.xlu0 %v6092_v24, %s7256_s10  ;;  %11401 = vst [vmem:[#allocation106_spill] sm:$0xff] %v8248_v20  ;;  %v8272_v23 = vld [vmem:[#allocation2 + $0x92] sm:$0xff] }
 0x194   :  { %6078 = vrot.lane.b32.xlu1 %v6092_v24, %s7252_s18  ;;  %v1184_v24 = vld [vmem:[#allocation2 + $0x1e2] sm:$0xff]  ;;  %11410 = vst [vmem:[#allocation115_spill] sm:$0xff] %v8272_v23  ;;  %v8399_v23 = vld [vmem:[#allocation2 + $0x171] sm:$0xff] }
 0x195   :  { %v7981_v42 = vpop.permute.xlu0 %5803  ;;  %v6112_v41 = vpack.i.bf16 %v1185_v25, %v1184_v24  ;;  %v1373_v24 = vld [vmem:[#allocation2 + $0x1d2] sm:$0xff]  ;;  %11443 = vst [vmem:[#allocation148_spill] sm:$0xff] %v8399_v23 }
 0x196   :  { %11319 = vst [vmem:[#allocation24_spill] sm:$0xff] %v7981_v42  ;;  %v7983_v43 = vpop.permute.xlu1 %5813  ;;  %v1124_v25 = vld [vmem:[#allocation2 + $0x211] sm:$0xff]  ;;  %v8244_v42 = vld [vmem:[#allocation2 + $0x79] sm:$0xff] }
 0x197   :  { %11320 = vst [vmem:[#allocation25_spill] sm:$0xff] %v7983_v43  ;;  %6098 = vrot.lane.b32.xlu0 %v6097_v44, %s7257_s11  ;;  %v8242_v43 = vld [vmem:[#allocation2 + $0x52] sm:$0xff]  ;;  %11399 = vst [vmem:[#allocation104_spill] sm:$0xff] %v8244_v42  ;;  %v8427_v42 = vld [vmem:[#allocation2 + $0x1ea] sm:$0xff] }
 0x198   :  { %6083 = vrot.lane.b32.xlu1 %v6097_v44, %s7253_s23  ;;  %v866_v44 = vmax.f32 %v802_v26, 0.0  ;;  %v1125_v26 = vld [vmem:[#allocation2 + $0x219] sm:$0xff]  ;;  %11398 = vst [vmem:[#allocation103_spill] sm:$0xff] %v8242_v43  ;;  %v8382_v43 = vld [vmem:[#allocation2 + $0x181] sm:$0xff]  ;;  %11451 = vst [vmem:[#allocation156_spill] sm:$0xff] %v8427_v42 }
 0x199   :  { %v7990_v61 = vpop.permute.xlu0 %5808  ;;  %11440 = vst [vmem:[#allocation145_spill] sm:$0xff] %v8382_v43  ;;  %v8431_v20 = vld [vmem:[#allocation2 + $0x210] sm:$0xff]  ;;  %v1336_v50 = vld [vmem:[#allocation2 + $0x319] sm:$0xff] }
 0x19a   :  { %11321 = vst [vmem:[#allocation26_spill] sm:$0xff] %v7990_v61  ;;  %v7992_v62 = vpop.permute.xlu1 %5828  ;;  %1019 = vst.msk [vmem:[#allocation2 + $0x339] sm:$0xff] %vm867_vm2, %v866_v44  ;;  %v6157_v44 = vpack.i.bf16 %v1125_v26, %v1124_v25  ;;  %v1249_v25 = vld [vmem:[#allocation2 + $0x200] sm:$0xff]  ;;  %v1269_v61 = vld [vmem:[#allocation2 + $0x2f0] sm:$0xff] }
 0x19b   :  { %11322 = vst [vmem:[#allocation27_spill] sm:$0xff] %v7992_v62  ;;  %6108 = vrot.lane.b32.xlu0 %v6107_v48, %s7252_s18  ;;  %v7132_v42 = vld [vmem:[#allocation2 + $0x30] sm:$0xff] }
 0x19c   :  { %6103 = vrot.lane.b32.xlu1 %v6087_v8, %s7254_s24  ;;  %v864_v8 = vmax.f32 %v800_v45, 0.0  ;;  %v3649_v6 = vsel %vm867_vm2, %v7132_v42, %v5645_v27 }
 0x19d   :  { %v8003_v33 = vpop.permute.xlu0 %5818 }
 0x19e   :  { %v8001_v30 = vpop.permute.xlu1 %5833  ;;  %11324 = vst [vmem:[#allocation29_spill] sm:$0xff] %v8003_v33  ;;  %1017 = vst.msk [vmem:[#allocation2 + $0x321] sm:$0xff] %vm867_vm2, %v864_v8  ;;  %v1188_v8 = vld [vmem:[#allocation2 + $0x212] sm:$0xff] }
 0x19f   :  { %11323 = vst [vmem:[#allocation28_spill] sm:$0xff] %v8001_v30  ;;  %6113 = vrot.lane.b32.xlu0 %v6112_v41, %s7253_s23  ;;  %v1209_v30 = vld [vmem:[#allocation2 + $0x30a] sm:$0xff] }
 0x1a0   :  { %6118 = vrot.lane.b32.xlu1 %v6117_v34, %s7255_s9 }
 0x1a1   :  { %v8011_v11 = vpop.permute.xlu0 %5823  ;;  %v1339_v15 = vld [vmem:[#allocation2 + $0x339] sm:$0xff] }
 0x1a2   :  { %v8009_v51 = vpop.permute.xlu1 %5838  ;;  %11326 = vst [vmem:[#allocation31_spill] sm:$0xff] %v8011_v11  ;;  %v1208_v11 = vld [vmem:[#allocation2 + $0x302] sm:$0xff] }
 0x1a3   :  { %11325 = vst [vmem:[#allocation30_spill] sm:$0xff] %v8009_v51  ;;  %6143 = vrot.lane.b32.xlu0 %v6142_v58, %s7255_s9  ;;  %v1189_v58 = vld [vmem:[#allocation2 + $0x21a] sm:$0xff] }
 0x1a4   :  { %6123 = vrot.lane.b32.xlu1 %v6107_v48, %s7256_s10  ;;  %v6152_v48 = vpack.i.bf16 %v1373_v24, %v1372_v16  ;;  %v6162_v24 = vpack.i.bf16 %v1189_v58, %v1188_v8  ;;  %v1376_v8 = vld [vmem:[#allocation2 + $0x1fa] sm:$0xff]  ;;  %v1377_v58 = vld [vmem:[#allocation2 + $0x202] sm:$0xff] }
 0x1a5   :  { %v8016_v19 = vpop.permute.xlu0 %5843  ;;  %v1205_v51 = vld [vmem:[#allocation2 + $0x2da] sm:$0xff] }
 0x1a6   :  { %11327 = vst [vmem:[#allocation32_spill] sm:$0xff] %v8016_v19  ;;  %v8018_v7 = vpop.permute.xlu1 %5848  ;;  %v1273_v56 = vld [vmem:[#allocation2 + $0x320] sm:$0xff] }
 0x1a7   :  { %11328 = vst [vmem:[#allocation33_spill] sm:$0xff] %v8018_v7  ;;  %6148 = vrot.lane.b32.xlu0 %v6147_v12, %s7256_s10  ;;  %v1268_v7 = vld [vmem:[#allocation2 + $0x2e8] sm:$0xff]  ;;  %v1400_v21 = vld [vmem:[#allocation2 + $0x31a] sm:$0xff] }
 0x1a8   :  { %6128 = vrot.lane.b32.xlu1 %v6112_v41, %s7257_s11  ;;  %v1251_v41 = vld [vmem:[#allocation2 + $0x218] sm:$0xff] }
 0x1a9   :  { %v8022_v29 = vpop.permute.xlu0 %5858  ;;  %v6167_v16 = vpack.i.bf16 %v1251_v41, %v1250_v47 }
 0x1aa   :  { %11329 = vst [vmem:[#allocation34_spill] sm:$0xff] %v8022_v29  ;;  %v8024_v34 = vpop.permute.xlu1 %5853  ;;  %v1271_v29 = vld [vmem:[#allocation2 + $0x308] sm:$0xff] }
 0x1ab   :  { %11330 = vst [vmem:[#allocation35_spill] sm:$0xff] %v8024_v34  ;;  %6153 = vrot.lane.b32.xlu0 %v6152_v48, %s7257_s11  ;;  %v8209_v34 = vpack.i.bf16 %v1209_v30, %v1208_v11  ;;  %v5635_v30 = vunpack.i.l.bf16 %v7833_v28  ;;  %v8223_v11 = vld [vmem:[#allocation2 + $0x49] sm:$0xff] }
 0x1ac   :  { %6133 = vrot.lane.b32.xlu1 %v6147_v12, %s7252_s18  ;;  %v1248_v12 = vld [vmem:[#allocation2 + $0x1f8] sm:$0xff]  ;;  %11390 = vst [vmem:[#allocation95_spill] sm:$0xff] %v8223_v11 }
 0x1ad   :  { %v8028_v45 = vpop.permute.xlu0 %5863 }
 0x1ae   :  { %11331 = vst [vmem:[#allocation36_spill] sm:$0xff] %v8028_v45  ;;  %v8030_v46 = vpop.permute.xlu1 %5873  ;;  %v1313_v45 = vld [vmem:[#allocation2 + $0x201] sm:$0xff] }
 0x1af   :  { %11332 = vst [vmem:[#allocation37_spill] sm:$0xff] %v8030_v46  ;;  %6158 = vrot.lane.b32.xlu0 %v6157_v44, %s7252_s18  ;;  %v6192_v46 = vpack.i.bf16 %v1249_v25, %v1248_v12 }
 0x1b0   :  { %6138 = vrot.lane.b32.xlu1 %v6152_v48, %s7253_s23  ;;  %v1312_v48 = vld [vmem:[#allocation2 + $0x1f9] sm:$0xff] }
 0x1b1   :  { %v8034_v53 = vpop.permute.xlu0 %5868  ;;  %v6197_v41 = vpack.i.bf16 %v1313_v45, %v1312_v48  ;;  %v1254_v48 = vld [vmem:[#allocation2 + $0x240] sm:$0xff] }
 0x1b2   :  { %11333 = vst [vmem:[#allocation38_spill] sm:$0xff] %v8034_v53  ;;  %v8036_v63 = vpop.permute.xlu1 %5888  ;;  %v1317_v53 = vld [vmem:[#allocation2 + $0x231] sm:$0xff] }
 0x1b3   :  { %11334 = vst [vmem:[#allocation39_spill] sm:$0xff] %v8036_v63  ;;  %6163 = vrot.lane.b32.xlu0 %v6162_v24, %s7253_s23 }
 0x1b4   :  { %6168 = vrot.lane.b32.xlu1 %v6167_v16, %s7255_s9  ;;  %v1128_v16 = vld [vmem:[#allocation2 + $0x241] sm:$0xff] }
 0x1b5   :  { %v8042_v19 = vpop.permute.xlu0 %5878 }
 0x1b6   :  { %v8040_v26 = vpop.permute.xlu1 %5893  ;;  %11336 = vst [vmem:[#allocation41_spill] sm:$0xff] %v8042_v19  ;;  %v1193_v19 = vld [vmem:[#allocation2 + $0x24a] sm:$0xff] }
 0x1b7   :  { %11335 = vst [vmem:[#allocation40_spill] sm:$0xff] %v8040_v26  ;;  %6193 = vrot.lane.b32.xlu0 %v6192_v46, %s7255_s9  ;;  %v1129_v26 = vld [vmem:[#allocation2 + $0x249] sm:$0xff] }
 0x1b8   :  { %6173 = vrot.lane.b32.xlu1 %v6157_v44, %s7256_s10  ;;  %v6202_v44 = vpack.i.bf16 %v1377_v58, %v1376_v8  ;;  %v6207_v46 = vpack.i.bf16 %v1129_v26, %v1128_v16  ;;  %v1253_v26 = vld [vmem:[#allocation2 + $0x230] sm:$0xff] }
 0x1b9   :  { %v8048_v47 = vpop.permute.xlu0 %5883 }
 0x1ba   :  { %v8046_v63 = vpop.permute.xlu1 %5898  ;;  %11338 = vst [vmem:[#allocation43_spill] sm:$0xff] %v8048_v47  ;;  %v1192_v47 = vld [vmem:[#allocation2 + $0x242] sm:$0xff] }
 0x1bb   :  { %11337 = vst [vmem:[#allocation42_spill] sm:$0xff] %v8046_v63  ;;  %6198 = vrot.lane.b32.xlu0 %v6197_v41, %s7256_s10 }
 0x1bc   :  { %6178 = vrot.lane.b32.xlu1 %v6162_v24, %s7257_s11  ;;  %v1255_v24 = vld [vmem:[#allocation2 + $0x248] sm:$0xff] }
 0x1bd   :  { %v8052_v12 = vpop.permute.xlu0 %5903  ;;  %v6217_v58 = vpack.i.bf16 %v1255_v24, %v1254_v48  ;;  %v1380_v48 = vld [vmem:[#allocation2 + $0x22a] sm:$0xff]  ;;  %v1381_v24 = vld [vmem:[#allocation2 + $0x232] sm:$0xff] }
 0x1be   :  { %11339 = vst [vmem:[#allocation44_spill] sm:$0xff] %v8052_v12  ;;  %v8054_v25 = vpop.permute.xlu1 %5908 }
 0x1bf   :  { %11340 = vst [vmem:[#allocation45_spill] sm:$0xff] %v8054_v25  ;;  %6203 = vrot.lane.b32.xlu0 %v6202_v44, %s7257_s11  ;;  %v6212_v25 = vpack.i.bf16 %v1193_v19, %v1192_v47 }
 0x1c0   :  { %6183 = vrot.lane.b32.xlu1 %v6197_v41, %s7252_s18  ;;  %v1252_v41 = vld [vmem:[#allocation2 + $0x228] sm:$0xff] }
 0x1c1   :  { %v8058_v63 = vpop.permute.xlu0 %5918 }
 0x1c2   :  { %11341 = vst [vmem:[#allocation46_spill] sm:$0xff] %v8058_v63  ;;  %v8060_v45 = vpop.permute.xlu1 %5913 }
 0x1c3   :  { %11342 = vst [vmem:[#allocation47_spill] sm:$0xff] %v8060_v45  ;;  %6208 = vrot.lane.b32.xlu0 %v6207_v46, %s7252_s18  ;;  %v6242_v45 = vpack.i.bf16 %v1253_v26, %v1252_v41 }
 0x1c4   :  { %6188 = vrot.lane.b32.xlu1 %v6202_v44, %s7253_s23  ;;  %v1316_v44 = vld [vmem:[#allocation2 + $0x229] sm:$0xff] }
 0x1c5   :  { %v8064_v12 = vpop.permute.xlu0 %5923  ;;  %v6247_v47 = vpack.i.bf16 %v1317_v53, %v1316_v44  ;;  %v1258_v44 = vld [vmem:[#allocation2 + $0x270] sm:$0xff] }
 0x1c6   :  { %11343 = vst [vmem:[#allocation48_spill] sm:$0xff] %v8064_v12  ;;  %v8066_v8 = vpop.permute.xlu1 %5933  ;;  %v1321_v12 = vld [vmem:[#allocation2 + $0x261] sm:$0xff] }
 0x1c7   :  { %11344 = vst [vmem:[#allocation49_spill] sm:$0xff] %v8066_v8  ;;  %6213 = vrot.lane.b32.xlu0 %v6212_v25, %s7253_s23 }
 0x1c8   :  { %6218 = vrot.lane.b32.xlu1 %v6217_v58, %s7255_s9  ;;  %v1132_v58 = vld [vmem:[#allocation2 + $0x271] sm:$0xff] }
 0x1c9   :  { %v8070_v16 = vpop.permute.xlu0 %5928 }
 0x1ca   :  { %11345 = vst [vmem:[#allocation50_spill] sm:$0xff] %v8070_v16  ;;  %v8072_v63 = vpop.permute.xlu1 %5948  ;;  %v1197_v16 = vld [vmem:[#allocation2 + $0x27a] sm:$0xff] }
 0x1cb   :  { %11346 = vst [vmem:[#allocation51_spill] sm:$0xff] %v8072_v63  ;;  %6243 = vrot.lane.b32.xlu0 %v6242_v45, %s7255_s9  ;;  %v1133_v63 = vld [vmem:[#allocation2 + $0x279] sm:$0xff] }
 0x1cc   :  { %6223 = vrot.lane.b32.xlu1 %v6207_v46, %s7256_s10  ;;  %v6252_v46 = vpack.i.bf16 %v1381_v24, %v1380_v48  ;;  %v6257_v45 = vpack.i.bf16 %v1133_v63, %v1132_v58  ;;  %v1257_v63 = vld [vmem:[#allocation2 + $0x260] sm:$0xff] }
 0x1cd   :  { %v8078_v19 = vpop.permute.xlu0 %5938 }
 0x1ce   :  { %v8076_v8 = vpop.permute.xlu1 %5953  ;;  %11348 = vst [vmem:[#allocation53_spill] sm:$0xff] %v8078_v19  ;;  %v1196_v19 = vld [vmem:[#allocation2 + $0x272] sm:$0xff] }
 0x1cf   :  { %11347 = vst [vmem:[#allocation52_spill] sm:$0xff] %v8076_v8  ;;  %6248 = vrot.lane.b32.xlu0 %v6247_v47, %s7256_s10 }
 0x1d0   :  { %6228 = vrot.lane.b32.xlu1 %v6212_v25, %s7257_s11  ;;  %v1259_v25 = vld [vmem:[#allocation2 + $0x278] sm:$0xff] }
 0x1d1   :  { %v8084_v26 = vpop.permute.xlu0 %5943  ;;  %v6267_v24 = vpack.i.bf16 %v1259_v25, %v1258_v44  ;;  %v1384_v44 = vld [vmem:[#allocation2 + $0x25a] sm:$0xff]  ;;  %v1385_v25 = vld [vmem:[#allocation2 + $0x262] sm:$0xff] }
 0x1d2   :  { %v8082_v41 = vpop.permute.xlu1 %5958  ;;  %11350 = vst [vmem:[#allocation55_spill] sm:$0xff] %v8084_v26  ;;  %v6262_v26 = vpack.i.bf16 %v1197_v16, %v1196_v19 }
 0x1d3   :  { %11349 = vst [vmem:[#allocation54_spill] sm:$0xff] %v8082_v41  ;;  %6253 = vrot.lane.b32.xlu0 %v6252_v46, %s7257_s11 }
 0x1d4   :  { %6233 = vrot.lane.b32.xlu1 %v6247_v47, %s7252_s18  ;;  %v1256_v47 = vld [vmem:[#allocation2 + $0x258] sm:$0xff] }
 0x1d5   :  { %v8088_v8 = vpop.permute.xlu0 %5963 }
 0x1d6   :  { %11351 = vst [vmem:[#allocation56_spill] sm:$0xff] %v8088_v8  ;;  %v8090_v53 = vpop.permute.xlu1 %5968 }
 0x1d7   :  { %11352 = vst [vmem:[#allocation57_spill] sm:$0xff] %v8090_v53  ;;  %6258 = vrot.lane.b32.xlu0 %v6257_v45, %s7252_s18  ;;  %v6292_v53 = vpack.i.bf16 %v1257_v63, %v1256_v47 }
 0x1d8   :  { %6238 = vrot.lane.b32.xlu1 %v6252_v46, %s7253_s23  ;;  %v1320_v46 = vld [vmem:[#allocation2 + $0x259] sm:$0xff] }
 0x1d9   :  { %v8094_v41 = vpop.permute.xlu0 %5978  ;;  %v6297_v19 = vpack.i.bf16 %v1321_v12, %v1320_v46  ;;  %v1262_v46 = vld [vmem:[#allocation2 + $0x2a0] sm:$0xff] }
 0x1da   :  { %11353 = vst [vmem:[#allocation58_spill] sm:$0xff] %v8094_v41  ;;  %v8096_v48 = vpop.permute.xlu1 %5973 }
 0x1db   :  { %11354 = vst [vmem:[#allocation59_spill] sm:$0xff] %v8096_v48  ;;  %6263 = vrot.lane.b32.xlu0 %v6262_v26, %s7253_s23  ;;  %v1204_v48 = vld [vmem:[#allocation2 + $0x2d2] sm:$0xff] }
 0x1dc   :  { %6268 = vrot.lane.b32.xlu1 %v6267_v24, %s7255_s9  ;;  %v1136_v24 = vld [vmem:[#allocation2 + $0x2a1] sm:$0xff] }
 0x1dd   :  { %v8100_v58 = vpop.permute.xlu0 %5983 }
 0x1de   :  { %11355 = vst [vmem:[#allocation60_spill] sm:$0xff] %v8100_v58  ;;  %v8102_v8 = vpop.permute.xlu1 %5993  ;;  %v1201_v58 = vld [vmem:[#allocation2 + $0x2aa] sm:$0xff] }
 0x1df   :  { %11356 = vst [vmem:[#allocation61_spill] sm:$0xff] %v8102_v8  ;;  %6293 = vrot.lane.b32.xlu0 %v6292_v53, %s7255_s9  ;;  %v1137_v8 = vld [vmem:[#allocation2 + $0x2a9] sm:$0xff] }
 0x1e0   :  { %6273 = vrot.lane.b32.xlu1 %v6257_v45, %s7256_s10  ;;  %v6302_v45 = vpack.i.bf16 %v1385_v25, %v1384_v44  ;;  %v6307_v53 = vpack.i.bf16 %v1137_v8, %v1136_v24  ;;  %v1260_v8 = vld [vmem:[#allocation2 + $0x288] sm:$0xff]  ;;  %v1261_v24 = vld [vmem:[#allocation2 + $0x290] sm:$0xff] }
 0x1e1   :  { %v8106_v41 = vpop.permute.xlu0 %5988 }
 0x1e2   :  { %11357 = vst [vmem:[#allocation62_spill] sm:$0xff] %v8106_v41  ;;  %v8108_v16 = vpop.permute.xlu1 %6008  ;;  %v1200_v41 = vld [vmem:[#allocation2 + $0x2a2] sm:$0xff] }
 0x1e3   :  { %11358 = vst [vmem:[#allocation63_spill] sm:$0xff] %v8108_v16  ;;  %6298 = vrot.lane.b32.xlu0 %v6297_v19, %s7256_s10 }
 0x1e4   :  { %6278 = vrot.lane.b32.xlu1 %v6262_v26, %s7257_s11  ;;  %v1263_v26 = vld [vmem:[#allocation2 + $0x2a8] sm:$0xff] }
 0x1e5   :  { %v8114_v63 = vpop.permute.xlu0 %5998  ;;  %v8128_v25 = vpack.i.bf16 %v1263_v26, %v1262_v46  ;;  %v1388_v26 = vld [vmem:[#allocation2 + $0x28a] sm:$0xff] }
 0x1e6   :  { %v8112_v47 = vpop.permute.xlu1 %6013  ;;  %11360 = vst [vmem:[#allocation65_spill] sm:$0xff] %v8114_v63  ;;  %v1324_v63 = vld [vmem:[#allocation2 + $0x289] sm:$0xff] }
 0x1e7   :  { %11359 = vst [vmem:[#allocation64_spill] sm:$0xff] %v8112_v47  ;;  %6303 = vrot.lane.b32.xlu0 %v6302_v45, %s7257_s11  ;;  %11365 = vst [vmem:[#allocation70_spill] sm:$0xff] %v8128_v25 }
 0x1e8   :  { %6283 = vrot.lane.b32.xlu1 %v6297_v19, %s7252_s18  ;;  %v6312_v19 = vpack.i.bf16 %v1201_v58, %v1200_v41 }
 0x1e9   :  { %v8120_v12 = vpop.permute.xlu0 %6003 }
 0x1ea   :  { %v8118_v16 = vpop.permute.xlu1 %6018  ;;  %11362 = vst [vmem:[#allocation67_spill] sm:$0xff] %v8120_v12 }
 0x1eb   :  { %11361 = vst [vmem:[#allocation66_spill] sm:$0xff] %v8118_v16  ;;  %6308 = vrot.lane.b32.xlu0 %v6307_v53, %s7252_s18 }
 0x1ec   :  { %6288 = vrot.lane.b32.xlu1 %v6302_v45, %s7253_s23  ;;  %v8137_v45 = vpack.i.bf16 %v1261_v24, %v1260_v8  ;;  %v1140_v8 = vld [vmem:[#allocation2 + $0x2d1] sm:$0xff]  ;;  %v1141_v24 = vld [vmem:[#allocation2 + $0x2d9] sm:$0xff] }
 0x1ed   :  { %v8124_v47 = vpop.permute.xlu0 %6023 }
 0x1ee   :  { %11363 = vst [vmem:[#allocation68_spill] sm:$0xff] %v8124_v47  ;;  %v8126_v44 = vpop.permute.xlu1 %6028  ;;  %11368 = vst [vmem:[#allocation73_spill] sm:$0xff] %v8137_v45  ;;  %v1325_v47 = vld [vmem:[#allocation2 + $0x291] sm:$0xff] }
 0x1ef   :  { %11364 = vst [vmem:[#allocation69_spill] sm:$0xff] %v8126_v44  ;;  %6313 = vrot.lane.b32.xlu0 %v6312_v19, %s7253_s23  ;;  %v6347_v46 = vpack.i.bf16 %v1325_v47, %v1324_v63  ;;  %v1389_v44 = vld [vmem:[#allocation2 + $0x292] sm:$0xff] }
 0x1f0   :  { %6318 = vrot.lane.b32.xlu1 %v8128_v25, %s7255_s9  ;;  %v1266_v63 = vld [vmem:[#allocation2 + $0x2d0] sm:$0xff]  ;;  %v8270_v25 = vld [vmem:[#allocation2 + $0x99] sm:$0xff] }
 0x1f1   :  { %v8133_v16 = vpop.permute.xlu0 %6038  ;;  %11409 = vst [vmem:[#allocation114_spill] sm:$0xff] %v8270_v25  ;;  %v1272_v25 = vld [vmem:[#allocation2 + $0x318] sm:$0xff] }
 0x1f2   :  { %11366 = vst [vmem:[#allocation71_spill] sm:$0xff] %v8133_v16  ;;  %v8135_v12 = vpop.permute.xlu1 %6033 }
 0x1f3   :  { %11367 = vst [vmem:[#allocation72_spill] sm:$0xff] %v8135_v12  ;;  %6343 = vrot.lane.b32.xlu0 %v8137_v45, %s7255_s9 }
 0x1f4   :  { %6323 = vrot.lane.b32.xlu1 %v6307_v53, %s7256_s10  ;;  %v6352_v53 = vpack.i.bf16 %v1389_v44, %v1388_v26 }
 0x1f5   :  { %v8142_v41 = vpop.permute.xlu0 %6043 }
 0x1f6   :  { %11369 = vst [vmem:[#allocation74_spill] sm:$0xff] %v8142_v41  ;;  %v8144_v58 = vpop.permute.xlu1 %6053  ;;  %v6357_v41 = vpack.i.bf16 %v1141_v24, %v1140_v8  ;;  %v1264_v8 = vld [vmem:[#allocation2 + $0x2b8] sm:$0xff]  ;;  %v1265_v24 = vld [vmem:[#allocation2 + $0x2c0] sm:$0xff] }
 0x1f7   :  { %11370 = vst [vmem:[#allocation75_spill] sm:$0xff] %v8144_v58  ;;  %6348 = vrot.lane.b32.xlu0 %v6347_v46, %s7256_s10 }
 0x1f8   :  { %6328 = vrot.lane.b32.xlu1 %v6312_v19, %s7257_s11  ;;  %v1267_v19 = vld [vmem:[#allocation2 + $0x2d8] sm:$0xff] }
 0x1f9   :  { %v8148_v16 = vpop.permute.xlu0 %6048  ;;  %v8164_v26 = vpack.i.bf16 %v1267_v19, %v1266_v63  ;;  %v1392_v19 = vld [vmem:[#allocation2 + $0x2ba] sm:$0xff] }
 0x1fa   :  { %11371 = vst [vmem:[#allocation76_spill] sm:$0xff] %v8148_v16  ;;  %v8150_v12 = vpop.permute.xlu1 %6058 }
 0x1fb   :  { %11372 = vst [vmem:[#allocation77_spill] sm:$0xff] %v8150_v12  ;;  %6353 = vrot.lane.b32.xlu0 %v6352_v53, %s7257_s11  ;;  %11377 = vst [vmem:[#allocation82_spill] sm:$0xff] %v8164_v26  ;;  %v1328_v12 = vld [vmem:[#allocation2 + $0x2b9] sm:$0xff] }
 0x1fc   :  { %6333 = vrot.lane.b32.xlu1 %v6347_v46, %s7252_s18  ;;  %v6362_v46 = vpack.i.bf16 %v1205_v51, %v1204_v48 }
 0x1fd   :  { %v8154_v58 = vpop.permute.xlu0 %6073 }
 0x1fe   :  { %11373 = vst [vmem:[#allocation78_spill] sm:$0xff] %v8154_v58  ;;  %v8156_v47 = vpop.permute.xlu1 %6063 }
 0x1ff   :  { %11374 = vst [vmem:[#allocation79_spill] sm:$0xff] %v8156_v47  ;;  %6358 = vrot.lane.b32.xlu0 %v6357_v41, %s7252_s18 }
 0x200   :  { %6338 = vrot.lane.b32.xlu1 %v6352_v53, %s7253_s23  ;;  %v8173_v53 = vpack.i.bf16 %v1265_v24, %v1264_v8  ;;  %v1144_v8 = vld [vmem:[#allocation2 + $0x301] sm:$0xff]  ;;  %v1145_v24 = vld [vmem:[#allocation2 + $0x309] sm:$0xff] }
 0x201   :  { %v8162_v44 = vpop.permute.xlu0 %6088 }
 0x202   :  { %v8160_v16 = vpop.permute.xlu1 %6068  ;;  %11376 = vst [vmem:[#allocation81_spill] sm:$0xff] %v8162_v44  ;;  %11380 = vst [vmem:[#allocation85_spill] sm:$0xff] %v8173_v53  ;;  %v1393_v44 = vld [vmem:[#allocation2 + $0x2c2] sm:$0xff] }
 0x203   :  { %11375 = vst [vmem:[#allocation80_spill] sm:$0xff] %v8160_v16  ;;  %6363 = vrot.lane.b32.xlu0 %v6362_v46, %s7253_s23  ;;  %v1329_v16 = vld [vmem:[#allocation2 + $0x2c1] sm:$0xff] }
 0x204   :  { %6368 = vrot.lane.b32.xlu1 %v8164_v26, %s7255_s9  ;;  %v6397_v63 = vpack.i.bf16 %v1329_v16, %v1328_v12 }
 0x205   :  { %v8169_v58 = vpop.permute.xlu0 %6093 }
 0x206   :  { %11378 = vst [vmem:[#allocation83_spill] sm:$0xff] %v8169_v58  ;;  %v8171_v47 = vpop.permute.xlu1 %6078 }
 0x207   :  { %11379 = vst [vmem:[#allocation84_spill] sm:$0xff] %v8171_v47  ;;  %6393 = vrot.lane.b32.xlu0 %v8173_v53, %s7255_s9 }
 0x208   :  { %6373 = vrot.lane.b32.xlu1 %v6357_v41, %s7256_s10  ;;  %v6402_v41 = vpack.i.bf16 %v1393_v44, %v1392_v19  ;;  %v5621_v44 = vunpack.i.h.bf16 %v7804_v57  ;;  %v5625_v19 = vunpack.i.l.bf16 %v7811_v1 }
 0x209   :  { %v8178_v51 = vpop.permute.xlu0 %6098 }
 0x20a   :  { %11381 = vst [vmem:[#allocation86_spill] sm:$0xff] %v8178_v51  ;;  %v8180_v48 = vpop.permute.xlu1 %6083  ;;  %v8190_v51 = vpack.i.bf16 %v1145_v24, %v1144_v8  ;;  %v1021_v8 = vld [vmem:[#allocation2 + $0x8] sm:$0xff]  ;;  %v1052_v24 = vld [vmem:[#allocation2 + $0x1b0] sm:$0xff] }
 0x20b   :  { %11382 = vst [vmem:[#allocation87_spill] sm:$0xff] %v8180_v48  ;;  %6398 = vrot.lane.b32.xlu0 %v6397_v63, %s7256_s10  ;;  %v5620_v48 = vunpack.i.l.bf16 %v7804_v57  ;;  %v3677_v45 = vsel %vm867_vm2, %v1052_v24, %v5625_v19  ;;  %v8262_v19 = vld [vmem:[#allocation2 + $0x82] sm:$0xff]  ;;  %v8266_v24 = vld [vmem:[#allocation2 + $0xb1] sm:$0xff] }
 0x20c   :  { %6378 = vrot.lane.b32.xlu1 %v6362_v46, %s7257_s11  ;;  %v1270_v46 = vld [vmem:[#allocation2 + $0x300] sm:$0xff] }
 0x20d   :  { %v8186_v47 = vpop.permute.xlu0 %6108  ;;  %v8207_v62 = vpack.i.bf16 %v1271_v29, %v1270_v46  ;;  %v5636_v29 = vunpack.i.h.bf16 %v7833_v28  ;;  %v8229_v46 = vld [vmem:[#allocation2 + $0x32] sm:$0xff]  ;;  %v3646_v28 = vsel %vm867_vm2, %v1021_v8, %v5621_v44  ;;  %v8256_v44 = vpack.i.bf16 %v1269_v61, %v1268_v7  ;;  %v8264_v8 = vld [vmem:[#allocation2 + $0xa9] sm:$0xff] }
 0x20e   :  { %v8184_v58 = vpop.permute.xlu1 %6103  ;;  %11384 = vst [vmem:[#allocation89_spill] sm:$0xff] %v8186_v47  ;;  %11393 = vst [vmem:[#allocation98_spill] sm:$0xff] %v8229_v46  ;;  %v8354_v46 = vld [vmem:[#allocation2 + $0x139] sm:$0xff] }
 0x20f   :  { %11383 = vst [vmem:[#allocation88_spill] sm:$0xff] %v8184_v58  ;;  %6403 = vrot.lane.b32.xlu0 %v6402_v41, %s7257_s11  ;;  %v1020_v58 = vld [vmem:[#allocation2] sm:$0xff]  ;;  %11389 = vst [vmem:[#allocation94_spill] sm:$0xff] %v8207_v62 }
 0x210   :  { %6383 = vrot.lane.b32.xlu1 %v6397_v63, %s7252_s18  ;;  %v5626_v63 = vunpack.i.h.bf16 %v7811_v1  ;;  %v3645_v53 = vsel %vm867_vm2, %v1020_v58, %v5620_v48  ;;  %v5630_v1 = vunpack.i.l.bf16 %v7820_v14  ;;  %v8225_v58 = vld [vmem:[#allocation2 + $0x51] sm:$0xff]  ;;  %v8227_v48 = vld [vmem:[#allocation2 + $0x39] sm:$0xff]  ;;  %11405 = vst [vmem:[#allocation110_spill] sm:$0xff] %v8256_v44  ;;  %11407 = vst [vmem:[#allocation112_spill] sm:$0xff] %v8264_v8 }
 0x211   :  { %v8194_v12 = vpop.permute.xlu0 %6113  ;;  %11391 = vst [vmem:[#allocation96_spill] sm:$0xff] %v8225_v58  ;;  %11392 = vst [vmem:[#allocation97_spill] sm:$0xff] %v8227_v48  ;;  %v1397_v48 = vld [vmem:[#allocation2 + $0x2f2] sm:$0xff]  ;;  %v8384_v58 = vld [vmem:[#allocation2 + $0x189] sm:$0xff] }
 0x212   :  { %v8192_v16 = vpop.permute.xlu1 %6118  ;;  %11386 = vst [vmem:[#allocation91_spill] sm:$0xff] %v8194_v12  ;;  %v8279_v7 = vsel %vm3709_vm5, %v3645_v53, %v5630_v1  ;;  %v8297_v53 = vsel %vm3709_vm5, %v3677_v45, %v5635_v30  ;;  %v8306_v1 = vld [vmem:[#allocation2 + $0xd9] sm:$0xff]  ;;  %11441 = vst [vmem:[#allocation146_spill] sm:$0xff] %v8384_v58  ;;  %v8425_v8 = vld [vmem:[#allocation2 + $0x1e2] sm:$0xff] }
 0x213   :  { %11385 = vst [vmem:[#allocation90_spill] sm:$0xff] %v8192_v16  ;;  %6408 = vrot.lane.b32.xlu0 %v8190_v51, %s7252_s18  ;;  %v1053_v16 = vld [vmem:[#allocation2 + $0x1b8] sm:$0xff]  ;;  %11419 = vst [vmem:[#allocation124_spill] sm:$0xff] %v8297_v53  ;;  %v1274_v58 = vld [vmem:[#allocation2 + $0x330] sm:$0xff] }
 0x214   :  { %6388 = vrot.lane.b32.xlu1 %v6402_v41, %s7253_s23  ;;  %v7131_v41 = vld [vmem:[%s11047_s0] sm:$0xff]   ;;  %v3678_v3 = vsel %vm867_vm2, %v1053_v16, %v5626_v63  ;;  %v8258_v16 = vld [vmem:[#allocation2 + $0x31] sm:$0xff]  ;;  %11421 = vst [vmem:[#allocation126_spill] sm:$0xff] %v8306_v1  ;;  %11450 = vst [vmem:[#allocation155_spill] sm:$0xff] %v8425_v8 }
 0x215   :  { %v8205_v47 = vpop.permute.xlu0 %6143  ;;  %v4764_v57 = vunpack.c.l.bf16 %v7131_v41  ;;  %v4765_v33 = vunpack.c.h.bf16 %v7131_v41  ;;  %v8231_v41 = vld [vmem:[#allocation2 + $0x3a] sm:$0xff]  ;;  %11406 = vst [vmem:[#allocation111_spill] sm:$0xff] %v8258_v16  ;;  %v8527_v8 = vld [vmem:[#allocation2 + $0x232] sm:$0xff] }
 0x216   :  { %v8203_v12 = vpop.permute.xlu1 %6123  ;;  %11388 = vst [vmem:[#allocation93_spill] sm:$0xff] %v8205_v47  ;;  %11394 = vst [vmem:[#allocation99_spill] sm:$0xff] %v8231_v41  ;;  %v8235_v47 = vld [vmem:[#allocation2 + $0x69] sm:$0xff]  ;;  %v8260_v63 = vld [vmem:[#allocation2 + $0x7a] sm:$0xff] }
 0x217   :  { %11387 = vst [vmem:[#allocation92_spill] sm:$0xff] %v8203_v12  ;;  %v5631_v12 = vunpack.i.h.bf16 %v7820_v14  ;;  %6413 = vrot.lane.b32.xlu0 %v8209_v34, %s7253_s23  ;;  %v8233_v14 = vld [vmem:[#allocation2 + $0x61] sm:$0xff]  ;;  %11396 = vst [vmem:[#allocation101_spill] sm:$0xff] %v8235_v47  ;;  %v8276_v61 = vpack.i.bf16 %v4765_v33, %v4764_v57  ;;  %v8300_v57 = vsel %vm3709_vm5, %v3678_v3, %v5636_v29  ;;  %v8316_v45 = vld [vmem:[#allocation2 + $0xf9] sm:$0xff] }
 0x218   :  { %6418 = vrot.lane.b32.xlu1 %v8207_v62, %s7255_s9  ;;  %11395 = vst [vmem:[#allocation100_spill] sm:$0xff] %v8233_v14  ;;  %v8240_v62 = vld [vmem:[#allocation2 + $0x4a] sm:$0xff]  ;;  %11420 = vst [vmem:[#allocation125_spill] sm:$0xff] %v8300_v57  ;;  %v8318_v3 = vld [vmem:[#allocation2 + $0xf2] sm:$0xff] }
 0x219   :  { %11397 = vst [vmem:[#allocation102_spill] sm:$0xff] %v8240_v62  ;;  %v8254_v35 = vpop.permute.xlu0 %6148  ;;  %11412 = vst [vmem:[#allocation117_spill] sm:$0xff] %v8276_v61  ;;  %v8294_v33 = vsel %vm3709_vm5, %v3646_v28, %v5631_v12  ;;  %v8308_v61 = vld [vmem:[#allocation2 + $0xe1] sm:$0xff]  ;;  %v8314_v28 = vld [vmem:[#allocation2 + $0xf1] sm:$0xff] }
 0x21a   :  { %v8252_v26 = vpop.permute.xlu1 %6128  ;;  %11404 = vst [vmem:[#allocation109_spill] sm:$0xff] %v8254_v35  ;;  %v1332_v35 = vld [vmem:[#allocation2 + $0x2e9] sm:$0xff]  ;;  %11422 = vst [vmem:[#allocation127_spill] sm:$0xff] %v8308_v61  ;;  %v8320_v29 = vld [vmem:[#allocation2 + $0xfa] sm:$0xff] }
 0x21b   :  { %11403 = vst [vmem:[#allocation108_spill] sm:$0xff] %v8252_v26  ;;  %v8274_v26 = vld [vmem:[#allocation2 + $0x9a] sm:$0xff]  ;;  %6443 = vrot.lane.b32.xlu0 %v8256_v44, %s7255_s9  ;;  %v8312_v12 = vld [vmem:[#allocation2 + $0xe2] sm:$0xff]  ;;  %11425 = vst [vmem:[#allocation130_spill] sm:$0xff] %v8314_v28  ;;  %v8346_v53 = vpack.i.bf16 %v1333_v36, %v1332_v35 }
 0x21c   :  { %11411 = vst [vmem:[#allocation116_spill] sm:$0xff] %v8274_v26  ;;  %6423 = vrot.lane.b32.xlu1 %v8190_v51, %s7256_s10  ;;  %11424 = vst [vmem:[#allocation129_spill] sm:$0xff] %v8312_v12  ;;  %v8330_v44 = vld [vmem:[#allocation2 + $0x109] sm:$0xff]  ;;  %v8356_v41 = vld [vmem:[#allocation2 + $0x141] sm:$0xff] }
 0x21d   :  { %11426 = vst [vmem:[#allocation131_spill] sm:$0xff] %v8316_v45  ;;  %11427 = vst [vmem:[#allocation132_spill] sm:$0xff] %v8318_v3  ;;  %v8340_v51 = vld [vmem:[#allocation2 + $0x129] sm:$0xff]  ;;  %v8342_v11 = vpop.permute.xlu0 %6153  ;;  %v8358_v16 = vld [vmem:[#allocation2 + $0x13a] sm:$0xff] }
 0x21e   :  { %11428 = vst [vmem:[#allocation133_spill] sm:$0xff] %v8320_v29  ;;  %11431 = vst [vmem:[#allocation136_spill] sm:$0xff] %v8340_v51  ;;  %v8344_v30 = vpop.permute.xlu1 %6133  ;;  %v8364_v35 = vld [vmem:[#allocation2 + $0x12a] sm:$0xff]  ;;  %v8368_v57 = vld [vmem:[#allocation2 + $0x159] sm:$0xff]  ;;  %v5646_v51 = vunpack.i.h.bf16 %v7840_v32 }
 0x21f   :  { %11432 = vst [vmem:[#allocation137_spill] sm:$0xff] %v8342_v11  ;;  %11433 = vst [vmem:[#allocation138_spill] sm:$0xff] %v8344_v30  ;;  %v8360_v11 = vld [vmem:[#allocation2 + $0x142] sm:$0xff]  ;;  %v8366_v36 = vld [vmem:[#allocation2 + $0x151] sm:$0xff]  ;;  %6448 = vrot.lane.b32.xlu0 %v8346_v53, %s7256_s10 }
 0x220   :  { %v8362_v30 = vld [vmem:[#allocation2 + $0x122] sm:$0xff]  ;;  %11435 = vst [vmem:[#allocation140_spill] sm:$0xff] %v8364_v35  ;;  %11436 = vst [vmem:[#allocation141_spill] sm:$0xff] %v8366_v36  ;;  %v1396_v14 = vld [vmem:[#allocation2 + $0x2ea] sm:$0xff]  ;;  %6428 = vrot.lane.b32.xlu1 %v8209_v34, %s7257_s11  ;;  %v3650_v45 = vsel %vm867_vm2, %v7133_v17, %v5646_v51 }
 0x221   :  { %11434 = vst [vmem:[#allocation139_spill] sm:$0xff] %v8362_v30  ;;  %11437 = vst [vmem:[#allocation142_spill] sm:$0xff] %v8368_v57  ;;  %v8380_v62 = vld [vmem:[#allocation2 + $0x15a] sm:$0xff]  ;;  %v8397_v47 = vld [vmem:[#allocation2 + $0x169] sm:$0xff]  ;;  %v8433_v4 = vpop.permute.xlu0 %6158  ;;  %v6452_v59 = vpack.i.bf16 %v1397_v48, %v1396_v14  ;;  %v8471_v14 = vpack.i.bf16 %v1273_v56, %v1272_v25 }
 0x222   :  { %11439 = vst [vmem:[#allocation144_spill] sm:$0xff] %v8380_v62  ;;  %11442 = vst [vmem:[#allocation147_spill] sm:$0xff] %v8397_v47  ;;  %v8403_v26 = vld [vmem:[#allocation2 + $0x172] sm:$0xff]  ;;  %v8405_v34 = vld [vmem:[#allocation2 + $0x1e0] sm:$0xff]  ;;  %v8429_v1 = vpop.permute.xlu1 %6138 }
 0x223   :  { %11445 = vst [vmem:[#allocation150_spill] sm:$0xff] %v8403_v26  ;;  %11452 = vst [vmem:[#allocation157_spill] sm:$0xff] %v8429_v1  ;;  %v8435_v28 = vld [vmem:[#allocation2 + $0x218] sm:$0xff]  ;;  %v8439_v29 = vld [vmem:[#allocation2 + $0x200] sm:$0xff]  ;;  %6453 = vrot.lane.b32.xlu0 %v6452_v59, %s7257_s11 }
 0x224   :  { %11453 = vst [vmem:[#allocation158_spill] sm:$0xff] %v8433_v4  ;;  %v8437_v3 = vld [vmem:[#allocation2 + $0x1f8] sm:$0xff]  ;;  %v8449_v61 = vld [vmem:[#allocation2 + $0x201] sm:$0xff]  ;;  %6433 = vrot.lane.b32.xlu1 %v8346_v53, %s7252_s18  ;;  %v8489_v25 = vld [vmem:[#allocation2 + $0x230] sm:$0xff]  ;;  %v5650_v53 = vunpack.i.l.bf16 %v7838_v31 }
 0x225   :  { %v8447_v12 = vld [vmem:[#allocation2 + $0x1f9] sm:$0xff]  ;;  %11455 = vst [vmem:[#allocation160_spill] sm:$0xff] %v8449_v61  ;;  %v8463_v1 = vld [vmem:[#allocation2 + $0x211] sm:$0xff]  ;;  %v8485_v30 = vld [vmem:[#allocation2 + $0x248] sm:$0xff]  ;;  %v8497_v43 = vpop.permute.xlu0 %6163 }
 0x226   :  { %11454 = vst [vmem:[#allocation159_spill] sm:$0xff] %v8447_v12  ;;  %v8451_v4 = vld [vmem:[#allocation2 + $0x1fa] sm:$0xff]  ;;  %11458 = vst [vmem:[#allocation163_spill] sm:$0xff] %v8463_v1  ;;  %v8479_v36 = vld [vmem:[#allocation2 + $0x212] sm:$0xff]  ;;  %v8495_v37 = vpop.permute.xlu1 %6168 }
 0x227   :  { %11456 = vst [vmem:[#allocation161_spill] sm:$0xff] %v8451_v4  ;;  %v8473_v48 = vld [vmem:[#allocation2 + $0x240] sm:$0xff]  ;;  %11460 = vst [vmem:[#allocation165_spill] sm:$0xff] %v8479_v36  ;;  %v8487_v56 = vld [vmem:[#allocation2 + $0x228] sm:$0xff]  ;;  %6483 = vrot.lane.b32.xlu0 %v8471_v14, %s7255_s9 }
 0x228   :  { %v8481_v57 = vld [vmem:[#allocation2 + $0x21a] sm:$0xff]  ;;  %11462 = vst [vmem:[#allocation167_spill] sm:$0xff] %v8495_v37  ;;  %11463 = vst [vmem:[#allocation168_spill] sm:$0xff] %v8497_v43  ;;  %v8503_v62 = vld [vmem:[#allocation2 + $0x229] sm:$0xff]  ;;  %6438 = vrot.lane.b32.xlu1 %v6452_v59, %s7253_s23  ;;  %v5651_v59 = vunpack.i.h.bf16 %v7838_v31  ;;  %v5675_v31 = vunpack.i.l.bf16 %v7857_v54  ;;  %v5656_v54 = vunpack.i.h.bf16 %v7847_v40 }
 0x229   :  { %11461 = vst [vmem:[#allocation166_spill] sm:$0xff] %v8481_v57  ;;  %11464 = vst [vmem:[#allocation169_spill] sm:$0xff] %v8503_v62  ;;  %v8505_v35 = vld [vmem:[#allocation2 + $0x231] sm:$0xff]  ;;  %v1337_v43 = vld [vmem:[#allocation2 + $0x321] sm:$0xff]  ;;  %v8550_v27 = vpop.permute.xlu0 %6193  ;;  %v5680_v57 = vunpack.i.l.bf16 %v7874_v9 }
 0x22a   :  { %11465 = vst [vmem:[#allocation170_spill] sm:$0xff] %v8505_v35  ;;  %v1275_v37 = vld [vmem:[#allocation2 + $0x338] sm:$0xff]  ;;  %v8525_v26 = vld [vmem:[#allocation2 + $0x22a] sm:$0xff]  ;;  %11467 = vst [vmem:[#allocation172_spill] sm:$0xff] %v8527_v8  ;;  %v8548_v36 = vpop.permute.xlu1 %6173  ;;  %v8554_v42 = vpack.i.bf16 %v1337_v43, %v1336_v50 }
 0x22b   :  { %11466 = vst [vmem:[#allocation171_spill] sm:$0xff] %v8525_v26  ;;  %v8533_v32 = vld [vmem:[#allocation2 + $0x241] sm:$0xff]  ;;  %v8540_v4 = vld [vmem:[#allocation2 + $0x249] sm:$0xff]  ;;  %11472 = vst [vmem:[#allocation177_spill] sm:$0xff] %v8548_v36  ;;  %v8552_v17 = vpack.i.bf16 %v1275_v37, %v1274_v58  ;;  %v8563_v37 = vsel %vm3709_vm5, %v3649_v6, %v5650_v53  ;;  %v8583_v26 = vsel %vm3709_vm5, %v3650_v45, %v5651_v59 }
 0x22c   :  { %11468 = vst [vmem:[#allocation173_spill] sm:$0xff] %v8533_v32  ;;  %11469 = vst [vmem:[#allocation174_spill] sm:$0xff] %v8540_v4  ;;  %v8544_v1 = vld [vmem:[#allocation2 + $0x24a] sm:$0xff]  ;;  %v1401_v12 = vld [vmem:[#allocation2 + $0x322] sm:$0xff]  ;;  %6488 = vrot.lane.b32.xlu0 %v8554_v42, %s7256_s10  ;;  %v5655_v4 = vunpack.i.l.bf16 %v7847_v40 }
 0x22d   :  { %11471 = vst [vmem:[#allocation176_spill] sm:$0xff] %v8544_v1  ;;  %11473 = vst [vmem:[#allocation178_spill] sm:$0xff] %v8550_v27  ;;  %v1338_v51 = vld [vmem:[#allocation2 + $0x331] sm:$0xff]  ;;  %6458 = vrot.lane.b32.xlu1 %v8552_v17, %s7255_s9  ;;  %v8585_v8 = vld [vmem:[#allocation2 + $0x260] sm:$0xff]  ;;  %v8595_v53 = vpop.permute.xlu0 %6198  ;;  %v8597_v1 = vpack.i.bf16 %v1401_v12, %v1400_v21  ;;  %v5685_v21 = vunpack.i.l.bf16 %v7868_v2 }
 0x22e   :  { %v8569_v9 = vld [vmem:[#allocation2 + $0x270] sm:$0xff]  ;;  %v8571_v50 = vld [vmem:[#allocation2 + $0x278] sm:$0xff]  ;;  %v8589_v35 = vld [vmem:[#allocation2 + $0x261] sm:$0xff]  ;;  %v8593_v6 = vpop.permute.xlu1 %6178  ;;  %11477 = vst [vmem:[#allocation182_spill] sm:$0xff] %v8595_v53  ;;  %v6462_v55 = vpack.i.bf16 %v1339_v15, %v1338_v51  ;;  %v5686_v15 = vunpack.i.h.bf16 %v7868_v2  ;;  %v5661_v51 = vunpack.i.h.bf16 %v7855_v52  ;;  %v5660_v2 = vunpack.i.l.bf16 %v7855_v52 }
 0x22f   :  { %v8573_v43 = vld [vmem:[#allocation2 + $0x258] sm:$0xff]  ;;  %11475 = vst [vmem:[#allocation180_spill] sm:$0xff] %v8589_v35  ;;  %v7135_v32 = vld [vmem:[#allocation2 + $0x20] sm:$0xff]  ;;  %11476 = vst [vmem:[#allocation181_spill] sm:$0xff] %v8593_v6  ;;  %v5666_v53 = vunpack.i.h.bf16 %v7866_v0  ;;  %v5695_v52 = vunpack.i.l.bf16 %v7880_v13 }
 0x230   :  { %v8587_v62 = vld [vmem:[#allocation2 + $0x259] sm:$0xff]  ;;  %v3648_v36 = vsel %vm867_vm2, %v7135_v32, %v5676_v49  ;;  %v8601_v59 = vld [vmem:[#allocation2 + $0x262] sm:$0xff]  ;;  %v8608_v32 = vld [vmem:[#allocation2 + $0x271] sm:$0xff]  ;;  %6493 = vrot.lane.b32.xlu0 %v8597_v1, %s7257_s11 }
 0x231   :  { %11474 = vst [vmem:[#allocation179_spill] sm:$0xff] %v8587_v62  ;;  %v7134_v27 = vld [vmem:[#allocation2 + $0x18] sm:$0xff]  ;;  %11479 = vst [vmem:[#allocation184_spill] sm:$0xff] %v8601_v59  ;;  %6463 = vrot.lane.b32.xlu1 %v6462_v55, %s7256_s10  ;;  %v5691_v55 = vunpack.i.h.bf16 %v7876_v10  ;;  %v8631_v6 = vpop.permute.xlu0 %6203 }
 0x232   :  { %v3647_v58 = vsel %vm867_vm2, %v7134_v27, %v5675_v31  ;;  %v8599_v45 = vld [vmem:[#allocation2 + $0x25a] sm:$0xff]  ;;  %v3713_v31 = vsel %vm3709_vm5, %v3648_v36, %v5681_v5  ;;  %v1402_v27 = vld [vmem:[#allocation2 + $0x332] sm:$0xff]  ;;  %11480 = vst [vmem:[#allocation185_spill] sm:$0xff] %v8608_v32  ;;  %v8633_v5 = vpop.permute.xlu1 %6183 }
 0x233   :  { %11478 = vst [vmem:[#allocation183_spill] sm:$0xff] %v8599_v45  ;;  %v3712_v61 = vsel %vm3709_vm5, %v3647_v58, %v5680_v57  ;;  %v1403_v47 = vld [vmem:[#allocation2 + $0x33a] sm:$0xff]  ;;  %v8621_v12 = vld [vmem:[#allocation2 + $0x272] sm:$0xff]  ;;  %v5690_v58 = vunpack.i.l.bf16 %v7876_v10  ;;  %v3778_v40 = vsel %vm3774_vm6, %v3713_v31, %v5656_v54  ;;  %v5696_v54 = vunpack.i.h.bf16 %v7880_v13 }
 0x234   :  { %v8619_v57 = vld [vmem:[#allocation2 + $0x279] sm:$0xff]  ;;  %11482 = vst [vmem:[#allocation187_spill] sm:$0xff] %v8621_v12  ;;  %v3777_v49 = vsel %vm3774_vm6, %v3712_v61, %v5655_v4  ;;  %v6467_v62 = vpack.i.bf16 %v1403_v47, %v1402_v27  ;;  %v5665_v4 = vunpack.i.l.bf16 %v7866_v0  ;;  %v3776_v61 = vsel %vm3774_vm6, %v8294_v33, %v5686_v15  ;;  %v11485_v15 = vld [vmem:[#allocation9_spill] sm:$0xff]  ;;  %v8702_v32 = vld [vmem:[#allocation2 + $0x2a1] sm:$0xff] }
 0x235   :  { %11481 = vst [vmem:[#allocation186_spill] sm:$0xff] %v8619_v57  ;;  %v8623_v36 = vld [vmem:[#allocation2 + $0x27a] sm:$0xff]  ;;  %v3775_v47 = vsel %vm3774_vm6, %v8279_v7, %v5685_v21  ;;  %v11484_v31 = vpack.i.bf16 %v8407_v18, %v8405_v34  ;;  %v3841_v0 = vsel %vm3839_vm7, %v3776_v61, %v5691_v55  ;;  %v3842_v10 = vsel %vm3839_vm7, %v3777_v49, %v5660_v2  ;;  %v8664_v18 = vpop.permute.xlu0 %6208  ;;  %v8704_v57 = vld [vmem:[#allocation2 + $0x2a9] sm:$0xff] }
 0x236   :  { %11483 = vst [vmem:[#allocation188_spill] sm:$0xff] %v8623_v36  ;;  %6468 = vrot.lane.b32.xlu1 %v6467_v62, %s7257_s11  ;;  %v3840_v27 = vsel %vm3839_vm7, %v3775_v47, %v5690_v58  ;;  %v3843_v33 = vsel %vm3839_vm7, %v3778_v40, %v5661_v51  ;;  %v5701_v7 = vunpack.i.h.bf16 %v7889_v22  ;;  %v5700_v13 = vunpack.i.l.bf16 %v7889_v22  ;;  %v8662_v23 = vpop.permute.xlu1 %6188  ;;  %v11486_v58 = vld [vmem:[#allocation4_spill] sm:$0xff]  ;;  %v11487_v61 = vld [vmem:[#allocation11_spill] sm:$0xff]  ;;  %11496 = vst [vmem:[#allocation189_spill] sm:$0xff] %v8704_v57 }
 0x237   :  { %6498 = vrot.lane.b32.xlu0 %v11484_v31, %s7254_s24  ;;  %v5731_v21 = vunpack.i.h.bf16 %v11485_v15  ;;  %v5730_v62 = vunpack.i.l.bf16 %v11485_v15  ;;  %v3905_v34 = vsel %vm3904_vm8, %v3840_v27, %v5695_v52  ;;  %v5711_v55 = vunpack.i.h.bf16 %v11486_v58  ;;  %v8682_v52 = vld [vmem:[#allocation2 + $0x289] sm:$0xff]  ;;  %v11497_v45 = vld [vmem:[#allocation6_spill] sm:$0xff] }
 0x238   :  { %v5736_v49 = vunpack.i.h.bf16 %v11487_v61  ;;  %v5735_v40 = vunpack.i.l.bf16 %v11487_v61  ;;  %v3906_v51 = vsel %vm3904_vm8, %v3841_v0, %v5696_v54  ;;  %v5710_v22 = vunpack.i.l.bf16 %v11486_v58  ;;  %11489 = vst [vmem:[#allocation9_spill] sm:$0xff] %v8682_v52  ;;  %v11490_v27 = vld [vmem:[#allocation5_spill] sm:$0xff]  ;;  %v11491_v0 = vld [vmem:[#allocation7_spill] sm:$0xff]  ;;  %v11537_v57 = vld [vmem:[#allocation24_spill] sm:$0xff] }
 0x239   :  { %v8673_v2 = vsel %vm3904_vm8, %v3842_v10, %v5665_v4  ;;  %v3908_v47 = vsel %vm3904_vm8, %v3843_v33, %v5666_v53  ;;  %v11488_v31 = vpack.i.bf16 %v8435_v28, %v8431_v20  ;;  %v5716_v15 = vunpack.i.h.bf16 %v11490_v27  ;;  %v8688_v4 = vld [vmem:[#allocation2 + $0x291] sm:$0xff]  ;;  %v7136_v20 = vld [vmem:[#allocation2 + $0x60] sm:$0xff]  ;;  %11495 = vst [vmem:[#allocation7_spill] sm:$0xff] %v8702_v32 }
 0x23a   :  { %6473 = vrot.lane.b32.xlu1 %v8554_v42, %s7252_s18  ;;  %v5715_v54 = vunpack.i.l.bf16 %v11490_v27  ;;  %v5706_v58 = vunpack.i.h.bf16 %v11491_v0  ;;  %v5705_v10 = vunpack.i.l.bf16 %v11491_v0  ;;  %11492 = vst [vmem:[#allocation4_spill] sm:$0xff] %v8688_v4  ;;  %v8690_v53 = vld [vmem:[#allocation2 + $0x28a] sm:$0xff]  ;;  %v8692_v33 = vld [vmem:[#allocation2 + $0x292] sm:$0xff]  ;;  %v3653_v28 = vsel %vm867_vm2, %v7136_v20, %v5700_v13  ;;  %v8698_v36 = vpop.permute.xlu1 %6218  ;;  %v8700_v0 = vpop.permute.xlu0 %6213 }
 0x23b   :  { %6508 = vrot.lane.b32.xlu0 %v11488_v31, %s7254_s24  ;;  %11493 = vst [vmem:[#allocation11_spill] sm:$0xff] %v8690_v53  ;;  %11494 = vst [vmem:[#allocation5_spill] sm:$0xff] %v8692_v33  ;;  %v7137_v42 = vld [vmem:[#allocation2 + $0x68] sm:$0xff]  ;;  %v7139_v27 = vld [vmem:[#allocation2 + $0x50] sm:$0xff]  ;;  %v5721_v59 = vunpack.i.h.bf16 %v11497_v45  ;;  %v5720_v13 = vunpack.i.l.bf16 %v11497_v45  ;;  %v11505_v52 = vunpack.i.l.bf16 %v7845_v39 }
 0x23c   :  { %v3654_v61 = vsel %vm867_vm2, %v7137_v42, %v5701_v7  ;;  %v7138_v31 = vld [vmem:[#allocation2 + $0x48] sm:$0xff]  ;;  %v3652_v12 = vsel %vm867_vm2, %v7139_v27, %v5731_v21  ;;  %v11503_v27 = vld [vmem:[#allocation13_spill] sm:$0xff]  ;;  %v11578_v4 = vld [vmem:[#allocation102_spill] sm:$0xff] }
 0x23d   :  { %v3651_v35 = vsel %vm867_vm2, %v7138_v31, %v5730_v62  ;;  %v3717_v20 = vsel %vm3709_vm5, %v3652_v12, %v5736_v49  ;;  %v11498_v62 = vld [vmem:[#allocation10_spill] sm:$0xff]  ;;  %v11499_v31 = vpack.i.bf16 %v8485_v30, %v8473_v48  ;;  %v8722_v45 = vld [vmem:[#allocation2 + $0x2a2] sm:$0xff]  ;;  %v8724_v12 = vld [vmem:[#allocation2 + $0x2aa] sm:$0xff]  ;;  %v8727_v49 = vsel %vm3709_vm5, %v3653_v28, %v5705_v10 }
 0x23e   :  { %v3716_v7 = vsel %vm3709_vm5, %v3651_v35, %v5735_v40  ;;  %v5741_v42 = vunpack.i.h.bf16 %v11498_v62  ;;  %v5740_v21 = vunpack.i.l.bf16 %v11498_v62  ;;  %6478 = vrot.lane.b32.xlu1 %v8597_v1, %s7253_s23  ;;  %11500 = vst [vmem:[#allocation6_spill] sm:$0xff] %v8722_v45  ;;  %11501 = vst [vmem:[#allocation10_spill] sm:$0xff] %v8724_v12  ;;  %v8730_v40 = vsel %vm3709_vm5, %v3654_v61, %v5706_v58  ;;  %v11502_v30 = vld [vmem:[#allocation12_spill] sm:$0xff]  ;;  %v8739_v33 = vpop.permute.xlu1 %6223  ;;  %v8741_v10 = vpop.permute.xlu0 %6243 }
 0x23f   :  { %6518 = vrot.lane.b32.xlu0 %v11499_v31, %s7254_s24  ;;  %v5745_v48 = vunpack.i.l.bf16 %v11502_v30  ;;  %v3781_v62 = vsel %vm3774_vm6, %v3716_v7, %v5710_v22  ;;  %v3782_v31 = vsel %vm3774_vm6, %v3717_v20, %v5711_v55  ;;  %v5746_v35 = vunpack.i.h.bf16 %v11502_v30  ;;  %v11504_v28 = vld [vmem:[#allocation8_spill] sm:$0xff]  ;;  %v11520_v7 = vld [vmem:[#allocation70_spill] sm:$0xff] }
 0x240   :  { %v5756_v53 = vunpack.i.h.bf16 %v11503_v27  ;;  %v8749_v1 = vsel %vm3969_vm9, %v3905_v34, %v11505_v52  ;;  %v11507_v55 = vunpack.i.h.bf16 %v7845_v39  ;;  %v3780_v20 = vsel %vm3774_vm6, %v8583_v26, %v5741_v42  ;;  %v11511_v52 = vld [vmem:[#allocation14_spill] sm:$0xff] }
 0x241   :  { %11506 = vst [vmem:[#allocation12_spill] sm:$0xff] %v8749_v1  ;;  %v3779_v30 = vsel %vm3774_vm6, %v8563_v37, %v5740_v21  ;;  %v5755_v61 = vunpack.i.l.bf16 %v11503_v27  ;;  %v11509_v34 = vpack.i.bf16 %v8571_v50, %v8569_v9  ;;  %v11510_v39 = vpack.i.bf16 %v8439_v29, %v8437_v3  ;;  %v11513_v50 = vld [vmem:[#allocation21_spill] sm:$0xff] }
 0x242   :  { %v8754_v22 = vsel %vm3969_vm9, %v3906_v51, %v11507_v55  ;;  %v3844_v51 = vsel %vm3839_vm7, %v3779_v30, %v5745_v48  ;;  %v5750_v55 = vunpack.i.l.bf16 %v11511_v52  ;;  %v3846_v26 = vsel %vm3839_vm7, %v3781_v62, %v5715_v54  ;;  %v8782_v3 = vpop.permute.xlu0 %6248  ;;  %v11515_v29 = vld [vmem:[#allocation17_spill] sm:$0xff]  ;;  %v1030_v54 = vld [vmem:[#allocation2 + $0x78] sm:$0xff]  ;;  %v11516_v62 = vld [vmem:[#allocation23_spill] sm:$0xff] }
 0x243   :  { %11508 = vst [vmem:[#allocation13_spill] sm:$0xff] %v8754_v22  ;;  %6528 = vrot.lane.b32.xlu0 %v11509_v34, %s7254_s24  ;;  %6503 = vrot.lane.b32.xlu1 %v11510_v39, %s7254_s24  ;;  %v3847_v37 = vsel %vm3839_vm7, %v3782_v31, %v5716_v15  ;;  %v3845_v42 = vsel %vm3839_vm7, %v3780_v20, %v5746_v35  ;;  %v5751_v9 = vunpack.i.h.bf16 %v11511_v52  ;;  %v5790_v27 = vunpack.i.l.bf16 %v11513_v50  ;;  %v8780_v34 = vpop.permute.xlu1 %6228  ;;  %v8788_v31 = vld [vmem:[#allocation2 + $0x2b9] sm:$0xff]  ;;  %v1032_v20 = vld [vmem:[#allocation2 + $0x90] sm:$0xff] }
 0x244   :  { %v8776_v21 = vsel %vm3969_vm9, %v3908_v47, %v5756_v53  ;;  %11514 = vst [vmem:[#allocation14_spill] sm:$0xff] %v8780_v34  ;;  %v5761_v48 = vunpack.i.h.bf16 %v11515_v29  ;;  %v5760_v30 = vunpack.i.l.bf16 %v11515_v29  ;;  %v5791_v15 = vunpack.i.h.bf16 %v11513_v50  ;;  %11517 = vst [vmem:[#allocation21_spill] sm:$0xff] %v8788_v31  ;;  %v8790_v47 = vld [vmem:[#allocation2 + $0x2c1] sm:$0xff]  ;;  %v1033_v39 = vld [vmem:[#allocation2 + $0x98] sm:$0xff] }
 0x245   :  { %11512 = vst [vmem:[#allocation8_spill] sm:$0xff] %v8776_v21  ;;  %v5795_v35 = vunpack.i.l.bf16 %v11516_v62  ;;  %11518 = vst [vmem:[#allocation17_spill] sm:$0xff] %v8790_v47  ;;  %v8794_v53 = vsel %vm3969_vm9, %v8673_v2, %v5755_v61  ;;  %v1031_v52 = vld [vmem:[#allocation2 + $0x80] sm:$0xff]  ;;  %v5796_v58 = vunpack.i.h.bf16 %v11516_v62  ;;  %v8798_v29 = vsel %vm3904_vm8, %v3846_v26, %v5720_v13  ;;  %v8813_v1 = vld [vmem:[#allocation2 + $0x2d1] sm:$0xff] }
 0x246   :  { %11519 = vst [vmem:[#allocation23_spill] sm:$0xff] %v8794_v53  ;;  %v8801_v50 = vsel %vm3904_vm8, %v3847_v37, %v5721_v59  ;;  %v11521_v22 = vpack.i.bf16 %v8489_v25, %v8487_v56  ;;  %v8809_v2 = vld [vmem:[#allocation2 + $0x2ba] sm:$0xff]  ;;  %v8811_v61 = vld [vmem:[#allocation2 + $0x2c2] sm:$0xff]  ;;  %11524 = vst [vmem:[#allocation191_spill] sm:$0xff] %v8813_v1  ;;  %v3909_v13 = vsel %vm3904_vm8, %v3844_v51, %v5750_v55  ;;  %v8828_v51 = vpop.permute.xlu0 %6253 }
 0x247   :  { %6538 = vrot.lane.b32.xlu0 %v11520_v7, %s7254_s24  ;;  %11522 = vst [vmem:[#allocation70_spill] sm:$0xff] %v8809_v2  ;;  %11523 = vst [vmem:[#allocation190_spill] sm:$0xff] %v8811_v61  ;;  %v11525_v26 = vld [vmem:[#allocation15_spill] sm:$0xff]  ;;  %v8820_v7 = vld [vmem:[#allocation2 + $0x2d2] sm:$0xff]  ;;  %v3910_v56 = vsel %vm3904_vm8, %v3845_v42, %v5751_v9  ;;  %v3655_v45 = vsel %vm867_vm2, %v1030_v54, %v5790_v27  ;;  %v8830_v55 = vpop.permute.xlu1 %6233  ;;  %v3657_v12 = vsel %vm867_vm2, %v1032_v20, %v5760_v30 }
 0x248   :  { %6513 = vrot.lane.b32.xlu1 %v11521_v22, %s7254_s24  ;;  %v5771_v62 = vunpack.i.h.bf16 %v11525_v26  ;;  %v5770_v59 = vunpack.i.l.bf16 %v11525_v26  ;;  %v8818_v37 = vld [vmem:[#allocation2 + $0x2d9] sm:$0xff]  ;;  %11527 = vst [vmem:[#allocation192_spill] sm:$0xff] %v8820_v7  ;;  %v11529_v25 = vld [vmem:[#allocation16_spill] sm:$0xff]  ;;  %v3658_v32 = vsel %vm867_vm2, %v1033_v39, %v5761_v48  ;;  %v3656_v42 = vsel %vm867_vm2, %v1031_v52, %v5791_v15 }
 0x249   :  { %11526 = vst [vmem:[#allocation15_spill] sm:$0xff] %v8818_v37  ;;  %v8822_v21 = vld [vmem:[#allocation2 + $0x2da] sm:$0xff]  ;;  %v5776_v22 = vunpack.i.h.bf16 %v11529_v25  ;;  %v5775_v53 = vunpack.i.l.bf16 %v11529_v25  ;;  %v3720_v9 = vsel %vm3709_vm5, %v3655_v45, %v5795_v35  ;;  %v3721_v25 = vsel %vm3709_vm5, %v3656_v42, %v5796_v58  ;;  %v11562_v2 = vld [vmem:[#allocation28_spill] sm:$0xff] }
 0x24a   :  { %11528 = vst [vmem:[#allocation193_spill] sm:$0xff] %v8822_v21  ;;  %v7092_v26 = vld [vmem:[%s11050_s4 + $0x20] ss:$0 sps:$4 sm:$0xff]   ;;  %v11530_v27 = vld [vmem:[#allocation82_spill] sm:$0xff]  ;;  %v11531_v54 = vpack.i.bf16 %v8585_v8, %v8573_v43  ;;  %v3785_v42 = vsel %vm3774_vm6, %v3720_v9, %v5770_v59  ;;  %v3786_v48 = vsel %vm3774_vm6, %v3721_v25, %v5771_v62  ;;  %v5806_v7 = vunpack.i.h.bf16 %v11537_v57  ;;  %v11538_v9 = vld [vmem:[#allocation25_spill] sm:$0xff] }
 0x24b   :  { %6548 = vrot.lane.b32.xlu0 %v11530_v27, %s7254_s24  ;;  %v4331_v30 = vsel %vm4329_vm10, %v7092_v26, 0  ;;  %v11532_v15 = vld [vmem:[#allocation19_spill] sm:$0xff]  ;;  %5606 = vmatprep.subr.msk.bf16.mxu1 %vm4329_vm10, %v7092_v26  ;;  %v7093_v43 = vld [vmem:[%s11050_s4 + $0x18] sm:$0xff]   ;;  %v8864_v27 = vpop.permute.xlu1 %6238  ;;  %v11534_v26 = vunpack.i.l.bf16 %v11504_v28  ;;  %v5816_v21 = vunpack.i.h.bf16 %v11538_v9 }
 0x24c   :  { %6523 = vrot.lane.b32.xlu1 %v11531_v54, %s7254_s24  ;;  %v5766_v45 = vunpack.i.h.bf16 %v11532_v15  ;;  %v5765_v58 = vunpack.i.l.bf16 %v11532_v15  ;;  %v11533_v20 = vld [vmem:[#allocation22_spill] sm:$0xff]  ;;  %v8866_v54 = vpop.permute.xlu0 %6258  ;;  %5532 = vmatpush3.bf16.msra.mxu1 %v4331_v30  ;;  %v5815_v30 = vunpack.i.l.bf16 %v11538_v9  ;;  %v3850_v9 = vsel %vm3839_vm7, %v3785_v42, %v5775_v53  ;;  %v8930_v42 = vld [vmem:[#allocation2 + $0x2e9] sm:$0xff]  ;;  %v1036_v47 = vld [vmem:[#allocation2 + $0xc0] sm:$0xff] }
 0x24d   :  { %v5801_v39 = vunpack.i.h.bf16 %v11533_v20  ;;  %v5800_v52 = vunpack.i.l.bf16 %v11533_v20  ;;  %v8871_v15 = vsel %vm3969_vm9, %v3909_v13, %v11534_v26  ;;  %v11536_v8 = vld [vmem:[#allocation18_spill] sm:$0xff]  ;;  %v5805_v20 = vunpack.i.l.bf16 %v11537_v57  ;;  %5533 = vmatprep.subr.bf16.mxu1 %v7093_v43  ;;  %v11540_v13 = vld [vmem:[#allocation73_spill] sm:$0xff]  ;;  %11551 = vst [vmem:[#allocation25_spill] sm:$0xff] %v8930_v42  ;;  %v8963_v31 = vld [vmem:[#allocation2 + $0x302] sm:$0xff] }
 0x24e   :  { %11535 = vst [vmem:[#allocation16_spill] sm:$0xff] %v8871_v15  ;;  %v5781_v35 = vunpack.i.h.bf16 %v11536_v8  ;;  %v5780_v59 = vunpack.i.l.bf16 %v11536_v8  ;;  %v11539_v1 = vld [vmem:[#allocation94_spill] sm:$0xff]  ;;  %v11541_v26 = vunpack.i.h.bf16 %v11504_v28  ;;  %v8890_v57 = vsel %vm3709_vm5, %v3657_v12, %v5765_v58  ;;  %v11543_v8 = vld [vmem:[#allocation20_spill] sm:$0xff] }
 0x24f   :  { %6558 = vrot.lane.b32.xlu0 %v11539_v1, %s7254_s24  ;;  %v8893_v25 = vsel %vm3709_vm5, %v3658_v32, %v5766_v45  ;;  %v3783_v28 = vsel %vm3774_vm6, %v8727_v49, %v5800_v52  ;;  %v7094_v32 = vld [vmem:[%s11050_s4 + $0x10] sm:$0xff]   ;;  %v11546_v58 = vld [vmem:[#allocation26_spill] sm:$0xff]  ;;  %v8916_v49 = vsel %vm3969_vm9, %v8801_v50, %v5816_v21 }
 0x250   :  { %6533 = vrot.lane.b32.xlu1 %v11540_v13, %s7254_s24  ;;  %v8887_v62 = vsel %vm3969_vm9, %v3910_v56, %v11541_v26  ;;  %v3784_v13 = vsel %vm3774_vm6, %v8730_v40, %v5801_v39  ;;  %v3851_v56 = vsel %vm3839_vm7, %v3786_v48, %v5776_v22  ;;  %v8903_v26 = vpop.permute.xlu1 %6268  ;;  %v8905_v12 = vpop.permute.xlu0 %6263  ;;  %5534 = vmatpush3.bf16.msra.mxu1 %v7093_v43  ;;  %v5811_v40 = vunpack.i.h.bf16 %v11546_v58  ;;  %v11549_v48 = vld [vmem:[#allocation33_spill] sm:$0xff] }
 0x251   :  { %11542 = vst [vmem:[#allocation82_spill] sm:$0xff] %v8887_v62  ;;  %11544 = vst [vmem:[#allocation19_spill] sm:$0xff] %v8903_v26  ;;  %v3848_v53 = vsel %vm3839_vm7, %v3783_v28, %v5805_v20  ;;  %v3849_v45 = vsel %vm3839_vm7, %v3784_v13, %v5806_v7  ;;  %v5810_v39 = vunpack.i.l.bf16 %v11546_v58  ;;  %v8920_v22 = vsel %vm3969_vm9, %v8798_v29, %v5815_v30  ;;  %v11550_v7 = vld [vmem:[#allocation85_spill] sm:$0xff]  ;;  %v11554_v30 = vld [vmem:[#allocation35_spill] sm:$0xff] }
 0x252   :  { %11545 = vst [vmem:[#allocation22_spill] sm:$0xff] %v8905_v12  ;;  %11547 = vst [vmem:[#allocation18_spill] sm:$0xff] %v8916_v49  ;;  %v5850_v43 = vunpack.i.l.bf16 %v11549_v48  ;;  %v8924_v52 = vsel %vm3904_vm8, %v3850_v9, %v5780_v59  ;;  %v8932_v20 = vld [vmem:[#allocation2 + $0x2f1] sm:$0xff]  ;;  %v5851_v29 = vunpack.i.h.bf16 %v11549_v48  ;;  %v5855_v13 = vunpack.i.l.bf16 %v11554_v30  ;;  %5535 = vmatprep.subr.bf16.mxu1 %v7094_v32  ;;  %v11557_v58 = vld [vmem:[#allocation27_spill] sm:$0xff] }
 0x253   :  { %11548 = vst [vmem:[#allocation24_spill] sm:$0xff] %v8920_v22  ;;  %6568 = vrot.lane.b32.xlu0 %v8552_v17, %s7254_s24  ;;  %11552 = vst [vmem:[#allocation94_spill] sm:$0xff] %v8932_v20  ;;  %v11553_v21 = vld [vmem:[#allocation29_spill] sm:$0xff]  ;;  %v8938_v28 = vsel %vm3904_vm8, %v3851_v56, %v5781_v35  ;;  %v7095_v17 = vld [vmem:[%s11050_s4 + $0x8] sm:$0xff]   ;;  %v5830_v15 = vunpack.i.l.bf16 %v11557_v58  ;;  %v5856_v1 = vunpack.i.h.bf16 %v11554_v30  ;;  %v3913_v49 = vsel %vm3904_vm8, %v3848_v53, %v5810_v39 }
 0x254   :  { %6543 = vrot.lane.b32.xlu1 %v11550_v7, %s7254_s24  ;;  %v5820_v50 = vunpack.i.l.bf16 %v11553_v21  ;;  %v8940_v59 = vld [vmem:[#allocation2 + $0x2ea] sm:$0xff]  ;;  %v8942_v9 = vld [vmem:[#allocation2 + $0x2f2] sm:$0xff]  ;;  %v5831_v7 = vunpack.i.h.bf16 %v11557_v58  ;;  %v5821_v48 = vunpack.i.h.bf16 %v11553_v21  ;;  %v8951_v62 = vpop.permute.xlu1 %6273  ;;  %v8953_v35 = vpop.permute.xlu0 %6293  ;;  %v8955_v56 = vld [vmem:[#allocation2 + $0x301] sm:$0xff]  ;;  %5536 = vmatpush3.bf16.msra.mxu1 %v7094_v32  ;;  %v3914_v37 = vsel %vm3904_vm8, %v3849_v45, %v5811_v40  ;;  %11563 = vst [vmem:[#allocation35_spill] sm:$0xff] %v8963_v31 }
 0x255   :  { %11555 = vst [vmem:[#allocation73_spill] sm:$0xff] %v8940_v59  ;;  %11556 = vst [vmem:[#allocation20_spill] sm:$0xff] %v8942_v9  ;;  %v8957_v22 = vld [vmem:[#allocation2 + $0x309] sm:$0xff]  ;;  %v5835_v58 = vunpack.i.l.bf16 %v11562_v2  ;;  %5537 = vmatprep.subr.bf16.mxu1 %v7095_v17  ;;  %v11567_v45 = vld [vmem:[#allocation95_spill] sm:$0xff]  ;;  %v11590_v9 = vunpack.i.h.bf16 %v11562_v2 }
 0x256   :  { %11558 = vst [vmem:[#allocation26_spill] sm:$0xff] %v8951_v62  ;;  %11559 = vst [vmem:[#allocation33_spill] sm:$0xff] %v8953_v35  ;;  %v1034_v21 = vld [vmem:[#allocation2 + $0xa8] sm:$0xff]  ;;  %v11565_v62 = vld [vmem:[#allocation31_spill] sm:$0xff]  ;;  %v3661_v34 = vsel %vm867_vm2, %v1036_v47, %v5820_v50 }
 0x257   :  { %11560 = vst [vmem:[#allocation85_spill] sm:$0xff] %v8955_v56  ;;  %11561 = vst [vmem:[#allocation29_spill] sm:$0xff] %v8957_v22  ;;  %v8965_v30 = vld [vmem:[#allocation2 + $0x30a] sm:$0xff]  ;;  %v5825_v35 = vunpack.i.l.bf16 %v11565_v62  ;;  %v3659_v32 = vsel %vm867_vm2, %v1034_v21, %v5850_v43  ;;  %v11569_v39 = vld [vmem:[#allocation110_spill] sm:$0xff] }
 0x258   :  { %11564 = vst [vmem:[#allocation27_spill] sm:$0xff] %v8965_v30  ;;  %v1035_v26 = vld [vmem:[#allocation2 + $0xb0] sm:$0xff]  ;;  %v11566_v53 = vld [vmem:[#allocation96_spill] sm:$0xff]  ;;  %6553 = vrot.lane.b32.xlu1 %v11569_v39, %s7254_s24  ;;  %v3724_v21 = vsel %vm3709_vm5, %v3659_v32, %v5855_v13  ;;  %v8987_v61 = vpop.permute.xlu1 %6278  ;;  %v8989_v42 = vpop.permute.xlu0 %6298  ;;  %5538 = vmatpush3.bf16.msra.mxu1 %v7095_v17  ;;  %v11571_v50 = vld [vmem:[#allocation34_spill] sm:$0xff]  ;;  %v11574_v13 = vunpack.i.h.bf16 %v11543_v8 }
 0x259   :  { %v11568_v40 = vpack.i.bf16 %v11566_v53, %v11567_v45  ;;  %v1037_v12 = vld [vmem:[#allocation2 + $0xc8] sm:$0xff]  ;;  %v3660_v43 = vsel %vm867_vm2, %v1035_v26, %v5851_v29  ;;  %11570 = vst [vmem:[#allocation28_spill] sm:$0xff] %v8987_v61  ;;  %v7096_v26 = vld [vmem:[%s11050_s4] sm:$0xff]   ;;  %v5861_v29 = vunpack.i.h.bf16 %v11571_v50  ;;  %v11576_v32 = vld [vmem:[#allocation30_spill] sm:$0xff]  ;;  %v9011_v47 = vsel %vm3709_vm5, %v3661_v34, %v5825_v35  ;;  %s7259_s4 = smov 64  }
 0x25a   :  { %v3662_v45 = vsel %vm867_vm2, %v1037_v12, %v5821_v48  ;;  %v3725_v39 = vsel %vm3709_vm5, %v3660_v43, %v5856_v1  ;;  %v5860_v12 = vunpack.i.l.bf16 %v11571_v50  ;;  %v9006_v48 = vsel %vm3969_vm9, %v3914_v37, %v11574_v13  ;;  %v11577_v50 = vld [vmem:[#allocation103_spill] sm:$0xff]  ;;  %v11582_v13 = vld [vmem:[#allocation36_spill] sm:$0xff]  ;;  %5539 = vmatprep.subr.bf16.mxu1 %v7096_v26 }
 0x25b   :  { %6578 = vrot.lane.b32.xlu0 %v11568_v40, %s7258_s22  ;;  %v5826_v40 = vunpack.i.h.bf16 %v11565_v62  ;;  %v11572_v62 = vunpack.i.l.bf16 %v11543_v8  ;;  %11575 = vst [vmem:[#allocation96_spill] sm:$0xff] %v9006_v48  ;;  %v5841_v17 = vunpack.i.h.bf16 %v11576_v32  ;;  %v5840_v43 = vunpack.i.l.bf16 %v11576_v32  ;;  %v9020_v37 = vld [vmem:[#allocation2 + $0x319] sm:$0xff]  ;;  %v9022_v8 = vld [vmem:[#allocation2 + $0x321] sm:$0xff] }
 0x25c   :  { %v3789_v53 = vsel %vm3774_vm6, %v3724_v21, %v5830_v15  ;;  %6563 = vrot.lane.b32.xlu1 %v8471_v14, %s7254_s24  ;;  %11580 = vst [vmem:[#allocation95_spill] sm:$0xff] %v9020_v37  ;;  %11581 = vst [vmem:[#allocation110_spill] sm:$0xff] %v9022_v8  ;;  %v5866_v34 = vunpack.i.h.bf16 %v11582_v13  ;;  %v5865_v35 = vunpack.i.l.bf16 %v11582_v13  ;;  %v11583_v15 = vld [vmem:[#allocation37_spill] sm:$0xff]  ;;  %v9028_v32 = vld [vmem:[#allocation2 + $0x31a] sm:$0xff]  ;;  %v9040_v31 = vpop.permute.xlu1 %6283  ;;  %5540 = vmatpush3.bf16.msra.mxu1 %v7096_v26 }
 0x25d   :  { %v9001_v1 = vsel %vm3969_vm9, %v3913_v49, %v11572_v62  ;;  %v11579_v49 = vpack.i.bf16 %v11577_v50, %v11578_v4  ;;  %v3790_v62 = vsel %vm3774_vm6, %v3725_v39, %v5831_v7  ;;  %v5876_v21 = vunpack.i.h.bf16 %v11583_v15  ;;  %11584 = vst [vmem:[#allocation34_spill] sm:$0xff] %v9028_v32  ;;  %v11586_v14 = vld [vmem:[#allocation32_spill] sm:$0xff]  ;;  %v9038_v39 = vpop.permute.xlu0 %6303  ;;  %v9042_v13 = vld [vmem:[#allocation2 + $0x331] sm:$0xff]  ;;  %v9044_v30 = vld [vmem:[#allocation2 + $0x339] sm:$0xff] }
 0x25e   :  { %11573 = vst [vmem:[#allocation31_spill] sm:$0xff] %v9001_v1  ;;  %v9030_v1 = vld [vmem:[#allocation2 + $0x322] sm:$0xff]  ;;  %v9033_v4 = vsel %vm3709_vm5, %v3662_v45, %v5826_v40  ;;  %v5846_v50 = vunpack.i.h.bf16 %v11586_v14  ;;  %11588 = vst [vmem:[#allocation103_spill] sm:$0xff] %v9042_v13  ;;  %v3788_v56 = vsel %vm3774_vm6, %v8893_v25, %v5861_v29  ;;  %v3787_v45 = vsel %vm3774_vm6, %v8890_v57, %v5860_v12  ;;  %v11591_v26 = vld [vmem:[#allocation105_spill] sm:$0xff] }
 0x25f   :  { %6588 = vrot.lane.b32.xlu0 %v11579_v49, %s7259_s4  ;;  %11585 = vst [vmem:[#allocation30_spill] sm:$0xff] %v9030_v1  ;;  %v11587_v49 = vld [vmem:[#allocation38_spill] sm:$0xff]  ;;  %11589 = vst [vmem:[#allocation102_spill] sm:$0xff] %v9044_v30  ;;  %v5875_v40 = vunpack.i.l.bf16 %v11583_v15  ;;  %v5845_v22 = vunpack.i.l.bf16 %v11586_v14  ;;  %v3854_v59 = vsel %vm3839_vm7, %v3789_v53, %v5835_v58  ;;  %v3855_v20 = vsel %vm3839_vm7, %v3790_v62, %v11590_v9  ;;  %v11592_v61 = vld [vmem:[#allocation104_spill] sm:$0xff] }
 0x260   :  { %v5871_v48 = vunpack.i.h.bf16 %v11587_v49  ;;  %v5870_v7 = vunpack.i.l.bf16 %v11587_v49  ;;  %v11593_v25 = vpack.i.bf16 %v11591_v26, %v11592_v61  ;;  %v11594_v57 = vld [vmem:[#allocation97_spill] sm:$0xff]  ;;  %v11595_v29 = vld [vmem:[#allocation111_spill] sm:$0xff]  ;;  %v3852_v14 = vsel %vm3839_vm7, %v3787_v45, %v5865_v35  ;;  %v11651_v37 = vld [vmem:[#allocation116_spill] sm:$0xff] }
 0x261   :  { %v11596_v12 = vpack.i.bf16 %v11594_v57, %v11595_v29  ;;  %v3853_v58 = vsel %vm3839_vm7, %v3788_v56, %v5866_v34  ;;  %v9072_v2 = vsel %vm3969_vm9, %v8938_v28, %v5876_v21  ;;  %v9076_v9 = vld [vmem:[#allocation2 + $0x332] sm:$0xff]  ;;  %v9078_v53 = vld [vmem:[#allocation2 + $0x33a] sm:$0xff]  ;;  %v9084_v56 = vpop.permute.xlu1 %6288  ;;  %v9086_v34 = vpop.permute.xlu0 %6308  ;;  %v9090_v28 = vsel %vm3969_vm9, %v8924_v52, %v5875_v40 }
 0x262   :  { %11597 = vst [vmem:[#allocation36_spill] sm:$0xff] %v9072_v2  ;;  %11598 = vst [vmem:[#allocation37_spill] sm:$0xff] %v9076_v9  ;;  %v3917_v62 = vsel %vm3904_vm8, %v3852_v14, %v5870_v7  ;;  %v3918_v26 = vsel %vm3904_vm8, %v3853_v58, %v5871_v48  ;;  %v11602_v21 = vld [vmem:[#allocation47_spill] sm:$0xff]  ;;  %v9095_v7 = vsel %vm3904_vm8, %v3854_v59, %v5840_v43  ;;  %v11603_v48 = vld [vmem:[#allocation41_spill] sm:$0xff] }
 0x263   :  { %6598 = vrot.lane.b32.xlu0 %v11593_v25, %s7258_s22  ;;  %6573 = vrot.lane.b32.xlu1 %v11596_v12, %s7258_s22  ;;  %11599 = vst [vmem:[#allocation32_spill] sm:$0xff] %v9078_v53  ;;  %v11600_v25 = vld [vmem:[#allocation45_spill] sm:$0xff]  ;;  %11601 = vst [vmem:[#allocation38_spill] sm:$0xff] %v9090_v28  ;;  %v5916_v45 = vunpack.i.h.bf16 %v11602_v21  ;;  %v5915_v29 = vunpack.i.l.bf16 %v11602_v21  ;;  %v5881_v12 = vunpack.i.h.bf16 %v11603_v48  ;;  %v5880_v14 = vunpack.i.l.bf16 %v11603_v48  ;;  %v11605_v52 = vld [vmem:[#allocation99_spill] sm:$0xff] }
 0x264   :  { %v5911_v57 = vunpack.i.h.bf16 %v11600_v25  ;;  %v5910_v35 = vunpack.i.l.bf16 %v11600_v25  ;;  %v3920_v58 = vsel %vm3904_vm8, %v3855_v20, %v5841_v17  ;;  %v11604_v25 = vpack.i.bf16 %v8262_v19, %v8260_v63  ;;  %v11606_v40 = vld [vmem:[#allocation98_spill] sm:$0xff]  ;;  %v11608_v43 = vld [vmem:[#allocation39_spill] sm:$0xff]  ;;  %v11611_v19 = vld [vmem:[#allocation40_spill] sm:$0xff] }
 0x265   :  { %v11607_v61 = vpack.i.bf16 %v11605_v52, %v11606_v40  ;;  %v5891_v21 = vunpack.i.h.bf16 %v11608_v43  ;;  %v5890_v15 = vunpack.i.l.bf16 %v11608_v43  ;;  %v1038_v48 = vld [vmem:[#allocation2 + $0xd8] sm:$0xff]  ;;  %v1039_v49 = vld [vmem:[#allocation2 + $0xe0] sm:$0xff]  ;;  %v9113_v20 = vsel %vm3969_vm9, %v3917_v62, %v5845_v22  ;;  %v9122_v40 = vpop.permute.xlu1 %6318  ;;  %v9124_v59 = vpop.permute.xlu0 %6313  ;;  %v1040_v43 = vld [vmem:[#allocation2 + $0xf0] sm:$0xff] }
 0x266   :  { %11609 = vst [vmem:[#allocation105_spill] sm:$0xff] %v9113_v20  ;;  %v9116_v63 = vsel %vm3969_vm9, %v3918_v26, %v5846_v50  ;;  %v5896_v17 = vunpack.i.h.bf16 %v11611_v19  ;;  %v3664_v52 = vsel %vm867_vm2, %v1039_v49, %v5911_v57  ;;  %v1041_v28 = vld [vmem:[#allocation2 + $0xf8] sm:$0xff]  ;;  %v11612_v2 = vld [vmem:[#allocation43_spill] sm:$0xff]  ;;  %v11614_v20 = vld [vmem:[#allocation112_spill] sm:$0xff] }
 0x267   :  { %6608 = vrot.lane.b32.xlu0 %v11604_v25, %s7259_s4  ;;  %6583 = vrot.lane.b32.xlu1 %v11607_v61, %s7259_s4  ;;  %11610 = vst [vmem:[#allocation104_spill] sm:$0xff] %v9116_v63  ;;  %v5895_v25 = vunpack.i.l.bf16 %v11611_v19  ;;  %v3663_v61 = vsel %vm867_vm2, %v1038_v48, %v5910_v35  ;;  %v5886_v22 = vunpack.i.h.bf16 %v11612_v2  ;;  %v5885_v62 = vunpack.i.l.bf16 %v11612_v2  ;;  %v11613_v48 = vld [vmem:[#allocation46_spill] sm:$0xff]  ;;  %v11616_v9 = vld [vmem:[#allocation101_spill] sm:$0xff]  ;;  %v11617_v2 = vld [vmem:[#allocation100_spill] sm:$0xff] }
 0x268   :  { %v3728_v50 = vsel %vm3709_vm5, %v3663_v61, %v5915_v29  ;;  %v3729_v26 = vsel %vm3709_vm5, %v3664_v52, %v5916_v45  ;;  %v3665_v19 = vsel %vm867_vm2, %v1040_v43, %v5880_v14  ;;  %v3666_v35 = vsel %vm867_vm2, %v1041_v28, %v5881_v12  ;;  %v11619_v29 = vld [vmem:[#allocation42_spill] sm:$0xff]  ;;  %v11620_v61 = vld [vmem:[#allocation48_spill] sm:$0xff] }
 0x269   :  { %v5921_v49 = vunpack.i.h.bf16 %v11613_v48  ;;  %v5920_v57 = vunpack.i.l.bf16 %v11613_v48  ;;  %v11615_v63 = vpack.i.bf16 %v8266_v24, %v11614_v20  ;;  %v11618_v53 = vpack.i.bf16 %v11616_v9, %v11617_v2  ;;  %v11621_v48 = vld [vmem:[#allocation50_spill] sm:$0xff]  ;;  %v9152_v9 = vpop.permute.xlu0 %6343 }
 0x26a   :  { %v5901_v45 = vunpack.i.h.bf16 %v11619_v29  ;;  %v5900_v14 = vunpack.i.l.bf16 %v11619_v29  ;;  %v5926_v28 = vunpack.i.h.bf16 %v11620_v61  ;;  %v5925_v12 = vunpack.i.l.bf16 %v11620_v61  ;;  %v11622_v29 = vld [vmem:[#allocation49_spill] sm:$0xff] }
 0x26b   :  { %6618 = vrot.lane.b32.xlu0 %v11615_v63, %s7258_s22  ;;  %6593 = vrot.lane.b32.xlu1 %v11618_v53, %s7258_s22  ;;  %v3793_v52 = vsel %vm3774_vm6, %v3728_v50, %v5890_v15  ;;  %v3794_v43 = vsel %vm3774_vm6, %v3729_v26, %v5891_v21  ;;  %v5931_v24 = vunpack.i.h.bf16 %v11621_v48  ;;  %v5930_v20 = vunpack.i.l.bf16 %v11621_v48  ;;  %v9150_v63 = vpop.permute.xlu1 %6323  ;;  %v11623_v50 = vld [vmem:[#allocation44_spill] sm:$0xff] }
 0x26c   :  { %v9155_v53 = vsel %vm3709_vm5, %v3665_v19, %v5885_v62  ;;  %v9158_v2 = vsel %vm3709_vm5, %v3666_v35, %v5886_v22  ;;  %v5936_v61 = vunpack.i.h.bf16 %v11622_v29  ;;  %v5935_v15 = vunpack.i.l.bf16 %v11622_v29  ;;  %v11624_v62 = vld [vmem:[#allocation119_spill] sm:$0xff]  ;;  %v11625_v19 = vld [vmem:[#allocation118_spill] sm:$0xff] }
 0x26d   :  { %v5906_v21 = vunpack.i.h.bf16 %v11623_v50  ;;  %v5905_v26 = vunpack.i.l.bf16 %v11623_v50  ;;  %v3792_v48 = vsel %vm3774_vm6, %v9033_v4, %v5921_v49  ;;  %v3791_v13 = vsel %vm3774_vm6, %v9011_v47, %v5920_v57  ;;  %v11627_v22 = vld [vmem:[#allocation107_spill] sm:$0xff]  ;;  %v11628_v35 = vld [vmem:[#allocation106_spill] sm:$0xff]  ;;  %v11630_v57 = vld [vmem:[#allocation57_spill] sm:$0xff] }
 0x26e   :  { %v11626_v30 = vpack.i.bf16 %v11624_v62, %v11625_v19  ;;  %v11629_v32 = vpack.i.bf16 %v11627_v22, %v11628_v35  ;;  %v3856_v29 = vsel %vm3839_vm7, %v3791_v13, %v5925_v12  ;;  %v3857_v50 = vsel %vm3839_vm7, %v3792_v48, %v5926_v28  ;;  %v9186_v22 = vpop.permute.xlu0 %6348  ;;  %v11635_v12 = vld [vmem:[#allocation53_spill] sm:$0xff]  ;;  %v11636_v48 = vld [vmem:[#allocation127_spill] sm:$0xff] }
 0x26f   :  { %v3858_v1 = vsel %vm3839_vm7, %v3793_v52, %v5895_v25  ;;  %v3859_v4 = vsel %vm3839_vm7, %v3794_v43, %v5896_v17  ;;  %v3921_v47 = vsel %vm3904_vm8, %v3856_v29, %v5930_v20  ;;  %v3922_v49 = vsel %vm3904_vm8, %v3857_v50, %v5931_v24  ;;  %v9184_v19 = vpop.permute.xlu1 %6328  ;;  %v11634_v17 = vld [vmem:[#allocation59_spill] sm:$0xff] }
 0x270   :  { %6628 = vrot.lane.b32.xlu0 %v11626_v30, %s7259_s4  ;;  %6603 = vrot.lane.b32.xlu1 %v11629_v32, %s7259_s4  ;;  %v5971_v62 = vunpack.i.h.bf16 %v11630_v57  ;;  %v5970_v30 = vunpack.i.l.bf16 %v11630_v57  ;;  %11631 = vst [vmem:[#allocation97_spill] sm:$0xff] %v9184_v19  ;;  %v9189_v32 = vsel %vm3969_vm9, %v3920_v58, %v5936_v61  ;;  %v9193_v13 = vsel %vm3969_vm9, %v9095_v7, %v5935_v15  ;;  %v11637_v58 = vld [vmem:[#allocation126_spill] sm:$0xff]  ;;  %v11640_v15 = vld [vmem:[#allocation113_spill] sm:$0xff]  ;;  %v11642_v29 = vld [vmem:[#allocation51_spill] sm:$0xff] }
 0x271   :  { %11632 = vst [vmem:[#allocation111_spill] sm:$0xff] %v9189_v32  ;;  %11633 = vst [vmem:[#allocation45_spill] sm:$0xff] %v9193_v13  ;;  %v5976_v25 = vunpack.i.h.bf16 %v11634_v17  ;;  %v5975_v28 = vunpack.i.l.bf16 %v11634_v17  ;;  %v5941_v52 = vunpack.i.h.bf16 %v11635_v12  ;;  %v5940_v43 = vunpack.i.l.bf16 %v11635_v12  ;;  %v11639_v7 = vld [vmem:[#allocation114_spill] sm:$0xff]  ;;  %v1042_v17 = vld [vmem:[#allocation2 + $0x108] sm:$0xff] }
 0x272   :  { %v3923_v24 = vsel %vm3904_vm8, %v3858_v1, %v5900_v14  ;;  %v3924_v20 = vsel %vm3904_vm8, %v3859_v4, %v5901_v45  ;;  %v11638_v61 = vpack.i.bf16 %v11636_v48, %v11637_v58  ;;  %v11641_v35 = vpack.i.bf16 %v11639_v7, %v11640_v15  ;;  %v1043_v12 = vld [vmem:[#allocation2 + $0x110] sm:$0xff]  ;;  %v11645_v14 = vld [vmem:[#allocation52_spill] sm:$0xff]  ;;  %v9221_v7 = vpop.permute.xlu0 %6353  ;;  %v11646_v13 = vld [vmem:[#allocation55_spill] sm:$0xff] }
 0x273   :  { %v5951_v50 = vunpack.i.h.bf16 %v11642_v29  ;;  %v5950_v57 = vunpack.i.l.bf16 %v11642_v29  ;;  %v9212_v1 = vsel %vm3969_vm9, %v3921_v47, %v5905_v26  ;;  %v9215_v45 = vsel %vm3969_vm9, %v3922_v49, %v5906_v21  ;;  %v9223_v15 = vpop.permute.xlu1 %6333  ;;  %v1045_v29 = vld [vmem:[#allocation2 + $0x128] sm:$0xff] }
 0x274   :  { %6638 = vrot.lane.b32.xlu0 %v11638_v61, %s7258_s22  ;;  %6613 = vrot.lane.b32.xlu1 %v11641_v35, %s7258_s22  ;;  %11643 = vst [vmem:[#allocation47_spill] sm:$0xff] %v9212_v1  ;;  %11644 = vst [vmem:[#allocation41_spill] sm:$0xff] %v9215_v45  ;;  %v5956_v4 = vunpack.i.h.bf16 %v11645_v14  ;;  %v5955_v48 = vunpack.i.l.bf16 %v11645_v14  ;;  %v3667_v58 = vsel %vm867_vm2, %v1042_v17, %v5970_v30  ;;  %v1044_v35 = vld [vmem:[#allocation2 + $0x120] sm:$0xff]  ;;  %v5946_v26 = vunpack.i.h.bf16 %v11646_v13  ;;  %v11647_v17 = vld [vmem:[#allocation58_spill] sm:$0xff] }
 0x275   :  { %v3668_v61 = vsel %vm867_vm2, %v1043_v12, %v5971_v62  ;;  %v5945_v47 = vunpack.i.l.bf16 %v11646_v13  ;;  %v3732_v21 = vsel %vm3709_vm5, %v3667_v58, %v5975_v28  ;;  %v3669_v14 = vsel %vm867_vm2, %v1044_v35, %v5940_v43  ;;  %v11648_v1 = vld [vmem:[#allocation129_spill] sm:$0xff]  ;;  %v11649_v45 = vld [vmem:[#allocation128_spill] sm:$0xff]  ;;  %v11652_v13 = vld [vmem:[#allocation115_spill] sm:$0xff] }
 0x276   :  { %v3733_v49 = vsel %vm3709_vm5, %v3668_v61, %v5976_v25  ;;  %v3670_v30 = vsel %vm867_vm2, %v1045_v29, %v5941_v52  ;;  %v5981_v62 = vunpack.i.h.bf16 %v11647_v17  ;;  %v5980_v12 = vunpack.i.l.bf16 %v11647_v17  ;;  %v11654_v28 = vld [vmem:[#allocation54_spill] sm:$0xff]  ;;  %v11655_v58 = vld [vmem:[#allocation60_spill] sm:$0xff]  ;;  %v11656_v17 = vld [vmem:[#allocation61_spill] sm:$0xff] }
 0x277   :  { %v11650_v32 = vpack.i.bf16 %v11648_v1, %v11649_v45  ;;  %v11653_v8 = vpack.i.bf16 %v11651_v37, %v11652_v13  ;;  %v5961_v25 = vunpack.i.h.bf16 %v11654_v28  ;;  %v5960_v43 = vunpack.i.l.bf16 %v11654_v28  ;;  %v9249_v45 = vpop.permute.xlu1 %6338  ;;  %v9251_v37 = vpop.permute.xlu0 %6358  ;;  %v11658_v28 = vld [vmem:[#allocation62_spill] sm:$0xff] }
 0x278   :  { %v5986_v52 = vunpack.i.h.bf16 %v11655_v58  ;;  %v5985_v61 = vunpack.i.l.bf16 %v11655_v58  ;;  %v3797_v35 = vsel %vm3774_vm6, %v3732_v21, %v5950_v57  ;;  %v3798_v29 = vsel %vm3774_vm6, %v3733_v49, %v5951_v50  ;;  %11657 = vst [vmem:[#allocation99_spill] sm:$0xff] %v9251_v37  ;;  %v11659_v21 = vld [vmem:[#allocation56_spill] sm:$0xff] }
 0x279   :  { %6648 = vrot.lane.b32.xlu0 %v11650_v32, %s7259_s4  ;;  %6623 = vrot.lane.b32.xlu1 %v11653_v8, %s7259_s4  ;;  %v5996_v1 = vunpack.i.h.bf16 %v11656_v17  ;;  %v5995_v32 = vunpack.i.l.bf16 %v11656_v17  ;;  %v9254_v8 = vsel %vm3709_vm5, %v3669_v14, %v5945_v47  ;;  %v9257_v13 = vsel %vm3709_vm5, %v3670_v30, %v5946_v26  ;;  %v11661_v26 = vld [vmem:[#allocation121_spill] sm:$0xff]  ;;  %v11662_v14 = vld [vmem:[#allocation120_spill] sm:$0xff] }
 0x27a   :  { %v5991_v58 = vunpack.i.h.bf16 %v11658_v28  ;;  %v5990_v57 = vunpack.i.l.bf16 %v11658_v28  ;;  %v5966_v50 = vunpack.i.h.bf16 %v11659_v21  ;;  %v5965_v49 = vunpack.i.l.bf16 %v11659_v21 }
 0x27b   :  { %v3796_v17 = vsel %vm3774_vm6, %v9158_v2, %v5981_v62  ;;  %v3795_v19 = vsel %vm3774_vm6, %v9155_v53, %v5980_v12  ;;  %v11660_v47 = vpack.i.bf16 %v8332_v38, %v8330_v44  ;;  %v11663_v30 = vpack.i.bf16 %v11661_v26, %v11662_v14  ;;  %v11666_v38 = vld [vmem:[#allocation69_spill] sm:$0xff]  ;;  %v9289_v26 = vpop.permute.xlu0 %6363 }
 0x27c   :  { %v3860_v28 = vsel %vm3839_vm7, %v3795_v19, %v5985_v61  ;;  %v3861_v21 = vsel %vm3839_vm7, %v3796_v17, %v5986_v52  ;;  %v3862_v37 = vsel %vm3839_vm7, %v3797_v35, %v5955_v48  ;;  %v3863_v2 = vsel %vm3839_vm7, %v3798_v29, %v5956_v4  ;;  %v11668_v52 = vld [vmem:[#allocation72_spill] sm:$0xff]  ;;  %v11669_v61 = vld [vmem:[#allocation65_spill] sm:$0xff] }
 0x27d   :  { %6658 = vrot.lane.b32.xlu0 %v11660_v47, %s7258_s22  ;;  %6633 = vrot.lane.b32.xlu1 %v11663_v30, %s7258_s22  ;;  %v9280_v53 = vsel %vm3969_vm9, %v3924_v20, %v5996_v1  ;;  %v9283_v62 = vsel %vm3969_vm9, %v3923_v24, %v5995_v32  ;;  %v6031_v44 = vunpack.i.h.bf16 %v11666_v38  ;;  %v6030_v12 = vunpack.i.l.bf16 %v11666_v38  ;;  %v9287_v47 = vpop.permute.xlu1 %6368  ;;  %v11670_v32 = vld [vmem:[#allocation134_spill] sm:$0xff]  ;;  %v11675_v30 = vld [vmem:[#allocation63_spill] sm:$0xff] }
 0x27e   :  { %11664 = vst [vmem:[#allocation98_spill] sm:$0xff] %v9280_v53  ;;  %11665 = vst [vmem:[#allocation39_spill] sm:$0xff] %v9283_v62  ;;  %v3925_v19 = vsel %vm3904_vm8, %v3860_v28, %v5990_v57  ;;  %v3926_v48 = vsel %vm3904_vm8, %v3861_v21, %v5991_v58  ;;  %v6036_v4 = vunpack.i.h.bf16 %v11668_v52  ;;  %v6035_v20 = vunpack.i.l.bf16 %v11668_v52  ;;  %v11672_v57 = vld [vmem:[#allocation123_spill] sm:$0xff]  ;;  %v11673_v58 = vld [vmem:[#allocation122_spill] sm:$0xff] }
 0x27f   :  { %11667 = vst [vmem:[#allocation40_spill] sm:$0xff] %v9287_v47  ;;  %v6001_v35 = vunpack.i.h.bf16 %v11669_v61  ;;  %v6000_v24 = vunpack.i.l.bf16 %v11669_v61  ;;  %v3927_v29 = vsel %vm3904_vm8, %v3862_v37, %v5960_v43  ;;  %v3928_v1 = vsel %vm3904_vm8, %v3863_v2, %v5961_v25  ;;  %v11676_v38 = vld [vmem:[#allocation67_spill] sm:$0xff]  ;;  %v1046_v37 = vld [vmem:[#allocation2 + $0x138] sm:$0xff] }
 0x280   :  { %v11671_v17 = vpack.i.bf16 %v8336_v60, %v11670_v32  ;;  %v11674_v14 = vpack.i.bf16 %v11672_v57, %v11673_v58  ;;  %v6011_v28 = vunpack.i.h.bf16 %v11675_v30  ;;  %v6010_v21 = vunpack.i.l.bf16 %v11675_v30  ;;  %v1047_v25 = vld [vmem:[#allocation2 + $0x140] sm:$0xff]  ;;  %v9315_v32 = vpop.permute.xlu0 %6393  ;;  %v11681_v58 = vld [vmem:[#allocation64_spill] sm:$0xff]  ;;  %v1049_v62 = vld [vmem:[#allocation2 + $0x158] sm:$0xff] }
 0x281   :  { %v6006_v52 = vunpack.i.h.bf16 %v11676_v38  ;;  %v6005_v43 = vunpack.i.l.bf16 %v11676_v38  ;;  %v3671_v2 = vsel %vm867_vm2, %v1046_v37, %v6030_v12  ;;  %v3672_v60 = vsel %vm867_vm2, %v1047_v25, %v6031_v44  ;;  %v9313_v61 = vpop.permute.xlu1 %6373  ;;  %11678 = vst [vmem:[#allocation46_spill] sm:$0xff] %v9315_v32  ;;  %v1048_v38 = vld [vmem:[#allocation2 + $0x150] sm:$0xff]  ;;  %v11682_v53 = vld [vmem:[#allocation66_spill] sm:$0xff] }
 0x282   :  { %6668 = vrot.lane.b32.xlu0 %v11671_v17, %s7259_s4  ;;  %6643 = vrot.lane.b32.xlu1 %v11674_v14, %s7259_s4  ;;  %11677 = vst [vmem:[#allocation43_spill] sm:$0xff] %v9313_v61  ;;  %v9318_v17 = vsel %vm3969_vm9, %v3925_v19, %v5965_v49  ;;  %v9321_v57 = vsel %vm3969_vm9, %v3926_v48, %v5966_v50  ;;  %v6016_v14 = vunpack.i.h.bf16 %v11681_v58  ;;  %v6015_v30 = vunpack.i.l.bf16 %v11681_v58  ;;  %v11684_v48 = vld [vmem:[#allocation131_spill] sm:$0xff]  ;;  %v11685_v58 = vld [vmem:[#allocation130_spill] sm:$0xff] }
 0x283   :  { %11679 = vst [vmem:[#allocation112_spill] sm:$0xff] %v9318_v17  ;;  %11680 = vst [vmem:[#allocation101_spill] sm:$0xff] %v9321_v57  ;;  %v3736_v12 = vsel %vm3709_vm5, %v3671_v2, %v6035_v20  ;;  %v3737_v44 = vsel %vm3709_vm5, %v3672_v60, %v6036_v4  ;;  %v3673_v37 = vsel %vm867_vm2, %v1048_v38, %v6000_v24  ;;  %v6021_v49 = vunpack.i.h.bf16 %v11682_v53 }
 0x284   :  { %v3674_v25 = vsel %vm867_vm2, %v1049_v62, %v6001_v35  ;;  %v6020_v19 = vunpack.i.l.bf16 %v11682_v53  ;;  %v11683_v50 = vpack.i.bf16 %v8356_v41, %v8354_v46  ;;  %v11686_v17 = vpack.i.bf16 %v11684_v48, %v11685_v58  ;;  %v11687_v62 = vld [vmem:[#allocation71_spill] sm:$0xff]  ;;  %v11688_v46 = vld [vmem:[#allocation74_spill] sm:$0xff]  ;;  %v11693_v48 = vld [vmem:[#allocation84_spill] sm:$0xff] }
 0x285   :  { %v3738_v4 = vsel %vm3709_vm5, %v3673_v37, %v6005_v43  ;;  %v9341_v20 = vsel %vm3709_vm5, %v3674_v25, %v6006_v52  ;;  %v6041_v35 = vunpack.i.h.bf16 %v11687_v62  ;;  %v6040_v24 = vunpack.i.l.bf16 %v11687_v62  ;;  %v9349_v38 = vpop.permute.xlu1 %6378  ;;  %v11691_v43 = vld [vmem:[#allocation75_spill] sm:$0xff]  ;;  %v11692_v25 = vld [vmem:[#allocation76_spill] sm:$0xff] }
 0x286   :  { %6678 = vrot.lane.b32.xlu0 %v11683_v50, %s7258_s22  ;;  %6653 = vrot.lane.b32.xlu1 %v11686_v17, %s7258_s22  ;;  %v3801_v53 = vsel %vm3774_vm6, %v3736_v12, %v6010_v21  ;;  %v3802_v2 = vsel %vm3774_vm6, %v3737_v44, %v6011_v28  ;;  %v6046_v41 = vunpack.i.h.bf16 %v11688_v46  ;;  %v6045_v60 = vunpack.i.l.bf16 %v11688_v46  ;;  %11689 = vst [vmem:[#allocation100_spill] sm:$0xff] %v9349_v38  ;;  %v9351_v17 = vpop.permute.xlu0 %6398  ;;  %v11694_v62 = vld [vmem:[#allocation68_spill] sm:$0xff]  ;;  %v11695_v44 = vld [vmem:[#allocation87_spill] sm:$0xff]  ;;  %v11697_v38 = vld [vmem:[#allocation133_spill] sm:$0xff] }
 0x287   :  { %11690 = vst [vmem:[#allocation42_spill] sm:$0xff] %v9351_v17  ;;  %v6056_v37 = vunpack.i.h.bf16 %v11691_v43  ;;  %v6055_v52 = vunpack.i.l.bf16 %v11691_v43  ;;  %v6050_v50 = vunpack.i.l.bf16 %v11692_v25  ;;  %v6080_v58 = vunpack.i.l.bf16 %v11693_v48  ;;  %v11698_v43 = vld [vmem:[#allocation132_spill] sm:$0xff] }
 0x288   :  { %v6026_v21 = vunpack.i.h.bf16 %v11694_v62  ;;  %v6051_v28 = vunpack.i.h.bf16 %v11692_v25  ;;  %v6081_v12 = vunpack.i.h.bf16 %v11693_v48  ;;  %v6085_v46 = vunpack.i.l.bf16 %v11695_v44 }
 0x289   :  { %v11696_v57 = vpack.i.bf16 %v8360_v11, %v8358_v16  ;;  %v11699_v61 = vpack.i.bf16 %v11697_v38, %v11698_v43  ;;  %v6025_v17 = vunpack.i.l.bf16 %v11694_v62  ;;  %v3800_v32 = vsel %vm3774_vm6, %v9257_v13, %v6041_v35  ;;  %v1050_v16 = vld [vmem:[#allocation2 + $0x168] sm:$0xff]  ;;  %v9381_v62 = vpop.permute.xlu1 %6383 }
 0x28a   :  { %v3799_v25 = vsel %vm3774_vm6, %v9254_v8, %v6040_v24  ;;  %v6086_v48 = vunpack.i.h.bf16 %v11695_v44  ;;  %v3865_v11 = vsel %vm3839_vm7, %v3800_v32, %v6046_v41  ;;  %v3867_v38 = vsel %vm3839_vm7, %v3802_v2, %v6016_v14  ;;  %v1051_v24 = vld [vmem:[#allocation2 + $0x170] sm:$0xff]  ;;  %v11710_v44 = vld [vmem:[#allocation83_spill] sm:$0xff] }
 0x28b   :  { %6688 = vrot.lane.b32.xlu0 %v11696_v57, %s7259_s4  ;;  %6663 = vrot.lane.b32.xlu1 %v11699_v61, %s7259_s4  ;;  %v3864_v47 = vsel %vm3839_vm7, %v3799_v25, %v6045_v60  ;;  %v3866_v57 = vsel %vm3839_vm7, %v3801_v53, %v6015_v30  ;;  %v9379_v61 = vpop.permute.xlu0 %6403  ;;  %v9384_v13 = vsel %vm3969_vm9, %v3928_v1, %v6056_v37  ;;  %v11702_v30 = vld [vmem:[#allocation81_spill] sm:$0xff]  ;;  %v11703_v60 = vld [vmem:[#allocation148_spill] sm:$0xff]  ;;  %v11704_v1 = vld [vmem:[#allocation147_spill] sm:$0xff] }
 0x28c   :  { %11700 = vst [vmem:[#allocation48_spill] sm:$0xff] %v9384_v13  ;;  %v9387_v8 = vsel %vm3969_vm9, %v3927_v29, %v6055_v52  ;;  %v3929_v35 = vsel %vm3904_vm8, %v3864_v47, %v6050_v50  ;;  %v3675_v32 = vsel %vm867_vm2, %v1050_v16, %v6080_v58  ;;  %v3930_v41 = vsel %vm3904_vm8, %v3865_v11, %v6051_v28  ;;  %v11706_v29 = vld [vmem:[#allocation136_spill] sm:$0xff]  ;;  %v11707_v52 = vld [vmem:[#allocation135_spill] sm:$0xff]  ;;  %v11709_v50 = vld [vmem:[#allocation77_spill] sm:$0xff] }
 0x28d   :  { %11701 = vst [vmem:[#allocation50_spill] sm:$0xff] %v9387_v8  ;;  %v6090_v53 = vunpack.i.l.bf16 %v11702_v30  ;;  %v3676_v14 = vsel %vm867_vm2, %v1051_v24, %v6081_v12  ;;  %v3740_v2 = vsel %vm3709_vm5, %v3675_v32, %v6085_v46  ;;  %v11705_v37 = vpack.i.bf16 %v11703_v60, %v11704_v1  ;;  %v1499_v25 = vld [vmem:[#allocation2 + $0x199] sm:$0xff]  ;;  %v1500_v46 = vld [vmem:[#allocation2 + $0x1a1] sm:$0xff]  ;;  %v9410_v60 = vpop.permute.xlu1 %6388 }
 0x28e   :  { %v11708_v47 = vpack.i.bf16 %v11706_v29, %v11707_v52  ;;  %v6060_v58 = vunpack.i.l.bf16 %v11709_v50  ;;  %v6095_v28 = vunpack.i.l.bf16 %v11710_v44  ;;  %v3741_v43 = vsel %vm3709_vm5, %v3676_v14, %v6086_v48  ;;  %v11711_v16 = vld [vmem:[#allocation86_spill] sm:$0xff]  ;;  %v11713_v29 = vld [vmem:[#allocation79_spill] sm:$0xff] }
 0x28f   :  { %6698 = vrot.lane.b32.xlu0 %v11705_v37, %s7258_s22  ;;  %v3931_v12 = vsel %vm3904_vm8, %v3866_v57, %v6020_v19  ;;  %v6061_v11 = vunpack.i.h.bf16 %v11709_v50  ;;  %v6100_v24 = vunpack.i.l.bf16 %v11711_v16  ;;  %v3932_v32 = vsel %vm3904_vm8, %v3867_v38, %v6021_v49  ;;  %v9412_v1 = vpop.permute.xlu0 %6408  ;;  %v11716_v50 = vld [vmem:[#allocation149_spill] sm:$0xff] }
 0x290   :  { %6673 = vrot.lane.b32.xlu1 %v11708_v47, %s7258_s22  ;;  %v9415_v37 = vsel %vm3969_vm9, %v3929_v35, %v6025_v17  ;;  %v6065_v52 = vunpack.i.l.bf16 %v11713_v29  ;;  %v6091_v48 = vunpack.i.h.bf16 %v11702_v30  ;;  %v3805_v19 = vsel %vm3774_vm6, %v3740_v2, %v6060_v58  ;;  %v11715_v47 = vld [vmem:[#allocation150_spill] sm:$0xff]  ;;  %v11718_v35 = vld [vmem:[#allocation140_spill] sm:$0xff] }
 0x291   :  { %11712 = vst [vmem:[#allocation49_spill] sm:$0xff] %v9415_v37  ;;  %v9421_v57 = vsel %vm3969_vm9, %v3930_v41, %v6026_v21  ;;  %v3803_v14 = vsel %vm3774_vm6, %v3738_v4, %v6090_v53  ;;  %v6096_v49 = vunpack.i.h.bf16 %v11710_v44  ;;  %v3806_v38 = vsel %vm3774_vm6, %v3741_v43, %v6061_v11  ;;  %v11719_v37 = vld [vmem:[#allocation139_spill] sm:$0xff]  ;;  %v11721_v58 = vld [vmem:[#allocation78_spill] sm:$0xff]  ;;  %v11722_v11 = vld [vmem:[#allocation80_spill] sm:$0xff] }
 0x292   :  { %11714 = vst [vmem:[#allocation44_spill] sm:$0xff] %v9421_v57  ;;  %v11717_v17 = vpack.i.bf16 %v11715_v47, %v11716_v50  ;;  %v11720_v30 = vpack.i.bf16 %v11718_v35, %v11719_v37  ;;  %v6717_v2 = vpack.i.bf16 %v1500_v46, %v1499_v25  ;;  %v6075_v21 = vunpack.i.l.bf16 %v11721_v58  ;;  %v1563_v44 = vld [vmem:[#allocation2 + $0x19a] sm:$0xff]  ;;  %v1564_v43 = vld [vmem:[#allocation2 + $0x1a2] sm:$0xff]  ;;  %v9442_v35 = vpop.permute.xlu1 %6418 }
 0x293   :  { %v6066_v41 = vunpack.i.h.bf16 %v11713_v29  ;;  %v3868_v4 = vsel %vm3839_vm7, %v3803_v14, %v6095_v28  ;;  %v6101_v53 = vunpack.i.h.bf16 %v11711_v16  ;;  %v6071_v57 = vunpack.i.h.bf16 %v11722_v11  ;;  %v9444_v25 = vpop.permute.xlu0 %6413 }
 0x294   :  { %6708 = vrot.lane.b32.xlu0 %v11717_v17, %s7259_s4  ;;  %6683 = vrot.lane.b32.xlu1 %v11720_v30, %s7259_s4  ;;  %v3933_v47 = vsel %vm3904_vm8, %v3868_v4, %v6100_v24  ;;  %v3870_v50 = vsel %vm3839_vm7, %v3805_v19, %v6065_v52  ;;  %v11723_v17 = vld [vmem:[#allocation88_spill] sm:$0xff]  ;;  %v6070_v46 = vunpack.i.l.bf16 %v11722_v11  ;;  %v3804_v28 = vsel %vm3774_vm6, %v9341_v20, %v6091_v48  ;;  %v11724_v24 = vld [vmem:[#allocation89_spill] sm:$0xff]  ;;  %v11725_v19 = vld [vmem:[#allocation142_spill] sm:$0xff] }
 0x295   :  { %v6106_v37 = vunpack.i.h.bf16 %v11723_v17  ;;  %v3871_v16 = vsel %vm3839_vm7, %v3806_v38, %v6066_v41  ;;  %v6105_v29 = vunpack.i.l.bf16 %v11723_v17  ;;  %v3869_v14 = vsel %vm3839_vm7, %v3804_v28, %v6096_v49  ;;  %v11726_v4 = vld [vmem:[#allocation141_spill] sm:$0xff]  ;;  %v11730_v17 = vld [vmem:[#allocation91_spill] sm:$0xff]  ;;  %v11731_v28 = vld [vmem:[#allocation138_spill] sm:$0xff] }
 0x296   :  { %v6111_v30 = vunpack.i.h.bf16 %v11724_v24  ;;  %v6110_v52 = vunpack.i.l.bf16 %v11724_v24  ;;  %v11727_v8 = vpack.i.bf16 %v11725_v19, %v11726_v4  ;;  %v6727_v11 = vpack.i.bf16 %v1564_v43, %v1563_v44  ;;  %v9470_v13 = vpop.permute.xlu1 %6423  ;;  %v11734_v43 = vld [vmem:[#allocation157_spill] sm:$0xff] }
 0x297   :  { %v6076_v20 = vunpack.i.h.bf16 %v11721_v58  ;;  %v3934_v48 = vsel %vm3904_vm8, %v3869_v14, %v6101_v53  ;;  %v3935_v38 = vsel %vm3904_vm8, %v3870_v50, %v6070_v46  ;;  %v9463_v49 = vsel %vm3969_vm9, %v3933_v47, %v6075_v21  ;;  %11732 = vst [vmem:[#allocation107_spill] sm:$0xff] %v9470_v13  ;;  %v7140_v47 = vld [vmem:[#allocation2 + $0x1e0] sm:$0xff]  ;;  %v11759_v13 = vld [vmem:[#allocation108_spill] sm:$0xff] }
 0x298   :  { %6718 = vrot.lane.b32.xlu0 %v6717_v2, %s7258_s22  ;;  %6693 = vrot.lane.b32.xlu1 %v11727_v8, %s7258_s22  ;;  %11728 = vst [vmem:[#allocation119_spill] sm:$0xff] %v9463_v49  ;;  %v9466_v41 = vsel %vm3969_vm9, %v3932_v32, %v6106_v37  ;;  %v6115_v2 = vunpack.i.l.bf16 %v11730_v17  ;;  %v6135_v24 = vunpack.i.l.bf16 %v11731_v28  ;;  %v9472_v8 = vpop.permute.xlu0 %6443  ;;  %v3936_v58 = vsel %vm3904_vm8, %v3871_v16, %v6071_v57  ;;  %v7141_v37 = vld [vmem:[#allocation2 + $0x1e8] sm:$0xff] }
 0x299   :  { %11729 = vst [vmem:[#allocation118_spill] sm:$0xff] %v9466_v41  ;;  %v9476_v53 = vsel %vm3969_vm9, %v3931_v12, %v6105_v29  ;;  %v6116_v44 = vunpack.i.h.bf16 %v11730_v17  ;;  %v6136_v21 = vunpack.i.h.bf16 %v11731_v28  ;;  %v6140_v32 = vunpack.i.l.bf16 %v11734_v43  ;;  %v11735_v57 = vld [vmem:[#allocation144_spill] sm:$0xff]  ;;  %v11736_v12 = vld [vmem:[#allocation143_spill] sm:$0xff]  ;;  %v11741_v17 = vld [vmem:[#allocation90_spill] sm:$0xff] }
 0x29a   :  { %11733 = vst [vmem:[#allocation106_spill] sm:$0xff] %v9476_v53  ;;  %v3681_v50 = vsel %vm867_vm2, %v7140_v47, %v6110_v52  ;;  %v3682_v46 = vsel %vm867_vm2, %v7141_v37, %v6111_v30  ;;  %v6141_v14 = vunpack.i.h.bf16 %v11734_v43  ;;  %v11737_v16 = vpack.i.bf16 %v11735_v57, %v11736_v12  ;;  %v11738_v29 = vld [vmem:[#allocation3_spill] sm:$0xff]  ;;  %v11742_v52 = vld [vmem:[#allocation93_spill] sm:$0xff]  ;;  %v1054_v49 = vld [vmem:[#allocation2 + $0x1c8] sm:$0xff] }
 0x29b   :  { %v11739_v19 = vunpack.i.l.bf16 %v11738_v29  ;;  %v6121_v28 = vunpack.i.h.bf16 %v11741_v17  ;;  %v6146_v47 = vunpack.i.h.bf16 %v11742_v52  ;;  %v11743_v30 = vunpack.i.h.bf16 %v11738_v29  ;;  %v1055_v12 = vld [vmem:[#allocation2 + $0x1d0] sm:$0xff] }
 0x29c   :  { %6728 = vrot.lane.b32.xlu0 %v6727_v11, %s7259_s4  ;;  %6703 = vrot.lane.b32.xlu1 %v11737_v16, %s7259_s4  ;;  %v9502_v11 = vsel %vm3969_vm9, %v3934_v48, %v6076_v20  ;;  %v6120_v37 = vunpack.i.l.bf16 %v11741_v17  ;;  %v9506_v57 = vsel %vm3709_vm5, %v3681_v50, %v6115_v2  ;;  %v3679_v16 = vsel %vm867_vm2, %v1054_v49, %v6135_v24  ;;  %v11747_v29 = vld [vmem:[#allocation109_spill] sm:$0xff]  ;;  %v11748_v2 = vld [vmem:[#allocation92_spill] sm:$0xff] }
 0x29d   :  { %v9492_v4 = vsel %vm3969_vm9, %v3935_v38, %v11739_v19  ;;  %v9499_v43 = vsel %vm3969_vm9, %v3936_v58, %v11743_v30  ;;  %11745 = vst [vmem:[#allocation53_spill] sm:$0xff] %v9502_v11  ;;  %v6145_v38 = vunpack.i.l.bf16 %v11742_v52  ;;  %v9510_v19 = vpop.permute.xlu1 %6428  ;;  %v9515_v58 = vsel %vm3709_vm5, %v3682_v46, %v6116_v44  ;;  %v11749_v30 = vld [vmem:[#allocation137_spill] sm:$0xff]  ;;  %v11750_v24 = vld [vmem:[#allocation160_spill] sm:$0xff]  ;;  %v11753_v44 = vld [vmem:[#allocation146_spill] sm:$0xff] }
 0x29e   :  { %11740 = vst [vmem:[#allocation57_spill] sm:$0xff] %v9492_v4  ;;  %11744 = vst [vmem:[#allocation59_spill] sm:$0xff] %v9499_v43  ;;  %v9512_v4 = vpop.permute.xlu0 %6448  ;;  %v6150_v20 = vunpack.i.l.bf16 %v11747_v29  ;;  %v3680_v48 = vsel %vm867_vm2, %v1055_v12, %v6136_v21  ;;  %v3744_v17 = vsel %vm3709_vm5, %v3679_v16, %v6140_v32  ;;  %v6126_v50 = vunpack.i.h.bf16 %v11748_v2  ;;  %v11751_v43 = vld [vmem:[#allocation159_spill] sm:$0xff]  ;;  %v11754_v46 = vld [vmem:[#allocation145_spill] sm:$0xff] }
 0x29f   :  { %11746 = vst [vmem:[#allocation127_spill] sm:$0xff] %v9510_v19  ;;  %v6151_v52 = vunpack.i.h.bf16 %v11747_v29  ;;  %v6155_v11 = vunpack.i.l.bf16 %v11749_v30  ;;  %v3745_v49 = vsel %vm3709_vm5, %v3680_v48, %v6141_v14  ;;  %v11752_v53 = vpack.i.bf16 %v11750_v24, %v11751_v43  ;;  %v11756_v32 = vld [vmem:[#allocation125_spill] sm:$0xff]  ;;  %v11757_v29 = vld [vmem:[#allocation158_spill] sm:$0xff]  ;;  %v11758_v14 = vld [vmem:[#allocation124_spill] sm:$0xff] }
 0x2a0   :  { %v11755_v41 = vpack.i.bf16 %v11753_v44, %v11754_v46  ;;  %v6125_v21 = vunpack.i.l.bf16 %v11748_v2  ;;  %v3808_v12 = vsel %vm3774_vm6, %v11756_v32, %v6146_v47  ;;  %v6156_v16 = vunpack.i.h.bf16 %v11749_v30  ;;  %v11762_v46 = vld [vmem:[#allocation168_spill] sm:$0xff] }
 0x2a1   :  { %6738 = vrot.lane.b32.xlu0 %v11752_v53, %s7258_s22  ;;  %v6160_v19 = vunpack.i.l.bf16 %v11757_v29  ;;  %v3807_v48 = vsel %vm3774_vm6, %v11758_v14, %v6145_v38  ;;  %v6131_v43 = vunpack.i.h.bf16 %v11759_v13  ;;  %v3809_v53 = vsel %vm3774_vm6, %v3744_v17, %v6120_v37 }
 0x2a2   :  { %6713 = vrot.lane.b32.xlu1 %v11755_v41, %s7258_s22  ;;  %v6161_v24 = vunpack.i.h.bf16 %v11757_v29  ;;  %v9542_v44 = vpop.permute.xlu0 %6453  ;;  %v9544_v41 = vpop.permute.xlu1 %6433  ;;  %v6130_v2 = vunpack.i.l.bf16 %v11759_v13  ;;  %v3872_v47 = vsel %vm3839_vm7, %v3807_v48, %v6150_v20  ;;  %v3810_v30 = vsel %vm3774_vm6, %v3745_v49, %v6121_v28  ;;  %v11764_v29 = vld [vmem:[#allocation162_spill] sm:$0xff]  ;;  %v11767_v13 = vld [vmem:[#allocation152_spill] sm:$0xff]  ;;  %v11768_v20 = vld [vmem:[#allocation151_spill] sm:$0xff] }
 0x2a3   :  { %11760 = vst [vmem:[#allocation126_spill] sm:$0xff] %v9542_v44  ;;  %11761 = vst [vmem:[#allocation114_spill] sm:$0xff] %v9544_v41  ;;  %v6165_v32 = vunpack.i.l.bf16 %v11762_v46  ;;  %v3873_v38 = vsel %vm3839_vm7, %v3808_v12, %v6151_v52  ;;  %v9552_v14 = vsel %vm3904_vm8, %v3872_v47, %v6155_v11  ;;  %v6166_v37 = vunpack.i.h.bf16 %v11762_v46  ;;  %v11765_v41 = vld [vmem:[#allocation161_spill] sm:$0xff]  ;;  %v7143_v47 = vld [vmem:[#allocation2 + $0x218] sm:$0xff] }
 0x2a4   :  { %11763 = vst [vmem:[#allocation113_spill] sm:$0xff] %v9552_v14  ;;  %v6185_v17 = vunpack.i.l.bf16 %v8633_v5  ;;  %v11766_v44 = vpack.i.bf16 %v11764_v29, %v11765_v41  ;;  %v11769_v28 = vpack.i.bf16 %v11767_v13, %v11768_v20  ;;  %v9565_v49 = vsel %vm3904_vm8, %v3873_v38, %v6156_v16  ;;  %v7142_v52 = vld [vmem:[#allocation2 + $0x210] sm:$0xff]  ;;  %v11771_v41 = vld [vmem:[#allocation167_spill] sm:$0xff] }
 0x2a5   :  { %11770 = vst [vmem:[#allocation51_spill] sm:$0xff] %v9565_v49  ;;  %v3685_v11 = vsel %vm867_vm2, %v7142_v52, %v6160_v19  ;;  %v6190_v12 = vunpack.i.l.bf16 %v8662_v23  ;;  %v3874_v48 = vsel %vm3839_vm7, %v3809_v53, %v6125_v21  ;;  %v3686_v46 = vsel %vm867_vm2, %v7143_v47, %v6161_v24  ;;  %v11772_v19 = vld [vmem:[#allocation178_spill] sm:$0xff] }
 0x2a6   :  { %6748 = vrot.lane.b32.xlu0 %v11766_v44, %s7259_s4  ;;  %6723 = vrot.lane.b32.xlu1 %v11769_v28, %s7259_s4  ;;  %v6171_v44 = vunpack.i.h.bf16 %v11771_v41  ;;  %v6186_v29 = vunpack.i.h.bf16 %v8633_v5  ;;  %v9573_v14 = vpop.permute.xlu1 %6438  ;;  %v9575_v13 = vpop.permute.xlu0 %6483  ;;  %v3875_v16 = vsel %vm3839_vm7, %v3810_v30, %v6126_v50  ;;  %v9579_v38 = vsel %vm3709_vm5, %v3685_v11, %v6165_v32  ;;  %v7144_v5 = vld [vmem:[#allocation2 + $0x1f8] sm:$0xff]  ;;  %v11774_v50 = vld [vmem:[#allocation169_spill] sm:$0xff] }
 0x2a7   :  { %v6196_v20 = vunpack.i.h.bf16 %v11772_v19  ;;  %v6195_v21 = vunpack.i.l.bf16 %v11772_v19  ;;  %v6191_v53 = vunpack.i.h.bf16 %v8662_v23  ;;  %v6170_v24 = vunpack.i.l.bf16 %v11771_v41  ;;  %v11773_v47 = vld [vmem:[#allocation170_spill] sm:$0xff]  ;;  %v11777_v11 = vld [vmem:[#allocation153_spill] sm:$0xff] }
 0x2a8   :  { %v9586_v28 = vsel %vm3709_vm5, %v3686_v46, %v6166_v37  ;;  %v3683_v52 = vsel %vm867_vm2, %v7144_v5, %v6185_v17  ;;  %v11775_v30 = vpack.i.bf16 %v11773_v47, %v11774_v50  ;;  %v11776_v32 = vld [vmem:[#allocation154_spill] sm:$0xff]  ;;  %v9598_v23 = vsel %vm3904_vm8, %v3874_v48, %v6130_v2  ;;  %v11782_v5 = vld [vmem:[#allocation177_spill] sm:$0xff] }
 0x2a9   :  { %v11778_v49 = vpack.i.bf16 %v11776_v32, %v11777_v11  ;;  %11779 = vst [vmem:[#allocation52_spill] sm:$0xff] %v9598_v23  ;;  %v11780_v41 = vld [vmem:[#allocation182_spill] sm:$0xff]  ;;  %v3748_v46 = vsel %vm3709_vm5, %v3683_v52, %v6190_v12  ;;  %v9604_v17 = vsel %vm3904_vm8, %v3875_v16, %v6131_v43  ;;  %v6176_v47 = vunpack.i.h.bf16 %v11782_v5  ;;  %v7145_v32 = vld [vmem:[#allocation2 + $0x200] sm:$0xff]  ;;  %v11784_v52 = vld [vmem:[#allocation181_spill] sm:$0xff] }
 0x2aa   :  { %6758 = vrot.lane.b32.xlu0 %v11775_v30, %s7258_s22  ;;  %v6201_v19 = vunpack.i.h.bf16 %v11780_v41  ;;  %v6200_v37 = vunpack.i.l.bf16 %v11780_v41  ;;  %11781 = vst [vmem:[#allocation55_spill] sm:$0xff] %v9604_v17  ;;  %v6175_v50 = vunpack.i.l.bf16 %v11782_v5  ;;  %v6205_v30 = vunpack.i.l.bf16 %v8631_v6  ;;  %v9610_v2 = vpop.permute.xlu1 %6458  ;;  %v9612_v48 = vpop.permute.xlu0 %6488  ;;  %v11786_v23 = vld [vmem:[#allocation171_spill] sm:$0xff] }
 0x2ab   :  { %6733 = vrot.lane.b32.xlu1 %v11778_v49, %s7258_s22  ;;  %v3684_v49 = vsel %vm867_vm2, %v7145_v32, %v6186_v29  ;;  %11783 = vst [vmem:[#allocation58_spill] sm:$0xff] %v9610_v2  ;;  %v3812_v11 = vsel %vm3774_vm6, %v9515_v58, %v6196_v20  ;;  %v3811_v43 = vsel %vm3774_vm6, %v9506_v57, %v6195_v21  ;;  %v6206_v12 = vunpack.i.h.bf16 %v8631_v6  ;;  %v11785_v2 = vld [vmem:[#allocation172_spill] sm:$0xff]  ;;  %v11789_v57 = vld [vmem:[#allocation155_spill] sm:$0xff] }
 0x2ac   :  { %v3749_v16 = vsel %vm3709_vm5, %v3684_v49, %v6191_v53  ;;  %v6181_v41 = vunpack.i.h.bf16 %v11784_v52  ;;  %v3813_v5 = vsel %vm3774_vm6, %v3748_v46, %v6170_v24  ;;  %v6211_v29 = vunpack.i.h.bf16 %v8664_v18  ;;  %v11788_v58 = vld [vmem:[#allocation156_spill] sm:$0xff] }
 0x2ad   :  { %v6210_v32 = vunpack.i.l.bf16 %v8664_v18  ;;  %v11787_v17 = vpack.i.bf16 %v11785_v2, %v11786_v23  ;;  %v11790_v20 = vpack.i.bf16 %v11788_v58, %v11789_v57  ;;  %v6180_v6 = vunpack.i.l.bf16 %v11784_v52  ;;  %v11792_v57 = vld [vmem:[#allocation180_spill] sm:$0xff] }
 0x2ae   :  { %v3876_v21 = vsel %vm3839_vm7, %v3811_v43, %v6200_v37  ;;  %v3877_v53 = vsel %vm3839_vm7, %v3812_v11, %v6201_v19  ;;  %v6215_v24 = vunpack.i.l.bf16 %v8700_v0  ;;  %v3814_v46 = vsel %vm3774_vm6, %v3749_v16, %v6171_v44  ;;  %v9642_v49 = vpop.permute.xlu1 %6463  ;;  %v9644_v2 = vpop.permute.xlu0 %6493  ;;  %v7146_v11 = vld [vmem:[#allocation2 + $0x240] sm:$0xff]  ;;  %v7147_v43 = vld [vmem:[#allocation2 + $0x248] sm:$0xff] }
 0x2af   :  { %6768 = vrot.lane.b32.xlu0 %v11787_v17, %s7259_s4  ;;  %6743 = vrot.lane.b32.xlu1 %v11790_v20, %s7259_s4  ;;  %v9637_v18 = vsel %vm3904_vm8, %v3876_v21, %v6205_v30  ;;  %v6216_v23 = vunpack.i.h.bf16 %v8700_v0  ;;  %v6235_v17 = vunpack.i.l.bf16 %v8830_v55  ;;  %11791 = vst [vmem:[#allocation129_spill] sm:$0xff] %v9642_v49  ;;  %v9647_v52 = vsel %vm3904_vm8, %v3877_v53, %v6206_v12  ;;  %v11793_v12 = vld [vmem:[#allocation179_spill] sm:$0xff]  ;;  %v7152_v49 = vld [vmem:[#allocation2 + $0x258] sm:$0xff] }
 0x2b0   :  { %v6236_v19 = vunpack.i.h.bf16 %v8830_v55  ;;  %v6240_v37 = vunpack.i.l.bf16 %v8864_v27  ;;  %v3878_v30 = vsel %vm3839_vm7, %v3813_v5, %v6175_v50  ;;  %v3689_v44 = vsel %vm867_vm2, %v7146_v11, %v6210_v32  ;;  %v11795_v55 = vld [vmem:[#allocation164_spill] sm:$0xff]  ;;  %v11796_v21 = vld [vmem:[#allocation163_spill] sm:$0xff] }
 0x2b1   :  { %v3690_v0 = vsel %vm867_vm2, %v7147_v43, %v6211_v29  ;;  %v6221_v16 = vunpack.i.h.bf16 %v8698_v36  ;;  %v6241_v58 = vunpack.i.h.bf16 %v8864_v27  ;;  %v11794_v20 = vpack.i.bf16 %v11792_v57, %v11793_v12  ;;  %v7148_v43 = vld [vmem:[#allocation2 + $0x228] sm:$0xff] }
 0x2b2   :  { %v11797_v53 = vpack.i.bf16 %v11795_v55, %v11796_v21  ;;  %v6220_v50 = vunpack.i.l.bf16 %v8698_v36  ;;  %v9666_v5 = vsel %vm3709_vm5, %v3689_v44, %v6215_v24  ;;  %v6246_v29 = vunpack.i.h.bf16 %v8741_v10  ;;  %v9675_v12 = vpop.permute.xlu1 %6468  ;;  %v11799_v55 = vld [vmem:[#allocation184_spill] sm:$0xff]  ;;  %v11800_v21 = vld [vmem:[#allocation183_spill] sm:$0xff] }
 0x2b3   :  { %6778 = vrot.lane.b32.xlu0 %v11794_v20, %s7258_s22  ;;  %v3879_v32 = vsel %vm3839_vm7, %v3814_v46, %v6176_v47  ;;  %v9671_v27 = vsel %vm3709_vm5, %v3690_v0, %v6216_v23  ;;  %v6245_v11 = vunpack.i.l.bf16 %v8741_v10  ;;  %v3687_v57 = vsel %vm867_vm2, %v7148_v43, %v6235_v17  ;;  %11798 = vst [vmem:[#allocation128_spill] sm:$0xff] %v9675_v12  ;;  %v9677_v20 = vpop.permute.xlu0 %6498  ;;  %v7149_v47 = vld [vmem:[#allocation2 + $0x230] sm:$0xff] }
 0x2b4   :  { %6753 = vrot.lane.b32.xlu1 %v11797_v53, %s7258_s22  ;;  %v9680_v36 = vsel %vm3904_vm8, %v3878_v30, %v6180_v6  ;;  %v6251_v24 = vunpack.i.h.bf16 %v8782_v3  ;;  %v6250_v44 = vunpack.i.l.bf16 %v8782_v3  ;;  %v3688_v46 = vsel %vm867_vm2, %v7149_v47, %v6236_v19  ;;  %v11802_v30 = vld [vmem:[#allocation166_spill] sm:$0xff]  ;;  %v11803_v53 = vld [vmem:[#allocation165_spill] sm:$0xff] }
 0x2b5   :  { %v3752_v23 = vsel %vm3709_vm5, %v3687_v57, %v6240_v37  ;;  %v6256_v10 = vunpack.i.h.bf16 %v8828_v51  ;;  %v6255_v17 = vunpack.i.l.bf16 %v8828_v51  ;;  %v3753_v0 = vsel %vm3709_vm5, %v3688_v46, %v6241_v58  ;;  %v11805_v47 = vld [vmem:[#allocation14_spill] sm:$0xff] }
 0x2b6   :  { %v11801_v6 = vpack.i.bf16 %v11799_v55, %v11800_v21  ;;  %v11804_v3 = vpack.i.bf16 %v11802_v30, %v11803_v53  ;;  %v9698_v19 = vsel %vm3904_vm8, %v3879_v32, %v6181_v41  ;;  %v6226_v37 = vunpack.i.h.bf16 %v8739_v33  ;;  %v9712_v32 = vpop.permute.xlu1 %6473  ;;  %v11809_v30 = vld [vmem:[#allocation4_spill] sm:$0xff]  ;;  %v11810_v53 = vld [vmem:[#allocation9_spill] sm:$0xff] }
 0x2b7   :  { %v6225_v43 = vunpack.i.l.bf16 %v8739_v33  ;;  %v3816_v51 = vsel %vm3774_vm6, %v9586_v28, %v6246_v29  ;;  %v6260_v58 = vunpack.i.l.bf16 %v8866_v54  ;;  %v3815_v57 = vsel %vm3774_vm6, %v9579_v38, %v6245_v11  ;;  %v9710_v41 = vpop.permute.xlu0 %6508  ;;  %11806 = vst [vmem:[#allocation116_spill] sm:$0xff] %v9712_v32 }
 0x2b8   :  { %6788 = vrot.lane.b32.xlu0 %v11801_v6, %s7259_s4  ;;  %6763 = vrot.lane.b32.xlu1 %v11804_v3, %s7259_s4  ;;  %v6231_v46 = vunpack.i.h.bf16 %v11805_v47  ;;  %v3817_v55 = vsel %vm3774_vm6, %v3752_v23, %v6220_v50  ;;  %v6261_v21 = vunpack.i.h.bf16 %v8866_v54  ;;  %v6230_v33 = vunpack.i.l.bf16 %v11805_v47  ;;  %v11808_v50 = vld [vmem:[#allocation22_spill] sm:$0xff] }
 0x2b9   :  { %v3880_v6 = vsel %vm3839_vm7, %v3815_v57, %v6250_v44  ;;  %v3881_v28 = vsel %vm3839_vm7, %v3816_v51, %v6251_v24  ;;  %v3818_v29 = vsel %vm3774_vm6, %v3753_v0, %v6221_v16  ;;  %v6266_v54 = vunpack.i.h.bf16 %v11808_v50  ;;  %v11812_v44 = vld [vmem:[#allocation174_spill] sm:$0xff]  ;;  %v11813_v24 = vld [vmem:[#allocation173_spill] sm:$0xff] }
 0x2ba   :  { %v9719_v38 = vsel %vm3904_vm8, %v3880_v6, %v6255_v17  ;;  %v9722_v11 = vsel %vm3904_vm8, %v3881_v28, %v6256_v10  ;;  %v6265_v23 = vunpack.i.l.bf16 %v11808_v50  ;;  %v11811_v3 = vpack.i.bf16 %v11809_v30, %v11810_v53  ;;  %v7150_v16 = vld [vmem:[#allocation2 + $0x270] sm:$0xff]  ;;  %v7151_v47 = vld [vmem:[#allocation2 + $0x278] sm:$0xff]  ;;  %v9743_v53 = vpop.permute.xlu1 %6478 }
 0x2bb   :  { %11807 = vst [vmem:[#allocation115_spill] sm:$0xff] %v9719_v38  ;;  %v11814_v51 = vpack.i.bf16 %v11812_v44, %v11813_v24  ;;  %v3693_v17 = vsel %vm867_vm2, %v7150_v16, %v6260_v58  ;;  %v6286_v10 = vunpack.i.h.bf16 %v9040_v31  ;;  %v6285_v0 = vunpack.i.l.bf16 %v9040_v31  ;;  %v9741_v30 = vpop.permute.xlu0 %6518  ;;  %11815 = vst [vmem:[#allocation54_spill] sm:$0xff] %v9743_v53  ;;  %v11816_v58 = vld [vmem:[#allocation19_spill] sm:$0xff]  ;;  %v11817_v31 = vld [vmem:[#allocation33_spill] sm:$0xff] }
 0x2bc   :  { %6798 = vrot.lane.b32.xlu0 %v11811_v3, %s7258_s22  ;;  %v3882_v57 = vsel %vm3839_vm7, %v3817_v55, %v6225_v43  ;;  %v3694_v6 = vsel %vm867_vm2, %v7151_v47, %v6261_v21  ;;  %v6291_v28 = vunpack.i.h.bf16 %v9084_v56  ;;  %v6290_v50 = vunpack.i.l.bf16 %v9084_v56  ;;  %v11818_v16 = vld [vmem:[#allocation5_spill] sm:$0xff]  ;;  %v11819_v47 = vld [vmem:[#allocation11_spill] sm:$0xff] }
 0x2bd   :  { %6773 = vrot.lane.b32.xlu1 %v11814_v51, %s7258_s22  ;;  %v3883_v3 = vsel %vm3839_vm7, %v3818_v29, %v6226_v37  ;;  %v6271_v44 = vunpack.i.h.bf16 %v11816_v58  ;;  %v6270_v24 = vunpack.i.l.bf16 %v11816_v58  ;;  %v6296_v51 = vunpack.i.h.bf16 %v11817_v31  ;;  %v11821_v29 = vld [vmem:[#allocation176_spill] sm:$0xff]  ;;  %v11822_v58 = vld [vmem:[#allocation175_spill] sm:$0xff] }
 0x2be   :  { %v6295_v43 = vunpack.i.l.bf16 %v11817_v31  ;;  %v9751_v55 = vsel %vm3709_vm5, %v3693_v17, %v6265_v23  ;;  %v9754_v21 = vsel %vm3709_vm5, %v3694_v6, %v6266_v54  ;;  %v6300_v56 = vunpack.i.l.bf16 %v8989_v42  ;;  %v11825_v23 = vld [vmem:[#allocation26_spill] sm:$0xff]  ;;  %v7153_v6 = vld [vmem:[#allocation2 + $0x260] sm:$0xff] }
 0x2bf   :  { %v11820_v37 = vpack.i.bf16 %v11818_v16, %v11819_v47  ;;  %v11823_v12 = vpack.i.bf16 %v11821_v29, %v11822_v58  ;;  %v9766_v31 = vsel %vm3904_vm8, %v3882_v57, %v6230_v33  ;;  %v6276_v17 = vunpack.i.h.bf16 %v11825_v23  ;;  %v9774_v16 = vld [vmem:[#allocation2 + $0x348] sm:$0xff]  ;;  %v9776_v47 = vld [vmem:[#allocation2 + $0x350] sm:$0xff]  ;;  %v9782_v29 = vpop.permute.xlu0 %6528 }
 0x2c0   :  { %11824 = vst [vmem:[#allocation60_spill] sm:$0xff] %v9766_v31  ;;  %v3691_v54 = vsel %vm867_vm2, %v7152_v49, %v6285_v0  ;;  %v3692_v53 = vsel %vm867_vm2, %v7153_v6, %v6286_v10  ;;  %v9772_v32 = vsel %vm3904_vm8, %v3883_v3, %v6231_v46  ;;  %v6305_v33 = vunpack.i.l.bf16 %v9038_v39  ;;  %11827 = vst [vmem:[#allocation62_spill] sm:$0xff] %v9782_v29  ;;  %v9784_v49 = vpop.permute.xlu1 %6503  ;;  %v9792_v3 = vld [vmem:[#allocation2 + $0x349] sm:$0xff]  ;;  %v9794_v58 = vld [vmem:[#allocation2 + $0x351] sm:$0xff] }
 0x2c1   :  { %6808 = vrot.lane.b32.xlu0 %v11820_v37, %s7259_s4  ;;  %6783 = vrot.lane.b32.xlu1 %v11823_v12, %s7259_s4  ;;  %11826 = vst [vmem:[#allocation61_spill] sm:$0xff] %v9772_v32  ;;  %v6301_v12 = vunpack.i.h.bf16 %v8989_v42  ;;  %v3756_v57 = vsel %vm3709_vm5, %v3691_v54, %v6290_v50  ;;  %v3757_v37 = vsel %vm3709_vm5, %v3692_v53, %v6291_v28  ;;  %v6275_v10 = vunpack.i.l.bf16 %v11825_v23  ;;  %v11828_v50 = vld [vmem:[#allocation28_spill] sm:$0xff]  ;;  %v11829_v23 = vld [vmem:[#allocation17_spill] sm:$0xff] }
 0x2c2   :  { %v3820_v46 = vsel %vm3774_vm6, %v9671_v27, %v6296_v51  ;;  %v3819_v0 = vsel %vm3774_vm6, %v9666_v5, %v6295_v43  ;;  %v6306_v42 = vunpack.i.h.bf16 %v9038_v39  ;;  %v6281_v28 = vunpack.i.h.bf16 %v11828_v50  ;;  %v11830_v6 = vld [vmem:[#allocation21_spill] sm:$0xff]  ;;  %v11832_v27 = vld [vmem:[#allocation186_spill] sm:$0xff] }
 0x2c3   :  { %v6280_v53 = vunpack.i.l.bf16 %v11828_v50  ;;  %v3884_v54 = vsel %vm3839_vm7, %v3819_v0, %v6300_v56  ;;  %v11831_v31 = vpack.i.bf16 %v11829_v23, %v11830_v6  ;;  %v11833_v5 = vld [vmem:[#allocation185_spill] sm:$0xff]  ;;  %v3821_v50 = vsel %vm3774_vm6, %v3756_v57, %v6270_v24  ;;  %v11838_v39 = vld [vmem:[#allocation190_spill] sm:$0xff] }
 0x2c4   :  { %v11834_v51 = vpack.i.bf16 %v11832_v27, %v11833_v5  ;;  %v9809_v43 = vld [vmem:[#allocation2 + $0x34a] sm:$0xff]  ;;  %v9811_v32 = vld [vmem:[#allocation2 + $0x352] sm:$0xff]  ;;  %v3822_v56 = vsel %vm3774_vm6, %v3757_v37, %v6271_v44  ;;  %v6311_v0 = vunpack.i.h.bf16 %v9086_v34  ;;  %v3885_v23 = vsel %vm3839_vm7, %v3820_v46, %v6301_v12  ;;  %v9822_v5 = vpop.permute.xlu0 %6538 }
 0x2c5   :  { %6818 = vrot.lane.b32.xlu0 %v11831_v31, %s7258_s22  ;;  %v6310_v31 = vunpack.i.l.bf16 %v9086_v34  ;;  %v9819_v6 = vsel %vm3904_vm8, %v3884_v54, %v6305_v33  ;;  %v6315_v27 = vunpack.i.l.bf16 %v9124_v59  ;;  %11836 = vst [vmem:[#allocation121_spill] sm:$0xff] %v9822_v5  ;;  %v9829_v44 = vsel %vm3904_vm8, %v3885_v23, %v6306_v42  ;;  %v1072_v33 = vld [vmem:[#allocation2 + $0x2a0] sm:$0xff]  ;;  %v1073_v37 = vld [vmem:[#allocation2 + $0x2a8] sm:$0xff]  ;;  %v11839_v5 = vld [vmem:[#allocation70_spill] sm:$0xff] }
 0x2c6   :  { %6793 = vrot.lane.b32.xlu1 %v11834_v51, %s7258_s22  ;;  %11835 = vst [vmem:[#allocation56_spill] sm:$0xff] %v9819_v6  ;;  %v9824_v51 = vpop.permute.xlu1 %6513  ;;  %11837 = vst [vmem:[#allocation120_spill] sm:$0xff] %v9829_v44  ;;  %v6316_v57 = vunpack.i.h.bf16 %v9124_v59  ;;  %v6335_v34 = vunpack.i.l.bf16 %v9223_v15  ;;  %v6336_v46 = vunpack.i.h.bf16 %v9223_v15  ;;  %v6340_v54 = vunpack.i.l.bf16 %v9249_v45  ;;  %v11841_v42 = vld [vmem:[#allocation188_spill] sm:$0xff]  ;;  %v11842_v23 = vld [vmem:[#allocation187_spill] sm:$0xff] }
 0x2c7   :  { %v11840_v24 = vpack.i.bf16 %v11838_v39, %v11839_v5  ;;  %v11843_v59 = vpack.i.bf16 %v11841_v42, %v11842_v23  ;;  %v3886_v6 = vsel %vm3839_vm7, %v3821_v50, %v6275_v10  ;;  %v3887_v12 = vsel %vm3839_vm7, %v3822_v56, %v6276_v17  ;;  %v1070_v10 = vld [vmem:[#allocation2 + $0x288] sm:$0xff] }
 0x2c8   :  { %v3697_v44 = vsel %vm867_vm2, %v1072_v33, %v6310_v31  ;;  %v3698_v15 = vsel %vm867_vm2, %v1073_v37, %v6311_v0  ;;  %v6346_v29 = vunpack.i.h.bf16 %v9152_v9  ;;  %v6341_v38 = vunpack.i.h.bf16 %v9249_v45  ;;  %v9857_v50 = vpop.permute.xlu0 %6548  ;;  %v1071_v0 = vld [vmem:[#allocation2 + $0x290] sm:$0xff] }
 0x2c9   :  { %6828 = vrot.lane.b32.xlu0 %v11840_v24, %s7259_s4  ;;  %v6321_v39 = vunpack.i.h.bf16 %v9122_v40  ;;  %v6320_v5 = vunpack.i.l.bf16 %v9122_v40  ;;  %v9854_v24 = vsel %vm3709_vm5, %v3697_v44, %v6315_v27  ;;  %v6345_v42 = vunpack.i.l.bf16 %v9152_v9  ;;  %v11845_v37 = vld [vmem:[#allocation25_spill] sm:$0xff] }
 0x2ca   :  { %6803 = vrot.lane.b32.xlu1 %v11843_v59, %s7259_s4  ;;  %v9859_v17 = vpop.permute.xlu1 %6523  ;;  %v9862_v56 = vsel %vm3709_vm5, %v3698_v15, %v6316_v57  ;;  %v3695_v45 = vsel %vm867_vm2, %v1070_v10, %v6335_v34  ;;  %v9866_v31 = vsel %vm3904_vm8, %v3886_v6, %v6280_v53  ;;  %v9869_v40 = vsel %vm3904_vm8, %v3887_v12, %v6281_v28  ;;  %v11844_v57 = vld [vmem:[#allocation94_spill] sm:$0xff]  ;;  %v11847_v34 = vld [vmem:[#allocation189_spill] sm:$0xff]  ;;  %v11848_v53 = vld [vmem:[#allocation7_spill] sm:$0xff] }
 0x2cb   :  { %v6326_v27 = vunpack.i.h.bf16 %v9150_v63  ;;  %v6325_v9 = vunpack.i.l.bf16 %v9150_v63  ;;  %v3696_v44 = vsel %vm867_vm2, %v1071_v0, %v6336_v46  ;;  %v3760_v33 = vsel %vm3709_vm5, %v3695_v45, %v6340_v54  ;;  %v11850_v10 = vld [vmem:[#allocation99_spill] sm:$0xff] }
 0x2cc   :  { %v11846_v23 = vpack.i.bf16 %v11844_v57, %v11845_v37  ;;  %v11849_v6 = vpack.i.bf16 %v11847_v34, %v11848_v53  ;;  %v3824_v28 = vsel %vm3774_vm6, %v9754_v21, %v6346_v29  ;;  %v6351_v12 = vunpack.i.h.bf16 %v9186_v22  ;;  %v9893_v45 = vpop.permute.xlu0 %6558  ;;  %v11852_v21 = vld [vmem:[#allocation97_spill] sm:$0xff] }
 0x2cd   :  { %v6350_v63 = vunpack.i.l.bf16 %v9186_v22  ;;  %v3761_v46 = vsel %vm3709_vm5, %v3696_v44, %v6341_v38  ;;  %v3823_v54 = vsel %vm3774_vm6, %v9751_v55, %v6345_v42  ;;  %v6356_v59 = vunpack.i.h.bf16 %v9221_v7  ;;  %11851 = vst [vmem:[#allocation69_spill] sm:$0xff] %v9893_v45  ;;  %v11854_v34 = vld [vmem:[#allocation73_spill] sm:$0xff] }
 0x2ce   :  { %6838 = vrot.lane.b32.xlu0 %v11846_v23, %s7258_s22  ;;  %6813 = vrot.lane.b32.xlu1 %v11849_v6, %s7258_s22  ;;  %v6355_v15 = vunpack.i.l.bf16 %v9221_v7  ;;  %v6360_v0 = vunpack.i.l.bf16 %v11850_v10  ;;  %v9895_v57 = vpop.permute.xlu1 %6533  ;;  %v6331_v29 = vunpack.i.h.bf16 %v11852_v21  ;;  %v6330_v37 = vunpack.i.l.bf16 %v11852_v21  ;;  %v11853_v23 = vld [vmem:[#allocation20_spill] sm:$0xff]  ;;  %v11856_v6 = vld [vmem:[#allocation10_spill] sm:$0xff] }
 0x2cf   :  { %v3825_v22 = vsel %vm3774_vm6, %v3760_v33, %v6320_v5  ;;  %v6361_v38 = vunpack.i.h.bf16 %v11850_v10  ;;  %v3826_v55 = vsel %vm3774_vm6, %v3761_v46, %v6321_v39  ;;  %v6366_v42 = vunpack.i.h.bf16 %v9289_v26  ;;  %v11857_v21 = vld [vmem:[#allocation6_spill] sm:$0xff]  ;;  %v1076_v33 = vld [vmem:[#allocation2 + $0x2d0] sm:$0xff] }
 0x2d0   :  { %v6365_v7 = vunpack.i.l.bf16 %v9289_v26  ;;  %v6385_v44 = vunpack.i.l.bf16 %v9381_v62  ;;  %v11855_v53 = vpack.i.bf16 %v11853_v23, %v11854_v34  ;;  %v11858_v45 = vpack.i.bf16 %v11856_v6, %v11857_v21  ;;  %v1077_v34 = vld [vmem:[#allocation2 + $0x2d8] sm:$0xff]  ;;  %v9925_v6 = vpop.permute.xlu0 %6568 }
 0x2d1   :  { %v3888_v5 = vsel %vm3839_vm7, %v3823_v54, %v6350_v63  ;;  %v3889_v39 = vsel %vm3839_vm7, %v3824_v28, %v6351_v12  ;;  %v6386_v46 = vunpack.i.h.bf16 %v9381_v62  ;;  %v6390_v26 = vunpack.i.l.bf16 %v9410_v60  ;;  %11859 = vst [vmem:[#allocation72_spill] sm:$0xff] %v9925_v6  ;;  %v11860_v62 = vld [vmem:[#allocation40_spill] sm:$0xff]  ;;  %v1074_v54 = vld [vmem:[#allocation2 + $0x2b8] sm:$0xff]  ;;  %v11874_v6 = vld [vmem:[#allocation193_spill] sm:$0xff] }
 0x2d2   :  { %6848 = vrot.lane.b32.xlu0 %v11855_v53, %s7259_s4  ;;  %6823 = vrot.lane.b32.xlu1 %v11858_v45, %s7259_s4  ;;  %v9918_v10 = vsel %vm3904_vm8, %v3888_v5, %v6355_v15  ;;  %v9921_v23 = vsel %vm3904_vm8, %v3889_v39, %v6356_v59  ;;  %v3701_v53 = vsel %vm867_vm2, %v1076_v33, %v6360_v0  ;;  %v6391_v45 = vunpack.i.h.bf16 %v9410_v60  ;;  %v9927_v63 = vpop.permute.xlu1 %6543  ;;  %v1075_v0 = vld [vmem:[#allocation2 + $0x2c0] sm:$0xff] }
 0x2d3   :  { %v3702_v28 = vsel %vm867_vm2, %v1077_v34, %v6361_v38  ;;  %v6371_v12 = vunpack.i.h.bf16 %v11860_v62  ;;  %v3890_v15 = vsel %vm3839_vm7, %v3825_v22, %v6325_v9  ;;  %v3891_v21 = vsel %vm3839_vm7, %v3826_v55, %v6326_v27  ;;  %v11861_v38 = vld [vmem:[#allocation110_spill] sm:$0xff]  ;;  %v11862_v33 = vld [vmem:[#allocation95_spill] sm:$0xff] }
 0x2d4   :  { %v6370_v59 = vunpack.i.l.bf16 %v11860_v62  ;;  %v9935_v5 = vsel %vm3709_vm5, %v3701_v53, %v6365_v7  ;;  %v9938_v60 = vsel %vm3709_vm5, %v3702_v28, %v6366_v42  ;;  %v3699_v39 = vsel %vm867_vm2, %v1074_v54, %v6385_v44  ;;  %v11864_v9 = vld [vmem:[#allocation15_spill] sm:$0xff]  ;;  %v11867_v55 = vld [vmem:[#allocation46_spill] sm:$0xff] }
 0x2d5   :  { %v11863_v34 = vpack.i.bf16 %v11861_v38, %v11862_v33  ;;  %v11865_v22 = vld [vmem:[#allocation191_spill] sm:$0xff]  ;;  %v6396_v62 = vunpack.i.h.bf16 %v11867_v55  ;;  %v6395_v7 = vunpack.i.l.bf16 %v11867_v55  ;;  %v3700_v42 = vsel %vm867_vm2, %v1075_v0, %v6386_v46  ;;  %v11868_v28 = vld [vmem:[#allocation42_spill] sm:$0xff] }
 0x2d6   :  { %v11866_v27 = vpack.i.bf16 %v11864_v9, %v11865_v22  ;;  %v3764_v53 = vsel %vm3709_vm5, %v3699_v39, %v6390_v26  ;;  %v6401_v44 = vunpack.i.h.bf16 %v11868_v28  ;;  %v6400_v54 = vunpack.i.l.bf16 %v11868_v28  ;;  %v9961_v9 = vpop.permute.xlu1 %6553  ;;  %v11870_v22 = vld [vmem:[#allocation43_spill] sm:$0xff]  ;;  %v11871_v39 = vld [vmem:[#allocation30_spill] sm:$0xff] }
 0x2d7   :  { %6858 = vrot.lane.b32.xlu0 %v11863_v34, %s7258_s22  ;;  %v3765_v38 = vsel %vm3709_vm5, %v3700_v42, %v6391_v45  ;;  %v9957_v33 = vsel %vm3904_vm8, %v3890_v15, %v6330_v37  ;;  %v9959_v34 = vpop.permute.xlu0 %6578  ;;  %11869 = vst [vmem:[#allocation65_spill] sm:$0xff] %v9961_v9  ;;  %v6406_v55 = vunpack.i.h.bf16 %v9379_v61  ;;  %v6405_v46 = vunpack.i.l.bf16 %v9379_v61  ;;  %v11872_v42 = vld [vmem:[#allocation34_spill] sm:$0xff]  ;;  %v11875_v61 = vld [vmem:[#allocation192_spill] sm:$0xff] }
 0x2d8   :  { %6833 = vrot.lane.b32.xlu1 %v11866_v27, %s7258_s22  ;;  %v6376_v27 = vunpack.i.h.bf16 %v11870_v22  ;;  %v9967_v26 = vsel %vm3904_vm8, %v3891_v21, %v6331_v29  ;;  %v6375_v0 = vunpack.i.l.bf16 %v11870_v22  ;;  %v3829_v45 = vsel %vm3774_vm6, %v3764_v53, %v6370_v59  ;;  %v11877_v53 = vld [vmem:[#allocation100_spill] sm:$0xff] }
 0x2d9   :  { %v6411_v37 = vunpack.i.h.bf16 %v9412_v1  ;;  %v6410_v15 = vunpack.i.l.bf16 %v9412_v1  ;;  %v11873_v28 = vpack.i.bf16 %v11871_v39, %v11872_v42  ;;  %v11876_v9 = vpack.i.bf16 %v11874_v6, %v11875_v61 }
 0x2da   :  { %v3828_v29 = vsel %vm3774_vm6, %v9862_v56, %v6396_v62  ;;  %v3827_v21 = vsel %vm3774_vm6, %v9854_v24, %v6395_v7  ;;  %v3830_v59 = vsel %vm3774_vm6, %v3765_v38, %v6371_v12  ;;  %v6415_v1 = vunpack.i.l.bf16 %v9444_v25  ;;  %v7154_v7 = vld [vmem:[#allocation2 + $0x300] sm:$0xff]  ;;  %v7155_v38 = vld [vmem:[#allocation2 + $0x308] sm:$0xff] }
 0x2db   :  { %6868 = vrot.lane.b32.xlu0 %v11873_v28, %s7259_s4  ;;  %v6381_v22 = vunpack.i.h.bf16 %v11877_v53  ;;  %v3892_v39 = vsel %vm3839_vm7, %v3827_v21, %v6400_v54  ;;  %v3893_v42 = vsel %vm3839_vm7, %v3828_v29, %v6401_v44  ;;  %v6416_v6 = vunpack.i.h.bf16 %v9444_v25  ;;  %v9991_v28 = vpop.permute.xlu1 %6563  ;;  %v11879_v29 = vld [vmem:[#allocation102_spill] sm:$0xff]  ;;  %v11880_v21 = vld [vmem:[#allocation103_spill] sm:$0xff] }
 0x2dc   :  { %6843 = vrot.lane.b32.xlu1 %v11876_v9, %s7259_s4  ;;  %v6589_v9 = vpop.permute.xlu0 %6588  ;;  %11878 = vst [vmem:[#allocation134_spill] sm:$0xff] %v9991_v28  ;;  %v6380_v56 = vunpack.i.l.bf16 %v11877_v53  ;;  %v9995_v62 = vsel %vm3904_vm8, %v3892_v39, %v6405_v46  ;;  %v9998_v24 = vsel %vm3904_vm8, %v3893_v42, %v6406_v55  ;;  %v3894_v12 = vsel %vm3839_vm7, %v3829_v45, %v6375_v0  ;;  %v11882_v55 = vld [vmem:[#allocation29_spill] sm:$0xff]  ;;  %v11891_v25 = vld [vmem:[#allocation27_spill] sm:$0xff] }
 0x2dd   :  { %v3705_v54 = vsel %vm867_vm2, %v7154_v7, %v6410_v15  ;;  %v3706_v44 = vsel %vm867_vm2, %v7155_v38, %v6411_v37  ;;  %v3895_v61 = vsel %vm3839_vm7, %v3830_v59, %v6376_v27  ;;  %v11881_v46 = vpack.i.bf16 %v11879_v29, %v11880_v21  ;;  %v11883_v53 = vld [vmem:[#allocation85_spill] sm:$0xff]  ;;  %v11892_v0 = vld [vmem:[#allocation35_spill] sm:$0xff] }
 0x2de   :  { %v11884_v39 = vpack.i.bf16 %v11882_v55, %v11883_v53  ;;  %v10015_v45 = vsel %vm3709_vm5, %v3705_v54, %v6415_v1  ;;  %v6446_v37 = vunpack.i.h.bf16 %v9472_v8  ;;  %v6445_v15 = vunpack.i.l.bf16 %v9472_v8  ;;  %v11886_v1 = vld [vmem:[#allocation107_spill] sm:$0xff] }
 0x2df   :  { %6878 = vrot.lane.b32.xlu0 %v11881_v46, %s7258_s22  ;;  %v10020_v27 = vsel %vm3709_vm5, %v3706_v44, %v6416_v6  ;;  %v6450_v59 = vunpack.i.l.bf16 %v9512_v4  ;;  %v6580_v42 = vunpack.i.l.bf16 %v9959_v34  ;;  %v10025_v7 = vsel %vm3904_vm8, %v3894_v12, %v6380_v56  ;;  %v6574_v29 = vpop.permute.xlu1 %6573  ;;  %v11889_v56 = vld [vmem:[#allocation37_spill] sm:$0xff] }
 0x2e0   :  { %6853 = vrot.lane.b32.xlu1 %v11884_v39, %s7258_s22  ;;  %11885 = vst [vmem:[#allocation123_spill] sm:$0xff] %v10025_v7  ;;  %v10027_v38 = vpop.permute.xlu0 %6598  ;;  %v6581_v21 = vunpack.i.h.bf16 %v9959_v34  ;;  %v10032_v8 = vsel %vm3904_vm8, %v3895_v61, %v6381_v22  ;;  %v6590_v46 = vunpack.i.l.bf16 %v6589_v9  ;;  %v6591_v44 = vunpack.i.h.bf16 %v6589_v9  ;;  %v11888_v39 = vld [vmem:[#allocation32_spill] sm:$0xff]  ;;  %v11894_v61 = vld [vmem:[#allocation127_spill] sm:$0xff] }
 0x2e1   :  { %11887 = vst [vmem:[#allocation122_spill] sm:$0xff] %v10032_v8  ;;  %v6576_v55 = vunpack.i.h.bf16 %v6574_v29  ;;  %v6575_v53 = vunpack.i.l.bf16 %v6574_v29  ;;  %v11890_v12 = vpack.i.bf16 %v11888_v39, %v11889_v56  ;;  %v11893_v54 = vpack.i.bf16 %v11891_v25, %v11892_v0  ;;  %v11895_v39 = vld [vmem:[#allocation23_spill] sm:$0xff]  ;;  %v7156_v25 = vld [vmem:[%s11047_s0 + $0x10] sm:$0xff]  }
 0x2e2   :  { %v3832_v34 = vsel %vm3774_vm6, %v9938_v60, %v6446_v37  ;;  %v3831_v22 = vsel %vm3774_vm6, %v9935_v5, %v6445_v15  ;;  %v6451_v29 = vunpack.i.h.bf16 %v9512_v4  ;;  %v4037_v56 = vsel %vm4034_vm11, %v11895_v39, %v6580_v42  ;;  %v11896_v37 = vld [vmem:[#allocation8_spill] sm:$0xff] }
 0x2e3   :  { %6888 = vrot.lane.b32.xlu0 %v11890_v12, %s7259_s4  ;;  %v10050_v6 = vsel %vm3839_vm7, %v3831_v22, %v6450_v59  ;;  %v6584_v28 = vpop.permute.xlu1 %6583  ;;  %v4768_v60 = vunpack.c.l.bf16 %v7156_v25  ;;  %v4769_v0 = vunpack.c.h.bf16 %v7156_v25  ;;  %v4038_v5 = vsel %vm4034_vm11, %v11896_v37, %v6581_v21  ;;  %v11898_v39 = vld [vmem:[#allocation12_spill] sm:$0xff]  ;;  %v11899_v25 = vld [vmem:[#allocation13_spill] sm:$0xff] }
 0x2e4   :  { %6863 = vrot.lane.b32.xlu1 %v11893_v54, %s7259_s4  ;;  %v6609_v12 = vpop.permute.xlu0 %6608  ;;  %v4102_v15 = vsel %vm4099_vm12, %v4037_v56, %v6590_v46  ;;  %v6586_v4 = vunpack.i.h.bf16 %v6584_v28  ;;  %v6585_v54 = vunpack.i.l.bf16 %v6584_v28  ;;  %v4103_v22 = vsel %vm4099_vm12, %v4038_v5, %v6591_v44  ;;  %v11900_v21 = vld [vmem:[#allocation117_spill] sm:$0xff]  ;;  %v7157_v44 = vld [vmem:[%s11047_s0 + $0x8] sm:$0xff]  }
 0x2e5   :  { %v11897_v42 = vpack.i.bf16 %v9776_v47, %v9774_v16  ;;  %v4035_v9 = vsel %vm4034_vm11, %v11898_v39, %v6575_v53  ;;  %v4036_v7 = vsel %vm4034_vm11, %v11899_v25, %v6576_v55  ;;  %v4766_v16 = vunpack.c.l.bf16 %v7157_v44  ;;  %v7158_v55 = vld [vmem:[%s11047_s0 + $0x20] sm:$0xff]  }
 0x2e6   :  { %v4100_v28 = vsel %vm4099_vm12, %v4035_v9, %v6585_v54  ;;  %v4101_v46 = vsel %vm4099_vm12, %v4036_v7, %v6586_v4  ;;  %v4767_v47 = vunpack.c.h.bf16 %v7157_v44  ;;  %v6907_v5 = vpack.i.bf16 %v4769_v0, %v4768_v60  ;;  %v11902_v0 = vld [vmem:[#allocation126_spill] sm:$0xff] }
 0x2e7   :  { %6898 = vrot.lane.b32.xlu0 %v11900_v21, %s7260_s29  ;;  %v6594_v53 = vpop.permute.xlu1 %6593  ;;  %v4164_v37 = vpack.c.bf16 %v4101_v46, %v4100_v28  ;;  %v4773_v39 = vunpack.c.h.bf16 %v7158_v55  ;;  %v10083_v9 = vsel %vm3839_vm7, %v3832_v34, %v6451_v29  ;;  %v4165_v7 = vpack.c.bf16 %v4103_v22, %v4102_v15 }
 0x2e8   :  { %6873 = vrot.lane.b32.xlu1 %v11897_v42, %s7254_s24  ;;  %v10077_v56 = vpop.permute.xlu0 %6618  ;;  %v4772_v42 = vunpack.c.l.bf16 %v7158_v55  ;;  %v6601_v4 = vunpack.i.h.bf16 %v10027_v38  ;;  %v6600_v54 = vunpack.i.l.bf16 %v10027_v38  ;;  %v6611_v25 = vunpack.i.h.bf16 %v6609_v12  ;;  %v7159_v38 = vld [vmem:[%s11047_s0 + $0x18] sm:$0xff]  }
 0x2e9   :  { %v6610_v21 = vunpack.i.l.bf16 %v6609_v12  ;;  %v6596_v44 = vunpack.i.h.bf16 %v6594_v53  ;;  %v6595_v59 = vunpack.i.l.bf16 %v6594_v53  ;;  %v11901_v60 = vpack.i.bf16 %v9794_v58, %v9792_v3  ;;  %5541 = vmatprep.mubr.msk.bf16.mxu1 %vm4232_vm13, %v4164_v37  ;;  %v7160_v58 = vld [vmem:[%s11047_s0 + $0x30] sm:$0xff]   ;;  %v11903_v55 = vld [vmem:[#allocation18_spill] sm:$0xff] }
 0x2ea   :  { %5542 = vmatmul.mubr.msk.bf16.vlgmr.msra.gmra.mxu1 %vm4232_vm13, %v4165_v7  ;;  %v6902_v29 = vpack.i.bf16 %v4767_v47, %v4766_v16  ;;  %v4770_v12 = vunpack.c.l.bf16 %v7159_v38  ;;  %v4771_v46 = vunpack.c.h.bf16 %v7159_v38  ;;  %v6917_v3 = vpack.i.bf16 %v4773_v39, %v4772_v42  ;;  %v11904_v47 = vld [vmem:[#allocation24_spill] sm:$0xff] }
 0x2eb   :  { %v6604_v22 = vpop.permute.xlu1 %6603  ;;  %6908 = vrot.lane.b32.xlu0 %v6907_v5, %s7260_s29  ;;  %v4776_v53 = vunpack.c.l.bf16 %v7160_v58  ;;  %v4777_v37 = vunpack.c.h.bf16 %v7160_v58  ;;  %v4042_v16 = vsel %vm4034_vm11, %v11903_v55, %v6601_v4  ;;  %v4041_v7 = vsel %vm4034_vm11, %v11904_v47, %v6600_v54  ;;  %v11905_v5 = vld [vmem:[#allocation82_spill] sm:$0xff]  ;;  %v11906_v39 = vld [vmem:[#allocation16_spill] sm:$0xff] }
 0x2ec   :  { %6883 = vrot.lane.b32.xlu1 %v11901_v60, %s7258_s22  ;;  %v6629_v15 = vpop.permute.xlu0 %6628  ;;  %v6606_v60 = vunpack.i.h.bf16 %v6604_v22  ;;  %v6605_v28 = vunpack.i.l.bf16 %v6604_v22  ;;  %v4106_v34 = vsel %vm4099_vm12, %v4041_v7, %v6610_v21  ;;  %v4107_v38 = vsel %vm4099_vm12, %v4042_v16, %v6611_v25  ;;  %v7161_v21 = vld [vmem:[%s11047_s0 + $0x28] sm:$0xff]  }
 0x2ed   :  { %v4040_v42 = vsel %vm4034_vm11, %v11905_v5, %v6596_v44  ;;  %v4039_v8 = vsel %vm4034_vm11, %v11906_v39, %v6595_v59  ;;  %v11907_v58 = vpack.i.bf16 %v9811_v32, %v9809_v43  ;;  %v4774_v25 = vunpack.c.l.bf16 %v7161_v21  ;;  %v7162_v32 = vld [vmem:[%s11047_s0 + $0x40] sm:$0xff]  }
 0x2ee   :  { %v4104_v4 = vsel %vm4099_vm12, %v4039_v8, %v6605_v28  ;;  %v4105_v54 = vsel %vm4099_vm12, %v4040_v42, %v6606_v60  ;;  %v4775_v22 = vunpack.c.h.bf16 %v7161_v21  ;;  %v6927_v59 = vpack.i.bf16 %v4777_v37, %v4776_v53 }
 0x2ef   :  { %v4166_v55 = vpack.c.bf16 %v4105_v54, %v4104_v4  ;;  %v6614_v16 = vpop.permute.xlu1 %6613  ;;  %6918 = vrot.lane.b32.xlu0 %v6917_v3, %s7260_s29  ;;  %v4780_v43 = vunpack.c.l.bf16 %v7162_v32  ;;  %v4781_v8 = vunpack.c.h.bf16 %v7162_v32  ;;  %v4167_v28 = vpack.c.bf16 %v4107_v38, %v4106_v34  ;;  %v11908_v3 = vld [vmem:[#allocation114_spill] sm:$0xff] }
 0x2f0   :  { %6893 = vrot.lane.b32.xlu1 %v11907_v58, %s7259_s4  ;;  %v10121_v44 = vpop.permute.xlu0 %6638  ;;  %v6621_v47 = vunpack.i.h.bf16 %v10077_v56  ;;  %v6620_v7 = vunpack.i.l.bf16 %v10077_v56  ;;  %v6912_v60 = vpack.i.bf16 %v4771_v46, %v4770_v12  ;;  %v6631_v5 = vunpack.i.h.bf16 %v6629_v15  ;;  %v7163_v56 = vld [vmem:[%s11047_s0 + $0x38] sm:$0xff]  }
 0x2f1   :  { %v6630_v42 = vunpack.i.l.bf16 %v6629_v15  ;;  %v6616_v39 = vunpack.i.h.bf16 %v6614_v16  ;;  %v6615_v58 = vunpack.i.l.bf16 %v6614_v16  ;;  %5545 = vmatprep.mubr.msk.bf16.mxu1 %vm4232_vm13, %v4166_v55  ;;  %v6922_v34 = vpack.i.bf16 %v4775_v22, %v4774_v25  ;;  %v11909_v55 = vld [vmem:[#allocation36_spill] sm:$0xff]  ;;  %v11910_v22 = vld [vmem:[#allocation38_spill] sm:$0xff] }
 0x2f2   :  { %5546 = vmatmul.mubr.msk.bf16.gmra.mxu1 %vm4232_vm13, %v4167_v28  ;;  %v4778_v12 = vunpack.c.l.bf16 %v7163_v56  ;;  %v4779_v38 = vunpack.c.h.bf16 %v7163_v56  ;;  %v6937_v4 = vpack.i.bf16 %v4781_v8, %v4780_v43  ;;  %v4046_v25 = vsel %vm4034_vm11, %v11909_v55, %v6621_v47  ;;  %v11912_v8 = vld [vmem:[#allocation31_spill] sm:$0xff] }
 0x2f3   :  { %v6624_v15 = vpop.permute.xlu1 %6623  ;;  %6928 = vrot.lane.b32.xlu0 %v6927_v59, %s7260_s29  ;;  %v4045_v16 = vsel %vm4034_vm11, %v11910_v22, %v6620_v7  ;;  %v4111_v56 = vsel %vm4099_vm12, %v4046_v25, %v6631_v5  ;;  %v11911_v59 = vld [vmem:[#allocation96_spill] sm:$0xff]  ;;  %v4043_v37 = vsel %vm4034_vm11, %v11912_v8, %v6615_v58 }
 0x2f4   :  { %6903 = vrot.lane.b32.xlu1 %v6902_v29, %s7260_s29  ;;  %v6649_v46 = vpop.permute.xlu0 %6648  ;;  %v7164_v29 = vld [vmem:[%s11047_s0 + $0x50] sm:$0xff]   ;;  %v6626_v32 = vunpack.i.h.bf16 %v6624_v15  ;;  %v6625_v28 = vunpack.i.l.bf16 %v6624_v15  ;;  %v4110_v53 = vsel %vm4099_vm12, %v4045_v16, %v6630_v42  ;;  %v4044_v43 = vsel %vm4034_vm11, %v11911_v59, %v6616_v39  ;;  %v7165_v7 = vld [vmem:[%s11047_s0 + $0x48] sm:$0xff]  }
 0x2f5   :  { %v4784_v54 = vunpack.c.l.bf16 %v7164_v29  ;;  %v4785_v21 = vunpack.c.h.bf16 %v7164_v29  ;;  %v4782_v15 = vunpack.c.l.bf16 %v7165_v7  ;;  %v4783_v42 = vunpack.c.h.bf16 %v7165_v7  ;;  %v11916_v7 = vld [vmem:[#allocation111_spill] sm:$0xff] }
 0x2f6   :  { %v4108_v29 = vsel %vm4099_vm12, %v4043_v37, %v6625_v28  ;;  %v4109_v47 = vsel %vm4099_vm12, %v4044_v43, %v6626_v32  ;;  %v4169_v22 = vpack.c.bf16 %v4111_v56, %v4110_v53  ;;  %v6641_v16 = vunpack.i.h.bf16 %v10121_v44 }
 0x2f7   :  { %v4168_v55 = vpack.c.bf16 %v4109_v47, %v4108_v29  ;;  %v6634_v25 = vpop.permute.xlu1 %6633  ;;  %6938 = vrot.lane.b32.xlu0 %v6937_v4, %s7260_s29  ;;  %v6947_v39 = vpack.i.bf16 %v4785_v21, %v4784_v54  ;;  %v6640_v32 = vunpack.i.l.bf16 %v10121_v44  ;;  %v6932_v28 = vpack.i.bf16 %v4779_v38, %v4778_v12 }
 0x2f8   :  { %6913 = vrot.lane.b32.xlu1 %v6912_v60, %s7260_s29  ;;  %v10157_v5 = vpop.permute.xlu0 %6658  ;;  %v7166_v60 = vld [vmem:[%s11047_s0 + $0x60] sm:$0xff]   ;;  %v6651_v59 = vunpack.i.h.bf16 %v6649_v46  ;;  %v6650_v43 = vunpack.i.l.bf16 %v6649_v46  ;;  %v6636_v8 = vunpack.i.h.bf16 %v6634_v25  ;;  %v6635_v29 = vunpack.i.l.bf16 %v6634_v25  ;;  %v7167_v46 = vld [vmem:[%s11047_s0 + $0x58] sm:$0xff]  }
 0x2f9   :  { %v4788_v58 = vunpack.c.l.bf16 %v7166_v60  ;;  %v4789_v37 = vunpack.c.h.bf16 %v7166_v60  ;;  %5549 = vmatprep.mubr.msk.bf16.mxu1 %vm4232_vm13, %v4168_v55  ;;  %v11913_v4 = vunpack.i.l.bf16 %v11902_v0  ;;  %v11915_v53 = vunpack.i.h.bf16 %v11902_v0 }
 0x2fa   :  { %5550 = vmatmul.mubr.msk.bf16.gmra.mxu1 %vm4232_vm13, %v4169_v22  ;;  %v6942_v12 = vpack.i.bf16 %v4783_v42, %v4782_v15  ;;  %v4787_v56 = vunpack.c.h.bf16 %v7167_v46  ;;  %v4050_v15 = vsel %vm4034_vm11, %v11916_v7, %v6641_v16  ;;  %v11917_v42 = vld [vmem:[#allocation45_spill] sm:$0xff] }
 0x2fb   :  { %v10171_v54 = vsel %vm3904_vm8, %v10050_v6, %v11913_v4  ;;  %v10177_v44 = vsel %vm3904_vm8, %v10083_v9, %v11915_v53  ;;  %v6644_v21 = vpop.permute.xlu1 %6643  ;;  %6948 = vrot.lane.b32.xlu0 %v6947_v39, %s7260_s29  ;;  %v6957_v6 = vpack.i.bf16 %v4789_v37, %v4788_v58  ;;  %v7168_v9 = vld [vmem:[%s11047_s0 + $0x70] sm:$0xff]   ;;  %v4049_v55 = vsel %vm4034_vm11, %v11917_v42, %v6640_v32  ;;  %v11918_v39 = vld [vmem:[#allocation104_spill] sm:$0xff] }
 0x2fc   :  { %6923 = vrot.lane.b32.xlu1 %v6922_v34, %s7260_s29  ;;  %11914 = vst [vmem:[#allocation63_spill] sm:$0xff] %v10171_v54  ;;  %v4786_v34 = vunpack.c.l.bf16 %v7167_v46  ;;  %v10183_v38 = vpop.permute.xlu0 %6668  ;;  %v4792_v0 = vunpack.c.l.bf16 %v7168_v9  ;;  %v4793_v47 = vunpack.c.h.bf16 %v7168_v9  ;;  %v6646_v25 = vunpack.i.h.bf16 %v6644_v21  ;;  %v11919_v37 = vld [vmem:[#allocation105_spill] sm:$0xff]  ;;  %v7169_v32 = vld [vmem:[%s11047_s0 + $0x68] sm:$0xff]  }
 0x2fd   :  { %v6645_v60 = vunpack.i.l.bf16 %v6644_v21  ;;  %v4114_v22 = vsel %vm4099_vm12, %v4049_v55, %v6650_v43  ;;  %v4115_v4 = vsel %vm4099_vm12, %v4050_v15, %v6651_v59  ;;  %v4048_v58 = vsel %vm4034_vm11, %v11918_v39, %v6636_v8  ;;  %v1078_v39 = vld [vmem:[#allocation2 + $0x2e8] sm:$0xff] }
 0x2fe   :  { %v4047_v53 = vsel %vm4034_vm11, %v11919_v37, %v6635_v29  ;;  %v4113_v16 = vsel %vm4099_vm12, %v4048_v58, %v6646_v25  ;;  %v4790_v21 = vunpack.c.l.bf16 %v7169_v32  ;;  %v4791_v43 = vunpack.c.h.bf16 %v7169_v32  ;;  %v1079_v58 = vld [vmem:[#allocation2 + $0x2f0] sm:$0xff] }
 0x2ff   :  { %v4112_v46 = vsel %vm4099_vm12, %v4047_v53, %v6645_v60  ;;  %v6654_v7 = vpop.permute.xlu1 %6653  ;;  %6958 = vrot.lane.b32.xlu0 %v6957_v6, %s7260_s29  ;;  %v6967_v8 = vpack.i.bf16 %v4793_v47, %v4792_v0  ;;  %v4171_v42 = vpack.c.bf16 %v4115_v4, %v4114_v22  ;;  %v6661_v55 = vunpack.i.h.bf16 %v10157_v5 }
 0x300   :  { %6933 = vrot.lane.b32.xlu1 %v6932_v28, %s7260_s29  ;;  %v4170_v9 = vpack.c.bf16 %v4113_v16, %v4112_v46  ;;  %v10205_v59 = vpop.permute.xlu0 %6678  ;;  %v7170_v28 = vld [vmem:[%s11047_s0 + $0x80] sm:$0xff]   ;;  %v6660_v25 = vunpack.i.l.bf16 %v10157_v5  ;;  %v6952_v60 = vpack.i.bf16 %v4787_v56, %v4786_v34  ;;  %v6671_v37 = vunpack.i.h.bf16 %v10183_v38 }
 0x301   :  { %v4796_v29 = vunpack.c.l.bf16 %v7170_v28  ;;  %v4797_v15 = vunpack.c.h.bf16 %v7170_v28  ;;  %v6670_v53 = vunpack.i.l.bf16 %v10183_v38  ;;  %v6656_v6 = vunpack.i.h.bf16 %v6654_v7  ;;  %v7171_v38 = vld [vmem:[%s11047_s0 + $0x78] sm:$0xff]  }
 0x302   :  { %v6655_v0 = vunpack.i.l.bf16 %v6654_v7  ;;  %5553 = vmatprep.mubr.msk.bf16.mxu1 %vm4232_vm13, %v4170_v9  ;;  %v11920_v47 = vunpack.i.l.bf16 %v11908_v3  ;;  %v11921_v5 = vunpack.i.h.bf16 %v11908_v3  ;;  %v6962_v56 = vpack.i.bf16 %v4791_v43, %v4790_v21  ;;  %v7172_v3 = vld [vmem:[%s11047_s0 + $0x90] sm:$0xff]   ;;  %v11922_v28 = vld [vmem:[#allocation98_spill] sm:$0xff]  ;;  %v11923_v43 = vld [vmem:[#allocation39_spill] sm:$0xff] }
 0x303   :  { %5554 = vmatmul.mubr.msk.bf16.gmra.mxu1 %vm4232_vm13, %v4171_v42  ;;  %v4794_v4 = vunpack.c.l.bf16 %v7171_v38  ;;  %v4795_v16 = vunpack.c.h.bf16 %v7171_v38  ;;  %6968 = vrot.lane.b32.xlu0 %v6967_v8, %s7260_s29  ;;  %v6977_v32 = vpack.i.bf16 %v4797_v15, %v4796_v29  ;;  %v4800_v9 = vunpack.c.l.bf16 %v7172_v3  ;;  %v11924_v8 = vld [vmem:[#allocation41_spill] sm:$0xff]  ;;  %v11925_v15 = vld [vmem:[#allocation47_spill] sm:$0xff] }
 0x304   :  { %6943 = vrot.lane.b32.xlu1 %v6942_v12, %s7260_s29  ;;  %v10220_v22 = vsel %vm867_vm2, %v1078_v39, %v11920_v47  ;;  %v10225_v34 = vsel %vm867_vm2, %v1079_v58, %v11921_v5  ;;  %v6689_v46 = vpop.permute.xlu0 %6688  ;;  %v6664_v12 = vpop.permute.xlu1 %6663  ;;  %v4801_v7 = vunpack.c.h.bf16 %v7172_v3  ;;  %v4054_v21 = vsel %vm4034_vm11, %v11922_v28, %v6661_v55 }
 0x305   :  { %v4053_v42 = vsel %vm4034_vm11, %v11923_v43, %v6660_v25  ;;  %v6666_v39 = vunpack.i.h.bf16 %v6664_v12  ;;  %v6665_v58 = vunpack.i.l.bf16 %v6664_v12  ;;  %v4119_v5 = vsel %vm4099_vm12, %v4054_v21, %v6671_v37  ;;  %v7173_v25 = vld [vmem:[%s11047_s0 + $0x88] sm:$0xff]  }
 0x306   :  { %v4118_v47 = vsel %vm4099_vm12, %v4053_v42, %v6670_v53  ;;  %v4052_v29 = vsel %vm4034_vm11, %v11924_v8, %v6656_v6  ;;  %v4051_v38 = vsel %vm4034_vm11, %v11925_v15, %v6655_v0  ;;  %v4798_v12 = vunpack.c.l.bf16 %v7173_v25 }
 0x307   :  { %v4116_v3 = vsel %vm4099_vm12, %v4051_v38, %v6665_v58  ;;  %v4117_v55 = vsel %vm4099_vm12, %v4052_v29, %v6666_v39  ;;  %v4799_v53 = vunpack.c.h.bf16 %v7173_v25  ;;  %6978 = vrot.lane.b32.xlu0 %v6977_v32, %s7260_s29  ;;  %v6987_v6 = vpack.i.bf16 %v4801_v7, %v4800_v9 }
 0x308   :  { %6953 = vrot.lane.b32.xlu1 %v6952_v60, %s7260_s29  ;;  %v4172_v28 = vpack.c.bf16 %v4117_v55, %v4116_v3  ;;  %v10251_v37 = vpop.permute.xlu0 %6698  ;;  %v6674_v21 = vpop.permute.xlu1 %6673  ;;  %v7174_v60 = vld [vmem:[%s11047_s0 + $0xa0] sm:$0xff]   ;;  %v4173_v42 = vpack.c.bf16 %v4119_v5, %v4118_v47  ;;  %v6681_v39 = vunpack.i.h.bf16 %v10205_v59  ;;  %v6680_v58 = vunpack.i.l.bf16 %v10205_v59  ;;  %v7175_v59 = vld [vmem:[%s11047_s0 + $0x98] sm:$0xff]  }
 0x309   :  { %v4804_v0 = vunpack.c.l.bf16 %v7174_v60  ;;  %v4805_v43 = vunpack.c.h.bf16 %v7174_v60  ;;  %v6972_v8 = vpack.i.bf16 %v4795_v16, %v4794_v4  ;;  %v6691_v29 = vunpack.i.h.bf16 %v6689_v46 }
 0x30a   :  { %v6690_v15 = vunpack.i.l.bf16 %v6689_v46  ;;  %v6676_v38 = vunpack.i.h.bf16 %v6674_v21  ;;  %v6675_v3 = vunpack.i.l.bf16 %v6674_v21  ;;  %5557 = vmatprep.mubr.msk.bf16.mxu1 %vm4232_vm13, %v4172_v28  ;;  %v6982_v7 = vpack.i.bf16 %v4799_v53, %v4798_v12  ;;  %v11926_v28 = vld [vmem:[#allocation48_spill] sm:$0xff]  ;;  %v11927_v53 = vld [vmem:[#allocation50_spill] sm:$0xff] }
 0x30b   :  { %5558 = vmatmul.mubr.msk.bf16.gmra.mxu1 %vm4232_vm13, %v4173_v42  ;;  %v4802_v4 = vunpack.c.l.bf16 %v7175_v59  ;;  %v4803_v47 = vunpack.c.h.bf16 %v7175_v59  ;;  %6988 = vrot.lane.b32.xlu0 %v6987_v6, %s7260_s29  ;;  %v6997_v5 = vpack.i.bf16 %v4805_v43, %v4804_v0  ;;  %v4058_v12 = vsel %vm4034_vm11, %v11926_v28, %v6681_v39  ;;  %v11928_v6 = vld [vmem:[#allocation101_spill] sm:$0xff]  ;;  %v11929_v43 = vld [vmem:[#allocation112_spill] sm:$0xff] }
 0x30c   :  { %6963 = vrot.lane.b32.xlu1 %v6962_v56, %s7260_s29  ;;  %v6709_v16 = vpop.permute.xlu0 %6708  ;;  %v6684_v46 = vpop.permute.xlu1 %6683  ;;  %v7176_v56 = vld [vmem:[%s11047_s0 + $0xb0] sm:$0xff]   ;;  %v4057_v21 = vsel %vm4034_vm11, %v11927_v53, %v6680_v58  ;;  %v4123_v59 = vsel %vm4099_vm12, %v4058_v12, %v6691_v29  ;;  %v4056_v0 = vsel %vm4034_vm11, %v11928_v6, %v6676_v38  ;;  %v4055_v9 = vsel %vm4034_vm11, %v11929_v43, %v6675_v3  ;;  %v7177_v58 = vld [vmem:[%s11047_s0 + $0xa8] sm:$0xff]  }
 0x30d   :  { %v4808_v55 = vunpack.c.l.bf16 %v7176_v56  ;;  %v4809_v25 = vunpack.c.h.bf16 %v7176_v56  ;;  %v6686_v60 = vunpack.i.h.bf16 %v6684_v46  ;;  %v6685_v42 = vunpack.i.l.bf16 %v6684_v46 }
 0x30e   :  { %v4122_v32 = vsel %vm4099_vm12, %v4057_v21, %v6690_v15  ;;  %v4806_v46 = vunpack.c.l.bf16 %v7177_v58  ;;  %v4807_v15 = vunpack.c.h.bf16 %v7177_v58  ;;  %v6701_v21 = vunpack.i.h.bf16 %v10251_v37 }
 0x30f   :  { %v4120_v56 = vsel %vm4099_vm12, %v4055_v9, %v6685_v42  ;;  %v4121_v39 = vsel %vm4099_vm12, %v4056_v0, %v6686_v60  ;;  %6998 = vrot.lane.b32.xlu0 %v6997_v5, %s7260_s29  ;;  %v7007_v38 = vpack.i.bf16 %v4809_v25, %v4808_v55  ;;  %v4175_v53 = vpack.c.bf16 %v4123_v59, %v4122_v32 }
 0x310   :  { %6973 = vrot.lane.b32.xlu1 %v6972_v8, %s7260_s29  ;;  %v4174_v28 = vpack.c.bf16 %v4121_v39, %v4120_v56  ;;  %v10287_v29 = vpop.permute.xlu0 %6718  ;;  %v6694_v12 = vpop.permute.xlu1 %6693  ;;  %v7178_v8 = vld [vmem:[%s11047_s0 + $0xc0] sm:$0xff]   ;;  %v6700_v60 = vunpack.i.l.bf16 %v10251_v37  ;;  %v6992_v42 = vpack.i.bf16 %v4803_v47, %v4802_v4  ;;  %v6711_v6 = vunpack.i.h.bf16 %v6709_v16  ;;  %v7179_v37 = vld [vmem:[%s11047_s0 + $0xb8] sm:$0xff]  }
 0x311   :  { %v4812_v3 = vunpack.c.l.bf16 %v7178_v8  ;;  %v4813_v9 = vunpack.c.h.bf16 %v7178_v8  ;;  %v6710_v0 = vunpack.i.l.bf16 %v6709_v16  ;;  %v6696_v43 = vunpack.i.h.bf16 %v6694_v12 }
 0x312   :  { %v6695_v56 = vunpack.i.l.bf16 %v6694_v12  ;;  %5561 = vmatprep.mubr.msk.bf16.mxu1 %vm4232_vm13, %v4174_v28  ;;  %v6486_v5 = vunpack.i.h.bf16 %v9575_v13  ;;  %v7002_v32 = vpack.i.bf16 %v4807_v15, %v4806_v46  ;;  %v4810_v4 = vunpack.c.l.bf16 %v7179_v37  ;;  %v11930_v28 = vld [vmem:[#allocation118_spill] sm:$0xff] }
 0x313   :  { %5562 = vmatmul.mubr.msk.bf16.gmra.mxu1 %vm4232_vm13, %v4175_v53  ;;  %v4811_v25 = vunpack.c.h.bf16 %v7179_v37  ;;  %7008 = vrot.lane.b32.xlu0 %v7007_v38, %s7260_s29  ;;  %v7017_v59 = vpack.i.bf16 %v4813_v9, %v4812_v3  ;;  %v4062_v46 = vsel %vm4034_vm11, %v11930_v28, %v6701_v21  ;;  %v11931_v15 = vld [vmem:[#allocation106_spill] sm:$0xff]  ;;  %v11932_v38 = vld [vmem:[#allocation44_spill] sm:$0xff]  ;;  %v11933_v9 = vld [vmem:[#allocation49_spill] sm:$0xff] }
 0x314   :  { %6983 = vrot.lane.b32.xlu1 %v6982_v7, %s7260_s29  ;;  %v6729_v47 = vpop.permute.xlu0 %6728  ;;  %v6704_v16 = vpop.permute.xlu1 %6703  ;;  %v7180_v7 = vld [vmem:[%s11047_s0 + $0xd0] sm:$0xff]   ;;  %v4061_v12 = vsel %vm4034_vm11, %v11931_v15, %v6700_v60  ;;  %v4127_v37 = vsel %vm4099_vm12, %v4062_v46, %v6711_v6  ;;  %v4060_v3 = vsel %vm4034_vm11, %v11932_v38, %v6696_v43  ;;  %v4059_v54 = vsel %vm4034_vm11, %v11933_v9, %v6695_v56 }
 0x315   :  { %v4816_v39 = vunpack.c.l.bf16 %v7180_v7  ;;  %v4817_v58 = vunpack.c.h.bf16 %v7180_v7  ;;  %v6706_v8 = vunpack.i.h.bf16 %v6704_v16  ;;  %v6705_v53 = vunpack.i.l.bf16 %v6704_v16 }
 0x316   :  { %v4126_v55 = vsel %vm4099_vm12, %v4061_v12, %v6710_v0  ;;  %v11934_v7 = vunpack.i.l.bf16 %v9573_v14  ;;  %v11935_v60 = vunpack.i.h.bf16 %v9573_v14  ;;  %v7012_v12 = vpack.i.bf16 %v4811_v25, %v4810_v4 }
 0x317   :  { %v4124_v6 = vsel %vm4099_vm12, %v4059_v54, %v6705_v53  ;;  %v4125_v16 = vsel %vm4099_vm12, %v4060_v3, %v6706_v8  ;;  %7018 = vrot.lane.b32.xlu0 %v7017_v59, %s7260_s29  ;;  %v7027_v14 = vpack.i.bf16 %v4817_v58, %v4816_v39  ;;  %v6720_v54 = vunpack.i.l.bf16 %v10287_v29 }
 0x318   :  { %6993 = vrot.lane.b32.xlu1 %v6992_v42, %s7260_s29  ;;  %v3768_v21 = vsel %vm3709_vm5, %v10220_v22, %v11934_v7  ;;  %v3769_v0 = vsel %vm3709_vm5, %v10225_v34, %v11935_v60  ;;  %v4176_v43 = vpack.c.bf16 %v4125_v16, %v4124_v6  ;;  %v10328_v28 = vpop.permute.xlu0 %6738  ;;  %v6714_v56 = vpop.permute.xlu1 %6713  ;;  %v7181_v42 = vld [vmem:[%s11047_s0 + $0xc8] sm:$0xff]   ;;  %v4177_v22 = vpack.c.bf16 %v4127_v37, %v4126_v55 }
 0x319   :  { %v4814_v46 = vunpack.c.l.bf16 %v7181_v42  ;;  %v4815_v15 = vunpack.c.h.bf16 %v7181_v42  ;;  %v6721_v34 = vunpack.i.h.bf16 %v10287_v29  ;;  %v6731_v8 = vunpack.i.h.bf16 %v6729_v47 }
 0x31a   :  { %v6730_v53 = vunpack.i.l.bf16 %v6729_v47  ;;  %v6716_v38 = vunpack.i.h.bf16 %v6714_v56  ;;  %v6715_v3 = vunpack.i.l.bf16 %v6714_v56  ;;  %5565 = vmatprep.mubr.msk.bf16.mxu1 %vm4232_vm13, %v4176_v43  ;;  %v11936_v9 = vunpack.i.l.bf16 %v9442_v35  ;;  %v11940_v56 = vld [vmem:[#allocation53_spill] sm:$0xff] }
 0x31b   :  { %v11937_v59 = vunpack.i.h.bf16 %v9442_v35  ;;  %v10348_v29 = vsel %vm3774_vm6, %v10020_v27, %v6486_v5  ;;  %v6491_v4 = vunpack.i.h.bf16 %v9612_v48  ;;  %5566 = vmatmul.mubr.msk.bf16.gmra.mxu1 %vm4232_vm13, %v4177_v22  ;;  %v6501_v47 = vunpack.i.h.bf16 %v9677_v20  ;;  %v7182_v35 = vld [vmem:[%s11047_s0 + $0xd8] sm:$0xff]   ;;  %7028 = vrot.lane.b32.xlu0 %v7027_v14, %s7260_s29  ;;  %v11939_v5 = vld [vmem:[#allocation57_spill] sm:$0xff] }
 0x31c   :  { %7003 = vrot.lane.b32.xlu1 %v7002_v32, %s7260_s29  ;;  %v3833_v7 = vsel %vm3774_vm6, %v3768_v21, %v11936_v9  ;;  %v6749_v32 = vpop.permute.xlu0 %6748  ;;  %v6724_v25 = vpop.permute.xlu1 %6723  ;;  %v7022_v39 = vpack.i.bf16 %v4815_v15, %v4814_v46  ;;  %v4818_v58 = vunpack.c.l.bf16 %v7182_v35  ;;  %v4819_v37 = vunpack.c.h.bf16 %v7182_v35  ;;  %v11938_v21 = vld [vmem:[#allocation59_spill] sm:$0xff] }
 0x31d   :  { %v10344_v55 = vsel %vm3774_vm6, %v3769_v0, %v11937_v59  ;;  %v4066_v27 = vsel %vm4034_vm11, %v11938_v21, %v6721_v34  ;;  %v4065_v60 = vsel %vm4034_vm11, %v11939_v5, %v6720_v54  ;;  %v6726_v0 = vunpack.i.h.bf16 %v6724_v25  ;;  %v11941_v46 = vld [vmem:[#allocation119_spill] sm:$0xff] }
 0x31e   :  { %v6725_v6 = vunpack.i.l.bf16 %v6724_v25  ;;  %v4130_v16 = vsel %vm4099_vm12, %v4065_v60, %v6730_v53  ;;  %v4131_v43 = vsel %vm4099_vm12, %v4066_v27, %v6731_v8  ;;  %v4064_v42 = vsel %vm4034_vm11, %v11940_v56, %v6716_v38  ;;  %v7183_v38 = vld [vmem:[%s11047_s0 + $0xe8] sm:$0xff]  }
 0x31f   :  { %v4063_v15 = vsel %vm4034_vm11, %v11941_v46, %v6715_v3  ;;  %v6500_v14 = vunpack.i.l.bf16 %v9677_v20  ;;  %v6506_v22 = vunpack.i.h.bf16 %v9784_v49  ;;  %v4129_v54 = vsel %vm4099_vm12, %v4064_v42, %v6726_v0  ;;  %v11943_v42 = vld [vmem:[#allocation113_spill] sm:$0xff] }
 0x320   :  { %7013 = vrot.lane.b32.xlu1 %v7012_v12, %s7260_s29  ;;  %v4128_v34 = vsel %vm4099_vm12, %v4063_v15, %v6725_v6  ;;  %v6505_v53 = vunpack.i.l.bf16 %v9784_v49  ;;  %v10373_v8 = vpop.permute.xlu0 %6758  ;;  %v6734_v59 = vpop.permute.xlu1 %6733  ;;  %v4822_v3 = vunpack.c.l.bf16 %v7183_v38  ;;  %v4823_v12 = vunpack.c.h.bf16 %v7183_v38  ;;  %v11942_v6 = vld [vmem:[#allocation51_spill] sm:$0xff] }
 0x321   :  { %v4178_v9 = vpack.c.bf16 %v4129_v54, %v4128_v34  ;;  %v4179_v25 = vpack.c.bf16 %v4131_v43, %v4130_v16  ;;  %v6741_v20 = vunpack.i.h.bf16 %v10328_v28  ;;  %v6740_v35 = vunpack.i.l.bf16 %v10328_v28 }
 0x322   :  { %v7032_v21 = vpack.i.bf16 %v4819_v37, %v4818_v58  ;;  %v6751_v27 = vunpack.i.h.bf16 %v6749_v32  ;;  %v6750_v5 = vunpack.i.l.bf16 %v6749_v32  ;;  %v6736_v60 = vunpack.i.h.bf16 %v6734_v59  ;;  %v11945_v58 = vld [vmem:[#allocation55_spill] sm:$0xff] }
 0x323   :  { %v6735_v49 = vunpack.i.l.bf16 %v6734_v59  ;;  %5569 = vmatprep.mubr.msk.bf16.mxu1 %vm4232_vm13, %v4178_v9  ;;  %v6490_v0 = vunpack.i.l.bf16 %v9612_v48  ;;  %v4003_v56 = vsel %vm3969_vm9, %v11942_v6, %v6501_v47  ;;  %v4002_v16 = vsel %vm3969_vm9, %v11943_v42, %v6500_v14 }
 0x324   :  { %7023 = vrot.lane.b32.xlu1 %v7022_v39, %s7260_s29  ;;  %v11944_v43 = vunpack.i.l.bf16 %v11886_v1  ;;  %5570 = vmatmul.mubr.msk.bf16.gmra.mxu1 %vm4232_vm13, %v4179_v25  ;;  %v6511_v32 = vunpack.i.h.bf16 %v9710_v41  ;;  %v4005_v37 = vsel %vm3969_vm9, %v11945_v58, %v6506_v22  ;;  %v11946_v39 = vld [vmem:[#allocation52_spill] sm:$0xff]  ;;  %v6769_v15 = vpop.permute.xlu0 %6768  ;;  %v6744_v34 = vpop.permute.xlu1 %6743  ;;  %v7042_v47 = vpack.i.bf16 %v4823_v12, %v4822_v3 }
 0x325   :  { %v4004_v46 = vsel %vm3969_vm9, %v11946_v39, %v6505_v53  ;;  %v4070_v14 = vsel %vm4034_vm11, %v4005_v37, %v6741_v20  ;;  %v6746_v9 = vunpack.i.h.bf16 %v6744_v34  ;;  %v6745_v59 = vunpack.i.l.bf16 %v6744_v34 }
 0x326   :  { %v3898_v28 = vsel %vm3839_vm7, %v3833_v7, %v11944_v43  ;;  %v4069_v54 = vsel %vm4034_vm11, %v4004_v46, %v6740_v35  ;;  %v4135_v38 = vsel %vm4099_vm12, %v4070_v14, %v6751_v27  ;;  %v4068_v25 = vsel %vm4034_vm11, %v4003_v56, %v6736_v60 }
 0x327   :  { %v4134_v7 = vsel %vm4099_vm12, %v4069_v54, %v6750_v5  ;;  %v4067_v22 = vsel %vm4034_vm11, %v4002_v16, %v6735_v49  ;;  %v6516_v53 = vunpack.i.h.bf16 %v9824_v51  ;;  %v6515_v3 = vunpack.i.l.bf16 %v9824_v51 }
 0x328   :  { %7033 = vrot.lane.b32.xlu1 %v7032_v21, %s7260_s29  ;;  %v4132_v12 = vsel %vm4099_vm12, %v4067_v22, %v6745_v59  ;;  %v4133_v20 = vsel %vm4099_vm12, %v4068_v25, %v6746_v9  ;;  %v6510_v35 = vunpack.i.l.bf16 %v9710_v41  ;;  %v6761_v5 = vunpack.i.h.bf16 %v10373_v8  ;;  %v10410_v60 = vpop.permute.xlu0 %6778  ;;  %v6754_v49 = vpop.permute.xlu1 %6753 }
 0x329   :  { %v6760_v27 = vunpack.i.l.bf16 %v10373_v8  ;;  %v4180_v6 = vpack.c.bf16 %v4133_v20, %v4132_v12  ;;  %v11947_v21 = vunpack.i.l.bf16 %v9575_v13  ;;  %v4181_v51 = vpack.c.bf16 %v4135_v38, %v4134_v7 }
 0x32a   :  { %v6771_v42 = vunpack.i.h.bf16 %v6769_v15  ;;  %v6770_v16 = vunpack.i.l.bf16 %v6769_v15  ;;  %v11948_v41 = vunpack.i.h.bf16 %v11886_v1  ;;  %v6756_v58 = vunpack.i.h.bf16 %v6754_v49 }
 0x32b   :  { %v3835_v56 = vsel %vm3774_vm6, %v10015_v45, %v11947_v21  ;;  %v6755_v37 = vunpack.i.l.bf16 %v6754_v49  ;;  %5573 = vmatprep.mubr.msk.bf16.mxu1 %vm4232_vm13, %v4180_v6  ;;  %v10429_v13 = vsel %vm3839_vm7, %v10348_v29, %v6491_v4  ;;  %v4009_v45 = vsel %vm3969_vm9, %v9698_v19, %v6516_v53 }
 0x32c   :  { %v10417_v43 = vsel %vm3839_vm7, %v3835_v56, %v6490_v0  ;;  %v3899_v8 = vsel %vm3839_vm7, %v10344_v55, %v11948_v41  ;;  %7043 = vrot.lane.b32.xlu1 %v7042_v47, %s7260_s29  ;;  %v4008_v1 = vsel %vm3969_vm9, %v9680_v36, %v6515_v3  ;;  %v11949_v55 = vunpack.i.l.bf16 %v11894_v61  ;;  %5574 = vmatmul.mubr.msk.bf16.gmra.mxu1 %vm4232_vm13, %v4181_v51  ;;  %v6789_v39 = vpop.permute.xlu0 %6788  ;;  %v6764_v46 = vpop.permute.xlu1 %6763 }
 0x32d   :  { %v4007_v48 = vsel %vm3969_vm9, %v9647_v52, %v6511_v32  ;;  %v4006_v29 = vsel %vm3969_vm9, %v9637_v18, %v6510_v35  ;;  %v4073_v4 = vsel %vm4034_vm11, %v4008_v1, %v6760_v27  ;;  %v4074_v19 = vsel %vm4034_vm11, %v4009_v45, %v6761_v5  ;;  %v7184_v18 = vld [vmem:[%s11047_s0 + $0xe0] sm:$0xff]   ;;  %v11954_v45 = vld [vmem:[#allocation60_spill] sm:$0xff] }
 0x32e   :  { %v10438_v0 = vsel %vm3904_vm8, %v3898_v28, %v11949_v55  ;;  %v4138_v36 = vsel %vm4099_vm12, %v4073_v4, %v6770_v16  ;;  %v4139_v15 = vsel %vm4099_vm12, %v4074_v19, %v6771_v42  ;;  %v6766_v28 = vunpack.i.h.bf16 %v6764_v46  ;;  %v11951_v42 = vld [vmem:[#allocation115_spill] sm:$0xff] }
 0x32f   :  { %v6765_v34 = vunpack.i.l.bf16 %v6764_v46  ;;  %v4072_v47 = vsel %vm4034_vm11, %v4007_v48, %v6756_v58  ;;  %v4071_v54 = vsel %vm4034_vm11, %v4006_v29, %v6755_v37  ;;  %v4820_v52 = vunpack.c.l.bf16 %v7184_v18  ;;  %v11953_v58 = vld [vmem:[#allocation61_spill] sm:$0xff] }
 0x330   :  { %v4821_v32 = vunpack.c.h.bf16 %v7184_v18  ;;  %v6521_v14 = vunpack.i.h.bf16 %v9741_v30  ;;  %v6520_v9 = vunpack.i.l.bf16 %v9741_v30  ;;  %v4137_v7 = vsel %vm4099_vm12, %v4072_v47, %v6766_v28  ;;  %v10460_v53 = vpop.permute.xlu0 %6798  ;;  %v6774_v3 = vpop.permute.xlu1 %6773 }
 0x331   :  { %v4136_v59 = vsel %vm4099_vm12, %v4071_v54, %v6765_v34  ;;  %v6526_v38 = vunpack.i.h.bf16 %v9859_v17  ;;  %v6525_v25 = vunpack.i.l.bf16 %v9859_v17  ;;  %v11950_v20 = vunpack.i.h.bf16 %v11894_v61 }
 0x332   :  { %v4182_v22 = vpack.c.bf16 %v4137_v7, %v4136_v59  ;;  %v7037_v12 = vpack.i.bf16 %v4821_v32, %v4820_v52  ;;  %v4183_v5 = vpack.c.bf16 %v4139_v15, %v4138_v36  ;;  %v6781_v30 = vunpack.i.h.bf16 %v10410_v60  ;;  %v11955_v52 = vld [vmem:[#allocation116_spill] sm:$0xff] }
 0x333   :  { %v10465_v35 = vsel %vm3904_vm8, %v3899_v8, %v11950_v20  ;;  %v6780_v27 = vunpack.i.l.bf16 %v10410_v60  ;;  %v6791_v6 = vunpack.i.h.bf16 %v6789_v39  ;;  %v6790_v49 = vunpack.i.l.bf16 %v6789_v39  ;;  %v11952_v60 = vld [vmem:[#allocation62_spill] sm:$0xff] }
 0x334   :  { %v6776_v21 = vunpack.i.h.bf16 %v6774_v3  ;;  %v6775_v56 = vunpack.i.l.bf16 %v6774_v3  ;;  %5577 = vmatprep.mubr.msk.bf16.mxu1 %vm4232_vm13, %v4182_v22  ;;  %7038 = vrot.lane.b32.xlu0 %v7037_v12, %s7260_s29  ;;  %v6496_v17 = vunpack.i.h.bf16 %v9644_v2  ;;  %v6495_v61 = vunpack.i.l.bf16 %v9644_v2  ;;  %v6809_v55 = vpop.permute.xlu0 %6808  ;;  %v6784_v48 = vpop.permute.xlu1 %6783 }
 0x335   :  { %v4011_v51 = vsel %vm3969_vm9, %v9722_v11, %v6521_v14  ;;  %v4010_v16 = vsel %vm3969_vm9, %v11951_v42, %v6520_v9  ;;  %5578 = vmatmul.mubr.msk.bf16.gmra.mxu1 %vm4232_vm13, %v4183_v5  ;;  %v6531_v41 = vunpack.i.h.bf16 %v11952_v60  ;;  %v6530_v8 = vunpack.i.l.bf16 %v11952_v60 }
 0x336   :  { %v4013_v37 = vsel %vm3969_vm9, %v11953_v58, %v6526_v38  ;;  %v4012_v1 = vsel %vm3969_vm9, %v11954_v45, %v6525_v25  ;;  %v6786_v4 = vunpack.i.h.bf16 %v6784_v48  ;;  %v6785_v19 = vunpack.i.l.bf16 %v6784_v48 }
 0x337   :  { %v4077_v29 = vsel %vm4034_vm11, %v4012_v1, %v6780_v27  ;;  %v4078_v11 = vsel %vm4034_vm11, %v4013_v37, %v6781_v30  ;;  %v4076_v36 = vsel %vm4034_vm11, %v4011_v51, %v6776_v21  ;;  %v4075_v15 = vsel %vm4034_vm11, %v4010_v16, %v6775_v56  ;;  %v11956_v30 = vld [vmem:[#allocation120_spill] sm:$0xff]  ;;  %v7186_v16 = vld [vmem:[%s11047_s0 + $0xf0] sm:$0xff]  }
 0x338   :  { %v4142_v39 = vsel %vm4099_vm12, %v4077_v29, %v6790_v49  ;;  %v4143_v46 = vsel %vm4099_vm12, %v4078_v11, %v6791_v6  ;;  %v6536_v28 = vunpack.i.h.bf16 %v9895_v57  ;;  %v6535_v34 = vunpack.i.l.bf16 %v9895_v57  ;;  %v10500_v59 = vpop.permute.xlu0 %6818  ;;  %v6794_v7 = vpop.permute.xlu1 %6793  ;;  %v11957_v6 = vld [vmem:[#allocation56_spill] sm:$0xff]  ;;  %v11958_v29 = vld [vmem:[#allocation121_spill] sm:$0xff] }
 0x339   :  { %v4140_v47 = vsel %vm4099_vm12, %v4075_v15, %v6785_v19  ;;  %v4141_v54 = vsel %vm4099_vm12, %v4076_v36, %v6786_v4  ;;  %v10496_v18 = vsel %vm3904_vm8, %v10417_v43, %v6495_v61  ;;  %v6476_v32 = vunpack.i.h.bf16 %v11955_v52  ;;  %v7185_v43 = vld [vmem:[%s11047_s0 + $0xf8] sm:$0xff]  }
 0x33a   :  { %v6800_v14 = vunpack.i.l.bf16 %v10460_v53  ;;  %v4184_v9 = vpack.c.bf16 %v4141_v54, %v4140_v47  ;;  %v4185_v38 = vpack.c.bf16 %v4143_v46, %v4142_v39  ;;  %v6801_v25 = vunpack.i.h.bf16 %v10460_v53 }
 0x33b   :  { %v6811_v57 = vunpack.i.h.bf16 %v6809_v55  ;;  %v6810_v22 = vunpack.i.l.bf16 %v6809_v55  ;;  %v6796_v3 = vunpack.i.h.bf16 %v6794_v7  ;;  %v6795_v12 = vunpack.i.l.bf16 %v6794_v7  ;;  %v1083_v7 = vld [vmem:[#allocation2 + $0x320] sm:$0xff] }
 0x33c   :  { %5581 = vmatprep.mubr.msk.bf16.mxu1 %vm4232_vm13, %v4184_v9  ;;  %v4826_v20 = vunpack.c.l.bf16 %v7185_v43  ;;  %v4827_v5 = vunpack.c.h.bf16 %v7185_v43  ;;  %v4015_v27 = vsel %vm3969_vm9, %v11956_v30, %v6531_v41  ;;  %v4014_v49 = vsel %vm3969_vm9, %v11957_v6, %v6530_v8  ;;  %v6829_v61 = vpop.permute.xlu0 %6828  ;;  %v6804_v51 = vpop.permute.xlu1 %6803  ;;  %v1082_v9 = vld [vmem:[#allocation2 + $0x318] sm:$0xff] }
 0x33d   :  { %v4017_v53 = vsel %vm3969_vm9, %v9869_v40, %v6536_v28  ;;  %v4016_v21 = vsel %vm3969_vm9, %v9866_v31, %v6535_v34  ;;  %5582 = vmatmul.mubr.msk.bf16.gmra.mxu1 %vm4232_vm13, %v4185_v38  ;;  %v4824_v60 = vunpack.c.l.bf16 %v7186_v16  ;;  %v4825_v41 = vunpack.c.h.bf16 %v7186_v16 }
 0x33e   :  { %v4081_v56 = vsel %vm4034_vm11, %v4016_v21, %v6800_v14  ;;  %v7052_v42 = vpack.i.bf16 %v4827_v5, %v4826_v20  ;;  %v4082_v8 = vsel %vm4034_vm11, %v4017_v53, %v6801_v25  ;;  %v6806_v58 = vunpack.i.h.bf16 %v6804_v51 }
 0x33f   :  { %v4146_v40 = vsel %vm4099_vm12, %v4081_v56, %v6810_v22  ;;  %v6805_v37 = vunpack.i.l.bf16 %v6804_v51  ;;  %v4147_v31 = vsel %vm4099_vm12, %v4082_v8, %v6811_v57  ;;  %v4080_v45 = vsel %vm4034_vm11, %v4015_v27, %v6796_v3 }
 0x340   :  { %v4079_v1 = vsel %vm4034_vm11, %v4014_v49, %v6795_v12  ;;  %7053 = vrot.lane.b32.xlu1 %v7052_v42, %s7260_s29  ;;  %v7047_v55 = vpack.i.bf16 %v4825_v41, %v4824_v60  ;;  %v6475_v48 = vunpack.i.l.bf16 %v11955_v52  ;;  %v6541_v11 = vunpack.i.h.bf16 %v11958_v29  ;;  %v10533_v28 = vpop.permute.xlu0 %6838  ;;  %v6814_v34 = vpop.permute.xlu1 %6813  ;;  %v11960_v42 = vld [vmem:[#allocation65_spill] sm:$0xff] }
 0x341   :  { %v4144_v4 = vsel %vm4099_vm12, %v4079_v1, %v6805_v37  ;;  %v4145_v19 = vsel %vm4099_vm12, %v4080_v45, %v6806_v58  ;;  %v6540_v39 = vunpack.i.l.bf16 %v11958_v29  ;;  %v6546_v46 = vunpack.i.h.bf16 %v9927_v63 }
 0x342   :  { %v6545_v36 = vunpack.i.l.bf16 %v9927_v63  ;;  %v4186_v15 = vpack.c.bf16 %v4145_v19, %v4144_v4  ;;  %7048 = vrot.lane.b32.xlu0 %v7047_v55, %s7260_s29  ;;  %v10540_v47 = vsel %vm3904_vm8, %v10429_v13, %v6496_v17  ;;  %v4187_v54 = vpack.c.bf16 %v4147_v31, %v4146_v40  ;;  %v11959_v13 = vld [vmem:[#allocation54_spill] sm:$0xff] }
 0x343   :  { %v6821_v52 = vunpack.i.h.bf16 %v10500_v59  ;;  %v6820_v14 = vunpack.i.l.bf16 %v10500_v59  ;;  %v6831_v63 = vunpack.i.h.bf16 %v6829_v61  ;;  %v6830_v38 = vunpack.i.l.bf16 %v6829_v61 }
 0x344   :  { %v6816_v25 = vunpack.i.h.bf16 %v6814_v34  ;;  %v6815_v57 = vunpack.i.l.bf16 %v6814_v34  ;;  %5585 = vmatprep.mubr.msk.bf16.mxu1 %vm4232_vm13, %v4186_v15  ;;  %v3707_v22 = vsel %vm867_vm2, %v1082_v9, %v6475_v48  ;;  %v10547_v2 = vsel %vm867_vm2, %v1083_v7, %v6476_v32  ;;  %v6849_v32 = vpop.permute.xlu0 %6848  ;;  %v6824_v5 = vpop.permute.xlu1 %6823  ;;  %v11964_v15 = vld [vmem:[#allocation123_spill] sm:$0xff]  ;;  %v11965_v34 = vld [vmem:[#allocation134_spill] sm:$0xff] }
 0x345   :  { %v6480_v17 = vunpack.i.l.bf16 %v11959_v13  ;;  %v4019_v3 = vsel %vm3969_vm9, %v9921_v23, %v6541_v11  ;;  %5586 = vmatmul.mubr.msk.bf16.gmra.mxu1 %vm4232_vm13, %v4187_v54  ;;  %v4018_v59 = vsel %vm3969_vm9, %v9918_v10, %v6540_v39  ;;  %v6551_v12 = vunpack.i.h.bf16 %v9857_v50  ;;  %v11961_v11 = vld [vmem:[#allocation69_spill] sm:$0xff]  ;;  %v11962_v39 = vld [vmem:[#allocation72_spill] sm:$0xff] }
 0x346   :  { %v4021_v43 = vsel %vm3969_vm9, %v9967_v26, %v6546_v46  ;;  %v4020_v20 = vsel %vm3969_vm9, %v9957_v33, %v6545_v36  ;;  %v6826_v23 = vunpack.i.h.bf16 %v6824_v5  ;;  %v6825_v6 = vunpack.i.l.bf16 %v6824_v5  ;;  %v11963_v46 = vld [vmem:[#allocation122_spill] sm:$0xff] }
 0x347   :  { %v4085_v30 = vsel %vm4034_vm11, %v4020_v20, %v6820_v14  ;;  %v4086_v27 = vsel %vm4034_vm11, %v4021_v43, %v6821_v52  ;;  %v4084_v53 = vsel %vm4034_vm11, %v4019_v3, %v6816_v25  ;;  %v4083_v21 = vsel %vm4034_vm11, %v4018_v59, %v6815_v57 }
 0x348   :  { %v4150_v49 = vsel %vm4099_vm12, %v4085_v30, %v6830_v38  ;;  %v4151_v10 = vsel %vm4099_vm12, %v4086_v27, %v6831_v63  ;;  %v6481_v26 = vunpack.i.h.bf16 %v11959_v13  ;;  %v6550_v33 = vunpack.i.l.bf16 %v9857_v50 }
 0x349   :  { %v4148_v56 = vsel %vm4099_vm12, %v4083_v21, %v6825_v6  ;;  %v4149_v61 = vsel %vm4099_vm12, %v4084_v53, %v6826_v23  ;;  %v10571_v51 = vsel %vm3709_vm5, %v3707_v22, %v6480_v17  ;;  %v6556_v16 = vunpack.i.h.bf16 %v11960_v42  ;;  %v6859_v8 = vpop.permute.xlu0 %6858 }
 0x34a   :  { %v6555_v60 = vunpack.i.l.bf16 %v11960_v42  ;;  %v4188_v41 = vpack.c.bf16 %v4149_v61, %v4148_v56  ;;  %v6834_v40 = vpop.permute.xlu1 %6833  ;;  %v4023_v58 = vsel %vm3969_vm9, %v9998_v24, %v6551_v12  ;;  %v4189_v37 = vpack.c.bf16 %v4151_v10, %v4150_v49  ;;  %v11966_v42 = vld [vmem:[#allocation63_spill] sm:$0xff] }
 0x34b   :  { %v6841_v50 = vunpack.i.h.bf16 %v10533_v28  ;;  %v6840_v31 = vunpack.i.l.bf16 %v10533_v28  ;;  %v6851_v45 = vunpack.i.h.bf16 %v6849_v32  ;;  %v6850_v1 = vunpack.i.l.bf16 %v6849_v32 }
 0x34c   :  { %v6836_v55 = vunpack.i.h.bf16 %v6834_v40  ;;  %v6835_v48 = vunpack.i.l.bf16 %v6834_v40  ;;  %5589 = vmatprep.mubr.msk.bf16.mxu1 %vm4232_vm13, %v4188_v41  ;;  %v4022_v29 = vsel %vm3969_vm9, %v9995_v62, %v6550_v33  ;;  %v6561_v4 = vunpack.i.h.bf16 %v11961_v11 }
 0x34d   :  { %v6560_v19 = vunpack.i.l.bf16 %v11961_v11  ;;  %v6571_v24 = vunpack.i.h.bf16 %v11962_v39  ;;  %5590 = vmatmul.mubr.msk.bf16.gmra.mxu1 %vm4232_vm13, %v4189_v37  ;;  %v4025_v36 = vsel %vm3969_vm9, %v11963_v46, %v6556_v16  ;;  %v4024_v28 = vsel %vm3969_vm9, %v11964_v15, %v6555_v60  ;;  %v6869_v14 = vpop.permute.xlu0 %6868  ;;  %v11967_v11 = vld [vmem:[#allocation58_spill] sm:$0xff] }
 0x34e   :  { %v6566_v54 = vunpack.i.h.bf16 %v11965_v34  ;;  %v6565_v52 = vunpack.i.l.bf16 %v11965_v34  ;;  %v6844_v62 = vpop.permute.xlu1 %6843  ;;  %v4089_v9 = vsel %vm4034_vm11, %v4024_v28, %v6840_v31  ;;  %v4090_v7 = vsel %vm4034_vm11, %v4025_v36, %v6841_v50  ;;  %v11968_v34 = vld [vmem:[#allocation129_spill] sm:$0xff] }
 0x34f   :  { %v6846_v63 = vunpack.i.h.bf16 %v6844_v62  ;;  %v6845_v38 = vunpack.i.l.bf16 %v6844_v62  ;;  %v4154_v25 = vsel %vm4099_vm12, %v4089_v9, %v6850_v1  ;;  %v4155_v57 = vsel %vm4099_vm12, %v4090_v7, %v6851_v45 }
 0x350   :  { %v4088_v22 = vsel %vm4034_vm11, %v4023_v58, %v6836_v55  ;;  %v4087_v13 = vsel %vm4034_vm11, %v4022_v29, %v6835_v48  ;;  %v6861_v17 = vunpack.i.h.bf16 %v6859_v8  ;;  %v6860_v3 = vunpack.i.l.bf16 %v6859_v8 }
 0x351   :  { %v4152_v59 = vsel %vm4099_vm12, %v4087_v13, %v6845_v38  ;;  %v4153_v12 = vsel %vm4099_vm12, %v4088_v22, %v6846_v63  ;;  %v6570_v43 = vunpack.i.l.bf16 %v11962_v39  ;;  %v6871_v20 = vunpack.i.h.bf16 %v6869_v14  ;;  %v6879_v30 = vpop.permute.xlu0 %6878  ;;  %v11969_v63 = vld [vmem:[#allocation128_spill] sm:$0xff] }
 0x352   :  { %v6870_v32 = vunpack.i.l.bf16 %v6869_v14  ;;  %v4190_v5 = vpack.c.bf16 %v4153_v12, %v4152_v59  ;;  %v6854_v27 = vpop.permute.xlu1 %6853  ;;  %v3773_v23 = vsel %vm3709_vm5, %v10547_v2, %v6481_v26  ;;  %v4029_v6 = vsel %vm3969_vm9, %v10465_v35, %v6566_v54 }
 0x353   :  { %v4028_v49 = vsel %vm3969_vm9, %v10438_v0, %v6565_v52  ;;  %v4191_v10 = vpack.c.bf16 %v4155_v57, %v4154_v25  ;;  %v6881_v53 = vunpack.i.h.bf16 %v6879_v30  ;;  %v6880_v21 = vunpack.i.l.bf16 %v6879_v30 }
 0x354   :  { %v6856_v33 = vunpack.i.h.bf16 %v6854_v27  ;;  %v6855_v56 = vunpack.i.l.bf16 %v6854_v27  ;;  %5593 = vmatprep.mubr.msk.bf16.mxu1 %vm4232_vm13, %v4190_v5  ;;  %v4027_v61 = vsel %vm3969_vm9, %v10177_v44, %v6561_v4  ;;  %v4026_v16 = vsel %vm3969_vm9, %v11966_v42, %v6560_v19 }
 0x355   :  { %v4093_v2 = vsel %vm4034_vm11, %v4028_v49, %v6860_v3  ;;  %v4094_v35 = vsel %vm4034_vm11, %v4029_v6, %v6861_v17  ;;  %5594 = vmatmul.mubr.msk.bf16.gmra.mxu1 %vm4232_vm13, %v4191_v10  ;;  %v4030_v0 = vsel %vm3969_vm9, %v10496_v18, %v6570_v43  ;;  %v4031_v26 = vsel %vm3969_vm9, %v10540_v47, %v6571_v24  ;;  %v6889_v44 = vpop.permute.xlu0 %6888  ;;  %v10655_v6 = vld [vmem:[%s11051_s5] ss:$0 sm:$0xff] }
 0x356   :  { %v4158_v60 = vsel %vm4099_vm12, %v4093_v2, %v6870_v32  ;;  %v4159_v41 = vsel %vm4099_vm12, %v4094_v35, %v6871_v20  ;;  %v6864_v8 = vpop.permute.xlu1 %6863  ;;  %v6891_v40 = vunpack.i.h.bf16 %v6889_v44  ;;  %v6890_v58 = vunpack.i.l.bf16 %v6889_v44 }
 0x357   :  { %v6866_v37 = vunpack.i.h.bf16 %v6864_v8  ;;  %v6865_v50 = vunpack.i.l.bf16 %v6864_v8  ;;  %v4095_v31 = vsel %vm4034_vm11, %v4030_v0, %v6880_v21  ;;  %v4096_v45 = vsel %vm4034_vm11, %v4031_v26, %v6881_v53  ;;  %v10660_v53 = vld [vmem:[%s11052_s6] ss:$0 sm:$0xff] }
 0x358   :  { %v4092_v1 = vsel %vm4034_vm11, %v4027_v61, %v6856_v33  ;;  %v4091_v18 = vsel %vm4034_vm11, %v4026_v16, %v6855_v56  ;;  %v4160_v47 = vsel %vm4099_vm12, %v4095_v31, %v6890_v58  ;;  %v4161_v55 = vsel %vm4099_vm12, %v4096_v45, %v6891_v40 }
 0x359   :  { %v4156_v48 = vsel %vm4099_vm12, %v4091_v18, %v6865_v50  ;;  %v4157_v29 = vsel %vm4099_vm12, %v4092_v1, %v6866_v37  ;;  %v6461_v4 = vunpack.i.h.bf16 %v11967_v11  ;;  %v6460_v19 = vunpack.i.l.bf16 %v11967_v11  ;;  %v6899_v21 = vpop.permute.xlu0 %6898 }
 0x35a   :  { %v4192_v39 = vpack.c.bf16 %v4157_v29, %v4156_v48  ;;  %v6874_v24 = vpop.permute.xlu1 %6873  ;;  %v4193_v46 = vpack.c.bf16 %v4159_v41, %v4158_v60  ;;  %v4194_v28 = vpack.c.bf16 %v4161_v55, %v4160_v47  ;;  %v6466_v54 = vunpack.i.h.bf16 %v11968_v34 }
 0x35b   :  { %v3837_v36 = vsel %vm3774_vm6, %v10571_v51, %v6460_v19  ;;  %v3838_v15 = vsel %vm3774_vm6, %v3773_v23, %v6461_v4  ;;  %v6465_v52 = vunpack.i.l.bf16 %v11968_v34  ;;  %v6876_v62 = vunpack.i.h.bf16 %v6874_v24 }
 0x35c   :  { %5597 = vmatprep.mubr.msk.bf16.mxu1 %vm4232_vm13, %v4192_v39  ;;  %v6875_v9 = vunpack.i.l.bf16 %v6874_v24  ;;  %v3903_v51 = vsel %vm3839_vm7, %v3838_v15, %v6466_v54  ;;  %v6471_v38 = vunpack.i.h.bf16 %v11969_v63  ;;  %v6470_v25 = vunpack.i.l.bf16 %v11969_v63 }
 0x35d   :  { %5598 = vmatmul.mubr.msk.bf16.gmra.mxu1 %vm4232_vm13, %v4193_v46  ;;  %v3902_v7 = vsel %vm3839_vm7, %v3837_v36, %v6465_v52  ;;  %v6909_v58 = vpop.permute.xlu0 %6908 }
 0x35e   :  { %v6884_v14 = vpop.permute.xlu1 %6883  ;;  %5601 = vmatprep.mubr.msk.bf16.mxu1 %vm4232_vm13, %v4194_v28  ;;  %v3967_v13 = vsel %vm3904_vm8, %v3902_v7, %v6470_v25  ;;  %v3968_v17 = vsel %vm3904_vm8, %v3903_v51, %v6471_v38 }
 0x35f   :  { %v6886_v57 = vunpack.i.h.bf16 %v6884_v14  ;;  %v6885_v22 = vunpack.i.l.bf16 %v6884_v14  ;;  %v4032_v59 = vsel %vm3969_vm9, %v3967_v13, %v6875_v9  ;;  %v4033_v12 = vsel %vm3969_vm9, %v3968_v17, %v6876_v62 }
 0x361   :  { %v4097_v32 = vsel %vm4034_vm11, %v4032_v59, %v6885_v22  ;;  %v4098_v5 = vsel %vm4034_vm11, %v4033_v12, %v6886_v57  ;;  %v6919_v52 = vpop.permute.xlu0 %6918 }
 0x362   :  { %v6894_v3 = vpop.permute.xlu1 %6893 }
 0x363   :  { %v6896_v43 = vunpack.i.h.bf16 %v6894_v3  ;;  %v6895_v20 = vunpack.i.l.bf16 %v6894_v3 }
 0x365   :  { %v4162_v30 = vsel %vm4099_vm12, %v4097_v32, %v6895_v20  ;;  %v4163_v27 = vsel %vm4099_vm12, %v4098_v5, %v6896_v43 }
 0x366   :  { %v4195_v23 = vpack.c.bf16 %v4163_v27, %v4162_v30  ;;  %v6904_v49 = vpop.permute.xlu1 %6903 }
 0x368   :  { %5602 = vmatmul.mubr.msk.bf16.gmra.mxu1 %vm4232_vm13, %v4195_v23  ;;  %v6929_v23 = vpop.permute.xlu0 %6928 }
 0x36a   :  { %v6914_v26 = vpop.permute.xlu1 %6913 }
 0x36e   :  { %v6924_v46 = vpop.permute.xlu1 %6923 }
 0x372   :  { %v6934_v43 = vpop.permute.xlu1 %6933 }
 0x3aa   :  { %v5543_v10 = vpop.f32.mrf.mxu1 }
 0x3ab   :  { %v4631_v33 = vmul.f32 %v5543_v10, %v10655_v6 }
 0x3ac   :  { %v4367_v56 = vpop.f32.mrf.mxu1 }
 0x3ad   :  { %v4702_v61 = vadd.f32 %v10660_v53, %v4631_v33  ;;  %v4629_v42 = vmul.f32 %v10655_v6, %v4367_v56 }
 0x3ae   :  { %v5544_v16 = vpop.f32.mrf.mxu1 }
 0x3af   :  { %v7187_v2 = vadd.low.f32.bf16 %v4702_v61, %v6904_v49  ;;  %v4700_v35 = vadd.f32 %v10660_v53, %v4629_v42  ;;  %v4632_v0 = vmul.f32 %v5544_v16, %v10655_v6 }
 0x3b0   :  { %v4370_v60 = vpop.f32.mrf.mxu1 }
 0x3b1   :  { %v5150_v41 = vmax.f32 %v7187_v2, 0.0  ;;  %v7188_v44 = vadd.low.f32.bf16 %v4700_v35, %v6899_v21  ;;  %v4703_v8 = vadd.f32 %v10660_v53, %v4632_v0  ;;  %v4630_v40 = vmul.f32 %v10655_v6, %v4370_v60 }
 0x3b2   :  { %v5547_v37 = vpop.f32.mrf.mxu1 }
 0x3b3   :  { %5215 = vst.msk [vmem:[%s11053_s7 + $0x10] sm:$0xff] %vm5212_vm14, %v5150_v41  ;;  %v5148_v50 = vmax.f32 %v7188_v44, 0.0  ;;  %v7189_v31 = vadd.high.f32.bf16 %v4703_v8, %v6904_v49  ;;  %v4701_v45 = vadd.f32 %v10660_v53, %v4630_v40  ;;  %v4635_v1 = vmul.f32 %v5547_v37, %v10655_v6  ;;  %v6944_v8 = vpop.permute.xlu1 %6943 }
 0x3b4   :  { %v4383_v18 = vpop.f32.mrf.mxu1 }
 0x3b5   :  { %5213 = vst.msk [vmem:[%s11053_s7] sm:$0xff] %vm5212_vm14, %v5148_v50  ;;  %v5151_v47 = vmax.f32 %v7189_v31, 0.0  ;;  %v7190_v55 = vadd.high.f32.bf16 %v4701_v45, %v6899_v21  ;;  %v4706_v48 = vadd.f32 %v10660_v53, %v4635_v1  ;;  %v4633_v29 = vmul.f32 %v10655_v6, %v4383_v18  ;;  %v6939_v45 = vpop.permute.xlu0 %6938 }
 0x3b6   :  { %v5548_v11 = vpop.f32.mrf.mxu1 }
 0x3b7   :  { %5216 = vst.msk [vmem:[%s11053_s7 + $0x18] sm:$0xff] %vm5212_vm14, %v5151_v47  ;;  %v5149_v4 = vmax.f32 %v7190_v55, 0.0  ;;  %v7191_v19 = vadd.low.f32.bf16 %v4706_v48, %v6914_v26  ;;  %v4704_v39 = vadd.f32 %v10660_v53, %v4633_v29  ;;  %v4636_v24 = vmul.f32 %v5548_v11, %v10655_v6 }
 0x3b8   :  { %v4386_v36 = vpop.f32.mrf.mxu1 }
 0x3b9   :  { %5214 = vst.msk [vmem:[%s11053_s7 + $0x8] sm:$0xff] %vm5212_vm14, %v5149_v4  ;;  %v5154_v15 = vmax.f32 %v7191_v19, 0.0  ;;  %v7192_v28 = vadd.low.f32.bf16 %v4704_v39, %v6909_v58  ;;  %v4707_v34 = vadd.f32 %v10660_v53, %v4636_v24  ;;  %v4634_v54 = vmul.f32 %v10655_v6, %v4386_v36 }
 0x3ba   :  { %v5551_v14 = vpop.f32.mrf.mxu1 }
 0x3bb   :  { %5219 = vst.msk [vmem:[%s11053_s7 + $0x30] sm:$0xff] %vm5212_vm14, %v5154_v15  ;;  %v5152_v62 = vmax.f32 %v7192_v28, 0.0  ;;  %v7193_v9 = vadd.high.f32.bf16 %v4707_v34, %v6914_v26  ;;  %v4705_v7 = vadd.f32 %v10660_v53, %v4634_v54  ;;  %v4639_v51 = vmul.f32 %v5551_v14, %v10655_v6  ;;  %v6954_v34 = vpop.permute.xlu1 %6953 }
 0x3bc   :  { %v4399_v63 = vpop.f32.mrf.mxu1 }
 0x3bd   :  { %5217 = vst.msk [vmem:[%s11053_s7 + $0x20] sm:$0xff] %vm5212_vm14, %v5152_v62  ;;  %v5155_v38 = vmax.f32 %v7193_v9, 0.0  ;;  %v7194_v25 = vadd.high.f32.bf16 %v4705_v7, %v6909_v58  ;;  %v4710_v57 = vadd.f32 %v10660_v53, %v4639_v51  ;;  %v4637_v22 = vmul.f32 %v10655_v6, %v4399_v63  ;;  %v6949_v7 = vpop.permute.xlu0 %6948 }
 0x3be   :  { %v5552_v13 = vpop.f32.mrf.mxu1 }
 0x3bf   :  { %5220 = vst.msk [vmem:[%s11053_s7 + $0x38] sm:$0xff] %vm5212_vm14, %v5155_v38  ;;  %v5153_v17 = vmax.f32 %v7194_v25, 0.0  ;;  %v7195_v3 = vadd.low.f32.bf16 %v4710_v57, %v6924_v46  ;;  %v4708_v59 = vadd.f32 %v10660_v53, %v4637_v22  ;;  %v4640_v12 = vmul.f32 %v5552_v13, %v10655_v6 }
 0x3c0   :  { %v4402_v20 = vpop.f32.mrf.mxu1 }
 0x3c1   :  { %5218 = vst.msk [vmem:[%s11053_s7 + $0x28] sm:$0xff] %vm5212_vm14, %v5153_v17  ;;  %v5158_v32 = vmax.f32 %v7195_v3, 0.0  ;;  %v7196_v5 = vadd.low.f32.bf16 %v4708_v59, %v6919_v52  ;;  %v4711_v30 = vadd.f32 %v10660_v53, %v4640_v12  ;;  %v4638_v27 = vmul.f32 %v10655_v6, %v4402_v20 }
 0x3c3   :  { %v5555_v49 = vpop.f32.mrf.mxu1  ;;  %5223 = vst.msk [vmem:[%s11053_s7 + $0x50] sm:$0xff] %vm5212_vm14, %v5158_v32  ;;  %v5156_v10 = vmax.f32 %v7196_v5, 0.0  ;;  %v7197_v21 = vadd.high.f32.bf16 %v4711_v30, %v6924_v46  ;;  %v4709_v33 = vadd.f32 %v10660_v53, %v4638_v27  ;;  %v6964_v30 = vpop.permute.xlu1 %6963 }
 0x3c4   :  { %v4643_v56 = vmul.f32 %v5555_v49, %v10655_v6 }
 0x3c5   :  { %v4415_v61 = vpop.f32.mrf.mxu1  ;;  %5221 = vst.msk [vmem:[%s11053_s7 + $0x40] sm:$0xff] %vm5212_vm14, %v5156_v10  ;;  %v5159_v42 = vmax.f32 %v7197_v21, 0.0  ;;  %v7198_v16 = vadd.high.f32.bf16 %v4709_v33, %v6919_v52  ;;  %v6959_v33 = vpop.permute.xlu0 %6958 }
 0x3c6   :  { %v4714_v2 = vadd.f32 %v10660_v53, %v4643_v56  ;;  %v4641_v35 = vmul.f32 %v10655_v6, %v4415_v61 }
 0x3c7   :  { %v5556_v0 = vpop.f32.mrf.mxu1  ;;  %5224 = vst.msk [vmem:[%s11053_s7 + $0x58] sm:$0xff] %vm5212_vm14, %v5159_v42  ;;  %v5157_v26 = vmax.f32 %v7198_v16, 0.0 }
 0x3c8   :  { %v7199_v60 = vadd.low.f32.bf16 %v4714_v2, %v6934_v43  ;;  %v4712_v41 = vadd.f32 %v10660_v53, %v4641_v35  ;;  %v4644_v44 = vmul.f32 %v5556_v0, %v10655_v6 }
 0x3c9   :  { %v4418_v40 = vpop.f32.mrf.mxu1  ;;  %5222 = vst.msk [vmem:[%s11053_s7 + $0x48] sm:$0xff] %vm5212_vm14, %v5157_v26 }
 0x3ca   :  { %v5162_v58 = vmax.f32 %v7199_v60, 0.0  ;;  %v7200_v37 = vadd.low.f32.bf16 %v4712_v41, %v6929_v23  ;;  %v4715_v50 = vadd.f32 %v10660_v53, %v4644_v44  ;;  %v4642_v31 = vmul.f32 %v10655_v6, %v4418_v40 }
 0x3cb   :  { %v5559_v1 = vpop.f32.mrf.mxu1 }
 0x3cc   :  { %5227 = vst.msk [vmem:[%s11053_s7 + $0x70] sm:$0xff] %vm5212_vm14, %v5162_v58  ;;  %v5160_v18 = vmax.f32 %v7200_v37, 0.0  ;;  %v7201_v47 = vadd.high.f32.bf16 %v4715_v50, %v6934_v43  ;;  %v4713_v55 = vadd.f32 %v10660_v53, %v4642_v31  ;;  %v4647_v48 = vmul.f32 %v5559_v1, %v10655_v6  ;;  %v6974_v50 = vpop.permute.xlu1 %6973 }
 0x3cd   :  { %v4431_v29 = vpop.f32.mrf.mxu1 }
 0x3ce   :  { %5225 = vst.msk [vmem:[%s11053_s7 + $0x60] sm:$0xff] %vm5212_vm14, %v5160_v18  ;;  %v5163_v11 = vmax.f32 %v7201_v47, 0.0  ;;  %v7202_v4 = vadd.high.f32.bf16 %v4713_v55, %v6929_v23  ;;  %v4718_v19 = vadd.f32 %v10660_v53, %v4647_v48  ;;  %v4645_v39 = vmul.f32 %v10655_v6, %v4431_v29  ;;  %v6969_v55 = vpop.permute.xlu0 %6968 }
 0x3cf   :  { %v5560_v24 = vpop.f32.mrf.mxu1 }
 0x3d0   :  { %5228 = vst.msk [vmem:[%s11053_s7 + $0x78] sm:$0xff] %vm5212_vm14, %v5163_v11  ;;  %v5161_v46 = vmax.f32 %v7202_v4, 0.0  ;;  %v7203_v36 = vadd.low.f32.bf16 %v4718_v19, %v6944_v8  ;;  %v4716_v15 = vadd.f32 %v10660_v53, %v4645_v39  ;;  %v4648_v28 = vmul.f32 %v5560_v24, %v10655_v6 }
 0x3d1   :  { %v4434_v54 = vpop.f32.mrf.mxu1 }
 0x3d2   :  { %5226 = vst.msk [vmem:[%s11053_s7 + $0x68] sm:$0xff] %vm5212_vm14, %v5161_v46  ;;  %v5166_v52 = vmax.f32 %v7203_v36, 0.0  ;;  %v7204_v14 = vadd.low.f32.bf16 %v4716_v15, %v6939_v45  ;;  %v4719_v62 = vadd.f32 %v10660_v53, %v4648_v28  ;;  %v4646_v9 = vmul.f32 %v10655_v6, %v4434_v54 }
 0x3d3   :  { %v5563_v51 = vpop.f32.mrf.mxu1 }
 0x3d4   :  { %5231 = vst.msk [vmem:[%s11053_s7 + $0x90] sm:$0xff] %vm5212_vm14, %v5166_v52  ;;  %v5164_v63 = vmax.f32 %v7204_v14, 0.0  ;;  %v7205_v38 = vadd.high.f32.bf16 %v4719_v62, %v6944_v8  ;;  %v4717_v25 = vadd.f32 %v10660_v53, %v4646_v9  ;;  %v4651_v57 = vmul.f32 %v5563_v51, %v10655_v6  ;;  %v6984_v62 = vpop.permute.xlu1 %6983 }
 0x3d5   :  { %v4447_v22 = vpop.f32.mrf.mxu1 }
 0x3d6   :  { %5229 = vst.msk [vmem:[%s11053_s7 + $0x80] sm:$0xff] %vm5212_vm14, %v5164_v63  ;;  %v5167_v13 = vmax.f32 %v7205_v38, 0.0  ;;  %v7206_v17 = vadd.high.f32.bf16 %v4717_v25, %v6939_v45  ;;  %v4722_v3 = vadd.f32 %v10660_v53, %v4651_v57  ;;  %v4649_v59 = vmul.f32 %v10655_v6, %v4447_v22  ;;  %v6979_v25 = vpop.permute.xlu0 %6978 }
 0x3d7   :  { %v5564_v12 = vpop.f32.mrf.mxu1 }
 0x3d8   :  { %5232 = vst.msk [vmem:[%s11053_s7 + $0x98] sm:$0xff] %vm5212_vm14, %v5167_v13  ;;  %v5165_v43 = vmax.f32 %v7206_v17, 0.0  ;;  %v7207_v20 = vadd.low.f32.bf16 %v4722_v3, %v6954_v34  ;;  %v4720_v32 = vadd.f32 %v10660_v53, %v4649_v59  ;;  %v4652_v5 = vmul.f32 %v5564_v12, %v10655_v6 }
 0x3d9   :  { %v4450_v27 = vpop.f32.mrf.mxu1 }
 0x3da   :  { %5230 = vst.msk [vmem:[%s11053_s7 + $0x88] sm:$0xff] %vm5212_vm14, %v5165_v43  ;;  %v5170_v23 = vmax.f32 %v7207_v20, 0.0  ;;  %v7208_v49 = vadd.low.f32.bf16 %v4720_v32, %v6949_v7  ;;  %v4723_v10 = vadd.f32 %v10660_v53, %v4652_v5  ;;  %v4650_v21 = vmul.f32 %v10655_v6, %v4450_v27 }
 0x3db   :  { %v5567_v56 = vpop.f32.mrf.mxu1 }
 0x3dc   :  { %5235 = vst.msk [vmem:[%s11053_s7 + $0xb0] sm:$0xff] %vm5212_vm14, %v5170_v23  ;;  %v5168_v61 = vmax.f32 %v7208_v49, 0.0  ;;  %v7209_v42 = vadd.high.f32.bf16 %v4723_v10, %v6954_v34  ;;  %v4721_v16 = vadd.f32 %v10660_v53, %v4650_v21  ;;  %v4655_v2 = vmul.f32 %v5567_v56, %v10655_v6  ;;  %v6994_v10 = vpop.permute.xlu1 %6993 }
 0x3dd   :  { %v4463_v35 = vpop.f32.mrf.mxu1 }
 0x3de   :  { %5233 = vst.msk [vmem:[%s11053_s7 + $0xa0] sm:$0xff] %vm5212_vm14, %v5168_v61  ;;  %v5171_v0 = vmax.f32 %v7209_v42, 0.0  ;;  %v7210_v26 = vadd.high.f32.bf16 %v4721_v16, %v6949_v7  ;;  %v4726_v60 = vadd.f32 %v10660_v53, %v4655_v2  ;;  %v4653_v41 = vmul.f32 %v10655_v6, %v4463_v35  ;;  %v6989_v16 = vpop.permute.xlu0 %6988 }
 0x3df   :  { %v5568_v44 = vpop.f32.mrf.mxu1 }
 0x3e0   :  { %5236 = vst.msk [vmem:[%s11053_s7 + $0xb8] sm:$0xff] %vm5212_vm14, %v5171_v0  ;;  %v5169_v8 = vmax.f32 %v7210_v26, 0.0  ;;  %v7211_v40 = vadd.low.f32.bf16 %v4726_v60, %v6964_v30  ;;  %v4724_v58 = vadd.f32 %v10660_v53, %v4653_v41  ;;  %v4656_v37 = vmul.f32 %v5568_v44, %v10655_v6 }
 0x3e1   :  { %v4466_v31 = vpop.f32.mrf.mxu1 }
 0x3e2   :  { %5234 = vst.msk [vmem:[%s11053_s7 + $0xa8] sm:$0xff] %vm5212_vm14, %v5169_v8  ;;  %v5174_v45 = vmax.f32 %v7211_v40, 0.0  ;;  %v7212_v1 = vadd.low.f32.bf16 %v4724_v58, %v6959_v33  ;;  %v4727_v18 = vadd.f32 %v10660_v53, %v4656_v37  ;;  %v4654_v47 = vmul.f32 %v10655_v6, %v4466_v31 }
 0x3e4   :  { %v5571_v48 = vpop.f32.mrf.mxu1  ;;  %5239 = vst.msk [vmem:[%s11053_s7 + $0xd0] sm:$0xff] %vm5212_vm14, %v5174_v45  ;;  %v5172_v29 = vmax.f32 %v7212_v1, 0.0  ;;  %v7213_v11 = vadd.high.f32.bf16 %v4727_v18, %v6964_v30  ;;  %v4725_v4 = vadd.f32 %v10660_v53, %v4654_v47  ;;  %v7004_v18 = vpop.permute.xlu1 %7003 }
 0x3e5   :  { %v4659_v19 = vmul.f32 %v5571_v48, %v10655_v6 }
 0x3e6   :  { %v4479_v39 = vpop.f32.mrf.mxu1  ;;  %5237 = vst.msk [vmem:[%s11053_s7 + $0xc0] sm:$0xff] %vm5212_vm14, %v5172_v29  ;;  %v5175_v24 = vmax.f32 %v7213_v11, 0.0  ;;  %v7214_v46 = vadd.high.f32.bf16 %v4725_v4, %v6959_v33  ;;  %v6999_v4 = vpop.permute.xlu0 %6998 }
 0x3e7   :  { %v4730_v36 = vadd.f32 %v10660_v53, %v4659_v19  ;;  %v4657_v15 = vmul.f32 %v10655_v6, %v4479_v39 }
 0x3e8   :  { %v5572_v28 = vpop.f32.mrf.mxu1  ;;  %5240 = vst.msk [vmem:[%s11053_s7 + $0xd8] sm:$0xff] %vm5212_vm14, %v5175_v24  ;;  %v5173_v34 = vmax.f32 %v7214_v46, 0.0 }
 0x3e9   :  { %v7215_v54 = vadd.low.f32.bf16 %v4730_v36, %v6974_v50  ;;  %v4728_v52 = vadd.f32 %v10660_v53, %v4657_v15  ;;  %v4660_v14 = vmul.f32 %v5572_v28, %v10655_v6 }
 0x3ea   :  { %v4482_v9 = vpop.f32.mrf.mxu1  ;;  %5238 = vst.msk [vmem:[%s11053_s7 + $0xc8] sm:$0xff] %vm5212_vm14, %v5173_v34 }
 0x3eb   :  { %v5178_v7 = vmax.f32 %v7215_v54, 0.0  ;;  %v7216_v51 = vadd.low.f32.bf16 %v4728_v52, %v6969_v55  ;;  %v4731_v63 = vadd.f32 %v10660_v53, %v4660_v14  ;;  %v4658_v38 = vmul.f32 %v10655_v6, %v4482_v9 }
 0x3ec   :  { %v5575_v57 = vpop.f32.mrf.mxu1 }
 0x3ed   :  { %5243 = vst.msk [vmem:[%s11053_s7 + $0xf0] sm:$0xff] %vm5212_vm14, %v5178_v7  ;;  %v5176_v22 = vmax.f32 %v7216_v51, 0.0  ;;  %v7217_v13 = vadd.high.f32.bf16 %v4731_v63, %v6974_v50  ;;  %v4729_v17 = vadd.f32 %v10660_v53, %v4658_v38  ;;  %v4663_v3 = vmul.f32 %v5575_v57, %v10655_v6  ;;  %v7014_v63 = vpop.permute.xlu1 %7013 }
 0x3ee   :  { %v4495_v59 = vpop.f32.mrf.mxu1 }
 0x3ef   :  { %5241 = vst.msk [vmem:[%s11053_s7 + $0xe0] sm:$0xff] %vm5212_vm14, %v5176_v22  ;;  %v5179_v12 = vmax.f32 %v7217_v13, 0.0  ;;  %v7218_v43 = vadd.high.f32.bf16 %v4729_v17, %v6969_v55  ;;  %v4734_v20 = vadd.f32 %v10660_v53, %v4663_v3  ;;  %v4661_v32 = vmul.f32 %v10655_v6, %v4495_v59  ;;  %v7009_v17 = vpop.permute.xlu0 %7008 }
 0x3f0   :  { %v5576_v5 = vpop.f32.mrf.mxu1 }
 0x3f1   :  { %5244 = vst.msk [vmem:[%s11053_s7 + $0xf8] sm:$0xff] %vm5212_vm14, %v5179_v12  ;;  %v5177_v30 = vmax.f32 %v7218_v43, 0.0  ;;  %v7219_v27 = vadd.low.f32.bf16 %v4734_v20, %v6984_v62  ;;  %v4732_v23 = vadd.f32 %v10660_v53, %v4661_v32  ;;  %v4664_v49 = vmul.f32 %v5576_v5, %v10655_v6 }
 0x3f2   :  { %v4498_v21 = vpop.f32.mrf.mxu1 }
 0x3f3   :  { %5242 = vst.msk [vmem:[%s11053_s7 + $0xe8] sm:$0xff] %vm5212_vm14, %v5177_v30  ;;  %v5182_v33 = vmax.f32 %v7219_v27, 0.0  ;;  %v7220_v56 = vadd.low.f32.bf16 %v4732_v23, %v6979_v25  ;;  %v4735_v61 = vadd.f32 %v10660_v53, %v4664_v49  ;;  %v4662_v42 = vmul.f32 %v10655_v6, %v4498_v21 }
 0x3f5   :  { %v5579_v2 = vpop.f32.mrf.mxu1  ;;  %5247 = vst.msk [vmem:[%s11053_s7 + $0x110] sm:$0xff] %vm5212_vm14, %v5182_v33  ;;  %v5180_v35 = vmax.f32 %v7220_v56, 0.0  ;;  %v7221_v0 = vadd.high.f32.bf16 %v4735_v61, %v6984_v62  ;;  %v4733_v26 = vadd.f32 %v10660_v53, %v4662_v42  ;;  %v7024_v61 = vpop.permute.xlu1 %7023 }
 0x3f6   :  { %v4667_v60 = vmul.f32 %v5579_v2, %v10655_v6 }
 0x3f7   :  { %v4511_v41 = vpop.f32.mrf.mxu1  ;;  %5245 = vst.msk [vmem:[%s11053_s7 + $0x100] sm:$0xff] %vm5212_vm14, %v5180_v35  ;;  %v5183_v44 = vmax.f32 %v7221_v0, 0.0  ;;  %v7222_v8 = vadd.high.f32.bf16 %v4733_v26, %v6979_v25  ;;  %v7019_v26 = vpop.permute.xlu0 %7018 }
 0x3f8   :  { %v4738_v40 = vadd.f32 %v10660_v53, %v4667_v60  ;;  %v4665_v58 = vmul.f32 %v10655_v6, %v4511_v41 }
 0x3f9   :  { %v5580_v37 = vpop.f32.mrf.mxu1  ;;  %5248 = vst.msk [vmem:[%s11053_s7 + $0x118] sm:$0xff] %vm5212_vm14, %v5183_v44  ;;  %v5181_v50 = vmax.f32 %v7222_v8, 0.0 }
 0x3fa   :  { %v7223_v31 = vadd.low.f32.bf16 %v4738_v40, %v6994_v10  ;;  %v4736_v45 = vadd.f32 %v10660_v53, %v4665_v58  ;;  %v4668_v1 = vmul.f32 %v5580_v37, %v10655_v6 }
 0x3fb   :  { %v4514_v47 = vpop.f32.mrf.mxu1  ;;  %5246 = vst.msk [vmem:[%s11053_s7 + $0x108] sm:$0xff] %vm5212_vm14, %v5181_v50 }
 0x3fc   :  { %v5186_v55 = vmax.f32 %v7223_v31, 0.0  ;;  %v7224_v48 = vadd.low.f32.bf16 %v4736_v45, %v6989_v16  ;;  %v4739_v29 = vadd.f32 %v10660_v53, %v4668_v1  ;;  %v4666_v11 = vmul.f32 %v10655_v6, %v4514_v47 }
 0x3fd   :  { %v5583_v19 = vpop.f32.mrf.mxu1 }
 0x3fe   :  { %5251 = vst.msk [vmem:[%s11053_s7 + $0x130] sm:$0xff] %vm5212_vm14, %v5186_v55  ;;  %v5184_v39 = vmax.f32 %v7224_v48, 0.0  ;;  %v7225_v24 = vadd.high.f32.bf16 %v4739_v29, %v6994_v10  ;;  %v4737_v46 = vadd.f32 %v10660_v53, %v4666_v11  ;;  %v4671_v36 = vmul.f32 %v5583_v19, %v10655_v6  ;;  %v7034_v29 = vpop.permute.xlu1 %7033 }
 0x3ff   :  { %v4527_v15 = vpop.f32.mrf.mxu1 }
 0x400   :  { %5249 = vst.msk [vmem:[%s11053_s7 + $0x120] sm:$0xff] %vm5212_vm14, %v5184_v39  ;;  %v5187_v28 = vmax.f32 %v7225_v24, 0.0  ;;  %v7226_v34 = vadd.high.f32.bf16 %v4737_v46, %v6989_v16  ;;  %v4742_v54 = vadd.f32 %v10660_v53, %v4671_v36  ;;  %v4669_v52 = vmul.f32 %v10655_v6, %v4527_v15  ;;  %v7029_v46 = vpop.permute.xlu0 %7028 }
 0x401   :  { %v5584_v14 = vpop.f32.mrf.mxu1 }
 0x402   :  { %5252 = vst.msk [vmem:[%s11053_s7 + $0x138] sm:$0xff] %vm5212_vm14, %v5187_v28  ;;  %v5185_v62 = vmax.f32 %v7226_v34, 0.0  ;;  %v7227_v9 = vadd.low.f32.bf16 %v4742_v54, %v7004_v18  ;;  %v4740_v7 = vadd.f32 %v10660_v53, %v4669_v52  ;;  %v4672_v51 = vmul.f32 %v5584_v14, %v10655_v6 }
 0x403   :  { %v4530_v38 = vpop.f32.mrf.mxu1 }
 0x404   :  { %5250 = vst.msk [vmem:[%s11053_s7 + $0x128] sm:$0xff] %vm5212_vm14, %v5185_v62  ;;  %v5190_v25 = vmax.f32 %v7227_v9, 0.0  ;;  %v7228_v57 = vadd.low.f32.bf16 %v4740_v7, %v6999_v4  ;;  %v4743_v22 = vadd.f32 %v10660_v53, %v4672_v51  ;;  %v4670_v13 = vmul.f32 %v10655_v6, %v4530_v38 }
 0x405   :  { %v5587_v3 = vpop.f32.mrf.mxu1 }
 0x406   :  { %5255 = vst.msk [vmem:[%s11053_s7 + $0x150] sm:$0xff] %vm5212_vm14, %v5190_v25  ;;  %v5188_v59 = vmax.f32 %v7228_v57, 0.0  ;;  %v7229_v12 = vadd.high.f32.bf16 %v4743_v22, %v7004_v18  ;;  %v4741_v43 = vadd.f32 %v10660_v53, %v4670_v13  ;;  %v4675_v20 = vmul.f32 %v5587_v3, %v10655_v6  ;;  %v7044_v22 = vpop.permute.xlu1 %7043 }
 0x407   :  { %v4543_v32 = vpop.f32.mrf.mxu1 }
 0x408   :  { %5253 = vst.msk [vmem:[%s11053_s7 + $0x140] sm:$0xff] %vm5212_vm14, %v5188_v59  ;;  %v5191_v5 = vmax.f32 %v7229_v12, 0.0  ;;  %v7230_v30 = vadd.high.f32.bf16 %v4741_v43, %v6999_v4  ;;  %v4746_v27 = vadd.f32 %v10660_v53, %v4675_v20  ;;  %v4673_v23 = vmul.f32 %v10655_v6, %v4543_v32  ;;  %v7039_v43 = vpop.permute.xlu0 %7038 }
 0x409   :  { %v5588_v49 = vpop.f32.mrf.mxu1 }
 0x40a   :  { %5256 = vst.msk [vmem:[%s11053_s7 + $0x158] sm:$0xff] %vm5212_vm14, %v5191_v5  ;;  %v5189_v10 = vmax.f32 %v7230_v30, 0.0  ;;  %v7231_v21 = vadd.low.f32.bf16 %v4746_v27, %v7014_v63  ;;  %v4744_v33 = vadd.f32 %v10660_v53, %v4673_v23  ;;  %v4676_v56 = vmul.f32 %v5588_v49, %v10655_v6 }
 0x40b   :  { %v4546_v42 = vpop.f32.mrf.mxu1 }
 0x40c   :  { %5254 = vst.msk [vmem:[%s11053_s7 + $0x148] sm:$0xff] %vm5212_vm14, %v5189_v10  ;;  %v5194_v16 = vmax.f32 %v7231_v21, 0.0  ;;  %v7232_v2 = vadd.low.f32.bf16 %v4744_v33, %v7009_v17  ;;  %v4747_v35 = vadd.f32 %v10660_v53, %v4676_v56  ;;  %v4674_v0 = vmul.f32 %v10655_v6, %v4546_v42 }
 0x40d   :  { %v5591_v60 = vpop.f32.mrf.mxu1 }
 0x40e   :  { %5259 = vst.msk [vmem:[%s11053_s7 + $0x170] sm:$0xff] %vm5212_vm14, %v5194_v16  ;;  %v5192_v41 = vmax.f32 %v7232_v2, 0.0  ;;  %v7233_v44 = vadd.high.f32.bf16 %v4747_v35, %v7014_v63  ;;  %v4745_v8 = vadd.f32 %v10660_v53, %v4674_v0  ;;  %v4679_v40 = vmul.f32 %v5591_v60, %v10655_v6 }
 0x40f   :  { %v4559_v58 = vpop.f32.mrf.mxu1 }
 0x410   :  { %5257 = vst.msk [vmem:[%s11053_s7 + $0x160] sm:$0xff] %vm5212_vm14, %v5192_v41  ;;  %v5195_v37 = vmax.f32 %v7233_v44, 0.0  ;;  %v7234_v50 = vadd.high.f32.bf16 %v4745_v8, %v7009_v17  ;;  %v4750_v31 = vadd.f32 %v10660_v53, %v4679_v40  ;;  %v4677_v45 = vmul.f32 %v10655_v6, %v4559_v58  ;;  %v7054_v58 = vpop.permute.xlu1 %7053 }
 0x411   :  { %v5592_v1 = vpop.f32.mrf.mxu1 }
 0x412   :  { %5260 = vst.msk [vmem:[%s11053_s7 + $0x178] sm:$0xff] %vm5212_vm14, %v5195_v37  ;;  %v5193_v18 = vmax.f32 %v7234_v50, 0.0  ;;  %v7235_v47 = vadd.low.f32.bf16 %v4750_v31, %v7024_v61  ;;  %v4748_v55 = vadd.f32 %v10660_v53, %v4677_v45  ;;  %v4680_v48 = vmul.f32 %v5592_v1, %v10655_v6  ;;  %v7049_v45 = vpop.permute.xlu0 %7048 }
 0x413   :  { %v4562_v11 = vpop.f32.mrf.mxu1 }
 0x414   :  { %5258 = vst.msk [vmem:[%s11053_s7 + $0x168] sm:$0xff] %vm5212_vm14, %v5193_v18  ;;  %v5198_v4 = vmax.f32 %v7235_v47, 0.0  ;;  %v7236_v19 = vadd.low.f32.bf16 %v4748_v55, %v7019_v26  ;;  %v4751_v39 = vadd.f32 %v10660_v53, %v4680_v48  ;;  %v4678_v24 = vmul.f32 %v10655_v6, %v4562_v11 }
 0x415   :  { %v5595_v36 = vpop.f32.mrf.mxu1 }
 0x416   :  { %5263 = vst.msk [vmem:[%s11053_s7 + $0x190] sm:$0xff] %vm5212_vm14, %v5198_v4  ;;  %v5196_v15 = vmax.f32 %v7236_v19, 0.0  ;;  %v7237_v28 = vadd.high.f32.bf16 %v4751_v39, %v7024_v61  ;;  %v4749_v34 = vadd.f32 %v10660_v53, %v4678_v24  ;;  %v4683_v54 = vmul.f32 %v5595_v36, %v10655_v6 }
 0x417   :  { %v4575_v52 = vpop.f32.mrf.mxu1 }
 0x418   :  { %5261 = vst.msk [vmem:[%s11053_s7 + $0x180] sm:$0xff] %vm5212_vm14, %v5196_v15  ;;  %v5199_v14 = vmax.f32 %v7237_v28, 0.0  ;;  %v7238_v62 = vadd.high.f32.bf16 %v4749_v34, %v7019_v26  ;;  %v4754_v9 = vadd.f32 %v10660_v53, %v4683_v54  ;;  %v4681_v7 = vmul.f32 %v10655_v6, %v4575_v52 }
 0x419   :  { %v5596_v51 = vpop.f32.mrf.mxu1 }
 0x41a   :  { %5264 = vst.msk [vmem:[%s11053_s7 + $0x198] sm:$0xff] %vm5212_vm14, %v5199_v14  ;;  %v5197_v63 = vmax.f32 %v7238_v62, 0.0  ;;  %v7239_v38 = vadd.low.f32.bf16 %v4754_v9, %v7034_v29  ;;  %v4752_v25 = vadd.f32 %v10660_v53, %v4681_v7  ;;  %v4684_v57 = vmul.f32 %v5596_v51, %v10655_v6 }
 0x41b   :  { %v4578_v13 = vpop.f32.mrf.mxu1 }
 0x41c   :  { %5262 = vst.msk [vmem:[%s11053_s7 + $0x188] sm:$0xff] %vm5212_vm14, %v5197_v63  ;;  %v5202_v17 = vmax.f32 %v7239_v38, 0.0  ;;  %v7240_v3 = vadd.low.f32.bf16 %v4752_v25, %v7029_v46  ;;  %v4755_v59 = vadd.f32 %v10660_v53, %v4684_v57  ;;  %v4682_v12 = vmul.f32 %v10655_v6, %v4578_v13 }
 0x41d   :  { %v5599_v20 = vpop.f32.mrf.mxu1 }
 0x41e   :  { %5267 = vst.msk [vmem:[%s11053_s7 + $0x1b0] sm:$0xff] %vm5212_vm14, %v5202_v17  ;;  %v5200_v32 = vmax.f32 %v7240_v3, 0.0  ;;  %v7241_v5 = vadd.high.f32.bf16 %v4755_v59, %v7034_v29  ;;  %v4753_v30 = vadd.f32 %v10660_v53, %v4682_v12  ;;  %v4687_v27 = vmul.f32 %v5599_v20, %v10655_v6 }
 0x41f   :  { %v4591_v23 = vpop.f32.mrf.mxu1 }
 0x420   :  { %5265 = vst.msk [vmem:[%s11053_s7 + $0x1a0] sm:$0xff] %vm5212_vm14, %v5200_v32  ;;  %v5203_v49 = vmax.f32 %v7241_v5, 0.0  ;;  %v7242_v10 = vadd.high.f32.bf16 %v4753_v30, %v7029_v46  ;;  %v4758_v21 = vadd.f32 %v10660_v53, %v4687_v27  ;;  %v4685_v33 = vmul.f32 %v10655_v6, %v4591_v23 }
 0x421   :  { %v5600_v56 = vpop.f32.mrf.mxu1 }
 0x422   :  { %5268 = vst.msk [vmem:[%s11053_s7 + $0x1b8] sm:$0xff] %vm5212_vm14, %v5203_v49  ;;  %v5201_v61 = vmax.f32 %v7242_v10, 0.0  ;;  %v7243_v42 = vadd.low.f32.bf16 %v4758_v21, %v7044_v22  ;;  %v4756_v16 = vadd.f32 %v10660_v53, %v4685_v33  ;;  %v4688_v2 = vmul.f32 %v5600_v56, %v10655_v6 }
 0x423   :  { %v4594_v35 = vpop.f32.mrf.mxu1 }
 0x424   :  { %5266 = vst.msk [vmem:[%s11053_s7 + $0x1a8] sm:$0xff] %vm5212_vm14, %v5201_v61  ;;  %v5206_v0 = vmax.f32 %v7243_v42, 0.0  ;;  %v7244_v26 = vadd.low.f32.bf16 %v4756_v16, %v7039_v43  ;;  %v4759_v60 = vadd.f32 %v10660_v53, %v4688_v2  ;;  %v4686_v41 = vmul.f32 %v10655_v6, %v4594_v35 }
 0x426   :  { %5271 = vst.msk [vmem:[%s11053_s7 + $0x1d0] sm:$0xff] %vm5212_vm14, %v5206_v0  ;;  %v5204_v44 = vmax.f32 %v7244_v26, 0.0  ;;  %v7245_v8 = vadd.high.f32.bf16 %v4759_v60, %v7044_v22  ;;  %v4757_v40 = vadd.f32 %v10660_v53, %v4686_v41 }
 0x428   :  { %5269 = vst.msk [vmem:[%s11053_s7 + $0x1c0] sm:$0xff] %vm5212_vm14, %v5204_v44  ;;  %v5207_v37 = vmax.f32 %v7245_v8, 0.0  ;;  %v7246_v50 = vadd.high.f32.bf16 %v4757_v40, %v7039_v43  ;;  %v5603_v31 = vpop.f32.mrf.mxu1 }
 0x429   :  { %v4691_v1 = vmul.f32 %v5603_v31, %v10655_v6 }
 0x42a   :  { %5272 = vst.msk [vmem:[%s11053_s7 + $0x1d8] sm:$0xff] %vm5212_vm14, %v5207_v37  ;;  %v5205_v18 = vmax.f32 %v7246_v50, 0.0  ;;  %v4607_v47 = vpop.f32.mrf.mxu1 }
 0x42b   :  { %v4762_v55 = vadd.f32 %v10660_v53, %v4691_v1  ;;  %v4689_v48 = vmul.f32 %v10655_v6, %v4607_v47 }
 0x42c   :  { %5270 = vst.msk [vmem:[%s11053_s7 + $0x1c8] sm:$0xff] %vm5212_vm14, %v5205_v18  ;;  %v5604_v29 = vpop.f32.mrf.mxu1 }
 0x42d   :  { %v7247_v11 = vadd.low.f32.bf16 %v4762_v55, %v7054_v58  ;;  %v4760_v4 = vadd.f32 %v10660_v53, %v4689_v48  ;;  %v4692_v19 = vmul.f32 %v5604_v29, %v10655_v6 }
 0x42e   :  { %v4610_v39 = vpop.f32.mrf.mxu1 }
 0x42f   :  { %v5210_v24 = vmax.f32 %v7247_v11, 0.0  ;;  %v7248_v46 = vadd.low.f32.bf16 %v4760_v4, %v7049_v45  ;;  %v4763_v36 = vadd.f32 %v10660_v53, %v4692_v19  ;;  %v4690_v15 = vmul.f32 %v10655_v6, %v4610_v39 }
 0x431   :  { %5275 = vst.msk [vmem:[%s11053_s7 + $0x1f0] sm:$0xff] %vm5212_vm14, %v5210_v24  ;;  %v5208_v28 = vmax.f32 %v7248_v46, 0.0  ;;  %v7249_v34 = vadd.high.f32.bf16 %v4763_v36, %v7054_v58  ;;  %v4761_v54 = vadd.f32 %v10660_v53, %v4690_v15 }
 0x433   :  { %5273 = vst.msk [vmem:[%s11053_s7 + $0x1e0] sm:$0xff] %vm5212_vm14, %v5208_v28  ;;  %v5211_v52 = vmax.f32 %v7249_v34, 0.0  ;;  %v7250_v14 = vadd.high.f32.bf16 %v4761_v54, %v7049_v45 }
 0x435   :  { %5276 = vst.msk [vmem:[%s11053_s7 + $0x1f8] sm:$0xff] %vm5212_vm14, %v5211_v52  ;;  %v5209_v6 = vmax.f32 %v7250_v14, 0.0 }
 0x437   :  { %5274 = vst.msk [vmem:[%s11053_s7 + $0x1e8] sm:$0xff] %vm5212_vm14, %v5209_v6 }

</bundles_post_ra>
